<compile_context>
chip_gen: v5e
topology: v5e:2x2
jax: 0.10.0
libtpu: 0.0.40
codegen_flags: <defaults>
</compile_context>

<pallas_src>
import jax
import jax.numpy as jnp
from jax import lax
from jax.experimental import pallas as pl
from jax.experimental.pallas import tpu as pltpu


def _round_up(x, m):
    return (x + m - 1) // m * m


def _pick_row_block(H, Wp, target=256):
    """Largest divisor of H whose chunk (RB*Wp rows) stays near the vreg-friendly target."""
    rb = 1
    for d in range(1, H + 1):
        if H % d == 0 and d * Wp <= target:
            rb = d
    return rb


def basic_block_kernel(x_ref, w1_ref, b1_ref, w2_ref, b2_ref, out_ref, mid_ref):
    """One image (one grid step) of the BasicBlock.

    x_ref   : ((H+3)*(W+2), Cp)  bf16, spatially padded (top 1, bottom 2, l/r 1),
                                 channel-padded, flattened row-major.
    w1_ref  : (9, Cp, Cp)        bf16 conv1 weights (tap-major, BN1 scale folded)
    b1_ref  : (1, Cp)            f32 folded BN1 bias
    w2_ref  : (9, Cp, Cp)        bf16 conv2 weights (BN2 scale folded)
    b2_ref  : (1, Cp)            f32 folded BN2 bias
    out_ref : (H, W, Cp)         f32 output block
    mid_ref : ((H+3)*(W+2), Cp)  bf16 scratch: spatially padded relu(bn1(conv1(x)))
    """
    H, W, Cp = out_ref.shape
    Wp = W + 2
    RB = _pick_row_block(H, Wp)      # output rows per chunk (divides H)
    M = RB * Wp                      # matmul M per chunk (contiguous slab rows)

    b1 = b1_ref[...]                 # (1, Cp) f32
    b2 = b2_ref[...]

    # Zero the parts of mid's padding that the masked chunk stores below do not
    # cover: top pad row + (row 1, col 0), and the tail of the bottom pad rows.
    # Done every grid step so the kernel stays correct when the "parallel" axis
    # is sharded across TensorCores (per-core scratch).  Cost: ~3 rows of W+2.
    mid_ref[pl.ds(0, Wp + 1), :] = jnp.zeros((Wp + 1, Cp), mid_ref.dtype)
    tail_start = (H + 1) * Wp + 1
    tail_len = mid_ref.shape[0] - tail_start
    mid_ref[pl.ds(tail_start, tail_len), :] = jnp.zeros((tail_len, Cp), mid_ref.dtype)

    # Slab positions m = j*Wp + t are real output pixels iff t < W; the rest land
    # on the pad columns of mid and must be stored as zero.
    col = lax.broadcasted_iota(jnp.int32, (M, 1), 0) % Wp
    valid = col < W

    def conv_chunk(src_ref, w_ref, base):
        """3x3 stride-1 conv for RB output rows: 9 shifted contiguous matmuls."""
        acc = None
        for ky in range(3):
            for kx in range(3):
                off = base + (ky - 1) * Wp + (kx - 1)          # static offset
                lhs = src_ref[pl.ds(off, M), :]                # (M, Cp) bf16, zero-copy window
                p = jnp.dot(lhs, w_ref[ky * 3 + kx],
                            preferred_element_type=jnp.float32)
                acc = p if acc is None else acc + p            # first tap '=', rest '+='
        return acc                                             # (M, Cp) f32, lives in vregs

    # ---- conv1 -> bn1 (scale folded, bias here) -> relu ----> mid (padded, bf16)
    for r0 in range(0, H, RB):
        base = (r0 + 1) * Wp + 1
        y1 = jnp.maximum(conv_chunk(x_ref, w1_ref, base) + b1, 0.0)
        # One contiguous store per chunk; pad columns get zeros via the mask.
        mid_ref[pl.ds(base, M), :] = jnp.where(valid, y1, 0.0).astype(mid_ref.dtype)

    # ---- conv2 -> bn2 -> + identity -> relu ----> out
    for r0 in range(0, H, RB):
        base = (r0 + 1) * Wp + 1
        identity = x_ref[pl.ds(base, M), :].astype(jnp.float32)   # residual, slab-aligned
        y2 = jnp.maximum(conv_chunk(mid_ref, w2_ref, base) + b2 + identity, 0.0)
        # Extract the W valid columns of each output row and store.
        for j in range(RB):
            out_ref[r0 + j, :, :] = y2[j * Wp:j * Wp + W, :].astype(out_ref.dtype)


def _fold_bn_into_conv(w, gamma, beta, mean, var, cp, eps=1e-5):
    """Fold inference-mode BN into the conv. Returns tap-major bf16 weights + f32 bias."""
    scale = gamma / jnp.sqrt(var + eps)                  # (Cout,)
    bias = beta - mean * scale                           # (Cout,)
    w = w * scale[:, None, None, None]                   # (Cout, Cin, 3, 3), BN scale folded
    cout, cin = w.shape[0], w.shape[1]
    wt = jnp.transpose(w, (2, 3, 1, 0))                  # (ky, kx, Cin, Cout)
    wt = jnp.pad(wt, ((0, 0), (0, 0), (0, cp - cin), (0, cp - cout)))
    wt = wt.reshape(9, cp, cp).astype(jnp.bfloat16)      # tap index t = ky*3 + kx
    b = jnp.pad(bias, (0, cp - cout)).reshape(1, cp).astype(jnp.float32)
    return wt, b


def _vmem_limit_bytes():
    """~75% of the chip's VMEM: ~96 MiB on v5e/v6e, ~48 MiB on v7x."""
    try:
        cap = pltpu.get_tpu_info().vmem_capacity_bytes
    except Exception:
        cap = 64 * 1024 * 1024
    return max(32 * 1024 * 1024, int(cap) * 3 // 4)


def basic_block_forward(x_nchw, params):
    """Wrapper: NCHW f32 -> padded bf16 NHWC slab -> Pallas kernel over batch -> NCHW f32."""
    w1, g1, be1, m1, v1, w2, g2, be2, m2, v2 = params
    N, Cin, H, W = x_nchw.shape
    C = w1.shape[0]
    assert Cin == C and w2.shape[0] == C, \
        "only the identity (stride=1, no-downsample) BasicBlock is supported"

    Cp = _round_up(C, 128)     # lane-dense channel count
    Wp = W + 2
    Mtot = (H + 3) * Wp        # +1 top pad, +1 bottom pad, +1 extra row so the
                               # shifted-slab windows never read out of bounds.

    # NCHW -> NHWC, bf16 cast, channel pad to 128 multiple, spatial pad, flatten.
    # XLA fuses transpose + cast + pads + reshape into one copy.
    x_nhwc = jnp.transpose(x_nchw, (0, 2, 3, 1)).astype(jnp.bfloat16)
    x_pad = jnp.pad(x_nhwc, ((0, 0), (1, 2), (1, 1), (0, Cp - C)))
    x_flat = x_pad.reshape(N, Mtot, Cp)

    w1t, b1 = _fold_bn_into_conv(w1, g1, be1, m1, v1, Cp)
    w2t, b2 = _fold_bn_into_conv(w2, g2, be2, m2, v2, Cp)

    grid_spec = pltpu.PrefetchScalarGridSpec(
        num_scalar_prefetch=0,
        grid=(N,),                                                  # one image per grid step
        in_specs=[
            pl.BlockSpec((None, Mtot, Cp), lambda n: (n, 0, 0)),    # padded input slab
            pl.BlockSpec((9, Cp, Cp), lambda n: (0, 0, 0)),         # w1 (same block every step)
            pl.BlockSpec((1, Cp), lambda n: (0, 0)),                # b1
            pl.BlockSpec((9, Cp, Cp), lambda n: (0, 0, 0)),         # w2
            pl.BlockSpec((1, Cp), lambda n: (0, 0)),                # b2
        ],
        out_specs=pl.BlockSpec((None, H, W, Cp), lambda n: (n, 0, 0, 0)),
        scratch_shapes=[
            pltpu.VMEM((Mtot, Cp), jnp.bfloat16),                   # padded conv1 output
        ],
    )

    out_p = pl.pallas_call(
        basic_block_kernel,
        out_shape=jax.ShapeDtypeStruct((N, H, W, Cp), jnp.float32),
        grid_spec=grid_spec,
        compiler_params=pltpu.CompilerParams(
            dimension_semantics=("parallel",),     # shard batch across TensorCores
            vmem_limit_bytes=_vmem_limit_bytes(),
        ),
    )(x_flat, w1t, b1, w2t, b2)

    return jnp.transpose(out_p[..., :C], (0, 3, 1, 2))   # strip channel padding, back to NCHW


# ------------------------- pure-JAX reference (NCHW) -------------------------
def basic_block_reference(x, params, eps=1e-5):
    w1, g1, be1, m1, v1, w2, g2, be2, m2, v2 = params

    def conv(x, w):
        return lax.conv_general_dilated(
            x, w, window_strides=(1, 1), padding=((1, 1), (1, 1)),
            dimension_numbers=('NCHW', 'OIHW', 'NCHW'))

    def bn(x, g, b, m, v):
        g, b, m, v = (t.reshape(1, -1, 1, 1) for t in (g, b, m, v))
        return (x - m) / jnp.sqrt(v + eps) * g + b

    out = jnp.maximum(bn(conv(x, w1), g1, be1, m1, v1), 0.0)
    out = bn(conv(out, w2), g2, be2, m2, v2)
    return jnp.maximum(out + x, 0.0)


if __name__ == "__main__":
    # Small shapes consistent with the module: inplanes == planes (no downsample).
    N, C, H, W = 2, 8, 16, 16
    key = jax.random.PRNGKey(0)
    keys = jax.random.split(key, 11)

    x = jax.random.normal(keys[0], (N, C, H, W), jnp.float32)

    # Deterministic synthetic parameters (conv weights, BN affine + running stats).
    w1 = 0.1 * jax.random.normal(keys[1], (C, C, 3, 3), jnp.float32)
    w2 = 0.1 * jax.random.normal(keys[2], (C, C, 3, 3), jnp.float32)
    g1 = 1.0 + 0.1 * jax.random.normal(keys[3], (C,), jnp.float32)
    be1 = 0.1 * jax.random.normal(keys[4], (C,), jnp.float32)
    m1 = 0.1 * jax.random.normal(keys[5], (C,), jnp.float32)
    v1 = jax.random.uniform(keys[6], (C,), jnp.float32, 0.5, 1.5)
    g2 = 1.0 + 0.1 * jax.random.normal(keys[7], (C,), jnp.float32)
    be2 = 0.1 * jax.random.normal(keys[8], (C,), jnp.float32)
    m2 = 0.1 * jax.random.normal(keys[9], (C,), jnp.float32)
    v2 = jax.random.uniform(keys[10], (C,), jnp.float32, 0.5, 1.5)

    params = (w1, g1, be1, m1, v1, w2, g2, be2, m2, v2)

    out = jax.block_until_ready(basic_block_forward(x, params))
    ref = basic_block_reference(x, params)

    assert out.shape == (N, C, H, W), out.shape
    err = float(jnp.max(jnp.abs(out - ref)))
    # bf16 MXU operands / bf16 identity (f32 accumulation) -> loosened tolerance.
    assert err < 6e-2, err

    print("KERNEL_OK")
</pallas_src>

<mosaic_0001>
module attributes {stable_mosaic.version = 11 : i64} {
  func.func @basic_block_kernel(%arg0: i32, %arg1: memref<1x342x128xbf16, #tpu.memory_space<vmem>>, %arg2: memref<9x128x128xbf16, #tpu.memory_space<vmem>>, %arg3: memref<1x128xf32, #tpu.memory_space<vmem>>, %arg4: memref<9x128x128xbf16, #tpu.memory_space<vmem>>, %arg5: memref<1x128xf32, #tpu.memory_space<vmem>>, %arg6: memref<1x16x16x128xf32, #tpu.memory_space<vmem>>, %arg7: memref<342x128xbf16, #tpu.memory_space<vmem>>) attributes {dimension_semantics = [#tpu.dimension_semantics<parallel>], iteration_bounds = array<i64: 2>, scalar_prefetch = 0 : i64, scratch_operands = 1 : i64, tpu.core_type = #tpu.core_type<tc>, window_params = [{transform_indices = @transform_0, window_bounds = array<i64: 1, 342, 128>}, {pipeline_mode = #tpu.pipeline_mode<synchronous>, transform_indices = @transform_1, window_bounds = array<i64: 9, 128, 128>}, {pipeline_mode = #tpu.pipeline_mode<synchronous>, transform_indices = @transform_2, window_bounds = array<i64: 1, 128>}, {pipeline_mode = #tpu.pipeline_mode<synchronous>, transform_indices = @transform_3, window_bounds = array<i64: 9, 128, 128>}, {pipeline_mode = #tpu.pipeline_mode<synchronous>, transform_indices = @transform_4, window_bounds = array<i64: 1, 128>}, {transform_indices = @transform_5, window_bounds = array<i64: 1, 16, 16, 128>}]} {
    %c0 = arith.constant 0 : index
    %c0_0 = arith.constant 0 : index
    %0 = vector.load %arg3[%c0, %c0_0] : memref<1x128xf32, #tpu.memory_space<vmem>>, vector<1x128xf32>
    %c0_1 = arith.constant 0 : index
    %c0_2 = arith.constant 0 : index
    %1 = vector.load %arg5[%c0_1, %c0_2] : memref<1x128xf32, #tpu.memory_space<vmem>>, vector<1x128xf32>
    %cst = arith.constant 0.000000e+00 : bf16
    %2 = vector.broadcast %cst : bf16 to vector<19x128xbf16>
    %c0_3 = arith.constant 0 : index
    %c0_4 = arith.constant 0 : index
    %3 = vector.load %arg7[%c0_3, %c0_4] : memref<342x128xbf16, #tpu.memory_space<vmem>>, vector<19x128xbf16>
    tpu.vector_store %arg7[%c0_3, %c0_4], %2 {strides = array<i32>} : memref<342x128xbf16, #tpu.memory_space<vmem>>, vector<19x128xbf16>,
    %cst_5 = arith.constant 0.000000e+00 : bf16
    %4 = vector.broadcast %cst_5 : bf16 to vector<35x128xbf16>
    %c307 = arith.constant 307 : index
    %c0_6 = arith.constant 0 : index
    %5 = vector.load %arg7[%c307, %c0_6] : memref<342x128xbf16, #tpu.memory_space<vmem>>, vector<35x128xbf16>
    tpu.vector_store %arg7[%c307, %c0_6], %4 {strides = array<i32>} : memref<342x128xbf16, #tpu.memory_space<vmem>>, vector<35x128xbf16>,
    %6 = tpu.iota {dimensions = array<i32: 0>} : vector<144x1xi32>
    %c18_i32 = arith.constant 18 : i32
    %c0_i32 = arith.constant 0 : i32
    %7 = arith.cmpi eq, %c18_i32, %c0_i32 : i32
    %c1_i32 = arith.constant 1 : i32
    %8 = arith.select %7, %c1_i32, %c18_i32 : i32
    %9 = vector.broadcast %8 : i32 to vector<144x1xi32>
    %10 = arith.remsi %6, %9 : vector<144x1xi32>
    %c0_i32_7 = arith.constant 0 : i32
    %11 = vector.broadcast %c0_i32_7 : i32 to vector<144x1xi32>
    %12 = arith.cmpi ne, %10, %11 : vector<144x1xi32>
    %c0_i32_8 = arith.constant 0 : i32
    %13 = vector.broadcast %c0_i32_8 : i32 to vector<144x1xi32>
    %14 = arith.cmpi slt, %10, %13 : vector<144x1xi32>
    %c0_i32_9 = arith.constant 0 : i32
    %15 = arith.cmpi slt, %8, %c0_i32_9 : i32
    %16 = vector.broadcast %15 : i1 to vector<144x1xi1>
    %17 = vector.broadcast %16 : vector<144x1xi1> to vector<144x1xi1>
    %18 = arith.xori %14, %17 : vector<144x1xi1>
    %19 = arith.andi %18, %12 : vector<144x1xi1>
    %20 = vector.broadcast %8 : i32 to vector<144x1xi32>
    %21 = arith.addi %10, %20 : vector<144x1xi32>
    %22 = arith.select %19, %21, %10 : vector<144x1xi1>, vector<144x1xi32>
    %c16_i32 = arith.constant 16 : i32
    %23 = vector.broadcast %c16_i32 : i32 to vector<144x1xi32>
    %24 = arith.cmpi slt, %22, %23 : vector<144x1xi32>
    %c0_10 = arith.constant 0 : index
    %c0_11 = arith.constant 0 : index
    %c0_12 = arith.constant 0 : index
    %25 = vector.load %arg1[%c0_10, %c0_11, %c0_12] : memref<1x342x128xbf16, #tpu.memory_space<vmem>>, vector<1x144x128xbf16>
    %26 = vector.shape_cast %25 : vector<1x144x128xbf16> to vector<144x128xbf16>
    %c0_13 = arith.constant 0 : index
    %c0_14 = arith.constant 0 : index
    %c0_15 = arith.constant 0 : index
    %27 = vector.load %arg2[%c0_13, %c0_14, %c0_15] : memref<9x128x128xbf16, #tpu.memory_space<vmem>>, vector<1x128x128xbf16>
    %28 = vector.shape_cast %27 : vector<1x128x128xbf16> to vector<128x128xbf16>
    %cst_16 = arith.constant dense<0.000000e+00> : vector<144x128xf32>
    %29 = tpu.matmul %26, %28, %cst_16 {dimension_numbers = #tpu.dot_dimension_numbers<[1], [0], [0], [1], [0, 0, 1, 1], [], []>} : vector<144x128xbf16>, vector<128x128xbf16>, vector<144x128xf32> -> vector<144x128xf32>
    %c0_17 = arith.constant 0 : index
    %c1 = arith.constant 1 : index
    %c0_18 = arith.constant 0 : index
    %30 = vector.load %arg1[%c0_17, %c1, %c0_18] : memref<1x342x128xbf16, #tpu.memory_space<vmem>>, vector<1x144x128xbf16>
    %31 = vector.shape_cast %30 : vector<1x144x128xbf16> to vector<144x128xbf16>
    %c1_19 = arith.constant 1 : index
    %c0_20 = arith.constant 0 : index
    %c0_21 = arith.constant 0 : index
    %32 = vector.load %arg2[%c1_19, %c0_20, %c0_21] : memref<9x128x128xbf16, #tpu.memory_space<vmem>>, vector<1x128x128xbf16>
    %33 = vector.shape_cast %32 : vector<1x128x128xbf16> to vector<128x128xbf16>
    %cst_22 = arith.constant dense<0.000000e+00> : vector<144x128xf32>
    %34 = tpu.matmul %31, %33, %cst_22 {dimension_numbers = #tpu.dot_dimension_numbers<[1], [0], [0], [1], [0, 0, 1, 1], [], []>} : vector<144x128xbf16>, vector<128x128xbf16>, vector<144x128xf32> -> vector<144x128xf32>
    %35 = arith.addf %29, %34 : vector<144x128xf32>
    %c0_23 = arith.constant 0 : index
    %c2 = arith.constant 2 : index
    %c0_24 = arith.constant 0 : index
    %36 = vector.load %arg1[%c0_23, %c2, %c0_24] : memref<1x342x128xbf16, #tpu.memory_space<vmem>>, vector<1x144x128xbf16>
    %37 = vector.shape_cast %36 : vector<1x144x128xbf16> to vector<144x128xbf16>
    %c2_25 = arith.constant 2 : index
    %c0_26 = arith.constant 0 : index
    %c0_27 = arith.constant 0 : index
    %38 = vector.load %arg2[%c2_25, %c0_26, %c0_27] : memref<9x128x128xbf16, #tpu.memory_space<vmem>>, vector<1x128x128xbf16>
    %39 = vector.shape_cast %38 : vector<1x128x128xbf16> to vector<128x128xbf16>
    %cst_28 = arith.constant dense<0.000000e+00> : vector<144x128xf32>
    %40 = tpu.matmul %37, %39, %cst_28 {dimension_numbers = #tpu.dot_dimension_numbers<[1], [0], [0], [1], [0, 0, 1, 1], [], []>} : vector<144x128xbf16>, vector<128x128xbf16>, vector<144x128xf32> -> vector<144x128xf32>
    %41 = arith.addf %35, %40 : vector<144x128xf32>
    %c0_29 = arith.constant 0 : index
    %c18 = arith.constant 18 : index
    %c0_30 = arith.constant 0 : index
    %42 = vector.load %arg1[%c0_29, %c18, %c0_30] : memref<1x342x128xbf16, #tpu.memory_space<vmem>>, vector<1x144x128xbf16>
    %43 = vector.shape_cast %42 : vector<1x144x128xbf16> to vector<144x128xbf16>
    %c3 = arith.constant 3 : index
    %c0_31 = arith.constant 0 : index
    %c0_32 = arith.constant 0 : index
    %44 = vector.load %arg2[%c3, %c0_31, %c0_32] : memref<9x128x128xbf16, #tpu.memory_space<vmem>>, vector<1x128x128xbf16>
    %45 = vector.shape_cast %44 : vector<1x128x128xbf16> to vector<128x128xbf16>
    %cst_33 = arith.constant dense<0.000000e+00> : vector<144x128xf32>
    %46 = tpu.matmul %43, %45, %cst_33 {dimension_numbers = #tpu.dot_dimension_numbers<[1], [0], [0], [1], [0, 0, 1, 1], [], []>} : vector<144x128xbf16>, vector<128x128xbf16>, vector<144x128xf32> -> vector<144x128xf32>
    %47 = arith.addf %41, %46 : vector<144x128xf32>
    %c0_34 = arith.constant 0 : index
    %c19 = arith.constant 19 : index
    %c0_35 = arith.constant 0 : index
    %48 = vector.load %arg1[%c0_34, %c19, %c0_35] : memref<1x342x128xbf16, #tpu.memory_space<vmem>>, vector<1x144x128xbf16>
    %49 = vector.shape_cast %48 : vector<1x144x128xbf16> to vector<144x128xbf16>
    %c4 = arith.constant 4 : index
    %c0_36 = arith.constant 0 : index
    %c0_37 = arith.constant 0 : index
    %50 = vector.load %arg2[%c4, %c0_36, %c0_37] : memref<9x128x128xbf16, #tpu.memory_space<vmem>>, vector<1x128x128xbf16>
    %51 = vector.shape_cast %50 : vector<1x128x128xbf16> to vector<128x128xbf16>
    %cst_38 = arith.constant dense<0.000000e+00> : vector<144x128xf32>
    %52 = tpu.matmul %49, %51, %cst_38 {dimension_numbers = #tpu.dot_dimension_numbers<[1], [0], [0], [1], [0, 0, 1, 1], [], []>} : vector<144x128xbf16>, vector<128x128xbf16>, vector<144x128xf32> -> vector<144x128xf32>
    %53 = arith.addf %47, %52 : vector<144x128xf32>
    %c0_39 = arith.constant 0 : index
    %c20 = arith.constant 20 : index
    %c0_40 = arith.constant 0 : index
    %54 = vector.load %arg1[%c0_39, %c20, %c0_40] : memref<1x342x128xbf16, #tpu.memory_space<vmem>>, vector<1x144x128xbf16>
    %55 = vector.shape_cast %54 : vector<1x144x128xbf16> to vector<144x128xbf16>
    %c5 = arith.constant 5 : index
    %c0_41 = arith.constant 0 : index
    %c0_42 = arith.constant 0 : index
    %56 = vector.load %arg2[%c5, %c0_41, %c0_42] : memref<9x128x128xbf16, #tpu.memory_space<vmem>>, vector<1x128x128xbf16>
    %57 = vector.shape_cast %56 : vector<1x128x128xbf16> to vector<128x128xbf16>
    %cst_43 = arith.constant dense<0.000000e+00> : vector<144x128xf32>
    %58 = tpu.matmul %55, %57, %cst_43 {dimension_numbers = #tpu.dot_dimension_numbers<[1], [0], [0], [1], [0, 0, 1, 1], [], []>} : vector<144x128xbf16>, vector<128x128xbf16>, vector<144x128xf32> -> vector<144x128xf32>
    %59 = arith.addf %53, %58 : vector<144x128xf32>
    %c0_44 = arith.constant 0 : index
    %c36 = arith.constant 36 : index
    %c0_45 = arith.constant 0 : index
    %60 = vector.load %arg1[%c0_44, %c36, %c0_45] : memref<1x342x128xbf16, #tpu.memory_space<vmem>>, vector<1x144x128xbf16>
    %61 = vector.shape_cast %60 : vector<1x144x128xbf16> to vector<144x128xbf16>
    %c6 = arith.constant 6 : index
    %c0_46 = arith.constant 0 : index
    %c0_47 = arith.constant 0 : index
    %62 = vector.load %arg2[%c6, %c0_46, %c0_47] : memref<9x128x128xbf16, #tpu.memory_space<vmem>>, vector<1x128x128xbf16>
    %63 = vector.shape_cast %62 : vector<1x128x128xbf16> to vector<128x128xbf16>
    %cst_48 = arith.constant dense<0.000000e+00> : vector<144x128xf32>
    %64 = tpu.matmul %61, %63, %cst_48 {dimension_numbers = #tpu.dot_dimension_numbers<[1], [0], [0], [1], [0, 0, 1, 1], [], []>} : vector<144x128xbf16>, vector<128x128xbf16>, vector<144x128xf32> -> vector<144x128xf32>
    %65 = arith.addf %59, %64 : vector<144x128xf32>
    %c0_49 = arith.constant 0 : index
    %c37 = arith.constant 37 : index
    %c0_50 = arith.constant 0 : index
    %66 = vector.load %arg1[%c0_49, %c37, %c0_50] : memref<1x342x128xbf16, #tpu.memory_space<vmem>>, vector<1x144x128xbf16>
    %67 = vector.shape_cast %66 : vector<1x144x128xbf16> to vector<144x128xbf16>
    %c7 = arith.constant 7 : index
    %c0_51 = arith.constant 0 : index
    %c0_52 = arith.constant 0 : index
    %68 = vector.load %arg2[%c7, %c0_51, %c0_52] : memref<9x128x128xbf16, #tpu.memory_space<vmem>>, vector<1x128x128xbf16>
    %69 = vector.shape_cast %68 : vector<1x128x128xbf16> to vector<128x128xbf16>
    %cst_53 = arith.constant dense<0.000000e+00> : vector<144x128xf32>
    %70 = tpu.matmul %67, %69, %cst_53 {dimension_numbers = #tpu.dot_dimension_numbers<[1], [0], [0], [1], [0, 0, 1, 1], [], []>} : vector<144x128xbf16>, vector<128x128xbf16>, vector<144x128xf32> -> vector<144x128xf32>
    %71 = arith.addf %65, %70 : vector<144x128xf32>
    %c0_54 = arith.constant 0 : index
    %c38 = arith.constant 38 : index
    %c0_55 = arith.constant 0 : index
    %72 = vector.load %arg1[%c0_54, %c38, %c0_55] : memref<1x342x128xbf16, #tpu.memory_space<vmem>>, vector<1x144x128xbf16>
    %73 = vector.shape_cast %72 : vector<1x144x128xbf16> to vector<144x128xbf16>
    %c8 = arith.constant 8 : index
    %c0_56 = arith.constant 0 : index
    %c0_57 = arith.constant 0 : index
    %74 = vector.load %arg2[%c8, %c0_56, %c0_57] : memref<9x128x128xbf16, #tpu.memory_space<vmem>>, vector<1x128x128xbf16>
    %75 = vector.shape_cast %74 : vector<1x128x128xbf16> to vector<128x128xbf16>
    %cst_58 = arith.constant dense<0.000000e+00> : vector<144x128xf32>
    %76 = tpu.matmul %73, %75, %cst_58 {dimension_numbers = #tpu.dot_dimension_numbers<[1], [0], [0], [1], [0, 0, 1, 1], [], []>} : vector<144x128xbf16>, vector<128x128xbf16>, vector<144x128xf32> -> vector<144x128xf32>
    %77 = arith.addf %71, %76 : vector<144x128xf32>
    %78 = vector.broadcast %0 : vector<1x128xf32> to vector<144x128xf32>
    %79 = arith.addf %77, %78 : vector<144x128xf32>
    %cst_59 = arith.constant 0.000000e+00 : f32
    %80 = vector.broadcast %cst_59 : f32 to vector<144x128xf32>
    %81 = arith.maximumf %79, %80 : vector<144x128xf32>
    %cst_60 = arith.constant 0.000000e+00 : f32
    %82 = vector.shape_cast %24 : vector<144x1xi1> to vector<144x1xi1>
    %83 = vector.broadcast %82 : vector<144x1xi1> to vector<144x128xi1>
    %84 = vector.broadcast %cst_60 : f32 to vector<144x128xf32>
    %85 = arith.select %83, %81, %84 : vector<144x128xi1>, vector<144x128xf32>
    %86 = arith.truncf %85 : vector<144x128xf32> to vector<144x128xbf16>
    %c19_61 = arith.constant 19 : index
    %c0_62 = arith.constant 0 : index
    %87 = vector.load %arg7[%c19_61, %c0_62] : memref<342x128xbf16, #tpu.memory_space<vmem>>, vector<144x128xbf16>
    tpu.vector_store %arg7[%c19_61, %c0_62], %86 {strides = array<i32>} : memref<342x128xbf16, #tpu.memory_space<vmem>>, vector<144x128xbf16>,
    %c0_63 = arith.constant 0 : index
    %c144 = arith.constant 144 : index
    %c0_64 = arith.constant 0 : index
    %88 = vector.load %arg1[%c0_63, %c144, %c0_64] : memref<1x342x128xbf16, #tpu.memory_space<vmem>>, vector<1x144x128xbf16>
    %89 = vector.shape_cast %88 : vector<1x144x128xbf16> to vector<144x128xbf16>
    %c0_65 = arith.constant 0 : index
    %c0_66 = arith.constant 0 : index
    %c0_67 = arith.constant 0 : index
    %90 = vector.load %arg2[%c0_65, %c0_66, %c0_67] : memref<9x128x128xbf16, #tpu.memory_space<vmem>>, vector<1x128x128xbf16>
    %91 = vector.shape_cast %90 : vector<1x128x128xbf16> to vector<128x128xbf16>
    %cst_68 = arith.constant dense<0.000000e+00> : vector<144x128xf32>
    %92 = tpu.matmul %89, %91, %cst_68 {dimension_numbers = #tpu.dot_dimension_numbers<[1], [0], [0], [1], [0, 0, 1, 1], [], []>} : vector<144x128xbf16>, vector<128x128xbf16>, vector<144x128xf32> -> vector<144x128xf32>
    %c0_69 = arith.constant 0 : index
    %c145 = arith.constant 145 : index
    %c0_70 = arith.constant 0 : index
    %93 = vector.load %arg1[%c0_69, %c145, %c0_70] : memref<1x342x128xbf16, #tpu.memory_space<vmem>>, vector<1x144x128xbf16>
    %94 = vector.shape_cast %93 : vector<1x144x128xbf16> to vector<144x128xbf16>
    %c1_71 = arith.constant 1 : index
    %c0_72 = arith.constant 0 : index
    %c0_73 = arith.constant 0 : index
    %95 = vector.load %arg2[%c1_71, %c0_72, %c0_73] : memref<9x128x128xbf16, #tpu.memory_space<vmem>>, vector<1x128x128xbf16>
    %96 = vector.shape_cast %95 : vector<1x128x128xbf16> to vector<128x128xbf16>
    %cst_74 = arith.constant dense<0.000000e+00> : vector<144x128xf32>
    %97 = tpu.matmul %94, %96, %cst_74 {dimension_numbers = #tpu.dot_dimension_numbers<[1], [0], [0], [1], [0, 0, 1, 1], [], []>} : vector<144x128xbf16>, vector<128x128xbf16>, vector<144x128xf32> -> vector<144x128xf32>
    %98 = arith.addf %92, %97 : vector<144x128xf32>
    %c0_75 = arith.constant 0 : index
    %c146 = arith.constant 146 : index
    %c0_76 = arith.constant 0 : index
    %99 = vector.load %arg1[%c0_75, %c146, %c0_76] : memref<1x342x128xbf16, #tpu.memory_space<vmem>>, vector<1x144x128xbf16>
    %100 = vector.shape_cast %99 : vector<1x144x128xbf16> to vector<144x128xbf16>
    %c2_77 = arith.constant 2 : index
    %c0_78 = arith.constant 0 : index
    %c0_79 = arith.constant 0 : index
    %101 = vector.load %arg2[%c2_77, %c0_78, %c0_79] : memref<9x128x128xbf16, #tpu.memory_space<vmem>>, vector<1x128x128xbf16>
    %102 = vector.shape_cast %101 : vector<1x128x128xbf16> to vector<128x128xbf16>
    %cst_80 = arith.constant dense<0.000000e+00> : vector<144x128xf32>
    %103 = tpu.matmul %100, %102, %cst_80 {dimension_numbers = #tpu.dot_dimension_numbers<[1], [0], [0], [1], [0, 0, 1, 1], [], []>} : vector<144x128xbf16>, vector<128x128xbf16>, vector<144x128xf32> -> vector<144x128xf32>
    %104 = arith.addf %98, %103 : vector<144x128xf32>
    %c0_81 = arith.constant 0 : index
    %c162 = arith.constant 162 : index
    %c0_82 = arith.constant 0 : index
    %105 = vector.load %arg1[%c0_81, %c162, %c0_82] : memref<1x342x128xbf16, #tpu.memory_space<vmem>>, vector<1x144x128xbf16>
    %106 = vector.shape_cast %105 : vector<1x144x128xbf16> to vector<144x128xbf16>
    %c3_83 = arith.constant 3 : index
    %c0_84 = arith.constant 0 : index
    %c0_85 = arith.constant 0 : index
    %107 = vector.load %arg2[%c3_83, %c0_84, %c0_85] : memref<9x128x128xbf16, #tpu.memory_space<vmem>>, vector<1x128x128xbf16>
    %108 = vector.shape_cast %107 : vector<1x128x128xbf16> to vector<128x128xbf16>
    %cst_86 = arith.constant dense<0.000000e+00> : vector<144x128xf32>
    %109 = tpu.matmul %106, %108, %cst_86 {dimension_numbers = #tpu.dot_dimension_numbers<[1], [0], [0], [1], [0, 0, 1, 1], [], []>} : vector<144x128xbf16>, vector<128x128xbf16>, vector<144x128xf32> -> vector<144x128xf32>
    %110 = arith.addf %104, %109 : vector<144x128xf32>
    %c0_87 = arith.constant 0 : index
    %c163 = arith.constant 163 : index
    %c0_88 = arith.constant 0 : index
    %111 = vector.load %arg1[%c0_87, %c163, %c0_88] : memref<1x342x128xbf16, #tpu.memory_space<vmem>>, vector<1x144x128xbf16>
    %112 = vector.shape_cast %111 : vector<1x144x128xbf16> to vector<144x128xbf16>
    %c4_89 = arith.constant 4 : index
    %c0_90 = arith.constant 0 : index
    %c0_91 = arith.constant 0 : index
    %113 = vector.load %arg2[%c4_89, %c0_90, %c0_91] : memref<9x128x128xbf16, #tpu.memory_space<vmem>>, vector<1x128x128xbf16>
    %114 = vector.shape_cast %113 : vector<1x128x128xbf16> to vector<128x128xbf16>
    %cst_92 = arith.constant dense<0.000000e+00> : vector<144x128xf32>
    %115 = tpu.matmul %112, %114, %cst_92 {dimension_numbers = #tpu.dot_dimension_numbers<[1], [0], [0], [1], [0, 0, 1, 1], [], []>} : vector<144x128xbf16>, vector<128x128xbf16>, vector<144x128xf32> -> vector<144x128xf32>
    %116 = arith.addf %110, %115 : vector<144x128xf32>
    %c0_93 = arith.constant 0 : index
    %c164 = arith.constant 164 : index
    %c0_94 = arith.constant 0 : index
    %117 = vector.load %arg1[%c0_93, %c164, %c0_94] : memref<1x342x128xbf16, #tpu.memory_space<vmem>>, vector<1x144x128xbf16>
    %118 = vector.shape_cast %117 : vector<1x144x128xbf16> to vector<144x128xbf16>
    %c5_95 = arith.constant 5 : index
    %c0_96 = arith.constant 0 : index
    %c0_97 = arith.constant 0 : index
    %119 = vector.load %arg2[%c5_95, %c0_96, %c0_97] : memref<9x128x128xbf16, #tpu.memory_space<vmem>>, vector<1x128x128xbf16>
    %120 = vector.shape_cast %119 : vector<1x128x128xbf16> to vector<128x128xbf16>
    %cst_98 = arith.constant dense<0.000000e+00> : vector<144x128xf32>
    %121 = tpu.matmul %118, %120, %cst_98 {dimension_numbers = #tpu.dot_dimension_numbers<[1], [0], [0], [1], [0, 0, 1, 1], [], []>} : vector<144x128xbf16>, vector<128x128xbf16>, vector<144x128xf32> -> vector<144x128xf32>
    %122 = arith.addf %116, %121 : vector<144x128xf32>
    %c0_99 = arith.constant 0 : index
    %c180 = arith.constant 180 : index
    %c0_100 = arith.constant 0 : index
    %123 = vector.load %arg1[%c0_99, %c180, %c0_100] : memref<1x342x128xbf16, #tpu.memory_space<vmem>>, vector<1x144x128xbf16>
    %124 = vector.shape_cast %123 : vector<1x144x128xbf16> to vector<144x128xbf16>
    %c6_101 = arith.constant 6 : index
    %c0_102 = arith.constant 0 : index
    %c0_103 = arith.constant 0 : index
    %125 = vector.load %arg2[%c6_101, %c0_102, %c0_103] : memref<9x128x128xbf16, #tpu.memory_space<vmem>>, vector<1x128x128xbf16>
    %126 = vector.shape_cast %125 : vector<1x128x128xbf16> to vector<128x128xbf16>
    %cst_104 = arith.constant dense<0.000000e+00> : vector<144x128xf32>
    %127 = tpu.matmul %124, %126, %cst_104 {dimension_numbers = #tpu.dot_dimension_numbers<[1], [0], [0], [1], [0, 0, 1, 1], [], []>} : vector<144x128xbf16>, vector<128x128xbf16>, vector<144x128xf32> -> vector<144x128xf32>
    %128 = arith.addf %122, %127 : vector<144x128xf32>
    %c0_105 = arith.constant 0 : index
    %c181 = arith.constant 181 : index
    %c0_106 = arith.constant 0 : index
    %129 = vector.load %arg1[%c0_105, %c181, %c0_106] : memref<1x342x128xbf16, #tpu.memory_space<vmem>>, vector<1x144x128xbf16>
    %130 = vector.shape_cast %129 : vector<1x144x128xbf16> to vector<144x128xbf16>
    %c7_107 = arith.constant 7 : index
    %c0_108 = arith.constant 0 : index
    %c0_109 = arith.constant 0 : index
    %131 = vector.load %arg2[%c7_107, %c0_108, %c0_109] : memref<9x128x128xbf16, #tpu.memory_space<vmem>>, vector<1x128x128xbf16>
    %132 = vector.shape_cast %131 : vector<1x128x128xbf16> to vector<128x128xbf16>
    %cst_110 = arith.constant dense<0.000000e+00> : vector<144x128xf32>
    %133 = tpu.matmul %130, %132, %cst_110 {dimension_numbers = #tpu.dot_dimension_numbers<[1], [0], [0], [1], [0, 0, 1, 1], [], []>} : vector<144x128xbf16>, vector<128x128xbf16>, vector<144x128xf32> -> vector<144x128xf32>
    %134 = arith.addf %128, %133 : vector<144x128xf32>
    %c0_111 = arith.constant 0 : index
    %c182 = arith.constant 182 : index
    %c0_112 = arith.constant 0 : index
    %135 = vector.load %arg1[%c0_111, %c182, %c0_112] : memref<1x342x128xbf16, #tpu.memory_space<vmem>>, vector<1x144x128xbf16>
    %136 = vector.shape_cast %135 : vector<1x144x128xbf16> to vector<144x128xbf16>
    %c8_113 = arith.constant 8 : index
    %c0_114 = arith.constant 0 : index
    %c0_115 = arith.constant 0 : index
    %137 = vector.load %arg2[%c8_113, %c0_114, %c0_115] : memref<9x128x128xbf16, #tpu.memory_space<vmem>>, vector<1x128x128xbf16>
    %138 = vector.shape_cast %137 : vector<1x128x128xbf16> to vector<128x128xbf16>
    %cst_116 = arith.constant dense<0.000000e+00> : vector<144x128xf32>
    %139 = tpu.matmul %136, %138, %cst_116 {dimension_numbers = #tpu.dot_dimension_numbers<[1], [0], [0], [1], [0, 0, 1, 1], [], []>} : vector<144x128xbf16>, vector<128x128xbf16>, vector<144x128xf32> -> vector<144x128xf32>
    %140 = arith.addf %134, %139 : vector<144x128xf32>
    %141 = vector.broadcast %0 : vector<1x128xf32> to vector<144x128xf32>
    %142 = arith.addf %140, %141 : vector<144x128xf32>
    %cst_117 = arith.constant 0.000000e+00 : f32
    %143 = vector.broadcast %cst_117 : f32 to vector<144x128xf32>
    %144 = arith.maximumf %142, %143 : vector<144x128xf32>
    %cst_118 = arith.constant 0.000000e+00 : f32
    %145 = vector.shape_cast %24 : vector<144x1xi1> to vector<144x1xi1>
    %146 = vector.broadcast %145 : vector<144x1xi1> to vector<144x128xi1>
    %147 = vector.broadcast %cst_118 : f32 to vector<144x128xf32>
    %148 = arith.select %146, %144, %147 : vector<144x128xi1>, vector<144x128xf32>
    %149 = arith.truncf %148 : vector<144x128xf32> to vector<144x128xbf16>
    %c163_119 = arith.constant 163 : index
    %c0_120 = arith.constant 0 : index
    %150 = vector.load %arg7[%c163_119, %c0_120] : memref<342x128xbf16, #tpu.memory_space<vmem>>, vector<144x128xbf16>
    tpu.vector_store %arg7[%c163_119, %c0_120], %149 {strides = array<i32>} : memref<342x128xbf16, #tpu.memory_space<vmem>>, vector<144x128xbf16>,
    %c0_121 = arith.constant 0 : index
    %c19_122 = arith.constant 19 : index
    %c0_123 = arith.constant 0 : index
    %151 = vector.load %arg1[%c0_121, %c19_122, %c0_123] : memref<1x342x128xbf16, #tpu.memory_space<vmem>>, vector<1x144x128xbf16>
    %152 = vector.shape_cast %151 : vector<1x144x128xbf16> to vector<144x128xbf16>
    %153 = arith.extf %152 : vector<144x128xbf16> to vector<144x128xf32>
    %c0_124 = arith.constant 0 : index
    %c0_125 = arith.constant 0 : index
    %154 = vector.load %arg7[%c0_124, %c0_125] : memref<342x128xbf16, #tpu.memory_space<vmem>>, vector<144x128xbf16>
    %c0_126 = arith.constant 0 : index
    %c0_127 = arith.constant 0 : index
    %c0_128 = arith.constant 0 : index
    %155 = vector.load %arg4[%c0_126, %c0_127, %c0_128] : memref<9x128x128xbf16, #tpu.memory_space<vmem>>, vector<1x128x128xbf16>
    %156 = vector.shape_cast %155 : vector<1x128x128xbf16> to vector<128x128xbf16>
    %cst_129 = arith.constant dense<0.000000e+00> : vector<144x128xf32>
    %157 = tpu.matmul %154, %156, %cst_129 {dimension_numbers = #tpu.dot_dimension_numbers<[1], [0], [0], [1], [0, 0, 1, 1], [], []>} : vector<144x128xbf16>, vector<128x128xbf16>, vector<144x128xf32> -> vector<144x128xf32>
    %c1_130 = arith.constant 1 : index
    %c0_131 = arith.constant 0 : index
    %158 = vector.load %arg7[%c1_130, %c0_131] : memref<342x128xbf16, #tpu.memory_space<vmem>>, vector<144x128xbf16>
    %c1_132 = arith.constant 1 : index
    %c0_133 = arith.constant 0 : index
    %c0_134 = arith.constant 0 : index
    %159 = vector.load %arg4[%c1_132, %c0_133, %c0_134] : memref<9x128x128xbf16, #tpu.memory_space<vmem>>, vector<1x128x128xbf16>
    %160 = vector.shape_cast %159 : vector<1x128x128xbf16> to vector<128x128xbf16>
    %cst_135 = arith.constant dense<0.000000e+00> : vector<144x128xf32>
    %161 = tpu.matmul %158, %160, %cst_135 {dimension_numbers = #tpu.dot_dimension_numbers<[1], [0], [0], [1], [0, 0, 1, 1], [], []>} : vector<144x128xbf16>, vector<128x128xbf16>, vector<144x128xf32> -> vector<144x128xf32>
    %162 = arith.addf %157, %161 : vector<144x128xf32>
    %c2_136 = arith.constant 2 : index
    %c0_137 = arith.constant 0 : index
    %163 = vector.load %arg7[%c2_136, %c0_137] : memref<342x128xbf16, #tpu.memory_space<vmem>>, vector<144x128xbf16>
    %c2_138 = arith.constant 2 : index
    %c0_139 = arith.constant 0 : index
    %c0_140 = arith.constant 0 : index
    %164 = vector.load %arg4[%c2_138, %c0_139, %c0_140] : memref<9x128x128xbf16, #tpu.memory_space<vmem>>, vector<1x128x128xbf16>
    %165 = vector.shape_cast %164 : vector<1x128x128xbf16> to vector<128x128xbf16>
    %cst_141 = arith.constant dense<0.000000e+00> : vector<144x128xf32>
    %166 = tpu.matmul %163, %165, %cst_141 {dimension_numbers = #tpu.dot_dimension_numbers<[1], [0], [0], [1], [0, 0, 1, 1], [], []>} : vector<144x128xbf16>, vector<128x128xbf16>, vector<144x128xf32> -> vector<144x128xf32>
    %167 = arith.addf %162, %166 : vector<144x128xf32>
    %c18_142 = arith.constant 18 : index
    %c0_143 = arith.constant 0 : index
    %168 = vector.load %arg7[%c18_142, %c0_143] : memref<342x128xbf16, #tpu.memory_space<vmem>>, vector<144x128xbf16>
    %c3_144 = arith.constant 3 : index
    %c0_145 = arith.constant 0 : index
    %c0_146 = arith.constant 0 : index
    %169 = vector.load %arg4[%c3_144, %c0_145, %c0_146] : memref<9x128x128xbf16, #tpu.memory_space<vmem>>, vector<1x128x128xbf16>
    %170 = vector.shape_cast %169 : vector<1x128x128xbf16> to vector<128x128xbf16>
    %cst_147 = arith.constant dense<0.000000e+00> : vector<144x128xf32>
    %171 = tpu.matmul %168, %170, %cst_147 {dimension_numbers = #tpu.dot_dimension_numbers<[1], [0], [0], [1], [0, 0, 1, 1], [], []>} : vector<144x128xbf16>, vector<128x128xbf16>, vector<144x128xf32> -> vector<144x128xf32>
    %172 = arith.addf %167, %171 : vector<144x128xf32>
    %c19_148 = arith.constant 19 : index
    %c0_149 = arith.constant 0 : index
    %173 = vector.load %arg7[%c19_148, %c0_149] : memref<342x128xbf16, #tpu.memory_space<vmem>>, vector<144x128xbf16>
    %c4_150 = arith.constant 4 : index
    %c0_151 = arith.constant 0 : index
    %c0_152 = arith.constant 0 : index
    %174 = vector.load %arg4[%c4_150, %c0_151, %c0_152] : memref<9x128x128xbf16, #tpu.memory_space<vmem>>, vector<1x128x128xbf16>
    %175 = vector.shape_cast %174 : vector<1x128x128xbf16> to vector<128x128xbf16>
    %cst_153 = arith.constant dense<0.000000e+00> : vector<144x128xf32>
    %176 = tpu.matmul %173, %175, %cst_153 {dimension_numbers = #tpu.dot_dimension_numbers<[1], [0], [0], [1], [0, 0, 1, 1], [], []>} : vector<144x128xbf16>, vector<128x128xbf16>, vector<144x128xf32> -> vector<144x128xf32>
    %177 = arith.addf %172, %176 : vector<144x128xf32>
    %c20_154 = arith.constant 20 : index
    %c0_155 = arith.constant 0 : index
    %178 = vector.load %arg7[%c20_154, %c0_155] : memref<342x128xbf16, #tpu.memory_space<vmem>>, vector<144x128xbf16>
    %c5_156 = arith.constant 5 : index
    %c0_157 = arith.constant 0 : index
    %c0_158 = arith.constant 0 : index
    %179 = vector.load %arg4[%c5_156, %c0_157, %c0_158] : memref<9x128x128xbf16, #tpu.memory_space<vmem>>, vector<1x128x128xbf16>
    %180 = vector.shape_cast %179 : vector<1x128x128xbf16> to vector<128x128xbf16>
    %cst_159 = arith.constant dense<0.000000e+00> : vector<144x128xf32>
    %181 = tpu.matmul %178, %180, %cst_159 {dimension_numbers = #tpu.dot_dimension_numbers<[1], [0], [0], [1], [0, 0, 1, 1], [], []>} : vector<144x128xbf16>, vector<128x128xbf16>, vector<144x128xf32> -> vector<144x128xf32>
    %182 = arith.addf %177, %181 : vector<144x128xf32>
    %c36_160 = arith.constant 36 : index
    %c0_161 = arith.constant 0 : index
    %183 = vector.load %arg7[%c36_160, %c0_161] : memref<342x128xbf16, #tpu.memory_space<vmem>>, vector<144x128xbf16>
    %c6_162 = arith.constant 6 : index
    %c0_163 = arith.constant 0 : index
    %c0_164 = arith.constant 0 : index
    %184 = vector.load %arg4[%c6_162, %c0_163, %c0_164] : memref<9x128x128xbf16, #tpu.memory_space<vmem>>, vector<1x128x128xbf16>
    %185 = vector.shape_cast %184 : vector<1x128x128xbf16> to vector<128x128xbf16>
    %cst_165 = arith.constant dense<0.000000e+00> : vector<144x128xf32>
    %186 = tpu.matmul %183, %185, %cst_165 {dimension_numbers = #tpu.dot_dimension_numbers<[1], [0], [0], [1], [0, 0, 1, 1], [], []>} : vector<144x128xbf16>, vector<128x128xbf16>, vector<144x128xf32> -> vector<144x128xf32>
    %187 = arith.addf %182, %186 : vector<144x128xf32>
    %c37_166 = arith.constant 37 : index
    %c0_167 = arith.constant 0 : index
    %188 = vector.load %arg7[%c37_166, %c0_167] : memref<342x128xbf16, #tpu.memory_space<vmem>>, vector<144x128xbf16>
    %c7_168 = arith.constant 7 : index
    %c0_169 = arith.constant 0 : index
    %c0_170 = arith.constant 0 : index
    %189 = vector.load %arg4[%c7_168, %c0_169, %c0_170] : memref<9x128x128xbf16, #tpu.memory_space<vmem>>, vector<1x128x128xbf16>
    %190 = vector.shape_cast %189 : vector<1x128x128xbf16> to vector<128x128xbf16>
    %cst_171 = arith.constant dense<0.000000e+00> : vector<144x128xf32>
    %191 = tpu.matmul %188, %190, %cst_171 {dimension_numbers = #tpu.dot_dimension_numbers<[1], [0], [0], [1], [0, 0, 1, 1], [], []>} : vector<144x128xbf16>, vector<128x128xbf16>, vector<144x128xf32> -> vector<144x128xf32>
    %192 = arith.addf %187, %191 : vector<144x128xf32>
    %c38_172 = arith.constant 38 : index
    %c0_173 = arith.constant 0 : index
    %193 = vector.load %arg7[%c38_172, %c0_173] : memref<342x128xbf16, #tpu.memory_space<vmem>>, vector<144x128xbf16>
    %c8_174 = arith.constant 8 : index
    %c0_175 = arith.constant 0 : index
    %c0_176 = arith.constant 0 : index
    %194 = vector.load %arg4[%c8_174, %c0_175, %c0_176] : memref<9x128x128xbf16, #tpu.memory_space<vmem>>, vector<1x128x128xbf16>
    %195 = vector.shape_cast %194 : vector<1x128x128xbf16> to vector<128x128xbf16>
    %cst_177 = arith.constant dense<0.000000e+00> : vector<144x128xf32>
    %196 = tpu.matmul %193, %195, %cst_177 {dimension_numbers = #tpu.dot_dimension_numbers<[1], [0], [0], [1], [0, 0, 1, 1], [], []>} : vector<144x128xbf16>, vector<128x128xbf16>, vector<144x128xf32> -> vector<144x128xf32>
    %197 = arith.addf %192, %196 : vector<144x128xf32>
    %198 = vector.broadcast %1 : vector<1x128xf32> to vector<144x128xf32>
    %199 = arith.addf %197, %198 : vector<144x128xf32>
    %200 = arith.addf %199, %153 : vector<144x128xf32>
    %cst_178 = arith.constant 0.000000e+00 : f32
    %201 = vector.broadcast %cst_178 : f32 to vector<144x128xf32>
    %202 = arith.maximumf %200, %201 : vector<144x128xf32>
    %203 = vector.extract_strided_slice %202 {offsets = [0, 0], sizes = [16, 128], strides = [1, 1]} : vector<144x128xf32> to vector<16x128xf32>
    %c0_179 = arith.constant 0 : index
    %c0_180 = arith.constant 0 : index
    %c0_181 = arith.constant 0 : index
    %c0_182 = arith.constant 0 : index
    %204 = vector.load %arg6[%c0_179, %c0_180, %c0_181, %c0_182] : memref<1x16x16x128xf32, #tpu.memory_space<vmem>>, vector<1x1x16x128xf32>
    %205 = vector.shape_cast %204 : vector<1x1x16x128xf32> to vector<16x128xf32>
    %206 = vector.shape_cast %203 : vector<16x128xf32> to vector<1x1x16x128xf32>
    tpu.vector_store %arg6[%c0_179, %c0_180, %c0_181, %c0_182], %206 {strides = array<i32>} : memref<1x16x16x128xf32, #tpu.memory_space<vmem>>, vector<1x1x16x128xf32>,
    %207 = vector.extract_strided_slice %202 {offsets = [18, 0], sizes = [16, 128], strides = [1, 1]} : vector<144x128xf32> to vector<16x128xf32>
    %c0_183 = arith.constant 0 : index
    %c1_184 = arith.constant 1 : index
    %c0_185 = arith.constant 0 : index
    %c0_186 = arith.constant 0 : index
    %208 = vector.load %arg6[%c0_183, %c1_184, %c0_185, %c0_186] : memref<1x16x16x128xf32, #tpu.memory_space<vmem>>, vector<1x1x16x128xf32>
    %209 = vector.shape_cast %208 : vector<1x1x16x128xf32> to vector<16x128xf32>
    %210 = vector.shape_cast %207 : vector<16x128xf32> to vector<1x1x16x128xf32>
    tpu.vector_store %arg6[%c0_183, %c1_184, %c0_185, %c0_186], %210 {strides = array<i32>} : memref<1x16x16x128xf32, #tpu.memory_space<vmem>>, vector<1x1x16x128xf32>,
    %211 = vector.extract_strided_slice %202 {offsets = [36, 0], sizes = [16, 128], strides = [1, 1]} : vector<144x128xf32> to vector<16x128xf32>
    %c0_187 = arith.constant 0 : index
    %c2_188 = arith.constant 2 : index
    %c0_189 = arith.constant 0 : index
    %c0_190 = arith.constant 0 : index
    %212 = vector.load %arg6[%c0_187, %c2_188, %c0_189, %c0_190] : memref<1x16x16x128xf32, #tpu.memory_space<vmem>>, vector<1x1x16x128xf32>
    %213 = vector.shape_cast %212 : vector<1x1x16x128xf32> to vector<16x128xf32>
    %214 = vector.shape_cast %211 : vector<16x128xf32> to vector<1x1x16x128xf32>
    tpu.vector_store %arg6[%c0_187, %c2_188, %c0_189, %c0_190], %214 {strides = array<i32>} : memref<1x16x16x128xf32, #tpu.memory_space<vmem>>, vector<1x1x16x128xf32>,
    %215 = vector.extract_strided_slice %202 {offsets = [54, 0], sizes = [16, 128], strides = [1, 1]} : vector<144x128xf32> to vector<16x128xf32>
    %c0_191 = arith.constant 0 : index
    %c3_192 = arith.constant 3 : index
    %c0_193 = arith.constant 0 : index
    %c0_194 = arith.constant 0 : index
    %216 = vector.load %arg6[%c0_191, %c3_192, %c0_193, %c0_194] : memref<1x16x16x128xf32, #tpu.memory_space<vmem>>, vector<1x1x16x128xf32>
    %217 = vector.shape_cast %216 : vector<1x1x16x128xf32> to vector<16x128xf32>
    %218 = vector.shape_cast %215 : vector<16x128xf32> to vector<1x1x16x128xf32>
    tpu.vector_store %arg6[%c0_191, %c3_192, %c0_193, %c0_194], %218 {strides = array<i32>} : memref<1x16x16x128xf32, #tpu.memory_space<vmem>>, vector<1x1x16x128xf32>,
    %219 = vector.extract_strided_slice %202 {offsets = [72, 0], sizes = [16, 128], strides = [1, 1]} : vector<144x128xf32> to vector<16x128xf32>
    %c0_195 = arith.constant 0 : index
    %c4_196 = arith.constant 4 : index
    %c0_197 = arith.constant 0 : index
    %c0_198 = arith.constant 0 : index
    %220 = vector.load %arg6[%c0_195, %c4_196, %c0_197, %c0_198] : memref<1x16x16x128xf32, #tpu.memory_space<vmem>>, vector<1x1x16x128xf32>
    %221 = vector.shape_cast %220 : vector<1x1x16x128xf32> to vector<16x128xf32>
    %222 = vector.shape_cast %219 : vector<16x128xf32> to vector<1x1x16x128xf32>
    tpu.vector_store %arg6[%c0_195, %c4_196, %c0_197, %c0_198], %222 {strides = array<i32>} : memref<1x16x16x128xf32, #tpu.memory_space<vmem>>, vector<1x1x16x128xf32>,
    %223 = vector.extract_strided_slice %202 {offsets = [90, 0], sizes = [16, 128], strides = [1, 1]} : vector<144x128xf32> to vector<16x128xf32>
    %c0_199 = arith.constant 0 : index
    %c5_200 = arith.constant 5 : index
    %c0_201 = arith.constant 0 : index
    %c0_202 = arith.constant 0 : index
    %224 = vector.load %arg6[%c0_199, %c5_200, %c0_201, %c0_202] : memref<1x16x16x128xf32, #tpu.memory_space<vmem>>, vector<1x1x16x128xf32>
    %225 = vector.shape_cast %224 : vector<1x1x16x128xf32> to vector<16x128xf32>
    %226 = vector.shape_cast %223 : vector<16x128xf32> to vector<1x1x16x128xf32>
    tpu.vector_store %arg6[%c0_199, %c5_200, %c0_201, %c0_202], %226 {strides = array<i32>} : memref<1x16x16x128xf32, #tpu.memory_space<vmem>>, vector<1x1x16x128xf32>,
    %227 = vector.extract_strided_slice %202 {offsets = [108, 0], sizes = [16, 128], strides = [1, 1]} : vector<144x128xf32> to vector<16x128xf32>
    %c0_203 = arith.constant 0 : index
    %c6_204 = arith.constant 6 : index
    %c0_205 = arith.constant 0 : index
    %c0_206 = arith.constant 0 : index
    %228 = vector.load %arg6[%c0_203, %c6_204, %c0_205, %c0_206] : memref<1x16x16x128xf32, #tpu.memory_space<vmem>>, vector<1x1x16x128xf32>
    %229 = vector.shape_cast %228 : vector<1x1x16x128xf32> to vector<16x128xf32>
    %230 = vector.shape_cast %227 : vector<16x128xf32> to vector<1x1x16x128xf32>
    tpu.vector_store %arg6[%c0_203, %c6_204, %c0_205, %c0_206], %230 {strides = array<i32>} : memref<1x16x16x128xf32, #tpu.memory_space<vmem>>, vector<1x1x16x128xf32>,
    %231 = vector.extract_strided_slice %202 {offsets = [126, 0], sizes = [16, 128], strides = [1, 1]} : vector<144x128xf32> to vector<16x128xf32>
    %c0_207 = arith.constant 0 : index
    %c7_208 = arith.constant 7 : index
    %c0_209 = arith.constant 0 : index
    %c0_210 = arith.constant 0 : index
    %232 = vector.load %arg6[%c0_207, %c7_208, %c0_209, %c0_210] : memref<1x16x16x128xf32, #tpu.memory_space<vmem>>, vector<1x1x16x128xf32>
    %233 = vector.shape_cast %232 : vector<1x1x16x128xf32> to vector<16x128xf32>
    %234 = vector.shape_cast %231 : vector<16x128xf32> to vector<1x1x16x128xf32>
    tpu.vector_store %arg6[%c0_207, %c7_208, %c0_209, %c0_210], %234 {strides = array<i32>} : memref<1x16x16x128xf32, #tpu.memory_space<vmem>>, vector<1x1x16x128xf32>,
    %c0_211 = arith.constant 0 : index
    %c163_212 = arith.constant 163 : index
    %c0_213 = arith.constant 0 : index
    %235 = vector.load %arg1[%c0_211, %c163_212, %c0_213] : memref<1x342x128xbf16, #tpu.memory_space<vmem>>, vector<1x144x128xbf16>
    %236 = vector.shape_cast %235 : vector<1x144x128xbf16> to vector<144x128xbf16>
    %237 = arith.extf %236 : vector<144x128xbf16> to vector<144x128xf32>
    %c144_214 = arith.constant 144 : index
    %c0_215 = arith.constant 0 : index
    %238 = vector.load %arg7[%c144_214, %c0_215] : memref<342x128xbf16, #tpu.memory_space<vmem>>, vector<144x128xbf16>
    %c0_216 = arith.constant 0 : index
    %c0_217 = arith.constant 0 : index
    %c0_218 = arith.constant 0 : index
    %239 = vector.load %arg4[%c0_216, %c0_217, %c0_218] : memref<9x128x128xbf16, #tpu.memory_space<vmem>>, vector<1x128x128xbf16>
    %240 = vector.shape_cast %239 : vector<1x128x128xbf16> to vector<128x128xbf16>
    %cst_219 = arith.constant dense<0.000000e+00> : vector<144x128xf32>
    %241 = tpu.matmul %238, %240, %cst_219 {dimension_numbers = #tpu.dot_dimension_numbers<[1], [0], [0], [1], [0, 0, 1, 1], [], []>} : vector<144x128xbf16>, vector<128x128xbf16>, vector<144x128xf32> -> vector<144x128xf32>
    %c145_220 = arith.constant 145 : index
    %c0_221 = arith.constant 0 : index
    %242 = vector.load %arg7[%c145_220, %c0_221] : memref<342x128xbf16, #tpu.memory_space<vmem>>, vector<144x128xbf16>
    %c1_222 = arith.constant 1 : index
    %c0_223 = arith.constant 0 : index
    %c0_224 = arith.constant 0 : index
    %243 = vector.load %arg4[%c1_222, %c0_223, %c0_224] : memref<9x128x128xbf16, #tpu.memory_space<vmem>>, vector<1x128x128xbf16>
    %244 = vector.shape_cast %243 : vector<1x128x128xbf16> to vector<128x128xbf16>
    %cst_225 = arith.constant dense<0.000000e+00> : vector<144x128xf32>
    %245 = tpu.matmul %242, %244, %cst_225 {dimension_numbers = #tpu.dot_dimension_numbers<[1], [0], [0], [1], [0, 0, 1, 1], [], []>} : vector<144x128xbf16>, vector<128x128xbf16>, vector<144x128xf32> -> vector<144x128xf32>
    %246 = arith.addf %241, %245 : vector<144x128xf32>
    %c146_226 = arith.constant 146 : index
    %c0_227 = arith.constant 0 : index
    %247 = vector.load %arg7[%c146_226, %c0_227] : memref<342x128xbf16, #tpu.memory_space<vmem>>, vector<144x128xbf16>
    %c2_228 = arith.constant 2 : index
    %c0_229 = arith.constant 0 : index
    %c0_230 = arith.constant 0 : index
    %248 = vector.load %arg4[%c2_228, %c0_229, %c0_230] : memref<9x128x128xbf16, #tpu.memory_space<vmem>>, vector<1x128x128xbf16>
    %249 = vector.shape_cast %248 : vector<1x128x128xbf16> to vector<128x128xbf16>
    %cst_231 = arith.constant dense<0.000000e+00> : vector<144x128xf32>
    %250 = tpu.matmul %247, %249, %cst_231 {dimension_numbers = #tpu.dot_dimension_numbers<[1], [0], [0], [1], [0, 0, 1, 1], [], []>} : vector<144x128xbf16>, vector<128x128xbf16>, vector<144x128xf32> -> vector<144x128xf32>
    %251 = arith.addf %246, %250 : vector<144x128xf32>
    %c162_232 = arith.constant 162 : index
    %c0_233 = arith.constant 0 : index
    %252 = vector.load %arg7[%c162_232, %c0_233] : memref<342x128xbf16, #tpu.memory_space<vmem>>, vector<144x128xbf16>
    %c3_234 = arith.constant 3 : index
    %c0_235 = arith.constant 0 : index
    %c0_236 = arith.constant 0 : index
    %253 = vector.load %arg4[%c3_234, %c0_235, %c0_236] : memref<9x128x128xbf16, #tpu.memory_space<vmem>>, vector<1x128x128xbf16>
    %254 = vector.shape_cast %253 : vector<1x128x128xbf16> to vector<128x128xbf16>
    %cst_237 = arith.constant dense<0.000000e+00> : vector<144x128xf32>
    %255 = tpu.matmul %252, %254, %cst_237 {dimension_numbers = #tpu.dot_dimension_numbers<[1], [0], [0], [1], [0, 0, 1, 1], [], []>} : vector<144x128xbf16>, vector<128x128xbf16>, vector<144x128xf32> -> vector<144x128xf32>
    %256 = arith.addf %251, %255 : vector<144x128xf32>
    %c163_238 = arith.constant 163 : index
    %c0_239 = arith.constant 0 : index
    %257 = vector.load %arg7[%c163_238, %c0_239] : memref<342x128xbf16, #tpu.memory_space<vmem>>, vector<144x128xbf16>
    %c4_240 = arith.constant 4 : index
    %c0_241 = arith.constant 0 : index
    %c0_242 = arith.constant 0 : index
    %258 = vector.load %arg4[%c4_240, %c0_241, %c0_242] : memref<9x128x128xbf16, #tpu.memory_space<vmem>>, vector<1x128x128xbf16>
    %259 = vector.shape_cast %258 : vector<1x128x128xbf16> to vector<128x128xbf16>
    %cst_243 = arith.constant dense<0.000000e+00> : vector<144x128xf32>
    %260 = tpu.matmul %257, %259, %cst_243 {dimension_numbers = #tpu.dot_dimension_numbers<[1], [0], [0], [1], [0, 0, 1, 1], [], []>} : vector<144x128xbf16>, vector<128x128xbf16>, vector<144x128xf32> -> vector<144x128xf32>
    %261 = arith.addf %256, %260 : vector<144x128xf32>
    %c164_244 = arith.constant 164 : index
    %c0_245 = arith.constant 0 : index
    %262 = vector.load %arg7[%c164_244, %c0_245] : memref<342x128xbf16, #tpu.memory_space<vmem>>, vector<144x128xbf16>
    %c5_246 = arith.constant 5 : index
    %c0_247 = arith.constant 0 : index
    %c0_248 = arith.constant 0 : index
    %263 = vector.load %arg4[%c5_246, %c0_247, %c0_248] : memref<9x128x128xbf16, #tpu.memory_space<vmem>>, vector<1x128x128xbf16>
    %264 = vector.shape_cast %263 : vector<1x128x128xbf16> to vector<128x128xbf16>
    %cst_249 = arith.constant dense<0.000000e+00> : vector<144x128xf32>
    %265 = tpu.matmul %262, %264, %cst_249 {dimension_numbers = #tpu.dot_dimension_numbers<[1], [0], [0], [1], [0, 0, 1, 1], [], []>} : vector<144x128xbf16>, vector<128x128xbf16>, vector<144x128xf32> -> vector<144x128xf32>
    %266 = arith.addf %261, %265 : vector<144x128xf32>
    %c180_250 = arith.constant 180 : index
    %c0_251 = arith.constant 0 : index
    %267 = vector.load %arg7[%c180_250, %c0_251] : memref<342x128xbf16, #tpu.memory_space<vmem>>, vector<144x128xbf16>
    %c6_252 = arith.constant 6 : index
    %c0_253 = arith.constant 0 : index
    %c0_254 = arith.constant 0 : index
    %268 = vector.load %arg4[%c6_252, %c0_253, %c0_254] : memref<9x128x128xbf16, #tpu.memory_space<vmem>>, vector<1x128x128xbf16>
    %269 = vector.shape_cast %268 : vector<1x128x128xbf16> to vector<128x128xbf16>
    %cst_255 = arith.constant dense<0.000000e+00> : vector<144x128xf32>
    %270 = tpu.matmul %267, %269, %cst_255 {dimension_numbers = #tpu.dot_dimension_numbers<[1], [0], [0], [1], [0, 0, 1, 1], [], []>} : vector<144x128xbf16>, vector<128x128xbf16>, vector<144x128xf32> -> vector<144x128xf32>
    %271 = arith.addf %266, %270 : vector<144x128xf32>
    %c181_256 = arith.constant 181 : index
    %c0_257 = arith.constant 0 : index
    %272 = vector.load %arg7[%c181_256, %c0_257] : memref<342x128xbf16, #tpu.memory_space<vmem>>, vector<144x128xbf16>
    %c7_258 = arith.constant 7 : index
    %c0_259 = arith.constant 0 : index
    %c0_260 = arith.constant 0 : index
    %273 = vector.load %arg4[%c7_258, %c0_259, %c0_260] : memref<9x128x128xbf16, #tpu.memory_space<vmem>>, vector<1x128x128xbf16>
    %274 = vector.shape_cast %273 : vector<1x128x128xbf16> to vector<128x128xbf16>
    %cst_261 = arith.constant dense<0.000000e+00> : vector<144x128xf32>
    %275 = tpu.matmul %272, %274, %cst_261 {dimension_numbers = #tpu.dot_dimension_numbers<[1], [0], [0], [1], [0, 0, 1, 1], [], []>} : vector<144x128xbf16>, vector<128x128xbf16>, vector<144x128xf32> -> vector<144x128xf32>
    %276 = arith.addf %271, %275 : vector<144x128xf32>
    %c182_262 = arith.constant 182 : index
    %c0_263 = arith.constant 0 : index
    %277 = vector.load %arg7[%c182_262, %c0_263] : memref<342x128xbf16, #tpu.memory_space<vmem>>, vector<144x128xbf16>
    %c8_264 = arith.constant 8 : index
    %c0_265 = arith.constant 0 : index
    %c0_266 = arith.constant 0 : index
    %278 = vector.load %arg4[%c8_264, %c0_265, %c0_266] : memref<9x128x128xbf16, #tpu.memory_space<vmem>>, vector<1x128x128xbf16>
    %279 = vector.shape_cast %278 : vector<1x128x128xbf16> to vector<128x128xbf16>
    %cst_267 = arith.constant dense<0.000000e+00> : vector<144x128xf32>
    %280 = tpu.matmul %277, %279, %cst_267 {dimension_numbers = #tpu.dot_dimension_numbers<[1], [0], [0], [1], [0, 0, 1, 1], [], []>} : vector<144x128xbf16>, vector<128x128xbf16>, vector<144x128xf32> -> vector<144x128xf32>
    %281 = arith.addf %276, %280 : vector<144x128xf32>
    %282 = vector.broadcast %1 : vector<1x128xf32> to vector<144x128xf32>
    %283 = arith.addf %281, %282 : vector<144x128xf32>
    %284 = arith.addf %283, %237 : vector<144x128xf32>
    %cst_268 = arith.constant 0.000000e+00 : f32
    %285 = vector.broadcast %cst_268 : f32 to vector<144x128xf32>
    %286 = arith.maximumf %284, %285 : vector<144x128xf32>
    %287 = vector.extract_strided_slice %286 {offsets = [0, 0], sizes = [16, 128], strides = [1, 1]} : vector<144x128xf32> to vector<16x128xf32>
    %c0_269 = arith.constant 0 : index
    %c8_270 = arith.constant 8 : index
    %c0_271 = arith.constant 0 : index
    %c0_272 = arith.constant 0 : index
    %288 = vector.load %arg6[%c0_269, %c8_270, %c0_271, %c0_272] : memref<1x16x16x128xf32, #tpu.memory_space<vmem>>, vector<1x1x16x128xf32>
    %289 = vector.shape_cast %288 : vector<1x1x16x128xf32> to vector<16x128xf32>
    %290 = vector.shape_cast %287 : vector<16x128xf32> to vector<1x1x16x128xf32>
    tpu.vector_store %arg6[%c0_269, %c8_270, %c0_271, %c0_272], %290 {strides = array<i32>} : memref<1x16x16x128xf32, #tpu.memory_space<vmem>>, vector<1x1x16x128xf32>,
    %291 = vector.extract_strided_slice %286 {offsets = [18, 0], sizes = [16, 128], strides = [1, 1]} : vector<144x128xf32> to vector<16x128xf32>
    %c0_273 = arith.constant 0 : index
    %c9 = arith.constant 9 : index
    %c0_274 = arith.constant 0 : index
    %c0_275 = arith.constant 0 : index
    %292 = vector.load %arg6[%c0_273, %c9, %c0_274, %c0_275] : memref<1x16x16x128xf32, #tpu.memory_space<vmem>>, vector<1x1x16x128xf32>
    %293 = vector.shape_cast %292 : vector<1x1x16x128xf32> to vector<16x128xf32>
    %294 = vector.shape_cast %291 : vector<16x128xf32> to vector<1x1x16x128xf32>
    tpu.vector_store %arg6[%c0_273, %c9, %c0_274, %c0_275], %294 {strides = array<i32>} : memref<1x16x16x128xf32, #tpu.memory_space<vmem>>, vector<1x1x16x128xf32>,
    %295 = vector.extract_strided_slice %286 {offsets = [36, 0], sizes = [16, 128], strides = [1, 1]} : vector<144x128xf32> to vector<16x128xf32>
    %c0_276 = arith.constant 0 : index
    %c10 = arith.constant 10 : index
    %c0_277 = arith.constant 0 : index
    %c0_278 = arith.constant 0 : index
    %296 = vector.load %arg6[%c0_276, %c10, %c0_277, %c0_278] : memref<1x16x16x128xf32, #tpu.memory_space<vmem>>, vector<1x1x16x128xf32>
    %297 = vector.shape_cast %296 : vector<1x1x16x128xf32> to vector<16x128xf32>
    %298 = vector.shape_cast %295 : vector<16x128xf32> to vector<1x1x16x128xf32>
    tpu.vector_store %arg6[%c0_276, %c10, %c0_277, %c0_278], %298 {strides = array<i32>} : memref<1x16x16x128xf32, #tpu.memory_space<vmem>>, vector<1x1x16x128xf32>,
    %299 = vector.extract_strided_slice %286 {offsets = [54, 0], sizes = [16, 128], strides = [1, 1]} : vector<144x128xf32> to vector<16x128xf32>
    %c0_279 = arith.constant 0 : index
    %c11 = arith.constant 11 : index
    %c0_280 = arith.constant 0 : index
    %c0_281 = arith.constant 0 : index
    %300 = vector.load %arg6[%c0_279, %c11, %c0_280, %c0_281] : memref<1x16x16x128xf32, #tpu.memory_space<vmem>>, vector<1x1x16x128xf32>
    %301 = vector.shape_cast %300 : vector<1x1x16x128xf32> to vector<16x128xf32>
    %302 = vector.shape_cast %299 : vector<16x128xf32> to vector<1x1x16x128xf32>
    tpu.vector_store %arg6[%c0_279, %c11, %c0_280, %c0_281], %302 {strides = array<i32>} : memref<1x16x16x128xf32, #tpu.memory_space<vmem>>, vector<1x1x16x128xf32>,
    %303 = vector.extract_strided_slice %286 {offsets = [72, 0], sizes = [16, 128], strides = [1, 1]} : vector<144x128xf32> to vector<16x128xf32>
    %c0_282 = arith.constant 0 : index
    %c12 = arith.constant 12 : index
    %c0_283 = arith.constant 0 : index
    %c0_284 = arith.constant 0 : index
    %304 = vector.load %arg6[%c0_282, %c12, %c0_283, %c0_284] : memref<1x16x16x128xf32, #tpu.memory_space<vmem>>, vector<1x1x16x128xf32>
    %305 = vector.shape_cast %304 : vector<1x1x16x128xf32> to vector<16x128xf32>
    %306 = vector.shape_cast %303 : vector<16x128xf32> to vector<1x1x16x128xf32>
    tpu.vector_store %arg6[%c0_282, %c12, %c0_283, %c0_284], %306 {strides = array<i32>} : memref<1x16x16x128xf32, #tpu.memory_space<vmem>>, vector<1x1x16x128xf32>,
    %307 = vector.extract_strided_slice %286 {offsets = [90, 0], sizes = [16, 128], strides = [1, 1]} : vector<144x128xf32> to vector<16x128xf32>
    %c0_285 = arith.constant 0 : index
    %c13 = arith.constant 13 : index
    %c0_286 = arith.constant 0 : index
    %c0_287 = arith.constant 0 : index
    %308 = vector.load %arg6[%c0_285, %c13, %c0_286, %c0_287] : memref<1x16x16x128xf32, #tpu.memory_space<vmem>>, vector<1x1x16x128xf32>
    %309 = vector.shape_cast %308 : vector<1x1x16x128xf32> to vector<16x128xf32>
    %310 = vector.shape_cast %307 : vector<16x128xf32> to vector<1x1x16x128xf32>
    tpu.vector_store %arg6[%c0_285, %c13, %c0_286, %c0_287], %310 {strides = array<i32>} : memref<1x16x16x128xf32, #tpu.memory_space<vmem>>, vector<1x1x16x128xf32>,
    %311 = vector.extract_strided_slice %286 {offsets = [108, 0], sizes = [16, 128], strides = [1, 1]} : vector<144x128xf32> to vector<16x128xf32>
    %c0_288 = arith.constant 0 : index
    %c14 = arith.constant 14 : index
    %c0_289 = arith.constant 0 : index
    %c0_290 = arith.constant 0 : index
    %312 = vector.load %arg6[%c0_288, %c14, %c0_289, %c0_290] : memref<1x16x16x128xf32, #tpu.memory_space<vmem>>, vector<1x1x16x128xf32>
    %313 = vector.shape_cast %312 : vector<1x1x16x128xf32> to vector<16x128xf32>
    %314 = vector.shape_cast %311 : vector<16x128xf32> to vector<1x1x16x128xf32>
    tpu.vector_store %arg6[%c0_288, %c14, %c0_289, %c0_290], %314 {strides = array<i32>} : memref<1x16x16x128xf32, #tpu.memory_space<vmem>>, vector<1x1x16x128xf32>,
    %315 = vector.extract_strided_slice %286 {offsets = [126, 0], sizes = [16, 128], strides = [1, 1]} : vector<144x128xf32> to vector<16x128xf32>
    %c0_291 = arith.constant 0 : index
    %c15 = arith.constant 15 : index
    %c0_292 = arith.constant 0 : index
    %c0_293 = arith.constant 0 : index
    %316 = vector.load %arg6[%c0_291, %c15, %c0_292, %c0_293] : memref<1x16x16x128xf32, #tpu.memory_space<vmem>>, vector<1x1x16x128xf32>
    %317 = vector.shape_cast %316 : vector<1x1x16x128xf32> to vector<16x128xf32>
    %318 = vector.shape_cast %315 : vector<16x128xf32> to vector<1x1x16x128xf32>
    tpu.vector_store %arg6[%c0_291, %c15, %c0_292, %c0_293], %318 {strides = array<i32>} : memref<1x16x16x128xf32, #tpu.memory_space<vmem>>, vector<1x1x16x128xf32>,
    return
  }
  func.func @transform_0(%arg0: i32) -> (i32, i32, i32) {
    %c0_i32 = arith.constant 0 : i32
    %c0_i32_0 = arith.constant 0 : i32
    %c0_i32_1 = arith.constant 0 : i32
    return %arg0, %c0_i32, %c0_i32_0 : i32, i32, i32
  }
  func.func @transform_1(%arg0: i32) -> (i32, i32, i32) {
    %c0_i32 = arith.constant 0 : i32
    %c0_i32_0 = arith.constant 0 : i32
    %c0_i32_1 = arith.constant 0 : i32
    %c0_i32_2 = arith.constant 0 : i32
    return %c0_i32, %c0_i32_0, %c0_i32_1 : i32, i32, i32
  }
  func.func @transform_2(%arg0: i32) -> (i32, i32) {
    %c0_i32 = arith.constant 0 : i32
    %c0_i32_0 = arith.constant 0 : i32
    %c0_i32_1 = arith.constant 0 : i32
    return %c0_i32, %c0_i32_0 : i32, i32
  }
  func.func @transform_3(%arg0: i32) -> (i32, i32, i32) {
    %c0_i32 = arith.constant 0 : i32
    %c0_i32_0 = arith.constant 0 : i32
    %c0_i32_1 = arith.constant 0 : i32
    %c0_i32_2 = arith.constant 0 : i32
    return %c0_i32, %c0_i32_0, %c0_i32_1 : i32, i32, i32
  }
  func.func @transform_4(%arg0: i32) -> (i32, i32) {
    %c0_i32 = arith.constant 0 : i32
    %c0_i32_0 = arith.constant 0 : i32
    %c0_i32_1 = arith.constant 0 : i32
    return %c0_i32, %c0_i32_0 : i32, i32
  }
  func.func @transform_5(%arg0: i32) -> (i32, i32, i32, i32) {
    %c0_i32 = arith.constant 0 : i32
    %c0_i32_0 = arith.constant 0 : i32
    %c0_i32_1 = arith.constant 0 : i32
    %c0_i32_2 = arith.constant 0 : i32
    return %arg0, %c0_i32, %c0_i32_0, %c0_i32_1 : i32, i32, i32, i32
  }
}

</mosaic_0001>

<bundles_post_ra>
// kernel: tpu_custom_call.1
= control target key start
LH: loop header
LB: loop body
LE: loop exit
PB: predicated region body
PF: predicated region fallthrough
CT: control target
= control target key end

     0   :  { %10 = vsyncpa [#allocation4], 0  ;;  %s15350_s0 = inlined_call_operand.vmem [shape: bf16[2,342,128], index: 0, kind: input, shape index: {}]   ;;  %s15351_s1 = inlined_call_operand.vmem [shape: bf16[9,128,128], index: 1, kind: input, shape index: {}]   ;;  %s15352_s2 = inlined_call_operand.vmem [shape: f32[1,128], index: 2, kind: input, shape index: {}]   ;;  %s15353_s3 = inlined_call_operand.hbm [shape: bf16[9,128,128], index: 3, kind: input, shape index: {}]   ;;  %s15354_s4 = inlined_call_operand.vmem [shape: f32[1,128], index: 4, kind: input, shape index: {}]   ;;  %s15355_s5 = inlined_call_operand.hbm [shape: f32[2,16,16,128], index: 5, kind: output, shape index: {}]  }
   0x1   :  { %11 = vsyncpa [#allocation5], 0 }
   0x2   :  { %13 = vsyncpa [#allocation5 + $0x1], 0  ;;  %s11954_s18 = smov 0   ;;  %s11956_s19 = smov 0  }
   0x3   :  { %s11958_s20 = smov 0   ;;  %s11960_s21 = smov 0  }
   0x4 LB: > { %s11975_s22 = sadd.s32 4294967295, %s11916_s21   ;;  %s9400_s23 = sadd.s32 4294967294, %s11916_s21   ;;  %s11916_s21 = sphi %s11960_s21, %s15838_s21   ;;  %s11912_s20 = sphi %s11958_s20, %s15837_s20   ;;  %s11908_s19 = sphi %s11956_s19, %s15836_s19   ;;  %s11904_s18 = sphi %s11954_s18, %s15835_s18  }
   0x5   : > { %s11979_s24 = sadd.s32 1, %s11916_s21   ;;  %s136_s25 = sadd.s32 1, %s11912_s20 }
   0x6   : > { %s133_s26 = ssub.s32 %s11916_s21, %s11979_s24  ;;  %p146_p0 = scmp.ne.s32.totalorder %s11912_s20, %s11908_s19 }
   0x7   : > { %p134_p1 = scmp.eq.s32.totalorder %s133_s26, 0  ;;  %p147_p2 = scmp.eq.s32.totalorder %s11975_s22, 1 }
   0x8   : > { %p152_p3 = scmp.ne.s32.totalorder %s11908_s19, %s11904_s18  ;;  %p153_p4 = scmp.eq.s32.totalorder %s9400_s23, 1 }
   0x9   : > { %s11990_s27 = scalar_select %p134_p1, %s11912_s20, %s136_s25  }
   0xa   : > { %p11992_p5 = por %p147_p2, %p146_p0  ;;  %p11996_p6 = por %p153_p4, %p152_p3 }
   0xb   : > { %p9401_p7 = scmp.ge.s32.totalorder %s11916_s21, 1  ;;  %p160_p8 = scmp.lt.s32.totalorder %s11916_s21, 3 }
   0xc   : > { %p11757_p9 = scmp.eq.s32.totalorder %s11975_s22, 0  ;;  %s177_s7 = sshll.u32 %s15353_s3, 4  ;;  %s178_s7 = int_to_ptr.hbm [resolvable:$true] %s177_s7 }
   0xd   : > { %p161_p10 = pnand %p9401_p7, %p160_p8  ;;  %s11918_s8 = smov [#allocation3]  }
   0xe   : > { %s179_s9 = sshll.u32 %s11918_s8, 4  ;;  %s11919_s10 = smov 64   ;;  %s180_s9 = int_to_ptr.vmem [resolvable:$true] %s179_s9 }
   0xf   : > { %p11749_p11 = pneg %p161_p10  ;;  %s11920_s11 = smov 4  }
  0x10   : > { %206 = sbr.rel (%p161_p10) target bundleno = 1540 (0x604), region = 40 }
  0x11   : > { %p11750_p12 = pnand %p11757_p9, %p11749_p11 }
  0x13   : > { %11752 = dma.hbm_to_vmem [thread:$0]  (!%p11750_p12), %s178_s7, 9216, %s180_s9, [#allocation4], %s11919_s10, %s11919_s10, %s11920_s11  }
  0x15   : > { %11895 = dma.done.wait (%p11757_p9), [#allocation4], 9216  }
  0x16   : > { %11897 = vsyncadd (%p11757_p9), [#allocation4], 4294958080  ;;  %v15356_v0 = vmov 0   ;;  %v11270_v1 = vld [vmem:[%s15351_s1 + $0x78] sm:$0xff]  ;;  %p235_p13 = scmp.lt.s32.totalorder %s11975_s22, 1  ;;  %v11269_v5 = vld [vmem:[%s15351_s1 + $0x70] sm:$0xff] }
  0x17   : > { %243 = vst [vmem:[#allocation2] sm:$0xf] %v15356_v0  ;;  %v11262_v2 = vld [vmem:[%s15351_s1 + $0x38] sm:$0xff]  ;;  %1144 = vmatpush.bf16.msra.mxu0 %v11270_v1  ;;  %v11261_v6 = vld [vmem:[%s15351_s1 + $0x30] sm:$0xff]  ;;  %v11268_v9 = vld [vmem:[%s15351_s1 + $0x68] sm:$0xff]  ;;  %vm15385_vm1 = vcmask 1046528  }
  0x18   : > { %244 = vst [vmem:[#allocation2 + $0x4] sm:$0xf] %v15356_v0  ;;  %v11278_v3 = vld [vmem:[%s15351_s1 + $0xb8] sm:$0xff]  ;;  %1255 = vmatpush.bf16.msra.mxu1 %v11262_v2  ;;  %v11277_v7 = vld [vmem:[%s15351_s1 + $0xb0] sm:$0xff]  ;;  %s236_s12 = scalar_select %p235_p13, %s11975_s22, 1  ;;  %v11260_v10 = vld [vmem:[%s15351_s1 + $0x28] sm:$0xff] }
  0x19   : > { %257 = vst [vmem:[#allocation2 + $0x9c] sm:$0xf] %v15356_v0  ;;  %v11294_v4 = vld [vmem:[%s15351_s1 + $0xf8] sm:$0xff]  ;;  %1407 = vmatpush.bf16.msra.mxu2 %v11278_v3  ;;  %v11293_v8 = vld [vmem:[%s15351_s1 + $0xf0] sm:$0xff]  ;;  %v11276_v11 = vld [vmem:[%s15351_s1 + $0xa8] sm:$0xff]  ;;  %vm15381_vm3 = vcmask 1045504  }
  0x1a   : > { %258 = vst [vmem:[#allocation2 + $0xa0] sm:$0xf] %v15356_v0  ;;  %1639 = vmatpush.bf16.msra.mxu3 %v11294_v4  ;;  %v11292_v12 = vld [vmem:[%s15351_s1 + $0xe8] sm:$0xff]  ;;  %s11742_s30 = smul.u32 172, %s236_s12  ;;  %v11267_v13 = vld [vmem:[%s15351_s1 + $0x60] sm:$0xff]  ;;  %v11266_v17 = vld [vmem:[%s15351_s1 + $0x58] sm:$0xff] }
  0x1b   : > { %1145 = vmatpush.bf16.msra.mxu0 %v11269_v5  ;;  %v11259_v14 = vld [vmem:[%s15351_s1 + $0x20] sm:$0xff]  ;;  %v11258_v18 = vld [vmem:[%s15351_s1 + $0x18] sm:$0xff]  ;;  %v11265_v24 = vld [vmem:[%s15351_s1 + $0x50] sm:$0xff]  ;;  %vm15370_vm0 = vsmask.f32 7424  ;;  %vm15366_vm5 = vcmask 1044480  }
  0x1c   : > { %1256 = vmatpush.bf16.msra.mxu1 %v11261_v6  ;;  %v11275_v15 = vld [vmem:[%s15351_s1 + $0xa0] sm:$0xff]  ;;  %s12069_s16 = scalar_lea.vmem %s15350_s0, %s11742_s30  ;;  %v11274_v19 = vld [vmem:[%s15351_s1 + $0x98] sm:$0xff]  ;;  %v11257_v25 = vld [vmem:[%s15351_s1 + $0x10] sm:$0xff]  ;;  %vm15372_vm2 = vsmask.f32 6400  ;;  %vm245_vm9 = vcmask 1041408  }
  0x1d   : > { %1408 = vmatpush.bf16.msra.mxu2 %v11277_v7  ;;  %v11291_v16 = vld [vmem:[%s15351_s1 + $0xe0] sm:$0xff]  ;;  %v11290_v20 = vld [vmem:[%s15351_s1 + $0xd8] sm:$0xff]  ;;  %v1479_v22 = vld [vmem:[%s12069_s16 + $0x8] sm:$0xe]  ;;  %vm15371_vm4 = vsmask.f32 5376 }
  0x1e   : > { %1640 = vmatpush.bf16.msra.mxu3 %v11293_v8  ;;  %v11633_v21 = vld [vmem:[%s12069_s16] sm:$0xff]   ;;  %v12086_v23 = vld [vmem:[%s12069_s16 + $0xc] sm:$0xf]  ;;  %v11273_v28 = vld [vmem:[%s15351_s1 + $0x90] sm:$0xff]  ;;  %v1534_v30 = vunpack.c.l.b16 %v1479_v22  ;;  %vm246_vm10 = vsmask.f32 1280 }
  0x1f   : > { %1146 = vmatpush.bf16.msra.mxu0 %v11268_v9  ;;  %v12095_v26 = vld [vmem:[%s12069_s16 + $0x8] sm:$0xff]  ;;  %v1014_v27 = vshll.u32 %v11633_v21, 16  ;;  %v11289_v29 = vld [vmem:[%s15351_s1 + $0xd0] sm:$0xff]  ;;  %v1535_v31 = vunpack.c.l.b16 %v12086_v23  ;;  %v11712_v32 = vld [vmem:[%s12069_s16] sm:$0xf0]  ;;  %v1012_v36 = vshrl.u32 %v11633_v21, 16 }
  0x20   : > { %1257 = vmatpush.bf16.msra.mxu1 %v11260_v10  ;;  %v11713_v33 = vld [vmem:[%s12069_s16] sm:$0xe]  ;;  %v11264_v34 = vld [vmem:[%s15351_s1 + $0x48] sm:$0xff]  ;;  %v1019_v38 = vshll.u32 %v12095_v26, 16  ;;  %v12120_v42 = vld [vmem:[%s12069_s16 + $0x10] sm:$0xff]  ;;  %v1332_v51 = vrot.slane %v12095_v26, 1 }
  0x21   : > { %1409 = vmatpush.bf16.msra.mxu2 %v11276_v11  ;;  %v11256_v35 = vld [vmem:[%s15351_s1 + $0x8] sm:$0xff]  ;;  %v1016_v37 = vrot.slane %v1014_v27, 1  ;;  %v11714_v41 = vor.u32 %v11713_v33, %v11712_v32  ;;  %v12124_v43 = vpack.c.b16 %v1535_v31, %v1534_v30  ;;  %v11263_v44 = vld [vmem:[%s15351_s1 + $0x40] sm:$0xff]  ;;  %v1564_v53 = vrot.slane %v12120_v42, 1  ;;  %v11326_v54 = vld [vmem:[%s15351_s1 + $0x1b8] sm:$0xff]  ;;  %s232_s13 = sand.u32 1, %s11908_s19  }
  0x22   : > { %1641 = vmatpush.bf16.msra.mxu3 %v11292_v12  ;;  %v11272_v39 = vld [vmem:[%s15351_s1 + $0x88] sm:$0xff]  ;;  %v11255_v45 = vld [vmem:[%s15351_s1] sm:$0xff]  ;;  %v1021_v47 = vrot.slane %v1019_v38, 1  ;;  %v11302_v55 = vld [vmem:[%s15351_s1 + $0x138] sm:$0xff]  ;;  %v1023_v5 = vshrl.u32 %v12095_v26, 16  ;;  %vm251_vm11 = vcmask 1043457  }
  0x23   : > { %1147 = vmatpush.bf16.msra.mxu0 %v11267_v13  ;;  %v11288_v40 = vld [vmem:[%s15351_s1 + $0xc8] sm:$0xff]  ;;  %v1017_v46 = vor.u32 %v1016_v37, %v1012_v36  ;;  %v11271_v48 = vld [vmem:[%s15351_s1 + $0x80] sm:$0xff]  ;;  %v1331_v50 = vrot.slane %v11714_v41, 1  ;;  %v1563_v52 = vrot.slane %v12124_v43, 1  ;;  %v11334_v59 = vld [vmem:[%s15351_s1 + $0x1f8] sm:$0xff]  ;;  %s9406_s14 = sshll.u32 %s232_s13, 8 }
  0x24   : > { %1258 = vmatpush.bf16.msra.mxu1 %v11259_v14  ;;  %v11287_v49 = vld [vmem:[%s15351_s1 + $0xc0] sm:$0xff]  ;;  %v11310_v60 = vld [vmem:[%s15351_s1 + $0x178] sm:$0xff]  ;;  %v11325_v61 = vld [vmem:[%s15351_s1 + $0x1b0] sm:$0xff]  ;;  %v1025_v10 = vor.u32 %v1023_v5, %v1021_v47  ;;  %vm252_vm13 = vsmask.f32 7942  ;;  %s14823_s12 = scalar_lea.vmem [#allocation6], %s9406_s14 }
  0x25   : > { %1410 = vmatpush.bf16.msra.mxu2 %v11275_v15  ;;  %v1022_v56 = vsel %vm15370_vm0, %v1017_v46, %v1021_v47  ;;  %v1333_v57 = vsel %vm15385_vm1, %v1331_v50, %v1332_v51  ;;  %v1565_v58 = vsel %vm15385_vm1, %v1563_v52, %v1564_v53  ;;  %v11301_v62 = vld [vmem:[%s15351_s1 + $0x130] sm:$0xff]  ;;  %v11324_v3 = vld [vmem:[%s15351_s1 + $0x1a8] sm:$0xff]  ;;  %v12177_v7 = vld [vmem:[%s12069_s16 + $0x18] sm:$0xff]  ;;  %s11631_s23 = sshll.u32 %s11975_s22, 8  ;;  %s9323_s6 = sshll.u32 %s14823_s12, 4  ;;  %s9324_s6 = int_to_ptr.vmem [resolvable:$true] %s9323_s6 }
  0x26   : > { %1642 = vmatpush.bf16.msra.mxu3 %v11291_v16  ;;  %v11248_v63 = vld [vmem:[%s12069_s16 + $0x10] sm:$0xff]  ;;  %v11300_v4 = vld [vmem:[%s15351_s1 + $0x128] sm:$0xff]  ;;  %v1566_v13 = vrot.slane %v12177_v7, 1  ;;  %v11298_v36 = vld [vmem:[%s15351_s1 + $0x118] sm:$0xff]  ;;  %s9322_s26 = scalar_lea.hbm %s15355_s5, %s11631_s23  ;;  %s9311_s7 = scalar_lea.sflag [#allocation5], %s232_s13 }
  0x27   : > { %1148 = vmatpush.bf16.msra.mxu0 %v11266_v17  ;;  %v11333_v1 = vld [vmem:[%s15351_s1 + $0x1f0] sm:$0xff]  ;;  %v1027_v6 = vshll.u32 %v11248_v63, 16  ;;  %v11332_v8 = vld [vmem:[%s15351_s1 + $0x1e8] sm:$0xff]  ;;  %v1334_v12 = vrot.slane %v11248_v63, 1  ;;  %v11249_v17 = vld [vmem:[%s12069_s16 + $0x18] sm:$0xff]  ;;  %v1031_v22 = vshrl.u32 %v11248_v63, 16 }
  0x28   : > { %1259 = vmatpush.bf16.msra.mxu1 %v11258_v18  ;;  %v11309_v2 = vld [vmem:[%s15351_s1 + $0x170] sm:$0xff]  ;;  %v11308_v9 = vld [vmem:[%s15351_s1 + $0x168] sm:$0xff]  ;;  %v1567_v16 = vsel %vm15385_vm1, %v1564_v53, %v1566_v13  ;;  %v11323_v18 = vld [vmem:[%s15351_s1 + $0x1a0] sm:$0xff]  ;;  %s9325_s22 = sshll.u32 %s9322_s26, 4  ;;  %s11870_s11 = scalar_lea.hbm %s15355_s5, 512  ;;  %s9326_s22 = int_to_ptr.hbm [resolvable:$true] %s9325_s22 }
  0x29   : > { %1411 = vmatpush.bf16.msra.mxu2 %v11274_v19  ;;  %v1029_v11 = vrot.slane %v1027_v6, 1  ;;  %v1335_v15 = vsel %vm15385_vm1, %v1332_v51, %v1334_v12  ;;  %v11299_v19 = vld [vmem:[%s15351_s1 + $0x120] sm:$0xff]  ;;  %v11330_v37 = vld [vmem:[%s15351_s1 + $0x1d8] sm:$0xff]  ;;  %v12224_v41 = vld [vmem:[%s12069_s16 + $0x28] sm:$0xff]  ;;  %s11864_s30 = sshra.s32 %s9326_s22, 4  ;;  %s11865_s30 = int_to_ptr.hbm [resolvable:$true] %s11864_s30 }
  0x2a   : > { %1643 = vmatpush.bf16.msra.mxu3 %v11290_v20  ;;  %v11331_v20 = vld [vmem:[%s15351_s1 + $0x1e0] sm:$0xff]  ;;  %v11306_v38 = vld [vmem:[%s15351_s1 + $0x158] sm:$0xff]  ;;  %v1570_v47 = vrot.slane %v12224_v41, 1  ;;  %v11251_v51 = vld [vmem:[%s12069_s16 + $0x28] sm:$0xff]  ;;  %s11866_s8 = scalar_lea.hbm %s11865_s30, 256  ;;  %p11871_p3 = scmp.lt.s32.totalorder %s11865_s30, %s15355_s5 }
  0x2b   : > { %1149 = vmatpush.bf16.msra.mxu0 %v11265_v24  ;;  %v1030_v14 = vsel %vm15370_vm0, %v1025_v10, %v1029_v11  ;;  %v1035_v24 = vshll.u32 %v11249_v17, 16  ;;  %v11321_v52 = vld [vmem:[%s15351_s1 + $0x190] sm:$0xff]  ;;  %v11296_v5 = vld [vmem:[%s15351_s1 + $0x108] sm:$0xff]  ;;  %v12261_v10 = vld [vmem:[%s12069_s16 + $0x38] sm:$0xff]  ;;  %p11867_p0 = scmp.ne.s32.totalorder %s11865_s30, %s11866_s8  ;;  %p11872_p4 = scmp.lt.s32.totalorder %s11870_s11, %s11866_s8 }
  0x2c   : > { %1260 = vmatpush.bf16.msra.mxu1 %v11257_v25  ;;  %v12204_v25 = vld [vmem:[%s12069_s16 + $0x20] sm:$0xff]  ;;  %v11297_v53 = vld [vmem:[%s15351_s1 + $0x110] sm:$0xff]  ;;  %v11328_v6 = vld [vmem:[%s15351_s1 + $0x1c8] sm:$0xff] }
  0x2d   : > { %1412 = vmatpush.bf16.msra.mxu2 %v11273_v28  ;;  %v1037_v27 = vrot.slane %v1035_v24, 1  ;;  %v1336_v28 = vrot.slane %v11249_v17, 1  ;;  %v11365_v23 = vld [vmem:[%s15351_s1 + $0x70] sm:$0xff]  ;;  %vm12820_vm12 = vmand %vm245_vm9, %vm246_vm10  ;;  %p11868_p1 = pnand %p11867_p0, %p11992_p5  ;;  %p11873_p7 = por %p11872_p4, %p11871_p3 }
  0x2e   : > { %1644 = vmatpush.bf16.msra.mxu3 %v11289_v29  ;;  %v1568_v29 = vrot.slane %v12204_v25, 1  ;;  %vm12832_vm15 = vmand %vm251_vm11, %vm252_vm13 }
  0x2f   : > { %1150 = vmatpush.bf16.msra.mxu0 %v11264_v34  ;;  %v1337_v32 = vsel %vm15385_vm1, %v1334_v12, %v1336_v28  ;;  %v11250_v34 = vld [vmem:[%s12069_s16 + $0x20] sm:$0xff]  ;;  %p11869_p2 = pneg %p11868_p1 }
  0x30   : > { %1261 = vmatpush.bf16.msra.mxu1 %v11256_v35  ;;  %v1569_v33 = vsel %vm15385_vm1, %v1566_v13, %v1568_v29  ;;  %v11322_v35 = vld [vmem:[%s15351_s1 + $0x198] sm:$0xff]  ;;  %v1338_v46 = vrot.slane %v11250_v34, 1  ;;  %v1571_v50 = vsel %vm15385_vm1, %v1568_v29, %v1570_v47 }
  0x31   : > { %1413 = vmatpush.bf16.msra.mxu2 %v11272_v39  ;;  %v1039_v39 = vshrl.u32 %v11249_v17, 16  ;;  %p11874_p8 = pnand %p11873_p7, %p11869_p2 }
  0x32   : > { %1645 = vmatpush.bf16.msra.mxu3 %v11288_v40  ;;  %v1043_v40 = vshll.u32 %v11250_v34, 16 }
  0x33   : > { %1151 = vmatpush.bf16.msra.mxu0 %v11263_v44  ;;  %v1041_v44 = vor.u32 %v1039_v39, %v1037_v27 }
  0x34   : > { %1262 = vmatpush.bf16.msra.mxu1 %v11255_v45  ;;  %v1045_v45 = vrot.slane %v1043_v40, 1  ;;  %v12292_v40 = vld [vmem:[%s12069_s16 + $0x48] sm:$0xff] }
  0x35   : > { %1414 = vmatpush.bf16.msra.mxu2 %v11271_v48 }
  0x36   : > { %1646 = vmatpush.bf16.msra.mxu3 %v11287_v49  ;;  %1152 = vmatmul.bf16.vlgmr.msra.gmra.mxu0 %v1022_v56  ;;  %v1046_v48 = vsel %vm15370_vm0, %v1041_v44, %v1045_v45  ;;  %v1339_v49 = vsel %vm15385_vm1, %v1336_v28, %v1338_v46  ;;  %v1047_v56 = vshrl.u32 %v11250_v34, 16 }
  0x37   : > { %1879 = vmatpush.bf16.msrb.mxu0 %v11302_v55  ;;  %1263 = vmatmul.bf16.vlgmr.msra.gmra.mxu1 %v11633_v21  ;;  %v11307_v21 = vld [vmem:[%s15351_s1 + $0x160] sm:$0xff]  ;;  %v11305_v55 = vld [vmem:[%s15351_s1 + $0x150] sm:$0xff] }
  0x38   : > { %1415 = vmatmul.bf16.vlgmr.msra.gmra.mxu2 %v1333_v57  ;;  %2049 = vmatpush.bf16.msrb.mxu1 %v11310_v60  ;;  %v1051_v57 = vshll.u32 %v11251_v51, 16 }
  0x39   : > { %2281 = vmatpush.bf16.msrb.mxu2 %v11326_v54  ;;  %1647 = vmatmul.bf16.vlgmr.msra.gmra.mxu3 %v1565_v58  ;;  %v11329_v54 = vld [vmem:[%s15351_s1 + $0x1d0] sm:$0xff] }
  0x3a   : > { %2521 = vmatpush.bf16.msrb.mxu3 %v11334_v59  ;;  %v12244_v58 = vld [vmem:[%s12069_s16 + $0x30] sm:$0xff]  ;;  %v1049_v59 = vor.u32 %v1047_v56, %v1045_v45  ;;  %v1053_v60 = vrot.slane %v1051_v57, 1  ;;  %v11342_v56 = vld [vmem:[%s15351_s1 + $0x238] sm:$0xff] }
  0x3b   : > { %1880 = vmatpush.bf16.msrb.mxu0 %v11301_v62  ;;  %v1572_v62 = vrot.slane %v12244_v58, 1  ;;  %v11374_v57 = vld [vmem:[%s15351_s1 + $0xb8] sm:$0xff] }
  0x3c   : > { %2050 = vmatpush.bf16.msrb.mxu1 %v11309_v2 }
  0x3d   : > { %2282 = vmatpush.bf16.msrb.mxu2 %v11325_v61  ;;  %v1340_v61 = vrot.slane %v11251_v51, 1  ;;  %v1573_v2 = vsel %vm15385_vm1, %v1570_v47, %v1572_v62  ;;  %v1578_v47 = vrot.slane %v12292_v40, 1 }
  0x3e   : > { %2522 = vmatpush.bf16.msrb.mxu3 %v11333_v1 }
  0x3f   : > { %1881 = vmatpush.bf16.msrb.mxu0 %v11300_v4  ;;  %v1341_v1 = vsel %vm15385_vm1, %v1338_v46, %v1340_v61  ;;  %v11320_v4 = vld [vmem:[%s15351_s1 + $0x188] sm:$0xff] }
  0x40   : > { %2051 = vmatpush.bf16.msrb.mxu1 %v11308_v9 }
  0x41   : > { %2283 = vmatpush.bf16.msrb.mxu2 %v11324_v3  ;;  %v11252_v3 = vld [vmem:[%s12069_s16 + $0x30] sm:$0xff] }
  0x42   : > { %2523 = vmatpush.bf16.msrb.mxu3 %v11332_v8  ;;  %v1055_v8 = vshrl.u32 %v11251_v51, 16  ;;  %v1059_v9 = vshll.u32 %v11252_v3, 16  ;;  %v1342_v13 = vrot.slane %v11252_v3, 1 }
  0x43   : > { %1882 = vmatpush.bf16.msrb.mxu0 %v11299_v19  ;;  %v11304_v19 = vld [vmem:[%s15351_s1 + $0x148] sm:$0xff] }
  0x44   : > { %2052 = vmatpush.bf16.msrb.mxu1 %v11307_v21  ;;  %v1061_v12 = vrot.slane %v1059_v9, 1 }
  0x45   : > { %2284 = vmatpush.bf16.msrb.mxu2 %v11323_v18  ;;  %v11253_v18 = vld [vmem:[%s12069_s16 + $0x38] sm:$0xff] }
  0x46   : > { %1157 = vmatmul.bf16.gmra.mxu0 %v1030_v14  ;;  %2524 = vmatpush.bf16.msrb.mxu3 %v11331_v20  ;;  %v1574_v14 = vrot.slane %v12261_v10, 1  ;;  %v1063_v20 = vshrl.u32 %v11252_v3, 16  ;;  %v1067_v21 = vshll.u32 %v11253_v18, 16 }
  0x47   : > { %1268 = vmatmul.bf16.gmra.mxu1 %v12095_v26  ;;  %v1033_v26 = vor.u32 %v1031_v22, %v1029_v11  ;;  %1883 = vmatpush.bf16.msrb.mxu0 %v11298_v36  ;;  %v1057_v11 = vor.u32 %v1055_v8, %v1053_v60  ;;  %v12272_v22 = vld [vmem:[%s12069_s16 + $0x40] sm:$0xff] }
  0x48   : > { %1420 = vmatmul.bf16.gmra.mxu2 %v1335_v15  ;;  %2053 = vmatpush.bf16.msrb.mxu1 %v11306_v38  ;;  %v1065_v24 = vor.u32 %v1063_v20, %v1061_v12  ;;  %v1576_v28 = vrot.slane %v12272_v22, 1  ;;  %v11327_v36 = vld [vmem:[%s15351_s1 + $0x1c0] sm:$0xff]  ;;  %v1071_v38 = vshrl.u32 %v11253_v18, 16  ;;  %v1734_v20 = vshrl.u32 %v12124_v43, 16 }
  0x49   : > { %1652 = vmatmul.bf16.gmra.mxu3 %v1567_v16  ;;  %v1038_v30 = vsel %vm15370_vm0, %v1033_v26, %v1037_v27  ;;  %2285 = vmatpush.bf16.msrb.mxu2 %v11322_v35  ;;  %v1062_v15 = vsel %vm15370_vm0, %v1057_v11, %v1061_v12  ;;  %v1343_v16 = vsel %vm15385_vm1, %v1340_v61, %v1342_v13  ;;  %v1069_v26 = vrot.slane %v1067_v21, 1  ;;  %v11295_v35 = vld [vmem:[%s15351_s1 + $0x100] sm:$0xff] }
  0x4a   : > { %2525 = vmatpush.bf16.msrb.mxu3 %v11330_v37  ;;  %v1344_v27 = vrot.slane %v11253_v18, 1  ;;  %v11303_v37 = vld [vmem:[%s15351_s1 + $0x140] sm:$0xff]  ;;  %v1737_v21 = vshll.u32 %v12124_v43, 16 }
  0x4b   : > { %1884 = vmatpush.bf16.msrb.mxu0 %v11297_v53  ;;  %v1070_v29 = vsel %vm15370_vm0, %v1065_v24, %v1069_v26  ;;  %v1073_v44 = vor.u32 %v1071_v38, %v1069_v26  ;;  %v1497_v53 = vld [vmem:[%s12069_s16 + $0x50] sm:$0x1]  ;;  %v1742_v24 = vshrl.u32 %v12120_v42, 16  ;;  %v1745_v26 = vshll.u32 %v12120_v42, 16 }
  0x4c   : > { %2054 = vmatpush.bf16.msrb.mxu1 %v11305_v55  ;;  %v11358_v55 = vld [vmem:[%s15351_s1 + $0x38] sm:$0xff] }
  0x4d   : > { %2286 = vmatpush.bf16.msrb.mxu2 %v11321_v52  ;;  %v1579_v52 = vsel %vm15385_vm1, %v1576_v28, %v1578_v47  ;;  %v1747_v38 = vrot.slane %v1745_v26, 2 }
  0x4e   : > { %2526 = vmatpush.bf16.msrb.mxu3 %v11329_v54 }
  0x4f   : > { %1885 = vmatpush.bf16.msrb.mxu0 %v11296_v5 }
  0x50   : > { %2055 = vmatpush.bf16.msrb.mxu1 %v11304_v19  ;;  %v12326_v19 = vld [vmem:[%s12069_s16 + $0x18] sm:$0xff] }
  0x51   : > { %2287 = vmatpush.bf16.msrb.mxu2 %v11320_v4 }
  0x52   : > { %2527 = vmatpush.bf16.msrb.mxu3 %v11328_v6 }
  0x53   : > { %1886 = vmatpush.bf16.msrb.mxu0 %v11295_v35  ;;  %v1736_v35 = vrot.slane %v1734_v20, 1 }
  0x54   : > { %2056 = vmatpush.bf16.msrb.mxu1 %v11303_v37  ;;  %v1744_v37 = vrot.slane %v1742_v24, 1 }
  0x56   : > { %1162 = vmatmul.bf16.gmra.mxu0 %v1038_v30  ;;  %v1345_v30 = vsel %vm15385_vm1, %v1342_v13, %v1344_v27  ;;  %2528 = vmatpush.bf16.msrb.mxu3 %v11327_v36  ;;  %v1739_v36 = vrot.slane %v1737_v21, 2 }
  0x57   : > { %1273 = vmatmul.bf16.gmra.mxu1 %v11248_v63  ;;  %v1054_v63 = vsel %vm15370_vm0, %v1049_v59, %v1053_v60  ;;  %v1552_v59 = vunpack.c.l.b16 %v1497_v53  ;;  %2691 = vmatpush.bf16.msra.mxu0 %v11342_v56  ;;  %v11341_v53 = vld [vmem:[%s15351_s1 + $0x230] sm:$0xff] }
  0x58   : > { %1425 = vmatmul.bf16.gmra.mxu2 %v1337_v32  ;;  %v1577_v32 = vsel %vm15385_vm1, %v1574_v14, %v1576_v28 }
  0x59   : > { %1657 = vmatmul.bf16.gmra.mxu3 %v1569_v33  ;;  %v11319_v33 = vld [vmem:[%s15351_s1 + $0x180] sm:$0xff] }
  0x5a   : > { %2288 = vmatpush.bf16.msrb.mxu2 %v11319_v33  ;;  %3590 = vmatpush.bf16.msra.mxu3 %v11374_v57  ;;  %v2387_v33 = vshll.u32 %v12326_v19, 16  ;;  %v1974_v57 = vrot.slane %v12120_v42, 2 }
  0x5b   : > { %2692 = vmatpush.bf16.msra.mxu0 %v11341_v53 }
  0x5e   : > { %3440 = vmatpush.bf16.msra.mxu2 %v11358_v55  ;;  %v1748_v55 = vor.u32 %v1747_v38, %v1744_v37  ;;  %v11364_v37 = vld [vmem:[%s15351_s1 + $0x68] sm:$0xff] }
  0x66   : > { %1167 = vmatmul.bf16.gmra.mxu0 %v1046_v48  ;;  %v944_v48 = vld [vmem:[%s12069_s16 + $0x48] sm:$0x1] }
  0x67   : > { %1278 = vmatmul.bf16.gmra.mxu1 %v11249_v17  ;;  %v1575_v17 = vsel %vm15385_vm1, %v1572_v62, %v1574_v14  ;;  %v1562_v62 = vpack.c.b16 %v1552_v59, %v1552_v59 }
  0x68   : > { %1430 = vmatmul.bf16.gmra.mxu2 %v1339_v49 }
  0x69   : > { %1662 = vmatmul.bf16.gmra.mxu3 %v1571_v50  ;;  %v999_v50 = vunpack.c.l.b16 %v944_v48  ;;  %v1580_v9 = vrot.slane %v1562_v62, 1 }
  0x6b   : > { %v1009_v54 = vpack.c.b16 %v999_v50, %v999_v50 }
  0x6d   : > { %v1083_v61 = vshll.u32 %v1009_v54, 16  ;;  %v1348_v8 = vrot.slane %v1009_v54, 1  ;;  %v11373_v54 = vld [vmem:[%s15351_s1 + $0xb0] sm:$0xff] }
  0x6e   : > { %3591 = vmatpush.bf16.msra.mxu3 %v11373_v54 }
  0x6f   : > { %v1085_v4 = vrot.slane %v1083_v61, 1 }
  0x76   : > { %1172 = vmatmul.bf16.gmra.mxu0 %v1054_v63  ;;  %v2121_v63 = vld [vmem:[%s12069_s16 + $0x10] sm:$0xc] }
  0x77   : > { %1283 = vmatmul.bf16.gmra.mxu1 %v11250_v34  ;;  %v11254_v34 = vld [vmem:[%s12069_s16 + $0x40] sm:$0xff]  ;;  %v2176_v5 = vunpack.c.l.b16 %v2121_v63 }
  0x78   : > { %1435 = vmatmul.bf16.gmra.mxu2 %v1341_v1  ;;  %v1075_v39 = vshll.u32 %v11254_v34, 16  ;;  %v1346_v46 = vrot.slane %v11254_v34, 1  ;;  %v1079_v60 = vshrl.u32 %v11254_v34, 16  ;;  %v12311_v1 = vld [vmem:[%s12069_s16 + $0x14] sm:$0xf] }
  0x79   : > { %1667 = vmatmul.bf16.gmra.mxu3 %v1573_v2  ;;  %v11366_v2 = vld [vmem:[%s15351_s1 + $0x78] sm:$0xff]  ;;  %v2177_v6 = vunpack.c.l.b16 %v12311_v1  ;;  %v11421_v1 = vld [vmem:[%s15351_s1 + $0x1b0] sm:$0xff] }
  0x7a   : > { %v1077_v45 = vrot.slane %v1075_v39, 1  ;;  %3329 = vmatpush.bf16.msra.mxu1 %v11366_v2 }
  0x7b   : > { %v12320_v14 = vpack.c.b16 %v2177_v6, %v2176_v5 }
  0x7c   : > { %v1078_v49 = vsel %vm15370_vm0, %v1073_v44, %v1077_v45 }
  0x7d   : > { %v2376_v28 = vshrl.u32 %v12320_v14, 16  ;;  %v2205_v59 = vrot.slane %v12320_v14, 2 }
  0x7e   : > { %3330 = vmatpush.bf16.msra.mxu1 %v11365_v23 }
  0x82   : > { %3331 = vmatpush.bf16.msra.mxu1 %v11364_v37 }
  0x86   : > { %1177 = vmatmul.bf16.gmra.mxu0 %v1062_v15 }
  0x87   : > { %1288 = vmatmul.bf16.gmra.mxu1 %v11251_v51  ;;  %v1347_v51 = vsel %vm15385_vm1, %v1344_v27, %v1346_v46 }
  0x88   : > { %1440 = vmatmul.bf16.gmra.mxu2 %v1343_v16  ;;  %v1349_v16 = vsel %vm15385_vm1, %v1346_v46, %v1348_v8 }
  0x89   : > { %1672 = vmatmul.bf16.gmra.mxu3 %v1575_v17  ;;  %v1581_v17 = vsel %vm15385_vm1, %v1578_v47, %v1580_v9  ;;  %v2378_v47 = vrot.slane %v2376_v28, 2 }
  0x96   : > { %1182 = vmatmul.bf16.gmra.mxu0 %v1070_v29  ;;  %v11357_v29 = vld [vmem:[%s15351_s1 + $0x30] sm:$0xff] }
  0x97   : > { %1293 = vmatmul.bf16.gmra.mxu1 %v11252_v3  ;;  %v1081_v3 = vor.u32 %v1079_v60, %v1077_v45  ;;  %3441 = vmatpush.bf16.msra.mxu2 %v11357_v29  ;;  %v2206_v60 = vrot.slane %v12326_v19, 2 }
  0x98   : > { %1445 = vmatmul.bf16.gmra.mxu2 %v1345_v30  ;;  %v2379_v30 = vshll.u32 %v12320_v14, 16 }
  0x99   : > { %1677 = vmatmul.bf16.gmra.mxu3 %v1577_v32  ;;  %v1086_v13 = vsel %vm15370_vm0, %v1081_v3, %v1085_v4  ;;  %v2384_v32 = vshrl.u32 %v12326_v19, 16 }
  0x9b   : > { %v2386_v50 = vrot.slane %v2384_v32, 2 }
  0xa6   : > { %1187 = vmatmul.bf16.gmra.mxu0 %v1078_v49  ;;  %v2381_v49 = vrot.slane %v2379_v30, 3 }
  0xa7   : > { %1298 = vmatmul.bf16.gmra.mxu1 %v11253_v18  ;;  %v1951_v18 = vld [vmem:[%s12069_s16 + $0x8] sm:$0xc] }
  0xa8   : > { %1450 = vmatmul.bf16.gmra.mxu2 %v1347_v51  ;;  %v1970_v27 = vunpack.c.l.b16 %v1951_v18  ;;  %v2389_v51 = vrot.slane %v2387_v33, 3  ;;  %v2382_v61 = vor.u32 %v2381_v49, %v2378_v47 }
  0xa9   : > { %1682 = vmatmul.bf16.gmra.mxu3 %v1579_v52 }
  0xaa   : > { %v1971_v46 = vpack.c.b16 %v1535_v31, %v1970_v27  ;;  %v1740_v31 = vor.u32 %v1739_v36, %v1736_v35  ;;  %v2390_v62 = vor.u32 %v2389_v51, %v2386_v50  ;;  %v11340_v35 = vld [vmem:[%s15351_s1 + $0x228] sm:$0xff] }
  0xab   : > { %v11372_v36 = vld [vmem:[%s15351_s1 + $0xa8] sm:$0xff]  ;;  %2693 = vmatpush.bf16.msra.mxu0 %v11340_v35 }
  0xac   : > { %v1973_v56 = vrot.slane %v1971_v46, 2  ;;  %v1749_v8 = vsel %vm15372_vm2, %v1740_v31, %v1748_v55  ;;  %3592 = vmatpush.bf16.msra.mxu3 %v11372_v36  ;;  %v12389_v31 = vld [vmem:[%s12069_s16 + $0x28] sm:$0xff]  ;;  %v12418_v36 = vld [vmem:[%s12069_s16 + $0x30] sm:$0xff] }
  0xae   : > { %v1975_v42 = vsel %vm15381_vm3, %v1973_v56, %v1974_v57 }
  0xb3   : > { %v1153_v11 = vpop.f32.mrf.mxu0 }
  0xb4   : > { %v1264_v12 = vpop.f32.mrf.mxu1 }
  0xb5   : > { %v1265_v15 = vadd.f32 %v1264_v12, %v1153_v11  ;;  %v2207_v11 = vsel %vm15381_vm3, %v2205_v59, %v2206_v60  ;;  %v2391_v12 = vsel %vm15371_vm4, %v2382_v61, %v2390_v62  ;;  %v1760_v59 = vshrl.u32 %v12204_v25, 16 }
  0xb6   : > { %1192 = vmatmul.bf16.gmra.mxu0 %v1086_v13  ;;  %v12360_v13 = vld [vmem:[%s12069_s16 + $0x20] sm:$0xff]  ;;  %v1763_v61 = vshll.u32 %v12204_v25, 16 }
  0xb7   : > { %1303 = vmatmul.bf16.gmra.mxu1 %v11254_v34  ;;  %v2396_v18 = vshll.u32 %v12360_v13, 16 }
  0xb8   : > { %1455 = vmatmul.bf16.gmra.mxu2 %v1349_v16  ;;  %v1754_v16 = vshll.u32 %v12177_v7, 16 }
  0xb9   : > { %1687 = vmatmul.bf16.gmra.mxu3 %v1581_v17  ;;  %v2393_v17 = vshrl.u32 %v12360_v13, 16  ;;  %v2398_v33 = vrot.slane %v2396_v18, 3 }
  0xba   : > { %v1756_v29 = vrot.slane %v1754_v16, 2  ;;  %v11371_v16 = vld [vmem:[%s15351_s1 + $0xa0] sm:$0xff] }
  0xbb   : > { %v1416_v43 = vpop.f32.mrf.mxu2  ;;  %v1155_v44 = vpop.f32.mrf.mxu0  ;;  %v2395_v32 = vrot.slane %v2393_v17, 2  ;;  %v11363_v17 = vld [vmem:[%s15351_s1 + $0x60] sm:$0xff]  ;;  %3593 = vmatpush.bf16.msra.mxu3 %v11371_v16 }
  0xbc   : > { %v1648_v34 = vpop.f32.mrf.mxu3  ;;  %v1461_v39 = vadd.f32 %v1416_v43, %v1265_v15  ;;  %v1266_v45 = vpop.f32.mrf.mxu1  ;;  %v1751_v15 = vshrl.u32 %v12177_v7, 16  ;;  %3332 = vmatpush.bf16.msra.mxu1 %v11363_v17  ;;  %v12444_v17 = vld [vmem:[%s12069_s16 + $0x38] sm:$0xff] }
  0xbd   : > { %v1267_v48 = vadd.f32 %v1266_v45, %v1155_v44  ;;  %v2208_v44 = vrot.slane %v12360_v13, 2  ;;  %v2399_v45 = vor.u32 %v2398_v33, %v2395_v32 }
  0xbe   : > { %v12341_v52 = vadd.f32 %v1648_v34, %v1461_v39  ;;  %v1753_v28 = vrot.slane %v1751_v15, 1  ;;  %v11356_v34 = vld [vmem:[%s15351_s1 + $0x28] sm:$0xff]  ;;  %v1976_v39 = vrot.slane %v12177_v7, 2  ;;  %v11339_v15 = vld [vmem:[%s15351_s1 + $0x220] sm:$0xff] }
  0xbf   : > { %3442 = vmatpush.bf16.msra.mxu2 %v11356_v34  ;;  %v2209_v7 = vsel %vm15381_vm3, %v2206_v60, %v2208_v44  ;;  %v2400_v23 = vsel %vm15371_vm4, %v2390_v62, %v2399_v45  ;;  %2694 = vmatpush.bf16.msra.mxu0 %v11339_v15 }
  0xc0   : > { %v1757_v38 = vor.u32 %v1756_v29, %v1753_v28  ;;  %v1977_v53 = vsel %vm15381_vm3, %v1974_v57, %v1976_v39  ;;  %v2405_v57 = vshll.u32 %v12389_v31, 16 }
  0xc2   : > { %v1758_v51 = vsel %vm15372_vm2, %v1748_v55, %v1757_v38  ;;  %v2402_v55 = vshrl.u32 %v12389_v31, 16 }
  0xc3   : > { %v1418_v63 = vpop.f32.mrf.mxu2  ;;  %v1158_v4 = vpop.f32.mrf.mxu0 }
  0xc4   : > { %v1650_v2 = vpop.f32.mrf.mxu3  ;;  %v1462_v3 = vadd.f32 %v1418_v63, %v1267_v48  ;;  %v1269_v5 = vpop.f32.mrf.mxu1 }
  0xc5   : > { %v1270_v9 = vadd.f32 %v1269_v5, %v1158_v4  ;;  %v1762_v4 = vrot.slane %v1760_v59, 1  ;;  %v1765_v5 = vrot.slane %v1763_v61, 2  ;;  %v11354_v61 = vld [vmem:[%s15351_s1 + $0x18] sm:$0xff] }
  0xc6   : > { %v12362_v14 = vadd.f32 %v1650_v2, %v1462_v3  ;;  %1887 = vmatmul.bf16.vlgmr.msrb.gmra.mxu0 %v1749_v8 }
  0xc7   : > { %2057 = vmatmul.bf16.vlgmr.msrb.gmra.mxu1 %v1975_v42  ;;  %v2404_v42 = vrot.slane %v2402_v55, 2  ;;  %v1766_v18 = vor.u32 %v1765_v5, %v1762_v4  ;;  %v11338_v55 = vld [vmem:[%s15351_s1 + $0x218] sm:$0xff] }
  0xc8   : > { %2289 = vmatmul.bf16.vlgmr.msrb.gmra.mxu2 %v2207_v11  ;;  %2695 = vmatpush.bf16.msra.mxu0 %v11338_v55 }
  0xc9   : > { %2529 = vmatmul.bf16.vlgmr.msrb.gmra.mxu3 %v2391_v12  ;;  %v11355_v12 = vld [vmem:[%s15351_s1 + $0x20] sm:$0xff]  ;;  %v1767_v32 = vsel %vm15372_vm2, %v1757_v38, %v1766_v18  ;;  %v2411_v38 = vshrl.u32 %v12418_v36, 16 }
  0xca   : > { %3443 = vmatpush.bf16.msra.mxu2 %v11355_v12 }
  0xcb   : > { %v1421_v20 = vpop.f32.mrf.mxu2  ;;  %v1160_v26 = vpop.f32.mrf.mxu0 }
  0xcc   : > { %v1653_v21 = vpop.f32.mrf.mxu3  ;;  %v1463_v24 = vadd.f32 %v1421_v20, %v1270_v9  ;;  %v1271_v27 = vpop.f32.mrf.mxu1  ;;  %v2407_v9 = vrot.slane %v2405_v57, 3  ;;  %v1978_v20 = vrot.slane %v12204_v25, 2  ;;  %v11370_v57 = vld [vmem:[%s15351_s1 + $0x98] sm:$0xff] }
  0xcd   : > { %v1272_v30 = vadd.f32 %v1271_v27, %v1160_v26  ;;  %3594 = vmatpush.bf16.msra.mxu3 %v11370_v57 }
  0xce   : > { %v12368_v43 = vadd.f32 %v1653_v21, %v1463_v24  ;;  %v2210_v21 = vrot.slane %v12389_v31, 2  ;;  %v2408_v24 = vor.u32 %v2407_v9, %v2404_v42  ;;  %v1979_v33 = vsel %vm15381_vm3, %v1976_v39, %v1978_v20  ;;  %3444 = vmatpush.bf16.msra.mxu2 %v11354_v61 }
  0xcf   : > { %v2414_v39 = vshll.u32 %v12418_v36, 16 }
  0xd0   : > { %v2211_v25 = vsel %vm15381_vm3, %v2208_v44, %v2210_v21  ;;  %v2409_v35 = vsel %vm15371_vm4, %v2399_v45, %v2408_v24 }
  0xd3   : > { %v1423_v46 = vpop.f32.mrf.mxu2  ;;  %v1163_v49 = vpop.f32.mrf.mxu0 }
  0xd4   : > { %v1655_v47 = vpop.f32.mrf.mxu3  ;;  %v1464_v48 = vadd.f32 %v1423_v46, %v1272_v30  ;;  %v1274_v50 = vpop.f32.mrf.mxu1  ;;  %v1769_v46 = vshrl.u32 %v12224_v41, 16 }
  0xd5   : > { %v1275_v54 = vadd.f32 %v1274_v50, %v1163_v49 }
  0xd6   : > { %v12391_v56 = vadd.f32 %v1655_v47, %v1464_v48  ;;  %1892 = vmatmul.bf16.gmra.mxu0 %v1758_v51  ;;  %v1772_v47 = vshll.u32 %v12224_v41, 16  ;;  %v1771_v51 = vrot.slane %v1769_v46, 1 }
  0xd7   : > { %2062 = vmatmul.bf16.gmra.mxu1 %v1977_v53 }
  0xd8   : > { %2294 = vmatmul.bf16.gmra.mxu2 %v2209_v7  ;;  %v1774_v53 = vrot.slane %v1772_v47, 2  ;;  %v2413_v7 = vrot.slane %v2411_v38, 2 }
  0xd9   : > { %2534 = vmatmul.bf16.gmra.mxu3 %v2400_v23  ;;  %v2416_v23 = vrot.slane %v2414_v39, 3  ;;  %v11353_v39 = vld [vmem:[%s15351_s1 + $0x10] sm:$0xff] }
  0xda   : > { %3445 = vmatpush.bf16.msra.mxu2 %v11353_v39 }
  0xdb   : > { %v1426_v63 = vpop.f32.mrf.mxu2  ;;  %v1165_v62 = vpop.f32.mrf.mxu0 }
  0xdc   : > { %v1658_v60 = vpop.f32.mrf.mxu3  ;;  %v1465_v2 = vadd.f32 %v1426_v63, %v1275_v54  ;;  %v1276_v3 = vpop.f32.mrf.mxu1  ;;  %v1775_v63 = vor.u32 %v1774_v53, %v1771_v51 }
  0xdd   : > { %v1277_v8 = vadd.f32 %v1276_v3, %v1165_v62  ;;  %v2417_v62 = vor.u32 %v2416_v23, %v2413_v7 }
  0xde   : > { %v12397_v11 = vadd.f32 %v1658_v60, %v1465_v2  ;;  %v1980_v60 = vrot.slane %v12224_v41, 2  ;;  %v2212_v2 = vrot.slane %v12418_v36, 2  ;;  %v1776_v9 = vsel %vm15372_vm2, %v1766_v18, %v1775_v63 }
  0xdf   : > { %v2418_v41 = vsel %vm15371_vm4, %v2408_v24, %v2417_v62  ;;  %v1778_v18 = vshrl.u32 %v12244_v58, 16  ;;  %v2423_v24 = vshll.u32 %v12444_v17, 16 }
  0xe0   : > { %v1981_v12 = vsel %vm15381_vm3, %v1978_v20, %v1980_v60  ;;  %v2213_v16 = vsel %vm15381_vm3, %v2210_v21, %v2212_v2  ;;  %v1781_v20 = vshll.u32 %v12244_v58, 16  ;;  %v2420_v21 = vshrl.u32 %v12444_v17, 16 }
  0xe1   : > { %v2425_v47 = vrot.slane %v2423_v24, 3 }
  0xe2   : > { %v2422_v46 = vrot.slane %v2420_v21, 2 }
  0xe3   : > { %v1428_v26 = vpop.f32.mrf.mxu2  ;;  %v1168_v29 = vpop.f32.mrf.mxu0 }
  0xe4   : > { %v1660_v27 = vpop.f32.mrf.mxu3  ;;  %v1466_v28 = vadd.f32 %v1428_v26, %v1277_v8  ;;  %v1279_v30 = vpop.f32.mrf.mxu1 }
  0xe5   : > { %v1280_v34 = vadd.f32 %v1279_v30, %v1168_v29 }
  0xe6   : > { %v12420_v37 = vadd.f32 %v1660_v27, %v1466_v28  ;;  %1897 = vmatmul.bf16.gmra.mxu0 %v1767_v32  ;;  %v11362_v27 = vld [vmem:[%s15351_s1 + $0x58] sm:$0xff] }
  0xe7   : > { %2067 = vmatmul.bf16.gmra.mxu1 %v1979_v33 }
  0xe8   : > { %2299 = vmatmul.bf16.gmra.mxu2 %v2211_v25  ;;  %3333 = vmatpush.bf16.msra.mxu1 %v11362_v27  ;;  %v1783_v25 = vrot.slane %v1781_v20, 2 }
  0xe9   : > { %2539 = vmatmul.bf16.gmra.mxu3 %v2409_v35 }
  0xeb   : > { %v1431_v48 = vpop.f32.mrf.mxu2  ;;  %v1170_v45 = vpop.f32.mrf.mxu0 }
  0xec   : > { %v1663_v44 = vpop.f32.mrf.mxu3  ;;  %v1467_v49 = vadd.f32 %v1431_v48, %v1280_v34  ;;  %v1281_v50 = vpop.f32.mrf.mxu1  ;;  %v1780_v34 = vrot.slane %v1778_v18, 1 }
  0xed   : > { %v1282_v54 = vadd.f32 %v1281_v50, %v1170_v45  ;;  %v2426_v45 = vor.u32 %v2425_v47, %v2422_v46 }
  0xee   : > { %v12426_v59 = vadd.f32 %v1663_v44, %v1467_v49  ;;  %v1784_v48 = vor.u32 %v1783_v25, %v1780_v34  ;;  %v1982_v44 = vrot.slane %v12244_v58, 2  ;;  %v2214_v49 = vrot.slane %v12444_v17, 2 }
  0xf0   : > { %v1785_v23 = vsel %vm15372_vm2, %v1775_v63, %v1784_v48  ;;  %v1983_v61 = vsel %vm15381_vm3, %v1980_v60, %v1982_v44  ;;  %v2215_v57 = vsel %vm15381_vm3, %v2212_v2, %v2214_v49  ;;  %v11361_v63 = vld [vmem:[%s15351_s1 + $0x50] sm:$0xff]  ;;  %v1787_v60 = vshrl.u32 %v12261_v10, 16 }
  0xf1   : > { %v1790_v2 = vshll.u32 %v12261_v10, 16  ;;  %3334 = vmatpush.bf16.msra.mxu1 %v11361_v63 }
  0xf2   : > { %v1789_v27 = vrot.slane %v1787_v60, 1 }
  0xf3   : > { %v1433_v3 = vpop.f32.mrf.mxu2  ;;  %v1173_v8 = vpop.f32.mrf.mxu0  ;;  %v1792_v18 = vrot.slane %v1790_v2, 2 }
  0xf4   : > { %v1665_v4 = vpop.f32.mrf.mxu3  ;;  %v1468_v5 = vadd.f32 %v1433_v3, %v1282_v54  ;;  %v1284_v42 = vpop.f32.mrf.mxu1  ;;  %v2427_v3 = vsel %vm15371_vm4, %v2417_v62, %v2426_v45 }
  0xf5   : > { %v1285_v15 = vadd.f32 %v1284_v42, %v1173_v8  ;;  %v11369_v8 = vld [vmem:[%s15351_s1 + $0x90] sm:$0xff] }
  0xf6   : > { %v12446_v26 = vadd.f32 %v1665_v4, %v1468_v5  ;;  %1902 = vmatmul.bf16.gmra.mxu0 %v1776_v9  ;;  %v12467_v4 = vld [vmem:[%s12069_s16 + $0x40] sm:$0xff]  ;;  %v11337_v5 = vld [vmem:[%s15351_s1 + $0x210] sm:$0xff]  ;;  %3595 = vmatpush.bf16.msra.mxu3 %v11369_v8 }
  0xf7   : > { %2072 = vmatmul.bf16.gmra.mxu1 %v1981_v12  ;;  %v2429_v62 = vshrl.u32 %v12467_v4, 16  ;;  %v2432_v42 = vshll.u32 %v12467_v4, 16  ;;  %2696 = vmatpush.bf16.msra.mxu0 %v11337_v5 }
  0xf8   : > { %2304 = vmatmul.bf16.gmra.mxu2 %v2213_v16 }
  0xf9   : > { %2544 = vmatmul.bf16.gmra.mxu3 %v2418_v41  ;;  %v2431_v21 = vrot.slane %v2429_v62, 2  ;;  %v2434_v24 = vrot.slane %v2432_v42, 3 }
  0xfb   : > { %v1436_v28 = vpop.f32.mrf.mxu2  ;;  %v1175_v32 = vpop.f32.mrf.mxu0 }
  0xfc   : > { %v1668_v29 = vpop.f32.mrf.mxu3  ;;  %v1469_v30 = vadd.f32 %v1436_v28, %v1285_v15  ;;  %v1286_v33 = vpop.f32.mrf.mxu1 }
  0xfd   : > { %v1287_v35 = vadd.f32 %v1286_v33, %v1175_v32  ;;  %v2216_v32 = vrot.slane %v12467_v4, 2  ;;  %v2435_v33 = vor.u32 %v2434_v24, %v2431_v21 }
  0xfe   : > { %v12455_v38 = vadd.f32 %v1668_v29, %v1469_v30  ;;  %v1793_v29 = vor.u32 %v1792_v18, %v1789_v27  ;;  %v1984_v30 = vrot.slane %v12261_v10, 2 }
 0x100   : > { %v1794_v39 = vsel %vm15372_vm2, %v1784_v48, %v1793_v29  ;;  %v11368_v48 = vld [vmem:[%s15351_s1 + $0x88] sm:$0xff] }
 0x101   : > { %3596 = vmatpush.bf16.msra.mxu3 %v11368_v48 }
 0x103   : > { %v1438_v50 = vpop.f32.mrf.mxu2  ;;  %v1178_v54 = vpop.f32.mrf.mxu0 }
 0x104   : > { %v1670_v51 = vpop.f32.mrf.mxu3  ;;  %v1470_v53 = vadd.f32 %v1438_v50, %v1287_v35  ;;  %v1289_v7 = vpop.f32.mrf.mxu1  ;;  %v1985_v50 = vsel %vm15381_vm3, %v1982_v44, %v1984_v30  ;;  %v1796_v44 = vshrl.u32 %v12272_v22, 16 }
 0x105   : > { %v1290_v55 = vadd.f32 %v1289_v7, %v1178_v54  ;;  %v2436_v54 = vsel %vm15371_vm4, %v2426_v45, %v2435_v33  ;;  %v12493_v7 = vld [vmem:[%s12069_s16 + $0x48] sm:$0xff] }
 0x106   : > { %v12469_v58 = vadd.f32 %v1670_v51, %v1470_v53  ;;  %1907 = vmatmul.bf16.gmra.mxu0 %v1785_v23  ;;  %v2217_v53 = vsel %vm15381_vm3, %v2214_v49, %v2216_v32  ;;  %v11352_v23 = vld [vmem:[%s15351_s1 + $0x8] sm:$0xff]  ;;  %v1799_v49 = vshll.u32 %v12272_v22, 16  ;;  %v1798_v2 = vrot.slane %v1796_v44, 1 }
 0x107   : > { %2077 = vmatmul.bf16.gmra.mxu1 %v1983_v61  ;;  %v11336_v61 = vld [vmem:[%s15351_s1 + $0x208] sm:$0xff]  ;;  %3446 = vmatpush.bf16.msra.mxu2 %v11352_v23  ;;  %v2218_v27 = vrot.slane %v12493_v7, 2 }
 0x108   : > { %2309 = vmatmul.bf16.gmra.mxu2 %v2215_v57  ;;  %v11360_v45 = vld [vmem:[%s15351_s1 + $0x48] sm:$0xff]  ;;  %v2441_v57 = vshll.u32 %v12493_v7, 16  ;;  %2697 = vmatpush.bf16.msra.mxu0 %v11336_v61  ;;  %v1801_v62 = vrot.slane %v1799_v49, 2 }
 0x109   : > { %2549 = vmatmul.bf16.gmra.mxu3 %v2427_v3  ;;  %3335 = vmatpush.bf16.msra.mxu1 %v11360_v45 }
 0x10b   : > { %v1441_v9 = vpop.f32.mrf.mxu2  ;;  %v1180_v16 = vpop.f32.mrf.mxu0 }
 0x10c   : > { %v1673_v12 = vpop.f32.mrf.mxu3  ;;  %v1471_v15 = vadd.f32 %v1441_v9, %v1290_v55  ;;  %v1291_v41 = vpop.f32.mrf.mxu1  ;;  %v2438_v55 = vshrl.u32 %v12493_v7, 16 }
 0x10d   : > { %v1292_v20 = vadd.f32 %v1291_v41, %v1180_v16  ;;  %v1802_v16 = vor.u32 %v1801_v62, %v1798_v2  ;;  %v1986_v41 = vrot.slane %v12272_v22, 2  ;;  %v2353_v62 = vld [vmem:[%s12069_s16 + $0x58] sm:$0x7] }
 0x10e   : > { %v12484_v28 = vadd.f32 %v1673_v12, %v1471_v15  ;;  %v2440_v9 = vrot.slane %v2438_v55, 2  ;;  %v2443_v12 = vrot.slane %v2441_v57, 3 }
 0x110   : > { %v2444_v18 = vor.u32 %v2443_v12, %v2440_v9  ;;  %v1988_v9 = vrot.slane %v12292_v40, 2 }
 0x113   : > { %v1443_v34 = vpop.f32.mrf.mxu2  ;;  %v1183_v46 = vpop.f32.mrf.mxu0 }
 0x114   : > { %v1675_v25 = vpop.f32.mrf.mxu3  ;;  %v1472_v35 = vadd.f32 %v1443_v34, %v1292_v20  ;;  %v1294_v47 = vpop.f32.mrf.mxu1 }
 0x115   : > { %v1295_v51 = vadd.f32 %v1294_v47, %v1183_v46  ;;  %v1987_v46 = vsel %vm15381_vm3, %v1984_v30, %v1986_v41  ;;  %v1808_v30 = vshll.u32 %v12292_v40, 16 }
 0x116   : > { %v12495_v10 = vadd.f32 %v1675_v25, %v1472_v35  ;;  %1912 = vmatmul.bf16.gmra.mxu0 %v1794_v39  ;;  %v1803_v35 = vsel %vm15372_vm2, %v1793_v29, %v1802_v16  ;;  %v2219_v39 = vsel %vm15381_vm3, %v2216_v32, %v2218_v27  ;;  %v1805_v29 = vshrl.u32 %v12292_v40, 16  ;;  %v11335_v32 = vld [vmem:[%s15351_s1 + $0x200] sm:$0xff] }
 0x117   : > { %2082 = vmatmul.bf16.gmra.mxu1 %v1985_v50  ;;  %v2445_v50 = vsel %vm15371_vm4, %v2435_v33, %v2444_v18  ;;  %v11367_v33 = vld [vmem:[%s15351_s1 + $0x80] sm:$0xff]  ;;  %2698 = vmatpush.bf16.msra.mxu0 %v11335_v32 }
 0x118   : > { %2314 = vmatmul.bf16.gmra.mxu2 %v2217_v53  ;;  %v11351_v53 = vld [vmem:[%s15351_s1] sm:$0xff]  ;;  %3597 = vmatpush.bf16.msra.mxu3 %v11367_v33  ;;  %v1807_v57 = vrot.slane %v1805_v29, 1 }
 0x119   : > { %2554 = vmatmul.bf16.gmra.mxu3 %v2436_v54  ;;  %v11359_v54 = vld [vmem:[%s15351_s1 + $0x40] sm:$0xff]  ;;  %3447 = vmatpush.bf16.msra.mxu2 %v11351_v53 }
 0x11a   : > { %3336 = vmatpush.bf16.msra.mxu1 %v11359_v54  ;;  %v2139_v54 = vld [vmem:[%s12069_s16 + $0x58] sm:$0x3] }
 0x11b   : > { %v1446_v3 = vpop.f32.mrf.mxu2  ;;  %v1185_v63 = vpop.f32.mrf.mxu0 }
 0x11c   : > { %v1678_v5 = vpop.f32.mrf.mxu3  ;;  %v1473_v8 = vadd.f32 %v1446_v3, %v1295_v51  ;;  %v1296_v60 = vpop.f32.mrf.mxu1  ;;  %v12522_v51 = vld [vmem:[%s12069_s16 + $0x50] sm:$0xff]  ;;  %v1810_v3 = vrot.slane %v1808_v30, 2 }
 0x11d   : > { %v1297_v42 = vadd.f32 %v1296_v60, %v1185_v63  ;;  %v2447_v23 = vshrl.u32 %v12522_v51, 16  ;;  %v2450_v61 = vshll.u32 %v12522_v51, 16  ;;  %v1711_v60 = vld [vmem:[%s12069_s16 + $0x50] sm:$0x3] }
 0x11e   : > { %v12513_v15 = vadd.f32 %v1678_v5, %v1473_v8  ;;  %v1730_v12 = vunpack.c.l.b16 %v1711_v60 }
 0x11f   : > { %v2449_v8 = vrot.slane %v2447_v23, 2  ;;  %v2452_v63 = vrot.slane %v2450_v61, 3 }
 0x120   : > { %v1731_v53 = vpack.c.b16 %v1730_v12, %v1730_v12 }
 0x122   : > { %v1814_v23 = vshrl.u32 %v1731_v53, 16  ;;  %v1817_v61 = vshll.u32 %v1731_v53, 16 }
 0x123   : > { %v1448_v20 = vpop.f32.mrf.mxu2  ;;  %v1188_v34 = vpop.f32.mrf.mxu0 }
 0x124   : > { %v1680_v21 = vpop.f32.mrf.mxu3  ;;  %v1474_v24 = vadd.f32 %v1448_v20, %v1297_v42  ;;  %v1299_v25 = vpop.f32.mrf.mxu1  ;;  %v1811_v42 = vor.u32 %v1810_v3, %v1807_v57  ;;  %v2220_v20 = vrot.slane %v12522_v51, 2 }
 0x125   : > { %v1300_v47 = vadd.f32 %v1299_v25, %v1188_v34 }
 0x126   : > { %v12524_v22 = vadd.f32 %v1680_v21, %v1474_v24  ;;  %1917 = vmatmul.bf16.gmra.mxu0 %v1803_v35  ;;  %v2453_v21 = vor.u32 %v2452_v63, %v2449_v8  ;;  %v2372_v24 = vunpack.c.l.b16 %v2353_v62  ;;  %v2221_v30 = vsel %vm15381_vm3, %v2218_v27, %v2220_v20  ;;  %v11422_v27 = vld [vmem:[%s15351_s1 + $0x1b8] sm:$0xff] }
 0x127   : > { %2087 = vmatmul.bf16.gmra.mxu1 %v1987_v46  ;;  %4458 = vmatpush.bf16.msrb.mxu3 %v11422_v27  ;;  %v1819_v8 = vrot.slane %v1817_v61, 2  ;;  %v2593_v61 = vld [vmem:[%s12069_s16 + $0x10] sm:$0x8]  ;;  %v11715_v27 = vld [vmem:[%s12069_s16 + $0x48] sm:$0xff]  }
 0x128   : > { %2319 = vmatmul.bf16.gmra.mxu2 %v2219_v39  ;;  %v1812_v39 = vsel %vm15372_vm2, %v1802_v16, %v1811_v42  ;;  %v2454_v40 = vsel %vm15371_vm4, %v2444_v18, %v2453_v21  ;;  %v12552_v32 = vpack.c.b16 %v2372_v24, %v2372_v24  ;;  %v11406_v16 = vld [vmem:[%s15351_s1 + $0x178] sm:$0xff]  ;;  %v2194_v18 = vunpack.c.l.b16 %v2139_v54 }
 0x129   : > { %2559 = vmatmul.bf16.gmra.mxu3 %v2445_v50  ;;  %v1989_v50 = vsel %vm15381_vm3, %v1986_v41, %v1988_v9  ;;  %v11390_v41 = vld [vmem:[%s15351_s1 + $0xf8] sm:$0xff]  ;;  %4227 = vmatpush.bf16.msrb.mxu2 %v11406_v16 }
 0x12a   : > { %3821 = vmatpush.bf16.msrb.mxu0 %v11390_v41  ;;  %v2204_v60 = vpack.c.b16 %v2194_v18, %v2194_v18 }
 0x12b   : > { %v1451_v48 = vpop.f32.mrf.mxu2  ;;  %v1190_v45 = vpop.f32.mrf.mxu0  ;;  %4459 = vmatpush.bf16.msrb.mxu3 %v11421_v1 }
 0x12c   : > { %v1683_v44 = vpop.f32.mrf.mxu3  ;;  %v1475_v49 = vadd.f32 %v1451_v48, %v1300_v47  ;;  %v1301_v55 = vpop.f32.mrf.mxu1  ;;  %v2456_v48 = vshrl.u32 %v12552_v32, 16 }
 0x12d   : > { %v1302_v5 = vadd.f32 %v1301_v55, %v1190_v45 }
 0x12e   : > { %v12543_v2 = vadd.f32 %v1683_v44, %v1475_v49  ;;  %v2459_v44 = vshll.u32 %v12552_v32, 16  ;;  %v2458_v62 = vrot.slane %v2456_v48, 2 }
 0x130   : > { %v2461_v12 = vrot.slane %v2459_v44, 3  ;;  %v2612_v44 = vunpack.c.l.b16 %v2593_v61 }
 0x133   : > { %v1453_v34 = vpop.f32.mrf.mxu2  ;;  %v1193_v46 = vpop.f32.mrf.mxu0 }
 0x134   : > { %v1685_v25 = vpop.f32.mrf.mxu3  ;;  %v1476_v35 = vadd.f32 %v1453_v34, %v1302_v5  ;;  %v1304_v47 = vpop.f32.mrf.mxu1  ;;  %v1816_v5 = vrot.slane %v1814_v23, 1  ;;  %v11398_v34 = vld [vmem:[%s15351_s1 + $0x138] sm:$0xff] }
 0x135   : > { %v1305_v29 = vadd.f32 %v1304_v47, %v1193_v46  ;;  %4059 = vmatpush.bf16.msrb.mxu1 %v11398_v34  ;;  %v2222_v46 = vrot.slane %v2204_v60, 2  ;;  %v2462_v47 = vor.u32 %v2461_v12, %v2458_v62 }
 0x136   : > { %v12554_v33 = vadd.f32 %v1685_v25, %v1476_v35  ;;  %1922 = vmatmul.bf16.gmra.mxu0 %v1812_v39  ;;  %v1820_v25 = vor.u32 %v1819_v8, %v1816_v5  ;;  %v1990_v35 = vrot.slane %v1731_v53, 2  ;;  %v3197_v8 = vshrl.u32 %v11715_v27, 16 }
 0x137   : > { %2092 = vmatmul.bf16.gmra.mxu1 %v1989_v50  ;;  %v2223_v53 = vsel %vm15381_vm3, %v2220_v20, %v2222_v46  ;;  %v2463_v41 = vsel %vm15371_vm4, %v2453_v21, %v2462_v47  ;;  %v11717_v20 = vld [vmem:[%s12069_s16 + $0x48] sm:$0xe]  ;;  %v2616_v47 = vrot.slane %v12326_v19, 3 }
 0x138   : > { %2324 = vmatmul.bf16.gmra.mxu2 %v2221_v30  ;;  %v1821_v54 = vsel %vm15372_vm2, %v1811_v42, %v1820_v25  ;;  %v1991_v23 = vsel %vm15381_vm3, %v1988_v9, %v1990_v35  ;;  %v12583_v42 = vld [vmem:[%s12069_s16 + $0x50] sm:$0xff]  ;;  %v3199_v9 = vshll.u32 %v11715_v27, 16 }
 0x139   : > { %2564 = vmatmul.bf16.gmra.mxu3 %v2454_v40  ;;  %v3204_v60 = vshll.u32 %v12583_v42, 16  ;;  %v11389_v25 = vld [vmem:[%s15351_s1 + $0xf0] sm:$0xff] }
 0x13a   : > { %v11397_v35 = vld [vmem:[%s15351_s1 + $0x130] sm:$0xff]  ;;  %3822 = vmatpush.bf16.msrb.mxu0 %v11389_v25 }
 0x13b   : > { %v1456_v49 = vpop.f32.mrf.mxu2  ;;  %v1195_v57 = vpop.f32.mrf.mxu0  ;;  %4060 = vmatpush.bf16.msrb.mxu1 %v11397_v35 }
 0x13c   : > { %v1688_v45 = vpop.f32.mrf.mxu3  ;;  %v1477_v55 = vadd.f32 %v1456_v49, %v1305_v29  ;;  %v1306_v3 = vpop.f32.mrf.mxu1  ;;  %v11716_v49 = vld [vmem:[%s12069_s16 + $0x48] sm:$0xf0] }
 0x13d   : > { %v1307_v63 = vadd.f32 %v1306_v3, %v1195_v57  ;;  %v11718_v12 = vor.u32 %v11717_v20, %v11716_v49 }
 0x13e   : > { %v12568_v24 = vadd.f32 %v1688_v45, %v1477_v55  ;;  %v2613_v55 = vpack.c.b16 %v2177_v6, %v2612_v44 }
 0x140   : > { %v2615_v46 = vrot.slane %v2613_v55, 3  ;;  %v3208_v55 = vshrl.u32 %v12583_v42, 16 }
 0x143   : > { %v1458_v39 = vpop.f32.mrf.mxu2  ;;  %v1888_v30 = vpop.f32.mrf.mxu0 }
 0x144   : > { %v1690_v50 = vpop.f32.mrf.mxu3  ;;  %v1478_v29 = vadd.f32 %v1458_v39, %v1307_v63  ;;  %v2058_v40 = vpop.f32.mrf.mxu1  ;;  %v1933_v16 = vadd.f32 %v1888_v30, %v12341_v52  ;;  %v11405_v52 = vld [vmem:[%s15351_s1 + $0x170] sm:$0xff]  ;;  %v3201_v63 = vrot.slane %v3199_v9, 1  ;;  %v3206_v39 = vrot.slane %v3204_v60, 1  ;;  %v12614_v9 = vld [vmem:[%s12069_s16 + $0x58] sm:$0xff]  ;;  %v11396_v60 = vld [vmem:[%s15351_s1 + $0x128] sm:$0xff] }
 0x145   : > { %4228 = vmatpush.bf16.msrb.mxu2 %v11405_v52  ;;  %v3517_v25 = vrot.slane %v12614_v9, 1  ;;  %4061 = vmatpush.bf16.msrb.mxu1 %v11396_v60 }
 0x146   : > { %v12580_v18 = vadd.f32 %v1690_v50, %v1478_v29  ;;  %v2103_v48 = vadd.f32 %v2058_v40, %v1933_v16  ;;  %1927 = vmatmul.bf16.gmra.mxu0 %v1821_v54  ;;  %v3514_v50 = vrot.slane %v11718_v12, 1  ;;  %v3515_v29 = vrot.slane %v12583_v42, 1 }
 0x147   : > { %2097 = vmatmul.bf16.gmra.mxu1 %v1991_v23  ;;  %v2617_v16 = vsel %vm15366_vm5, %v2615_v46, %v2616_v47 }
 0x148   : > { %2329 = vmatmul.bf16.gmra.mxu2 %v2223_v53 }
 0x149   : > { %2569 = vmatmul.bf16.gmra.mxu3 %v2463_v41  ;;  %v3516_v41 = vsel %vm15385_vm1, %v3514_v50, %v3515_v29 }
 0x14b   : > { %v2290_v21 = vpop.f32.mrf.mxu2  ;;  %v1890_v3 = vpop.f32.mrf.mxu0 }
 0x14c   : > { %v2530_v45 = vpop.f32.mrf.mxu3  ;;  %v2335_v57 = vadd.f32 %v2290_v21, %v2103_v48  ;;  %v2060_v5 = vpop.f32.mrf.mxu1  ;;  %v1934_v62 = vadd.f32 %v1890_v3, %v12362_v14  ;;  %v3202_v14 = vor.u32 %v3201_v63, %v3197_v8  ;;  %v11388_v8 = vld [vmem:[%s15351_s1 + $0xe8] sm:$0xff] }
 0x14d   : > { %v11420_v63 = vld [vmem:[%s15351_s1 + $0x1a8] sm:$0xff]  ;;  %3823 = vmatpush.bf16.msrb.mxu0 %v11388_v8 }
 0x14e   : > { %v12594_v34 = vadd.f32 %v2530_v45, %v2335_v57  ;;  %v2104_v6 = vadd.f32 %v2060_v5, %v1934_v62  ;;  %v3207_v53 = vsel %vm15370_vm0, %v3202_v14, %v3206_v39  ;;  %v3210_v62 = vor.u32 %v3208_v55, %v3206_v39  ;;  %4460 = vmatpush.bf16.msrb.mxu3 %v11420_v63 }
 0x14f   : > { %v3518_v39 = vsel %vm15385_vm1, %v3515_v29, %v3517_v25 }
 0x153   : > { %v2292_v30 = vpop.f32.mrf.mxu2  ;;  %v1893_v23 = vpop.f32.mrf.mxu0 }
 0x154   : > { %v2532_v40 = vpop.f32.mrf.mxu3  ;;  %v2336_v54 = vadd.f32 %v2292_v30, %v2104_v6  ;;  %v2063_v61 = vpop.f32.mrf.mxu1  ;;  %v1935_v19 = vadd.f32 %v1893_v23, %v12368_v43  ;;  %v3212_v43 = vshll.u32 %v12614_v9, 16  ;;  %v12643_v23 = vld [vmem:[%s12069_s16 + $0x60] sm:$0xff] }
 0x156   : > { %v12611_v48 = vadd.f32 %v2532_v40, %v2336_v54  ;;  %v2105_v44 = vadd.f32 %v2063_v61, %v1935_v19  ;;  %2699 = vmatmul.bf16.vlgmr.msra.gmra.mxu0 %v2617_v16  ;;  %v3214_v12 = vrot.slane %v3212_v43, 1  ;;  %v3519_v43 = vrot.slane %v12643_v23, 1 }
 0x157   : > { %3337 = vmatmul.bf16.vlgmr.msra.gmra.mxu1 %v3207_v53 }
 0x158   : > { %3448 = vmatmul.bf16.vlgmr.msra.gmra.mxu2 %v11715_v27  ;;  %v11404_v27 = vld [vmem:[%s15351_s1 + $0x168] sm:$0xff]  ;;  %v3215_v30 = vsel %vm15370_vm0, %v3210_v62, %v3214_v12 }
 0x159   : > { %3598 = vmatmul.bf16.vlgmr.msra.gmra.mxu3 %v3516_v41  ;;  %4229 = vmatpush.bf16.msrb.mxu2 %v11404_v27  ;;  %v3216_v41 = vshrl.u32 %v12614_v9, 16 }
 0x15b   : > { %v2295_v52 = vpop.f32.mrf.mxu2  ;;  %v1895_v21 = vpop.f32.mrf.mxu0 }
 0x15c   : > { %v2535_v49 = vpop.f32.mrf.mxu3  ;;  %v2337_v20 = vadd.f32 %v2295_v52, %v2105_v44  ;;  %v2065_v45 = vpop.f32.mrf.mxu1  ;;  %v1936_v57 = vadd.f32 %v1895_v21, %v12391_v56  ;;  %v2618_v56 = vrot.slane %v12360_v13, 3  ;;  %v2620_v21 = vrot.slane %v12389_v31, 3 }
 0x15e   : > { %v12619_v3 = vadd.f32 %v2535_v49, %v2337_v20  ;;  %v2106_v5 = vadd.f32 %v2065_v45, %v1936_v57  ;;  %v2619_v50 = vsel %vm15366_vm5, %v2616_v47, %v2618_v56  ;;  %v11387_v49 = vld [vmem:[%s15351_s1 + $0xe0] sm:$0xff]  ;;  %v3218_v45 = vor.u32 %v3216_v41, %v3214_v12 }
 0x15f   : > { %v11419_v20 = vld [vmem:[%s15351_s1 + $0x1a0] sm:$0xff]  ;;  %3824 = vmatpush.bf16.msrb.mxu0 %v11387_v49  ;;  %v2621_v31 = vsel %vm15366_vm5, %v2618_v56, %v2620_v21  ;;  %v3520_v12 = vsel %vm15385_vm1, %v3517_v25, %v3519_v43 }
 0x160   : > { %4461 = vmatpush.bf16.msrb.mxu3 %v11419_v20 }
 0x163   : > { %v2297_v1 = vpop.f32.mrf.mxu2  ;;  %v1898_v46 = vpop.f32.mrf.mxu0 }
 0x164   : > { %v2537_v6 = vpop.f32.mrf.mxu3  ;;  %v2338_v35 = vadd.f32 %v2297_v1, %v2106_v5  ;;  %v2068_v14 = vpop.f32.mrf.mxu1  ;;  %v1937_v13 = vadd.f32 %v1898_v46, %v12397_v11  ;;  %v3220_v11 = vshll.u32 %v12643_v23, 16 }
 0x166   : > { %v12639_v40 = vadd.f32 %v2537_v6, %v2338_v35  ;;  %v2107_v54 = vadd.f32 %v2068_v14, %v1937_v13  ;;  %2704 = vmatmul.bf16.gmra.mxu0 %v2619_v50  ;;  %v3222_v55 = vrot.slane %v3220_v11, 1  ;;  %v12672_v35 = vld [vmem:[%s12069_s16 + $0x68] sm:$0xff]  ;;  %v3224_v13 = vshrl.u32 %v12643_v23, 16 }
 0x167   : > { %3342 = vmatmul.bf16.gmra.mxu1 %v3215_v30 }
 0x168   : > { %3453 = vmatmul.bf16.gmra.mxu2 %v12583_v42  ;;  %v11403_v42 = vld [vmem:[%s15351_s1 + $0x160] sm:$0xff]  ;;  %v3223_v60 = vsel %vm15370_vm0, %v3218_v45, %v3222_v55 }
 0x169   : > { %3603 = vmatmul.bf16.gmra.mxu3 %v3518_v39  ;;  %4230 = vmatpush.bf16.msrb.mxu2 %v11403_v42 }
 0x16b   : > { %v2300_v61 = vpop.f32.mrf.mxu2  ;;  %v1900_v47 = vpop.f32.mrf.mxu0 }
 0x16c   : > { %v2540_v16 = vpop.f32.mrf.mxu3  ;;  %v2339_v53 = vadd.f32 %v2300_v61, %v2107_v54  ;;  %v2070_v19 = vpop.f32.mrf.mxu1  ;;  %v1938_v29 = vadd.f32 %v1900_v47, %v12420_v37  ;;  %v11395_v37 = vld [vmem:[%s15351_s1 + $0x120] sm:$0xff]  ;;  %v11386_v61 = vld [vmem:[%s15351_s1 + $0xd8] sm:$0xff]  ;;  %v3226_v47 = vor.u32 %v3224_v13, %v3222_v55 }
 0x16d   : > { %4062 = vmatpush.bf16.msrb.mxu1 %v11395_v37  ;;  %3825 = vmatpush.bf16.msrb.mxu0 %v11386_v61  ;;  %v11394_v37 = vld [vmem:[%s15351_s1 + $0x118] sm:$0xff] }
 0x16e   : > { %v12648_v44 = vadd.f32 %v2540_v16, %v2339_v53  ;;  %v2108_v52 = vadd.f32 %v2070_v19, %v1938_v29  ;;  %v11418_v16 = vld [vmem:[%s15351_s1 + $0x198] sm:$0xff]  ;;  %v2622_v53 = vrot.slane %v12418_v36, 3 }
 0x16f   : > { %4462 = vmatpush.bf16.msrb.mxu3 %v11418_v16  ;;  %v11385_v16 = vld [vmem:[%s15351_s1 + $0xd0] sm:$0xff] }
 0x170   : > { %v2623_v49 = vsel %vm15366_vm5, %v2620_v21, %v2622_v53 }
 0x171   : > { %4063 = vmatpush.bf16.msrb.mxu1 %v11394_v37  ;;  %3826 = vmatpush.bf16.msrb.mxu0 %v11385_v16  ;;  %v2626_v37 = vrot.slane %v12467_v4, 3 }
 0x173   : > { %v2302_v57 = vpop.f32.mrf.mxu2  ;;  %v1903_v8 = vpop.f32.mrf.mxu0 }
 0x174   : > { %v2542_v27 = vpop.f32.mrf.mxu3  ;;  %v2340_v5 = vadd.f32 %v2302_v57, %v2108_v52  ;;  %v2073_v63 = vpop.f32.mrf.mxu1  ;;  %v1939_v62 = vadd.f32 %v1903_v8, %v12426_v59  ;;  %v3228_v59 = vshll.u32 %v12672_v35, 16 }
 0x176   : > { %v12668_v1 = vadd.f32 %v2542_v27, %v2340_v5  ;;  %v2109_v6 = vadd.f32 %v2073_v63, %v1939_v62  ;;  %2709 = vmatmul.bf16.gmra.mxu0 %v2621_v31  ;;  %v3230_v19 = vrot.slane %v3228_v59, 1  ;;  %v12701_v27 = vld [vmem:[%s12069_s16 + $0x70] sm:$0xff]  ;;  %v3232_v63 = vshrl.u32 %v12672_v35, 16 }
 0x177   : > { %3347 = vmatmul.bf16.gmra.mxu1 %v3223_v60  ;;  %v3236_v31 = vshll.u32 %v12701_v27, 16 }
 0x178   : > { %3458 = vmatmul.bf16.gmra.mxu2 %v12614_v9  ;;  %v11402_v9 = vld [vmem:[%s15351_s1 + $0x158] sm:$0xff]  ;;  %v3231_v20 = vsel %vm15370_vm0, %v3226_v47, %v3230_v19  ;;  %v11417_v47 = vld [vmem:[%s15351_s1 + $0x190] sm:$0xff] }
 0x179   : > { %3608 = vmatmul.bf16.gmra.mxu3 %v3520_v12  ;;  %4231 = vmatpush.bf16.msrb.mxu2 %v11402_v9 }
 0x17a   : > { %4463 = vmatpush.bf16.msrb.mxu3 %v11417_v47  ;;  %v11392_v47 = vld [vmem:[%s15351_s1 + $0x108] sm:$0xff] }
 0x17b   : > { %v2305_v46 = vpop.f32.mrf.mxu2  ;;  %v1905_v56 = vpop.f32.mrf.mxu0 }
 0x17c   : > { %v2545_v14 = vpop.f32.mrf.mxu3  ;;  %v2341_v50 = vadd.f32 %v2305_v46, %v2109_v6  ;;  %v2075_v30 = vpop.f32.mrf.mxu1  ;;  %v1940_v25 = vadd.f32 %v1905_v56, %v12446_v26  ;;  %v3521_v26 = vrot.slane %v12672_v35, 1  ;;  %v2624_v6 = vrot.slane %v12444_v17, 3 }
 0x17d   : > { %v3234_v46 = vor.u32 %v3232_v63, %v3230_v19 }
 0x17e   : > { %v12677_v39 = vadd.f32 %v2545_v14, %v2341_v50  ;;  %v2110_v54 = vadd.f32 %v2075_v30, %v1940_v25  ;;  %v3522_v36 = vsel %vm15385_vm1, %v3519_v43, %v3521_v26  ;;  %v3238_v14 = vrot.slane %v3236_v31, 1  ;;  %v12746_v31 = vld [vmem:[%s12069_s16 + $0x80] sm:$0xff] }
 0x17f   : > { %v3523_v50 = vrot.slane %v12701_v27, 1  ;;  %v2625_v25 = vsel %vm15366_vm5, %v2622_v53, %v2624_v6  ;;  %v11393_v53 = vld [vmem:[%s15351_s1 + $0x110] sm:$0xff] }
 0x180   : > { %4064 = vmatpush.bf16.msrb.mxu1 %v11393_v53 }
 0x181   : > { %v3524_v61 = vsel %vm15385_vm1, %v3521_v26, %v3523_v50 }
 0x183   : > { %v2307_v41 = vpop.f32.mrf.mxu2  ;;  %v1908_v52 = vpop.f32.mrf.mxu0 }
 0x184   : > { %v2547_v11 = vpop.f32.mrf.mxu3  ;;  %v2342_v29 = vadd.f32 %v2307_v41, %v2110_v54  ;;  %v2078_v42 = vpop.f32.mrf.mxu1  ;;  %v1941_v45 = vadd.f32 %v1908_v52, %v12455_v38  ;;  %v3239_v54 = vsel %vm15370_vm0, %v3234_v46, %v3238_v14  ;;  %4065 = vmatpush.bf16.msrb.mxu1 %v11392_v47 }
 0x186   : > { %v12694_v55 = vadd.f32 %v2547_v11, %v2342_v29  ;;  %v2111_v57 = vadd.f32 %v2078_v42, %v1941_v45  ;;  %2714 = vmatmul.bf16.gmra.mxu0 %v2623_v49  ;;  %v3240_v42 = vshrl.u32 %v12701_v27, 16 }
 0x187   : > { %3352 = vmatmul.bf16.gmra.mxu1 %v3231_v20 }
 0x188   : > { %3463 = vmatmul.bf16.gmra.mxu2 %v12643_v23  ;;  %v11401_v23 = vld [vmem:[%s15351_s1 + $0x150] sm:$0xff] }
 0x189   : > { %3613 = vmatmul.bf16.gmra.mxu3 %v3522_v36  ;;  %4232 = vmatpush.bf16.msrb.mxu2 %v11401_v23 }
 0x18b   : > { %v2310_v21 = vpop.f32.mrf.mxu2  ;;  %v1910_v8 = vpop.f32.mrf.mxu0 }
 0x18c   : > { %v2550_v5 = vpop.f32.mrf.mxu3  ;;  %v2343_v38 = vadd.f32 %v2310_v21, %v2111_v57  ;;  %v2080_v43 = vpop.f32.mrf.mxu1  ;;  %v1942_v60 = vadd.f32 %v1910_v8, %v12469_v58  ;;  %v3242_v57 = vor.u32 %v3240_v42, %v3238_v14 }
 0x18e   : > { %v12706_v62 = vadd.f32 %v2550_v5, %v2343_v38  ;;  %v2112_v12 = vadd.f32 %v2080_v43, %v1942_v60 }
 0x193   : > { %v2312_v56 = vpop.f32.mrf.mxu2  ;;  %v1913_v59 = vpop.f32.mrf.mxu0 }
 0x194   : > { %v2552_v30 = vpop.f32.mrf.mxu3  ;;  %v2344_v13 = vadd.f32 %v2312_v56, %v2112_v12  ;;  %v2083_v58 = vpop.f32.mrf.mxu1  ;;  %v1943_v9 = vadd.f32 %v1913_v59, %v12484_v28  ;;  %v12730_v28 = vld [vmem:[%s12069_s16 + $0x78] sm:$0xff] }
 0x195   : > { %v3244_v49 = vshll.u32 %v12730_v28, 16  ;;  %v3525_v38 = vrot.slane %v12730_v28, 1 }
 0x196   : > { %v12717_v17 = vadd.f32 %v2552_v30, %v2344_v13  ;;  %v2113_v19 = vadd.f32 %v2083_v58, %v1943_v9  ;;  %2719 = vmatmul.bf16.gmra.mxu0 %v2625_v25  ;;  %v11400_v58 = vld [vmem:[%s15351_s1 + $0x148] sm:$0xff] }
 0x197   : > { %3357 = vmatmul.bf16.gmra.mxu1 %v3239_v54  ;;  %v3246_v21 = vrot.slane %v3244_v49, 1  ;;  %v3526_v13 = vsel %vm15385_vm1, %v3523_v50, %v3525_v38  ;;  %v11416_v50 = vld [vmem:[%s15351_s1 + $0x188] sm:$0xff]  ;;  %4233 = vmatpush.bf16.msrb.mxu2 %v11400_v58  ;;  %v3131_v58 = vld [vmem:[%s12069_s16 + $0x90] sm:$0x1] }
 0x198   : > { %3468 = vmatmul.bf16.gmra.mxu2 %v12672_v35  ;;  %v261_v35 = vlaneseq  ;;  %4464 = vmatpush.bf16.msrb.mxu3 %v11416_v50  ;;  %v3185_v50 = vunpack.c.l.b16 %v3131_v58 }
 0x199   : > { %3618 = vmatmul.bf16.gmra.mxu3 %v3524_v61  ;;  %v3247_v46 = vsel %vm15370_vm0, %v3242_v57, %v3246_v21  ;;  %v3252_v61 = vshll.u32 %v12746_v31, 16 }
 0x19a   : > { %v12738_v5 = vshrl.u32 %v261_v35, 7 }
 0x19b   : > { %v2315_v26 = vpop.f32.mrf.mxu2  ;;  %v1915_v29 = vpop.f32.mrf.mxu0  ;;  %v3254_v35 = vrot.slane %v3252_v61, 1 }
 0x19c   : > { %v2555_v41 = vpop.f32.mrf.mxu3  ;;  %v2345_v11 = vadd.f32 %v2315_v26, %v2113_v19  ;;  %v2085_v52 = vpop.f32.mrf.mxu1  ;;  %v1944_v20 = vadd.f32 %v1915_v29, %v12495_v10  ;;  %v283_v8 = vand.u32 65535, %v12738_v5  ;;  %v2627_v10 = vsel %vm15366_vm5, %v2624_v6, %v2626_v37 }
 0x19d   : > { %v284_v14 = vshrl.u32 %v12738_v5, 16  ;;  %v3248_v6 = vshrl.u32 %v12730_v28, 16  ;;  %v12772_v26 = vadd.s32 8, %v12738_v5 }
 0x19e   : > { %v12735_v45 = vadd.f32 %v2555_v41, %v2345_v11  ;;  %v2114_v36 = vadd.f32 %v2085_v52, %v1944_v20  ;;  %v287_v56 = vmul.u32 58254, %v283_v8  ;;  %v286_v25 = vmul.u32 14564, %v283_v8  ;;  %v12776_v52 = vld [vmem:[%s12069_s16 + $0x88] sm:$0xff] }
 0x19f   : > { %v288_v54 = vmul.u32 14564, %v284_v14  ;;  %v289_v19 = vmul.u32 58254, %v284_v14  ;;  %v2628_v11 = vrot.slane %v12493_v7, 3  ;;  %v3250_v29 = vor.u32 %v3248_v6, %v3246_v21 }
 0x1a0   : > { %v290_v16 = vshll.u32 %v287_v56, 16  ;;  %v312_v42 = vand.u32 65535, %v12772_v26  ;;  %v291_v21 = vshrl.u32 %v287_v56, 16 }
 0x1a1   : > { %v292_v53 = vshll.u32 %v288_v54, 16  ;;  %v293_v6 = vshrl.u32 %v288_v54, 16  ;;  %v12800_v54 = vadd.s32 16, %v12738_v5 }
 0x1a2   : > { %vm294_vm6 = vc.u32 %v286_v25, %v290_v16  ;;  %v296_v41 = vadd.s32 %v290_v16, %v286_v25  ;;  %v12785_v14 = vmul.u32 58254, %v312_v42  ;;  %v315_v25 = vmul.u32 14564, %v312_v42 }
 0x1a3   : > { %v2317_v43 = vpop.f32.mrf.mxu2  ;;  %v1918_v12 = vpop.f32.mrf.mxu0  ;;  %v342_v58 = vshrl.u32 %v12800_v54, 16 }
 0x1a4   : > { %v2557_v63 = vpop.f32.mrf.mxu3  ;;  %v2346_v60 = vadd.f32 %v2317_v43, %v2114_v36  ;;  %v2088_v23 = vpop.f32.mrf.mxu1  ;;  %v1945_v30 = vadd.f32 %v1918_v12, %v12513_v15  ;;  %v11384_v15 = vld [vmem:[%s15351_s1 + $0xc8] sm:$0xff]  ;;  %v3527_v36 = vrot.slane %v12746_v31, 1  ;;  %vm298_vm7 = vc.u32 %v296_v41, %v292_v53 }
 0x1a5   : > { %3827 = vmatpush.bf16.msrb.mxu0 %v11384_v15  ;;  %v319_v15 = vshll.u32 %v12785_v14, 16  ;;  %v2630_v41 = vrot.slane %v12522_v51, 3  ;;  %v3264_v51 = vshrl.u32 %v12776_v52, 16 }
 0x1a6   : > { %v12754_v59 = vadd.f32 %v2557_v63, %v2346_v60  ;;  %v2115_v9 = vadd.f32 %v2088_v23, %v1945_v30  ;;  %2724 = vmatmul.bf16.gmra.mxu0 %v2627_v10  ;;  %v299_v10 = vsel %vm298_vm7, 1, %v15356_v0  ;;  %v313_v60 = vshrl.u32 %v12772_v26, 16 }
 0x1a7   : > { %3362 = vmatmul.bf16.gmra.mxu1 %v3247_v46  ;;  %v3256_v23 = vshrl.u32 %v12746_v31, 16  ;;  %vm323_vm8 = vc.u32 %v315_v25, %v319_v15  ;;  %v3528_v53 = vsel %vm15385_vm1, %v3525_v38, %v3527_v36 }
 0x1a8   : > { %3473 = vmatmul.bf16.gmra.mxu2 %v12701_v27  ;;  %v295_v27 = vsel %vm294_vm6, 1, %v15356_v0  ;;  %v12791_v61 = vmul.u32 14564, %v313_v60  ;;  %v318_v47 = vmul.u32 58254, %v313_v60  ;;  %v324_v4 = vsel %vm323_vm8, 1, %v15356_v0 }
 0x1a9   : > { %3623 = vmatmul.bf16.gmra.mxu3 %v3526_v13  ;;  %v297_v57 = vadd.s32 %v295_v27, %v289_v19  ;;  %v3260_v13 = vshll.u32 %v12776_v52, 16  ;;  %v3255_v19 = vsel %vm15370_vm0, %v3250_v29, %v3254_v35  ;;  %v3258_v42 = vor.u32 %v3256_v23, %v3254_v35  ;;  %v248_v23 = vld [vmem:[#allocation2 + $0x8] sm:$0x3] }
 0x1aa   : > { %v326_v60 = vadd.s32 %v324_v4, %v318_v47  ;;  %v320_v47 = vshrl.u32 %v12785_v14, 16 }
 0x1ab   : > { %v2320_v49 = vpop.f32.mrf.mxu2  ;;  %v1920_v43 = vpop.f32.mrf.mxu0  ;;  %v301_v46 = vadd.s32 %v299_v10, %v297_v57  ;;  %v325_v57 = vadd.s32 %v319_v15, %v315_v25  ;;  %v12812_v10 = vpack.c.b16 %v3185_v50, %v3185_v50  ;;  %v249_v25 = vsel %vm12820_vm12, 0, %v248_v23 }
 0x1ac   : > { %v2560_v20 = vpop.f32.mrf.mxu3  ;;  %v2347_v8 = vadd.f32 %v2320_v49, %v2115_v9  ;;  %v2090_v63 = vpop.f32.mrf.mxu1  ;;  %v1946_v12 = vadd.f32 %v1920_v43, %v12524_v22  ;;  %v2629_v22 = vsel %vm15366_vm5, %v2626_v37, %v2628_v11  ;;  %v3262_v49 = vrot.slane %v3260_v13, 1  ;;  %250 = vst [vmem:[#allocation2 + $0x8] sm:$0x3] %v249_v25 }
 0x1ad   : > { %v302_v56 = vadd.s32 %v301_v46, %v291_v21  ;;  %v15424_v13 = vmov 0  ;;  %v2632_v15 = vrot.slane %v12552_v32, 3  ;;  %v12841_v50 = vsel %vm15366_vm5, %v2628_v11, %v2630_v41 }
 0x1ae   : > { %v12787_v30 = vadd.f32 %v2560_v20, %v2347_v8  ;;  %v2116_v9 = vadd.f32 %v2090_v63, %v1946_v12  ;;  %v321_v20 = vshll.u32 %v12791_v61, 16  ;;  %v3529_v63 = vrot.slane %v12776_v52, 1 }
 0x1af   : > { %v303_v16 = vadd.s32 %v302_v56, %v293_v6  ;;  %v341_v12 = vand.u32 65535, %v12800_v54  ;;  %v15425_v13 = vsel %vm12820_vm12, 4294967295, %v15424_v13  ;;  %v12856_v7 = vor.u32 %v3264_v51, %v3262_v49 }
 0x1b0   : > { %15426 = vst [vmem:[#allocation9_spill] sm:$0xff] %v15425_v13  ;;  %vm12824_vm14 = vc.u32 %v325_v57, %v321_v20  ;;  %v12854_v32 = vsel %vm15385_vm1, %v3527_v36, %v3529_v63  ;;  %v322_v11 = vshrl.u32 %v12791_v61, 16  ;;  %v12868_v61 = vsel %vm15366_vm5, %v2630_v41, %v2632_v15  ;;  %v11454_v13 = vld [vmem:[#allocation3 + $0x38] sm:$0xff] }
 0x1b1   : > { %v304_v21 = vshrl.u32 %v303_v16, 4  ;;  %v3531_v23 = vrot.slane %v12812_v10, 1 }
 0x1b3   : > { %v2322_v37 = vpop.f32.mrf.mxu2  ;;  %v1923_v43 = vpop.f32.mrf.mxu0  ;;  %v305_v56 = vmul.u32 18, %v304_v21 }
 0x1b4   : > { %v2562_v27 = vpop.f32.mrf.mxu3  ;;  %v2348_v8 = vadd.f32 %v2322_v37, %v2116_v9  ;;  %v2093_v29 = vpop.f32.mrf.mxu1  ;;  %v1947_v38 = vadd.f32 %v1923_v43, %v12543_v2  ;;  %v254_v2 = vld [vmem:[#allocation2 + $0x98] sm:$0xe]  ;;  %v15429_v9 = vmov 0  ;;  %v344_v37 = vmul.u32 14564, %v341_v12  ;;  %v3662_v43 = vld [vmem:[%s12069_s16 + $0x50] sm:$0xe] }
 0x1b5   : > { %v15430_v9 = vsel %vm12832_vm15, 4294967295, %v15429_v9  ;;  %v255_v16 = vsel %vm12832_vm15, 0, %v254_v2  ;;  %v3716_v2 = vunpack.c.l.b16 %v3662_v43 }
 0x1b6   : > { %v12817_v35 = vadd.f32 %v2562_v27, %v2348_v8  ;;  %v2117_v46 = vadd.f32 %v2093_v29, %v1947_v38  ;;  %2729 = vmatmul.bf16.gmra.mxu0 %v2629_v22  ;;  %15431 = vst [vmem:[#allocation10_spill] sm:$0xff] %v15430_v9  ;;  %v3268_v22 = vshll.u32 %v12812_v10, 16  ;;  %v345_v27 = vmul.u32 58254, %v341_v12 }
 0x1b7   : > { %3367 = vmatmul.bf16.gmra.mxu1 %v3255_v19  ;;  %256 = vst [vmem:[#allocation2 + $0x98] sm:$0xe] %v255_v16  ;;  %v328_v19 = vsel %vm12824_vm14, 1, %v15356_v0  ;;  %v347_v38 = vmul.u32 58254, %v342_v58 }
 0x1b8   : > { %3478 = vmatmul.bf16.gmra.mxu2 %v12730_v28  ;;  %v12844_v28 = vsel %vm15370_vm0, %v3258_v42, %v3262_v49  ;;  %v330_v14 = vadd.s32 %v328_v19, %v326_v60  ;;  %v12862_v42 = vmul.u32 14564, %v342_v58  ;;  %v12865_v49 = vsub.s32 %v12738_v5, %v305_v56  ;;  %v12875_v60 = vld [vmem:[%s12069_s16 + $0x54] sm:$0xf]  ;;  %v12882_v56 = vld [vmem:[%s12069_s16 + $0x58] sm:$0xff] }
 0x1b9   : > { %3628 = vmatmul.bf16.gmra.mxu3 %v3528_v53  ;;  %v12870_v8 = vrot.slane %v3268_v22, 1  ;;  %v348_v51 = vshll.u32 %v345_v27, 16  ;;  %v3717_v58 = vunpack.c.l.b16 %v12875_v60  ;;  %v349_v22 = vshrl.u32 %v345_v27, 16  ;;  %v11383_v27 = vld [vmem:[%s15351_s1 + $0xc0] sm:$0xff] }
 0x1ba   : > { %v331_v21 = vadd.s32 %v330_v14, %v320_v47  ;;  %vm802_vm7 = vcmp.ne.s32.totalorder %v12865_v49, 0  ;;  %vm820_vm8 = vcmp.lt.s32.totalorder %v12865_v49, 0  ;;  %v12889_v47 = vadd.s32 18, %v12865_v49  ;;  %3828 = vmatpush.bf16.msrb.mxu0 %v11383_v27  ;;  %v12930_v27 = vld [vmem:[%s12069_s16 + $0x5c] sm:$0xf] }
 0x1bb   : > { %v2325_v53 = vpop.f32.mrf.mxu2  ;;  %v1925_v20 = vpop.f32.mrf.mxu0  ;;  %vm352_vm6 = vc.u32 %v344_v37, %v348_v51  ;;  %v354_v25 = vadd.s32 %v348_v51, %v344_v37  ;;  %v3735_v19 = vpack.c.b16 %v3717_v58, %v3716_v2  ;;  %v351_v43 = vshrl.u32 %v12862_v42, 16  ;;  %v11391_v2 = vld [vmem:[%s15351_s1 + $0x100] sm:$0xff]  ;;  %vm12924_vm11 = vmand %vm820_vm8, %vm802_vm7  ;;  %15434 = vst [vmem:[#allocation11_spill] sm:$0xff] %v12930_v27 }
 0x1bc   : > { %v2565_v4 = vpop.f32.mrf.mxu3  ;;  %v2349_v36 = vadd.f32 %v2325_v53, %v2117_v46  ;;  %v2095_v57 = vpop.f32.mrf.mxu1  ;;  %v1948_v29 = vadd.f32 %v1925_v20, %v12554_v33  ;;  %v350_v46 = vshll.u32 %v12862_v42, 16  ;;  %v332_v6 = vadd.s32 %v331_v21, %v322_v11  ;;  %v11415_v20 = vld [vmem:[%s15351_s1 + $0x180] sm:$0xff]  ;;  %4066 = vmatpush.bf16.msrb.mxu1 %v11391_v2 }
 0x1bd   : > { %v353_v33 = vsel %vm352_vm6, 1, %v15356_v0  ;;  %v3922_v53 = vshrl.u32 %v12882_v56, 16  ;;  %v3925_v21 = vshll.u32 %v12882_v56, 16  ;;  %4465 = vmatpush.bf16.msrb.mxu3 %v11415_v20 }
 0x1be   : > { %v12877_v12 = vadd.f32 %v2565_v4, %v2349_v36  ;;  %v2118_v41 = vadd.f32 %v2095_v57, %v1948_v29  ;;  %v333_v15 = vshrl.u32 %v332_v6, 4  ;;  %v355_v16 = vadd.s32 %v353_v33, %v347_v38  ;;  %v4131_v4 = vld [vmem:[%s12069_s16 + $0x50] sm:$0xc]  ;;  %v11399_v36 = vld [vmem:[%s15351_s1 + $0x140] sm:$0xff] }
 0x1bf   : > { %vm356_vm9 = vc.u32 %v354_v25, %v350_v46  ;;  %v3914_v6 = vshrl.u32 %v3735_v19, 16  ;;  %v3917_v25 = vshll.u32 %v3735_v19, 16  ;;  %v12911_v33 = vadd.s32 24, %v12738_v5  ;;  %4234 = vmatpush.bf16.msrb.mxu2 %v11399_v36 }
 0x1c0   : > { %v357_v11 = vsel %vm356_vm9, 1, %v15356_v0  ;;  %v334_v57 = vmul.u32 18, %v333_v15  ;;  %v15359_v36 = vrot.slane %v12882_v56, 1 }
 0x1c1   : > { %v359_v29 = vadd.s32 %v357_v11, %v355_v16  ;;  %v4149_v16 = vunpack.c.l.b16 %v4131_v4  ;;  %v4299_v11 = vld [vmem:[%s12069_s16 + $0x58] sm:$0xc]  ;;  %v3916_v4 = vrot.slane %v3914_v6, 1  ;;  %5611 = vmatpush.bf16.msra.mxu3 %v11454_v13 }
 0x1c2   : > { %v12915_v42 = vsub.s32 %v12772_v26, %v334_v57  ;;  %v3924_v26 = vrot.slane %v3922_v53, 1  ;;  %v3927_v57 = vrot.slane %v3925_v21, 2  ;;  %v4353_v53 = vunpack.c.l.b16 %v4299_v11 }
 0x1c3   : > { %v2327_v14 = vpop.f32.mrf.mxu2  ;;  %v1928_v51 = vpop.f32.mrf.mxu0  ;;  %v371_v21 = vshrl.u32 %v12911_v33, 16 }
 0x1c4   : > { %v2567_v37 = vpop.f32.mrf.mxu3  ;;  %v2350_v38 = vadd.f32 %v2327_v14, %v2118_v41  ;;  %v2098_v46 = vpop.f32.mrf.mxu1  ;;  %v1949_v15 = vadd.f32 %v1928_v51, %v12568_v24  ;;  %v360_v41 = vadd.s32 %v359_v29, %v349_v22  ;;  %v3745_v24 = vrot.slane %v3735_v19, 1  ;;  %v12973_v29 = vld [vmem:[%s12069_s16 + $0x60] sm:$0xff] }
 0x1c5   : > { %vm803_vm13 = vcmp.ne.s32.totalorder %v12915_v42, 0  ;;  %vm821_vm14 = vcmp.lt.s32.totalorder %v12915_v42, 0  ;;  %v12956_v20 = vadd.s32 18, %v12915_v42 }
 0x1c6   : > { %v12918_v14 = vadd.f32 %v2567_v37, %v2350_v38  ;;  %v2119_v22 = vadd.f32 %v2098_v46, %v1949_v15  ;;  %2734 = vmatmul.bf16.gmra.mxu0 %v12841_v50  ;;  %v3919_v37 = vrot.slane %v3917_v25, 2  ;;  %v361_v19 = vadd.s32 %v360_v41, %v351_v43  ;;  %vm12964_vm6 = vmand %vm821_vm14, %vm803_vm13 }
 0x1c7   : > { %3372 = vmatmul.bf16.gmra.mxu1 %v12844_v28  ;;  %v874_v50 = vsel %vm12924_vm11, %v12889_v47, %v12865_v49  ;;  %v12945_v28 = vsel %vm15370_vm0, %v12856_v7, %v12870_v8  ;;  %v12961_v0 = vsel %vm15385_vm1, %v3745_v24, %v15359_v36  ;;  %v370_v7 = vand.u32 65535, %v12911_v33 }
 0x1c8   : > { %3483 = vmatmul.bf16.gmra.mxu2 %v12746_v31  ;;  %v12952_v31 = vsel %vm15385_vm1, %v3529_v63, %v3531_v23  ;;  %v362_v43 = vshrl.u32 %v361_v19, 4  ;;  %v3920_v63 = vor.u32 %v3919_v37, %v3916_v4  ;;  %v12968_v23 = vor.u32 %v3927_v57, %v3924_v26  ;;  %v12996_v57 = vld [vmem:[%s12069_s16 + $0x60] sm:$0xff] }
 0x1c9   : > { %3633 = vmatmul.bf16.gmra.mxu3 %v12854_v32  ;;  %v15358_v32 = vunpack.c.l.b16 %v12930_v27  ;;  %v4150_v47 = vpack.c.b16 %v3717_v58, %v4149_v16  ;;  %v374_v25 = vmul.u32 58254, %v370_v7  ;;  %v4152_v41 = vrot.slane %v12882_v56, 2  ;;  %v11438_v27 = vld [vmem:[%s15351_s1 + $0x238] sm:$0xff] }
 0x1ca   : > { %v363_v2 = vmul.u32 18, %v362_v43  ;;  %v373_v60 = vmul.u32 14564, %v370_v7  ;;  %v12982_v58 = vmul.u32 14564, %v371_v21  ;;  %v875_v11 = vsel %vm12964_vm6, %v12956_v20, %v12915_v42  ;;  %4864 = vmatpush.bf16.msra.mxu1 %v11438_v27 }
 0x1cb   : > { %v2330_v49 = vpop.f32.mrf.mxu2  ;;  %v1930_v51 = vpop.f32.mrf.mxu0  ;;  %v12978_v6 = vpack.c.b16 %v15358_v32, %v4353_v53  ;;  %v377_v26 = vshll.u32 %v374_v25, 16  ;;  %v15363_v4 = vrot.slane %v12973_v29, 2  ;;  %vm12998_vm7 = vcmp.lt.s32.totalorder %v874_v50, 16 }
 0x1cc   : > { %v2570_v10 = vpop.f32.mrf.mxu3  ;;  %v2351_v38 = vadd.f32 %v2330_v49, %v2119_v22  ;;  %v2100_v46 = vpop.f32.mrf.mxu1  ;;  %v1950_v15 = vadd.f32 %v1930_v51, %v12580_v18  ;;  %v12991_v24 = vsub.s32 %v12800_v54, %v363_v2  ;;  %v376_v18 = vmul.u32 58254, %v371_v21  ;;  %v13020_v21 = vld [vmem:[%s15352_s2] ss:$0 sm:$0xff] }
 0x1cd   : > { %v379_v37 = vshll.u32 %v12982_v58, 16  ;;  %v13004_v53 = vsel %vm15372_vm2, %v3920_v63, %v12968_v23  ;;  %v4151_v42 = vrot.slane %v4150_v47, 2  ;;  %v4382_v54 = vrot.slane %v12978_v6, 2 }
 0x1ce   : > { %v12984_v16 = vadd.f32 %v2570_v10, %v2351_v38  ;;  %v2120_v22 = vadd.f32 %v2100_v46, %v1950_v15  ;;  %v378_v20 = vshrl.u32 %v374_v25, 16  ;;  %vm804_vm8 = vcmp.ne.s32.totalorder %v12991_v24, 0 }
 0x1cf   : > { %vm381_vm9 = vc.u32 %v373_v60, %v377_v26  ;;  %v383_v43 = vadd.s32 %v377_v26, %v373_v60  ;;  %v13009_v7 = vadd.s32 32, %v12738_v5  ;;  %vm822_vm11 = vcmp.lt.s32.totalorder %v12991_v24, 0 }
 0x1d0   : > { %v13013_v50 = vadd.s32 18, %v12991_v24  ;;  %v380_v49 = vshrl.u32 %v12982_v58, 16  ;;  %v15439_v10 = vmov 0   ;;  %v3931_v46 = vshrl.u32 %v12996_v57, 16  ;;  %vm13032_vm14 = vmand %vm822_vm11, %vm804_vm8 }
 0x1d1   : > { %v382_v8 = vsel %vm381_vm9, 1, %v15439_v10  ;;  %vm385_vm13 = vc.u32 %v383_v43, %v379_v37  ;;  %v399_v51 = vand.u32 65535, %v13009_v7  ;;  %v400_v58 = vshrl.u32 %v13009_v7, 16  ;;  %v11462_v37 = vld [vmem:[#allocation3 + $0x78] sm:$0xff] }
 0x1d2   : > { %v384_v38 = vadd.s32 %v382_v8, %v376_v18  ;;  %v386_v60 = vsel %vm385_vm13, 1, %v15439_v10  ;;  %v3934_v26 = vshll.u32 %v12996_v57, 16  ;;  %vm13061_vm6 = vcmp.lt.s32.totalorder %v875_v11, 16  ;;  %5500 = vmatpush.bf16.msra.mxu2 %v11462_v37 }
 0x1d3   : > { %v2332_v63 = vpop.f32.mrf.mxu2  ;;  %v2700_v25 = vpop.f32.mrf.mxu0  ;;  %v402_v8 = vmul.u32 14564, %v399_v51  ;;  %v13073_v18 = vadd.s32 40, %v12738_v5  ;;  %vm2874_vm11 = vsmask.f32 5392 }
 0x1d4   : > { %v2572_v47 = vpop.f32.mrf.mxu3  ;;  %v2352_v2 = vadd.f32 %v2332_v63, %v2120_v22  ;;  %v3338_v15 = vpop.f32.mrf.mxu1  ;;  %v2745_v32 = vadd.f32 %v2700_v25, %v12594_v34  ;;  %v11430_v22 = vld [vmem:[%s15351_s1 + $0x1f8] sm:$0xff]  ;;  %v388_v43 = vadd.s32 %v386_v60, %v384_v38  ;;  %v403_v63 = vmul.u32 58254, %v399_v51 }
 0x1d5   : > { %v13044_v34 = vsel %vm15381_vm3, %v4151_v42, %v4152_v41  ;;  %v13049_v25 = vsel %vm15381_vm3, %v4382_v54, %v15363_v4  ;;  %v13054_v38 = vmul.u32 14564, %v400_v58  ;;  %v405_v51 = vmul.u32 58254, %v400_v58  ;;  %4696 = vmatpush.bf16.msra.mxu0 %v11430_v22 }
 0x1d6   : > { %v13039_v36 = vadd.f32 %v2572_v47, %v2352_v2  ;;  %v2766_v47 = vadd.f32 %v13020_v21, %v2745_v32  ;;  %2739 = vmatmul.bf16.gmra.mxu0 %v12868_v61  ;;  %v389_v42 = vadd.s32 %v388_v43, %v378_v20  ;;  %v406_v2 = vshll.u32 %v403_v63, 16 }
 0x1d7   : > { %3377 = vmatmul.bf16.gmra.mxu1 %v12945_v28  ;;  %v876_v32 = vsel %vm13032_vm14, %v13013_v50, %v12991_v24  ;;  %v408_v61 = vshll.u32 %v13054_v38, 16  ;;  %v3933_v60 = vrot.slane %v3931_v46, 1  ;;  %v3936_v28 = vrot.slane %v3934_v26, 2 }
 0x1d8   : > { %3488 = vmatmul.bf16.gmra.mxu2 %v12776_v52  ;;  %v2784_v20 = vmax.f32 %v2766_v47, 0.0  ;;  %v390_v58 = vadd.s32 %v389_v42, %v380_v49  ;;  %vm410_vm8 = vc.u32 %v402_v8, %v406_v2  ;;  %v412_v52 = vadd.s32 %v406_v2, %v402_v8 }
 0x1d9   : > { %3638 = vmatmul.bf16.gmra.mxu3 %v12952_v31  ;;  %v407_v31 = vshrl.u32 %v403_v63, 16  ;;  %v411_v11 = vsel %vm410_vm8, 1, %v15439_v10  ;;  %v15365_v43 = vrot.slane %v12996_v57, 1  ;;  %v409_v8 = vshrl.u32 %v13054_v38, 16 }
 0x1da   : > { %v2838_v24 = vsel %vm12998_vm7, %v2784_v20, 0.0  ;;  %v391_v26 = vshrl.u32 %v390_v58, 4  ;;  %v413_v49 = vadd.s32 %v411_v11, %v405_v51  ;;  %vm414_vm9 = vc.u32 %v412_v52, %v408_v61  ;;  %v13083_v20 = vld [vmem:[%s12069_s16 + $0x68] sm:$0xff] }
 0x1db   : > { %v3449_v50 = vpop.f32.mrf.mxu2  ;;  %v2856_v37 = vpack.c.bf16 %v2838_v24, %v2838_v24  ;;  %v2702_v27 = vpop.f32.mrf.mxu0  ;;  %v415_v63 = vsel %vm414_vm9, 1, %v15439_v10  ;;  %v13080_v4 = vor.u32 %v3936_v28, %v3933_v60  ;;  %vm13093_vm13 = vcmp.lt.s32.totalorder %v876_v32, 16 }
 0x1dc   : > { %v3599_v46 = vpop.f32.mrf.mxu3  ;;  %v3450_v13 = vadd.f32 %v3449_v50, %v3338_v15  ;;  %v3340_v22 = vpop.f32.mrf.mxu1  ;;  %v2746_v47 = vadd.f32 %v2702_v27, %v12611_v48  ;;  %v392_v42 = vmul.u32 18, %v391_v26  ;;  %v417_v2 = vadd.s32 %v415_v63, %v413_v49 }
 0x1dd   : > { %v2877_v58 = vshrl.u32 %v2856_v37, 16  ;;  %v2880_v51 = vshll.u32 %v2856_v37, 16  ;;  %v15364_v15 = vrot.slane %v12996_v57, 2  ;;  %v428_v48 = vand.u32 65535, %v13073_v18 }
 0x1de   : > { %v13085_v61 = vadd.f32 %v3599_v46, %v3450_v13  ;;  %v2767_v52 = vadd.f32 %v13020_v21, %v2746_v47  ;;  %v13090_v38 = vsub.s32 %v12911_v33, %v392_v42  ;;  %v418_v11 = vadd.s32 %v417_v2, %v407_v31  ;;  %v3074_v33 = vld [vmem:[#allocation2 + $0x8] sm:$0xe] }
 0x1df   : > { %v2879_v24 = vrot.slane %v2877_v58, 6  ;;  %v2882_v60 = vrot.slane %v2880_v51, 7  ;;  %v15444_v28 = vmov 0  ;;  %v15447_v50 = vrot.slane %v12882_v56, 1 }
 0x1e0   : > { %v15445_v28 = vsel %vm13093_vm13, 4294967295, %v15444_v28  ;;  %v429_v26 = vshrl.u32 %v13073_v18, 16  ;;  %v2785_v49 = vmax.f32 %v2767_v52, 0.0  ;;  %vm805_vm14 = vcmp.ne.s32.totalorder %v13090_v38, 0 }
 0x1e1   : > { %15446 = vst [vmem:[#allocation12_spill] sm:$0xff] %v15445_v28  ;;  %v13102_v46 = vsel %vm15385_vm1, %v15447_v50, %v15365_v43  ;;  %vm823_vm8 = vcmp.lt.s32.totalorder %v13090_v38, 0  ;;  %v15367_v32 = vrot.slane %v13083_v20, 2  ;;  %v2883_v31 = vor.u32 %v2882_v60, %v2879_v24 }
 0x1e2   : > { %v419_v37 = vadd.s32 %v418_v11, %v409_v8  ;;  %v13111_v13 = vsel %vm15372_vm2, %v12968_v23, %v13080_v4  ;;  %v13113_v27 = vmul.u32 58254, %v428_v48  ;;  %v2839_v63 = vsel %vm13061_vm6, %v2785_v49, 0.0  ;;  %vm13131_vm9 = vmand %vm823_vm8, %vm805_vm14  ;;  %v11429_v49 = vld [vmem:[%s15351_s1 + $0x1f0] sm:$0xff] }
 0x1e3   : > { %v3451_v47 = vpop.f32.mrf.mxu2  ;;  %v859_v2 = vadd.s32 18, %v13090_v38  ;;  %v13123_v8 = vsel %vm15381_vm3, %v4152_v41, %v15364_v15  ;;  %v431_v58 = vmul.u32 14564, %v428_v48  ;;  %v3075_v23 = vsel %vm12832_vm15, %v2883_v31, %v3074_v33  ;;  %v2705_v11 = vpop.f32.mrf.mxu0  ;;  %v11461_v33 = vld [vmem:[#allocation3 + $0x70] sm:$0xff]  ;;  %vm13165_vm8 = vmor %vm246_vm10, %vm2874_vm11  ;;  %4697 = vmatpush.bf16.msra.mxu0 %v11429_v49 }
 0x1e4   : > { %v3601_v42 = vpop.f32.mrf.mxu3  ;;  %v2857_v51 = vpack.c.bf16 %v2839_v63, %v2839_v63  ;;  %v3452_v52 = vadd.f32 %v3451_v47, %v3340_v22  ;;  %v3343_v24 = vpop.f32.mrf.mxu1  ;;  %v13135_v56 = vmul.u32 14564, %v429_v26  ;;  %3076 = vst [vmem:[#allocation2 + $0x8] sm:$0xe] %v3075_v23  ;;  %v2747_v41 = vadd.f32 %v2705_v11, %v12619_v3  ;;  %v11453_v23 = vld [vmem:[#allocation3 + $0x30] sm:$0xff]  ;;  %5501 = vmatpush.bf16.msra.mxu2 %v11461_v33 }
 0x1e5   : > { %v420_v48 = vshrl.u32 %v419_v37, 4  ;;  %v15450_v22 = vrot.slane %v12973_v29, 2  ;;  %v434_v63 = vmul.u32 58254, %v429_v26  ;;  %v435_v3 = vshll.u32 %v13113_v27, 16  ;;  %5612 = vmatpush.bf16.msra.mxu3 %v11453_v23 }
 0x1e6   : > { %v2886_v47 = vshrl.u32 %v2857_v51, 16  ;;  %v2889_v15 = vshll.u32 %v2857_v51, 16  ;;  %v13148_v43 = vadd.f32 %v3601_v42, %v3452_v52  ;;  %v2768_v37 = vadd.f32 %v13020_v21, %v2747_v41  ;;  %3829 = vmatmul.bf16.vlgmr.msrb.gmra.mxu0 %v12961_v0 }
 0x1e7   : > { %v13143_v50 = vsel %vm15381_vm3, %v15450_v22, %v15367_v32  ;;  %4067 = vmatmul.bf16.vlgmr.msrb.gmra.mxu1 %v13004_v53  ;;  %v877_v29 = vsel %vm13131_vm9, %v859_v2, %v13090_v38  ;;  %v421_v11 = vmul.u32 18, %v420_v48  ;;  %v13158_v26 = vadd.s32 48, %v12738_v5 }
 0x1e8   : > { %v2888_v51 = vrot.slane %v2886_v47, 6  ;;  %v2891_v42 = vrot.slane %v2889_v15, 7  ;;  %4235 = vmatmul.bf16.vlgmr.msrb.gmra.mxu2 %v13044_v34  ;;  %v437_v52 = vshll.u32 %v13135_v56, 16  ;;  %vm439_vm14 = vc.u32 %v431_v58, %v435_v3 }
 0x1e9   : > { %4466 = vmatmul.bf16.vlgmr.msrb.gmra.mxu3 %v13049_v25  ;;  %v2786_v53 = vmax.f32 %v2768_v37, 0.0  ;;  %v13170_v38 = vsub.s32 %v13009_v7, %v421_v11  ;;  %v440_v15 = vsel %vm439_vm14, 1, %v15439_v10  ;;  %v441_v34 = vadd.s32 %v435_v3, %v431_v58  ;;  %v11437_v11 = vld [vmem:[%s15351_s1 + $0x230] sm:$0xff] }
 0x1ea   : > { %v2884_v2 = vrot.slane %v2883_v31, 4  ;;  %v2892_v25 = vor.u32 %v2891_v42, %v2888_v51  ;;  %vm13173_vm9 = vcmp.lt.s32.totalorder %v877_v29, 16  ;;  %v15453_v60 = vmov 0  ;;  %4865 = vmatpush.bf16.msra.mxu1 %v11437_v11 }
 0x1eb   : > { %v15454_v60 = vsel %vm13173_vm9, 4294967295, %v15453_v60  ;;  %v442_v41 = vadd.s32 %v440_v15, %v434_v63  ;;  %v2840_v48 = vsel %vm13093_vm13, %v2786_v53, 0.0  ;;  %v3454_v22 = vpop.f32.mrf.mxu2  ;;  %vm806_vm10 = vcmp.ne.s32.totalorder %v13170_v38, 0  ;;  %v2707_v3 = vpop.f32.mrf.mxu0 }
 0x1ec   : > { %15455 = vst [vmem:[#allocation13_spill] sm:$0xff] %v15454_v60  ;;  %v3604_v47 = vpop.f32.mrf.mxu3  ;;  %v457_v7 = vand.u32 65535, %v13158_v26  ;;  %v458_v33 = vshrl.u32 %v13158_v26, 16  ;;  %v2893_v31 = vsel %vm13165_vm8, %v2884_v2, %v2892_v25  ;;  %v2858_v58 = vpack.c.bf16 %v2840_v48, %v2840_v48  ;;  %v3345_v37 = vpop.f32.mrf.mxu1 }
 0x1ed   : > { %v3455_v49 = vadd.f32 %v3454_v22, %v3343_v24  ;;  %vm824_vm11 = vcmp.lt.s32.totalorder %v13170_v38, 0  ;;  %3077 = vst [vmem:[#allocation2 + $0xc] sm:$0xf] %v2893_v31  ;;  %v2748_v63 = vadd.f32 %v2707_v3, %v12639_v40  ;;  %v860_v23 = vadd.s32 18, %v13170_v38  ;;  %v13205_v31 = vld [vmem:[%s12069_s16 + $0x68] sm:$0xff] }
 0x1ee   : > { %v436_v29 = vshrl.u32 %v13113_v27, 16  ;;  %vm443_vm14 = vc.u32 %v441_v34, %v437_v52  ;;  %v2896_v51 = vshrl.u32 %v2858_v58, 16  ;;  %v2899_v42 = vshll.u32 %v2858_v58, 16  ;;  %vm13196_vm5 = vmand %vm824_vm11, %vm806_vm10 }
 0x1ef   : > { %v13191_v24 = vadd.f32 %v3604_v47, %v3455_v49  ;;  %v460_v53 = vmul.u32 14564, %v457_v7  ;;  %v2769_v15 = vadd.f32 %v13020_v21, %v2748_v63  ;;  %v444_v27 = vsel %vm443_vm14, 1, %v15439_v10 }
 0x1f0   : > { %v461_v52 = vmul.u32 58254, %v457_v7  ;;  %v13201_v34 = vmul.u32 14564, %v458_v33  ;;  %v2898_v2 = vrot.slane %v2896_v51, 6  ;;  %v2901_v48 = vrot.slane %v2899_v42, 7 }
 0x1f1   : > { %v438_v22 = vshrl.u32 %v13135_v56, 16  ;;  %v446_v47 = vadd.s32 %v444_v27, %v442_v41  ;;  %v2894_v58 = vrot.slane %v2892_v25, 4  ;;  %v2787_v49 = vmax.f32 %v2769_v15, 0.0 }
 0x1f2   : > { %v464_v3 = vshll.u32 %v461_v52, 16  ;;  %v466_v63 = vshll.u32 %v13201_v34, 16  ;;  %v2902_v32 = vor.u32 %v2901_v48, %v2898_v2  ;;  %v878_v11 = vsel %vm13196_vm5, %v860_v23, %v13170_v38 }
 0x1f3   : > { %v447_v7 = vadd.s32 %v446_v47, %v436_v29  ;;  %v463_v28 = vmul.u32 58254, %v458_v33  ;;  %v2841_v51 = vsel %vm13173_vm9, %v2787_v49, 0.0  ;;  %v3456_v42 = vpop.f32.mrf.mxu2  ;;  %v465_v41 = vshrl.u32 %v461_v52, 16  ;;  %v2710_v2 = vpop.f32.mrf.mxu0  ;;  %v11460_v29 = vld [vmem:[#allocation3 + $0x68] sm:$0xff] }
 0x1f4   : > { %v3606_v56 = vpop.f32.mrf.mxu3  ;;  %vm468_vm10 = vc.u32 %v460_v53, %v464_v3  ;;  %v470_v27 = vadd.s32 %v464_v3, %v460_v53  ;;  %v2903_v25 = vsel %vm13165_vm8, %v2894_v58, %v2902_v32  ;;  %v2859_v15 = vpack.c.bf16 %v2841_v51, %v2841_v51  ;;  %v3348_v48 = vpop.f32.mrf.mxu1  ;;  %5502 = vmatpush.bf16.msra.mxu2 %v11460_v29 }
 0x1f5   : > { %v3457_v9 = vadd.f32 %v3456_v42, %v3345_v37  ;;  %v3940_v40 = vshrl.u32 %v13205_v31, 16  ;;  %3078 = vst [vmem:[#allocation2 + $0x10] sm:$0xf] %v2903_v25  ;;  %v2749_v38 = vadd.f32 %v2710_v2, %v12648_v44  ;;  %v448_v33 = vadd.s32 %v447_v7, %v438_v22 }
 0x1f6   : > { %v469_v23 = vsel %vm468_vm10, 1, %v15439_v10  ;;  %vm472_vm5 = vc.u32 %v470_v27, %v466_v63  ;;  %v2906_v52 = vshrl.u32 %v2859_v15, 16  ;;  %v2909_v47 = vshll.u32 %v2859_v15, 16  ;;  %3834 = vmatmul.bf16.gmra.mxu0 %v13102_v46 }
 0x1f7   : > { %v13218_v53 = vadd.f32 %v3606_v56, %v3457_v9  ;;  %v471_v49 = vadd.s32 %v469_v23, %v463_v28  ;;  %vm13220_vm11 = vcmp.lt.s32.totalorder %v878_v11, 16  ;;  %v15458_v58 = vmov 0  ;;  %4072 = vmatmul.bf16.gmra.mxu1 %v13111_v13 }
 0x1f8   : > { %v15459_v58 = vsel %vm13220_vm11, 4294967295, %v15458_v58  ;;  %v2770_v37 = vadd.f32 %v13020_v21, %v2749_v38  ;;  %v449_v44 = vshrl.u32 %v448_v33, 4  ;;  %v473_v22 = vsel %vm472_vm5, 1, %v15439_v10  ;;  %4240 = vmatmul.bf16.gmra.mxu2 %v13123_v8  ;;  %v13238_v38 = vld [vmem:[%s12069_s16 + $0x70] sm:$0xff] }
 0x1f9   : > { %15460 = vst [vmem:[#allocation14_spill] sm:$0xff] %v15459_v58  ;;  %v2908_v3 = vrot.slane %v2906_v52, 6  ;;  %v2911_v63 = vrot.slane %v2909_v47, 7  ;;  %4471 = vmatmul.bf16.gmra.mxu3 %v13143_v50  ;;  %v467_v9 = vshrl.u32 %v13201_v34, 16  ;;  %v475_v28 = vadd.s32 %v473_v22, %v471_v49 }
 0x1fa   : > { %v2788_v11 = vmax.f32 %v2770_v37, 0.0  ;;  %v450_v7 = vmul.u32 18, %v449_v44  ;;  %v15375_v51 = vrot.slane %v13205_v31, 1  ;;  %v3943_v46 = vshll.u32 %v13205_v31, 16 }
 0x1fb   : > { %v2904_v13 = vrot.slane %v2902_v32, 4  ;;  %v2912_v42 = vor.u32 %v2911_v63, %v2908_v3  ;;  %v476_v56 = vadd.s32 %v475_v28, %v465_v41  ;;  %v3942_v27 = vrot.slane %v3940_v40, 1  ;;  %v3459_v25 = vpop.f32.mrf.mxu2  ;;  %v2712_v29 = vpop.f32.mrf.mxu0 }
 0x1fc   : > { %v2842_v8 = vsel %vm13220_vm11, %v2788_v11, 0.0  ;;  %v3609_v50 = vpop.f32.mrf.mxu3  ;;  %v451_v34 = vsub.s32 %v13073_v18, %v450_v7  ;;  %v3945_v15 = vrot.slane %v3943_v46, 2  ;;  %v15374_v2 = vrot.slane %v13205_v31, 2  ;;  %v13242_v41 = vpop.f32.mrf.mxu1 }
 0x1fd   : > { %v2913_v33 = vsel %vm13165_vm8, %v2904_v13, %v2912_v42  ;;  %v2860_v23 = vpack.c.bf16 %v2842_v8, %v2842_v8  ;;  %v3460_v32 = vadd.f32 %v3459_v25, %v3348_v48  ;;  %v13245_v40 = vadd.s32 56, %v12738_v5 }
 0x1fe   : > { %3079 = vst [vmem:[#allocation2 + $0x14] sm:$0xf] %v2913_v33  ;;  %vm807_vm14 = vcmp.ne.s32.totalorder %v451_v34, 0  ;;  %vm825_vm10 = vcmp.lt.s32.totalorder %v451_v34, 0  ;;  %v861_v18 = vadd.s32 18, %v451_v34  ;;  %v2750_v52 = vadd.f32 %v2712_v29, %v12668_v1 }
 0x1ff   : > { %v2916_v47 = vshrl.u32 %v2860_v23, 16  ;;  %v2919_v49 = vshll.u32 %v2860_v23, 16  ;;  %v13248_v37 = vadd.f32 %v3609_v50, %v3460_v32  ;;  %vm843_vm5 = vmand %vm825_vm10, %vm807_vm14  ;;  %v477_v44 = vadd.s32 %v476_v56, %v467_v9 }
 0x200   : > { %v879_v22 = vsel %vm843_vm5, %v861_v18, %v451_v34  ;;  %v2771_v48 = vadd.f32 %v13020_v21, %v2750_v52  ;;  %v13251_v3 = vor.u32 %v3945_v15, %v3942_v27  ;;  %v15373_v63 = vrot.slane %v13238_v38, 2 }
 0x201   : > { %v2918_v28 = vrot.slane %v2916_v47, 6  ;;  %v2921_v11 = vrot.slane %v2919_v49, 7  ;;  %vm13254_vm0 = vcmp.lt.s32.totalorder %v879_v22, 16  ;;  %v15461_v7 = vmov 0 }
 0x202   : > { %v15462_v7 = vsel %vm13254_vm0, 4294967295, %v15461_v7  ;;  %v478_v1 = vshrl.u32 %v477_v44, 4  ;;  %v2789_v46 = vmax.f32 %v2771_v48, 0.0  ;;  %v486_v13 = vand.u32 65535, %v13245_v40 }
 0x203   : > { %15463 = vst [vmem:[#allocation15_spill] sm:$0xff] %v15462_v7  ;;  %v487_v8 = vshrl.u32 %v13245_v40, 16  ;;  %v2914_v9 = vrot.slane %v2912_v42, 4  ;;  %v2922_v56 = vor.u32 %v2921_v11, %v2918_v28  ;;  %v15464_v27 = vrot.slane %v12996_v57, 1  ;;  %v13267_v15 = vpop.f32.mrf.mxu2  ;;  %v2715_v49 = vpop.f32.mrf.mxu0 }
 0x204   : > { %v479_v25 = vmul.u32 18, %v478_v1  ;;  %v2843_v34 = vsel %vm13254_vm0, %v2789_v46, 0.0  ;;  %v13269_v33 = vpop.f32.mrf.mxu3  ;;  %v15466_v23 = vrot.slane %v12996_v57, 2  ;;  %v15467_v32 = vrot.slane %v13083_v20, 2  ;;  %v3353_v44 = vpop.f32.mrf.mxu1 }
 0x205   : > { %v3751_v50 = vsel %vm15385_vm1, %v15464_v27, %v15375_v51  ;;  %15465 = vst [vmem:[#allocation16_spill] sm:$0xff] %v13269_v33  ;;  %v13281_v18 = vmul.u32 58254, %v486_v13  ;;  %v2923_v52 = vsel %vm13165_vm8, %v2914_v9, %v2922_v56  ;;  %v2861_v47 = vpack.c.bf16 %v2843_v34, %v2843_v34 }
 0x206   : > { %v4157_v42 = vsel %vm15381_vm3, %v15466_v23, %v15374_v2  ;;  %v4388_v29 = vsel %vm15381_vm3, %v15467_v32, %v15373_v63  ;;  %v3947_v57 = vsel %vm15372_vm2, %v13080_v4, %v13251_v3  ;;  %v13288_v22 = vmul.u32 14564, %v487_v8  ;;  %3080 = vst [vmem:[#allocation2 + $0x18] sm:$0xf] %v2923_v52  ;;  %3839 = vmatmul.bf16.gmra.mxu0 %v3751_v50 }
 0x207   : > { %v480_v48 = vsub.s32 %v13158_v26, %v479_v25  ;;  %v2751_v20 = vadd.f32 %v2715_v49, %v12677_v39  ;;  %v489_v28 = vmul.u32 14564, %v486_v13  ;;  %v493_v11 = vshll.u32 %v13281_v18, 16  ;;  %4077 = vmatmul.bf16.gmra.mxu1 %v3947_v57  ;;  %v11428_v13 = vld [vmem:[%s15351_s1 + $0x1e8] sm:$0xff] }
 0x208   : > { %v2926_v1 = vshrl.u32 %v2861_v47, 16  ;;  %v2929_v46 = vshll.u32 %v2861_v47, 16  ;;  %v492_v9 = vmul.u32 58254, %v487_v8  ;;  %v13294_v27 = vadd.s32 64, %v12738_v5  ;;  %4245 = vmatmul.bf16.gmra.mxu2 %v4157_v42  ;;  %v11452_v8 = vld [vmem:[#allocation3 + $0x28] sm:$0xff]  ;;  %4698 = vmatpush.bf16.msra.mxu0 %v11428_v13 }
 0x209   : > { %vm808_vm14 = vcmp.ne.s32.totalorder %v480_v48, 0  ;;  %vm826_vm10 = vcmp.lt.s32.totalorder %v480_v48, 0  ;;  %v862_v34 = vadd.s32 18, %v480_v48  ;;  %v2772_v4 = vadd.f32 %v13020_v21, %v2751_v20  ;;  %4476 = vmatmul.bf16.gmra.mxu3 %v4388_v29  ;;  %v13319_v13 = vld [vmem:[%s12069_s16 + $0x70] sm:$0xff] }
 0x20a   : > { %v2924_v23 = vrot.slane %v2922_v56, 4  ;;  %v2928_v26 = vrot.slane %v2926_v1, 6  ;;  %v2931_v25 = vrot.slane %v2929_v46, 7  ;;  %vm844_vm5 = vmand %vm826_vm10, %vm808_vm14  ;;  %v495_v39 = vshll.u32 %v13288_v22, 16  ;;  %v11436_v56 = vld [vmem:[%s15351_s1 + $0x228] sm:$0xff]  ;;  %5613 = vmatpush.bf16.msra.mxu3 %v11452_v8 }
 0x20b   : > { %v880_v32 = vsel %vm844_vm5, %v862_v34, %v480_v48  ;;  %v2790_v52 = vmax.f32 %v2772_v4, 0.0  ;;  %vm497_vm4 = vc.u32 %v489_v28, %v493_v11  ;;  %v499_v47 = vadd.s32 %v493_v11, %v489_v28  ;;  %v3464_v48 = vpop.f32.mrf.mxu2  ;;  %4866 = vmatpush.bf16.msra.mxu1 %v11436_v56 }
 0x20c   : > { %v2932_v50 = vor.u32 %v2931_v25, %v2928_v26  ;;  %vm13304_vm2 = vcmp.lt.s32.totalorder %v880_v32, 16  ;;  %v15468_v49 = vmov 0  ;;  %v498_v42 = vsel %vm497_vm4, 1, %v15439_v10  ;;  %v3614_v20 = vpop.f32.mrf.mxu3  ;;  %v2717_v26 = vpop.f32.mrf.mxu0 }
 0x20d   : > { %v15469_v49 = vsel %vm13304_vm2, 4294967295, %v15468_v49  ;;  %v515_v29 = vand.u32 65535, %v13294_v27  ;;  %v2844_v57 = vsel %vm13304_vm2, %v2790_v52, 0.0  ;;  %v500_v28 = vadd.s32 %v498_v42, %v492_v9  ;;  %v13316_v25 = vpop.f32.mrf.mxu1 }
 0x20e   : > { %15470 = vst [vmem:[#allocation17_spill] sm:$0xff] %v15469_v49  ;;  %vm501_vm14 = vc.u32 %v499_v47, %v495_v39  ;;  %v516_v11 = vshrl.u32 %v13294_v27, 16  ;;  %v2933_v1 = vsel %vm13165_vm8, %v2924_v23, %v2932_v50  ;;  %v2862_v46 = vpack.c.bf16 %v2844_v57, %v2844_v57 }
 0x20f   : > { %v3465_v34 = vadd.f32 %v3464_v48, %v3353_v44  ;;  %v494_v4 = vshrl.u32 %v13281_v18, 16  ;;  %15471 = vst [vmem:[#allocation18_spill] sm:$0xff] %v13316_v25  ;;  %v496_v8 = vshrl.u32 %v13288_v22, 16  ;;  %v502_v9 = vsel %vm501_vm14, 1, %v15439_v10 }
 0x210   : > { %3081 = vst [vmem:[#allocation2 + $0x1c] sm:$0xf] %v2933_v1  ;;  %v518_v39 = vmul.u32 14564, %v515_v29  ;;  %v519_v32 = vmul.u32 58254, %v515_v29  ;;  %v2936_v52 = vshrl.u32 %v2862_v46, 16  ;;  %v2939_v47 = vshll.u32 %v2862_v46, 16 }
 0x211   : > { %v13323_v56 = vadd.f32 %v3614_v20, %v3465_v34  ;;  %v504_v23 = vadd.s32 %v502_v9, %v500_v28  ;;  %v520_v44 = vmul.u32 14564, %v516_v11  ;;  %v521_v42 = vmul.u32 58254, %v516_v11 }
 0x212   : > { %v522_v18 = vshll.u32 %v519_v32, 16  ;;  %v15380_v57 = vrot.slane %v13319_v13, 1  ;;  %v2938_v48 = vrot.slane %v2936_v52, 6  ;;  %v2941_v63 = vrot.slane %v2939_v47, 7  ;;  %v13337_v47 = vld [vmem:[%s12069_s16 + $0x78] sm:$0xff] }
 0x213   : > { %v505_v1 = vadd.s32 %v504_v23, %v494_v4  ;;  %v2752_v22 = vadd.f32 %v2717_v26, %v12694_v55  ;;  %v2934_v2 = vrot.slane %v2932_v50, 4  ;;  %v524_v51 = vshll.u32 %v520_v44, 16  ;;  %v13330_v34 = vpop.f32.mrf.mxu2 }
 0x214   : > { %vm526_vm4 = vc.u32 %v518_v39, %v522_v18  ;;  %v13327_v29 = vor.u32 %v2941_v63, %v2938_v48  ;;  %v528_v28 = vadd.s32 %v522_v18, %v518_v39  ;;  %15472 = vst [vmem:[#allocation19_spill] sm:$0xff] %v13330_v34  ;;  %v13332_v11 = vpop.f32.mrf.mxu3  ;;  %v3949_v52 = vshrl.u32 %v13319_v13, 16  ;;  %v2720_v26 = vpop.f32.mrf.mxu0 }
 0x215   : > { %v506_v46 = vadd.s32 %v505_v1, %v496_v8  ;;  %v527_v20 = vsel %vm526_vm4, 1, %v15439_v10  ;;  %15473 = vst [vmem:[#allocation20_spill] sm:$0xff] %v13332_v11  ;;  %v3952_v4 = vshll.u32 %v13319_v13, 16  ;;  %v2773_v50 = vadd.f32 %v13020_v21, %v2752_v22 }
 0x216   : > { %v529_v9 = vadd.s32 %v527_v20, %v521_v42  ;;  %v2943_v55 = vsel %vm13165_vm8, %v2934_v2, %v13327_v29  ;;  %v15474_v8 = vrot.slane %v13205_v31, 1  ;;  %v523_v23 = vshrl.u32 %v519_v32, 16  ;;  %v3358_v42 = vpop.f32.mrf.mxu1 }
 0x217   : > { %v507_v63 = vshrl.u32 %v506_v46, 4  ;;  %3082 = vst [vmem:[#allocation2 + $0x20] sm:$0xf] %v2943_v55  ;;  %vm530_vm10 = vc.u32 %v528_v28, %v524_v51  ;;  %v3951_v18 = vrot.slane %v3949_v52, 1  ;;  %v3954_v48 = vrot.slane %v3952_v4, 2 }
 0x218   : > { %v3753_v39 = vsel %vm15385_vm1, %v15474_v8, %v15380_v57  ;;  %v525_v20 = vshrl.u32 %v520_v44, 16  ;;  %v531_v2 = vsel %vm530_vm10, 1, %v15439_v10  ;;  %v15379_v46 = vrot.slane %v13319_v13, 2 }
 0x219   : > { %v508_v1 = vmul.u32 18, %v507_v63  ;;  %v533_v22 = vadd.s32 %v531_v2, %v529_v9  ;;  %v2753_v49 = vadd.f32 %v2720_v26, %v12706_v62  ;;  %3844 = vmatmul.bf16.gmra.mxu0 %v3753_v39  ;;  %v13351_v7 = vor.u32 %v3954_v48, %v3951_v18 }
 0x21a   : > { %v15378_v8 = vrot.slane %v13337_v47, 2  ;;  %v2791_v51 = vmax.f32 %v2773_v50, 0.0  ;;  %v15475_v28 = vrot.slane %v13205_v31, 2  ;;  %v13361_v52 = vadd.s32 72, %v12738_v5 }
 0x21b   : > { %v509_v32 = vsub.s32 %v13245_v40, %v508_v1  ;;  %v534_v9 = vadd.s32 %v533_v22, %v523_v23  ;;  %vm15476_vm5 = vsmask.f32 6400  ;;  %v15477_v40 = vrot.slane %v13238_v38, 2  ;;  %v3469_v38 = vpop.f32.mrf.mxu2 }
 0x21c   : > { %v4159_v44 = vsel %vm15381_vm3, %v15475_v28, %v15379_v46  ;;  %v3956_v62 = vsel %vm15476_vm5, %v13251_v3, %v13351_v7  ;;  %v13372_v55 = vadd.s32 80, %v12738_v5  ;;  %v544_v63 = vand.u32 65535, %v13361_v52  ;;  %v3619_v39 = vpop.f32.mrf.mxu3  ;;  %v11459_v46 = vld [vmem:[#allocation3 + $0x60] sm:$0xff] }
 0x21d   : > { %4250 = vmatmul.bf16.gmra.mxu2 %v4159_v44  ;;  %v4390_v4 = vsel %vm15381_vm3, %v15477_v40, %v15378_v8  ;;  %vm809_vm14 = vcmp.ne.s32.totalorder %v509_v32, 0  ;;  %vm827_vm4 = vcmp.lt.s32.totalorder %v509_v32, 0  ;;  %v863_v31 = vadd.s32 18, %v509_v32  ;;  %4082 = vmatmul.bf16.gmra.mxu1 %v3956_v62  ;;  %v2722_v62 = vpop.f32.mrf.mxu0 }
 0x21e   : > { %4481 = vmatmul.bf16.gmra.mxu3 %v4390_v4  ;;  %v2944_v50 = vrot.slane %v13327_v29, 4  ;;  %vm845_vm10 = vmand %vm827_vm4, %vm809_vm14  ;;  %v535_v3 = vadd.s32 %v534_v9, %v525_v20  ;;  %v13377_v26 = vadd.f32 %v13020_v21, %v2753_v49  ;;  %v545_v23 = vshrl.u32 %v13361_v52, 16  ;;  %5503 = vmatpush.bf16.msra.mxu2 %v11459_v46 }
 0x21f   : > { %v881_v18 = vsel %vm845_vm10, %v863_v31, %v509_v32  ;;  %v3470_v48 = vadd.f32 %v3469_v38, %v3358_v42  ;;  %v547_v1 = vmul.u32 14564, %v544_v63  ;;  %v548_v2 = vmul.u32 58254, %v544_v63  ;;  %v13389_v63 = vpop.f32.mrf.mxu1 }
 0x220   : > { %vm13380_vm5 = vcmp.lt.s32.totalorder %v881_v18, 16  ;;  %v15478_v22 = vmov 0  ;;  %v536_v28 = vshrl.u32 %v535_v3, 4  ;;  %v549_v44 = vmul.u32 14564, %v545_v23  ;;  %15481 = vst [vmem:[#allocation22_spill] sm:$0xff] %v13389_v63 }
 0x221   : > { %v15479_v22 = vsel %vm13380_vm5, 4294967295, %v15478_v22  ;;  %v573_v20 = vand.u32 65535, %v13372_v55  ;;  %v2845_v49 = vsel %vm13380_vm5, %v2791_v51, 0.0  ;;  %v13387_v9 = vadd.f32 %v3619_v39, %v3470_v48  ;;  %v11427_v51 = vld [vmem:[%s15351_s1 + $0x1e0] sm:$0xff]  ;;  %v11451_v39 = vld [vmem:[#allocation3 + $0x20] sm:$0xff] }
 0x222   : > { %15480 = vst [vmem:[#allocation21_spill] sm:$0xff] %v15479_v22  ;;  %v550_v40 = vmul.u32 58254, %v545_v23  ;;  %v551_v4 = vshll.u32 %v548_v2, 16  ;;  %v2863_v32 = vpack.c.bf16 %v2845_v49, %v2845_v49  ;;  %v537_v42 = vmul.u32 18, %v536_v28  ;;  %4699 = vmatpush.bf16.msra.mxu0 %v11427_v51  ;;  %5614 = vmatpush.bf16.msra.mxu3 %v11451_v39 }
 0x223   : > { %v553_v31 = vshll.u32 %v549_v44, 16  ;;  %v574_v38 = vshrl.u32 %v13372_v55, 16  ;;  %v552_v18 = vshrl.u32 %v548_v2, 16  ;;  %v2754_v8 = vadd.f32 %v2722_v62, %v12717_v17  ;;  %v11435_v2 = vld [vmem:[%s15351_s1 + $0x220] sm:$0xff] }
 0x224   : > { %vm555_vm14 = vc.u32 %v547_v1, %v551_v4  ;;  %v557_v3 = vadd.s32 %v551_v4, %v547_v1  ;;  %v2946_v23 = vshrl.u32 %v2863_v32, 16  ;;  %v2949_v48 = vshll.u32 %v2863_v32, 16  ;;  %4867 = vmatpush.bf16.msra.mxu1 %v11435_v2  ;;  %v13410_v51 = vpop.f32.mrf.mxu3  ;;  %v13414_v2 = vld [vmem:[%s12069_s16 + $0x78] sm:$0xff] }
 0x225   : > { %v538_v28 = vsub.s32 %v13294_v27, %v537_v42  ;;  %v556_v49 = vsel %vm555_vm14, 1, %v15439_v10  ;;  %v13402_v17 = vadd.f32 %v13020_v21, %v2754_v8  ;;  %v13404_v1 = vmul.u32 58254, %v573_v20  ;;  %v13406_v27 = vpop.f32.mrf.mxu2  ;;  %15483 = vst [vmem:[#allocation24_spill] sm:$0xff] %v13410_v51 }
 0x226   : > { %v558_v57 = vadd.s32 %v556_v49, %v550_v40  ;;  %vm559_vm4 = vc.u32 %v557_v3, %v553_v31  ;;  %v2948_v62 = vrot.slane %v2946_v23, 6  ;;  %v2951_v4 = vrot.slane %v2949_v48, 7  ;;  %15482 = vst [vmem:[#allocation23_spill] sm:$0xff] %v13406_v27 }
 0x227   : > { %vm810_vm10 = vcmp.ne.s32.totalorder %v538_v28, 0  ;;  %vm828_vm3 = vcmp.lt.s32.totalorder %v538_v28, 0  ;;  %v864_v32 = vadd.s32 18, %v538_v28  ;;  %v2792_v40 = vmax.f32 %v13377_v26, 0.0 }
 0x228   : > { %vm846_vm14 = vmand %vm828_vm3, %vm810_vm10  ;;  %v560_v8 = vsel %vm559_vm4, 1, %v15439_v10  ;;  %v576_v42 = vmul.u32 14564, %v573_v20  ;;  %v2952_v46 = vor.u32 %v2951_v4, %v2948_v62  ;;  %v554_v31 = vshrl.u32 %v549_v44, 16 }
 0x229   : > { %v562_v3 = vadd.s32 %v560_v8, %v558_v57  ;;  %v578_v23 = vmul.u32 14564, %v574_v38  ;;  %v882_v48 = vsel %vm846_vm14, %v864_v32, %v538_v28  ;;  %v579_v49 = vmul.u32 58254, %v574_v38  ;;  %v2725_v32 = vpop.f32.mrf.mxu0  ;;  %v3363_v8 = vpop.f32.mrf.mxu1  ;;  %v13432_v57 = vld [vmem:[%s12069_s16 + $0x80] sm:$0xff] }
 0x22a   : > { %v580_v39 = vshll.u32 %v13404_v1, 16  ;;  %v2953_v26 = vsel %vm13165_vm8, %v2944_v50, %v2952_v46  ;;  %vm13420_vm3 = vcmp.lt.s32.totalorder %v882_v48, 16  ;;  %v15484_v22 = vmov 0 }
 0x22b   : > { %v15485_v22 = vsel %vm13420_vm3, 4294967295, %v15484_v22  ;;  %v563_v44 = vadd.s32 %v562_v3, %v552_v18  ;;  %3083 = vst [vmem:[#allocation2 + $0x24] sm:$0xf] %v2953_v26  ;;  %v2846_v20 = vsel %vm13420_vm3, %v2792_v40, 0.0  ;;  %v581_v38 = vshrl.u32 %v13404_v1, 16 }
 0x22c   : > { %15486 = vst [vmem:[#allocation25_spill] sm:$0xff] %v15485_v22  ;;  %v582_v28 = vshll.u32 %v578_v23, 16  ;;  %vm584_vm4 = vc.u32 %v576_v42, %v580_v39  ;;  %v2864_v29 = vpack.c.bf16 %v2846_v20, %v2846_v20  ;;  %v586_v4 = vadd.s32 %v580_v39, %v576_v42 }
 0x22d   : > { %v564_v62 = vadd.s32 %v563_v44, %v554_v31  ;;  %v585_v50 = vsel %vm584_vm4, 1, %v15439_v10  ;;  %v2954_v48 = vrot.slane %v2952_v46, 4  ;;  %v15384_v3 = vrot.slane %v13414_v2, 1 }
 0x22e   : > { %v587_v18 = vadd.s32 %v585_v50, %v579_v49  ;;  %v3958_v26 = vshrl.u32 %v13414_v2, 16  ;;  %v2956_v40 = vshrl.u32 %v2864_v29, 16  ;;  %v2959_v22 = vshll.u32 %v2864_v29, 16  ;;  %v3474_v49 = vpop.f32.mrf.mxu2 }
 0x22f   : > { %v565_v1 = vshrl.u32 %v564_v62, 4  ;;  %vm588_vm10 = vc.u32 %v586_v4, %v582_v28  ;;  %v583_v51 = vshrl.u32 %v578_v23, 16  ;;  %v2755_v44 = vadd.f32 %v2725_v32, %v12735_v45 }
 0x230   : > { %v589_v31 = vsel %vm588_vm10, 1, %v15439_v10  ;;  %v15487_v42 = vrot.slane %v13319_v13, 1  ;;  %v2958_v39 = vrot.slane %v2956_v40, 6  ;;  %v2961_v20 = vrot.slane %v2959_v22, 7 }
 0x231   : > { %v566_v50 = vmul.u32 18, %v565_v1  ;;  %v591_v27 = vadd.s32 %v589_v31, %v587_v18  ;;  %v3960_v29 = vrot.slane %v3958_v26, 1  ;;  %v3961_v28 = vshll.u32 %v13414_v2, 16 }
 0x232   : > { %v3755_v46 = vsel %vm15385_vm1, %v15487_v42, %v15384_v3  ;;  %v15390_v23 = vrot.slane %v13414_v2, 2  ;;  %v15389_v62 = vrot.slane %v13432_v57, 2  ;;  %v13444_v45 = vor.u32 %v2961_v20, %v2958_v39  ;;  %v3624_v42 = vpop.f32.mrf.mxu3 }
 0x233   : > { %3849 = vmatmul.bf16.gmra.mxu0 %v3755_v46  ;;  %v567_v4 = vsub.s32 %v13361_v52, %v566_v50  ;;  %v592_v32 = vadd.s32 %v591_v27, %v581_v38  ;;  %v3475_v63 = vadd.f32 %v3474_v49, %v3363_v8  ;;  %v3963_v3 = vrot.slane %v3961_v28, 2  ;;  %v13472_v49 = vpop.f32.mrf.mxu1 }
 0x234   : > { %v15488_v22 = vrot.slane %v13319_v13, 2  ;;  %vm15489_vm14 = vcmask 1045504   ;;  %v15490_v26 = vrot.slane %v13337_v47, 2  ;;  %v13458_v1 = vadd.s32 88, %v12738_v5  ;;  %15492 = vst [vmem:[#allocation26_spill] sm:$0xff] %v13472_v49 }
 0x235   : > { %vm15491_vm4 = vmmov %vm15489_vm14  ;;  %v2963_v52 = vsel %vm13165_vm8, %v2954_v48, %v13444_v45  ;;  %vm811_vm10 = vcmp.ne.s32.totalorder %v567_v4, 0  ;;  %vm829_vm1 = vcmp.lt.s32.totalorder %v567_v4, 0  ;;  %v13464_v27 = vadd.f32 %v13020_v21, %v2755_v44  ;;  %v2727_v48 = vpop.f32.mrf.mxu0 }
 0x236   : > { %v4161_v18 = vsel %vm15489_vm14, %v15488_v22, %v15390_v23  ;;  %v4392_v40 = vsel %vm15491_vm4, %v15490_v26, %v15389_v62  ;;  %3084 = vst [vmem:[#allocation2 + $0x28] sm:$0xf] %v2963_v52  ;;  %vm847_vm14 = vmand %vm829_vm1, %vm811_vm10  ;;  %v865_v13 = vadd.s32 18, %v567_v4  ;;  %v593_v47 = vadd.s32 %v592_v32, %v583_v51  ;;  %v11458_v26 = vld [vmem:[#allocation3 + $0x58] sm:$0xff] }
 0x237   : > { %4255 = vmatmul.bf16.gmra.mxu2 %v4161_v18  ;;  %4486 = vmatmul.bf16.gmra.mxu3 %v4392_v40  ;;  %v13466_v38 = vor.u32 %v3963_v3, %v3960_v29  ;;  %v13468_v8 = vadd.f32 %v3624_v42, %v3475_v63  ;;  %v602_v31 = vand.u32 65535, %v13458_v1  ;;  %v603_v46 = vshrl.u32 %v13458_v1, 16  ;;  %v11426_v40 = vld [vmem:[%s15351_s1 + $0x1d8] sm:$0xff]  ;;  %v11450_v52 = vld [vmem:[#allocation3 + $0x18] sm:$0xff] }
 0x238   : > { %v883_v39 = vsel %vm847_vm14, %v865_v13, %v567_v4  ;;  %v594_v21 = vshrl.u32 %v593_v47, 4  ;;  %vm15493_vm4 = vsmask.f32 6400  ;;  %v15494_v20 = vmov 0  ;;  %5504 = vmatpush.bf16.msra.mxu2 %v11458_v26  ;;  %4700 = vmatpush.bf16.msra.mxu0 %v11426_v40 }
 0x239   : > { %v3965_v44 = vsel %vm15493_vm4, %v13351_v7, %v13466_v38  ;;  %vm13477_vm1 = vcmp.lt.s32.totalorder %v883_v39, 16  ;;  %v605_v63 = vmul.u32 14564, %v602_v31  ;;  %v606_v51 = vmul.u32 58254, %v602_v31  ;;  %5615 = vmatpush.bf16.msra.mxu3 %v11450_v52 }
 0x23a   : > { %v15495_v20 = vsel %vm13477_vm1, 4294967295, %v15494_v20  ;;  %4087 = vmatmul.bf16.gmra.mxu1 %v3965_v44  ;;  %v13481_v3 = vmul.u32 14564, %v603_v46  ;;  %v2964_v50 = vrot.slane %v13444_v45, 4  ;;  %v15497_v29 = vmax.f32 %v13402_v17, 0.0  ;;  %v13503_v44 = vpop.f32.mrf.mxu3 }
 0x23b   : > { %15496 = vst [vmem:[#allocation27_spill] sm:$0xff] %v15495_v20  ;;  %v595_v4 = vmul.u32 18, %v594_v21  ;;  %v2794_v32 = vmax.f32 %v13464_v27, 0.0  ;;  %v608_v42 = vmul.u32 58254, %v603_v46  ;;  %v609_v22 = vshll.u32 %v606_v51, 16  ;;  %v11434_v27 = vld [vmem:[%s15351_s1 + $0x218] sm:$0xff]  ;;  %v13501_v21 = vpop.f32.mrf.mxu2 }
 0x23c   : > { %v2847_v28 = vsel %vm13477_vm1, %v15497_v29, 0.0  ;;  %v611_v18 = vshll.u32 %v13481_v3, 16  ;;  %v610_v17 = vshrl.u32 %v606_v51, 16  ;;  %v2756_v13 = vadd.f32 %v2727_v48, %v12754_v59  ;;  %15498 = vst [vmem:[#allocation28_spill] sm:$0xff] %v13501_v21  ;;  %4868 = vmatpush.bf16.msra.mxu1 %v11434_v27 }
 0x23d   : > { %v2865_v7 = vpack.c.bf16 %v2847_v28, %v2847_v28  ;;  %v596_v45 = vsub.s32 %v13372_v55, %v595_v4  ;;  %v13499_v47 = vadd.s32 96, %v12738_v5  ;;  %vm613_vm10 = vc.u32 %v605_v63, %v609_v22  ;;  %15499 = vst [vmem:[#allocation29_spill] sm:$0xff] %v13503_v44  ;;  %v2730_v27 = vpop.f32.mrf.mxu0 }
 0x23e   : > { %v615_v39 = vadd.s32 %v609_v22, %v605_v63  ;;  %v614_v55 = vsel %vm613_vm10, 1, %v15439_v10  ;;  %v15500_v26 = vmov 0  ;;  %v612_v40 = vshrl.u32 %v13481_v3, 16 }
 0x23f   : > { %v2966_v31 = vshrl.u32 %v2865_v7, 16  ;;  %v2969_v46 = vshll.u32 %v2865_v7, 16  ;;  %vm812_vm14 = vcmp.ne.s32.totalorder %v596_v45, 0  ;;  %vm830_vm4 = vcmp.lt.s32.totalorder %v596_v45, 0 }
 0x240   : > { %v866_v59 = vadd.s32 18, %v596_v45  ;;  %vm848_vm1 = vmand %vm830_vm4, %vm812_vm14  ;;  %v616_v29 = vadd.s32 %v614_v55, %v608_v42  ;;  %vm617_vm3 = vc.u32 %v615_v39, %v611_v18  ;;  %v631_v4 = vand.u32 65535, %v13499_v47 }
 0x241   : > { %v2968_v48 = vrot.slane %v2966_v31, 6  ;;  %v2971_v51 = vrot.slane %v2969_v46, 7  ;;  %v618_v63 = vsel %vm617_vm3, 1, %v15439_v10  ;;  %v632_v7 = vshrl.u32 %v13499_v47, 16  ;;  %v3368_v31 = vpop.f32.mrf.mxu1 }
 0x242   : > { %v884_v28 = vsel %vm848_vm1, %v866_v59, %v596_v45  ;;  %v620_v52 = vadd.s32 %v618_v63, %v616_v29  ;;  %v634_v18 = vmul.u32 14564, %v631_v4  ;;  %v635_v45 = vmul.u32 58254, %v631_v4  ;;  %v13528_v63 = vld [vmem:[%s12069_s16 + $0x80] sm:$0xff] }
 0x243   : > { %v2972_v22 = vor.u32 %v2971_v51, %v2968_v48  ;;  %vm13509_vm5 = vcmp.lt.s32.totalorder %v884_v28, 16  ;;  %v636_v46 = vmul.u32 14564, %v632_v7  ;;  %v13521_v48 = vld [vmem:[%s15352_s2] ss:$0 sm:$0xff]  ;;  %v637_v51 = vmul.u32 58254, %v632_v7  ;;  %v3479_v44 = vpop.f32.mrf.mxu2 }
 0x244   : > { %v15501_v26 = vsel %vm13509_vm5, 4294967295, %v15500_v26  ;;  %v2848_v42 = vsel %vm13509_vm5, %v2794_v32, 0.0  ;;  %v621_v55 = vadd.s32 %v620_v52, %v610_v17  ;;  %v13524_v3 = vadd.f32 %v13521_v48, %v2756_v13 }
 0x245   : > { %15502 = vst [vmem:[#allocation30_spill] sm:$0xff] %v15501_v26  ;;  %v2973_v39 = vsel %vm13165_vm8, %v2964_v50, %v2972_v22  ;;  %v2866_v59 = vpack.c.bf16 %v2848_v42, %v2848_v42  ;;  %v638_v32 = vshll.u32 %v635_v45, 16  ;;  %v640_v29 = vshll.u32 %v636_v46, 16  ;;  %v13532_v26 = vld [vmem:[%s12069_s16 + $0x88] sm:$0xff] }
 0x246   : > { %3085 = vst [vmem:[#allocation2 + $0x2c] sm:$0xf] %v2973_v39  ;;  %v2757_v28 = vadd.f32 %v2730_v27, %v12787_v30  ;;  %v2974_v50 = vrot.slane %v2972_v22, 4  ;;  %v622_v52 = vadd.s32 %v621_v55, %v612_v40  ;;  %v639_v42 = vshrl.u32 %v635_v45, 16  ;;  %v3629_v30 = vpop.f32.mrf.mxu3 }
 0x247   : > { %v2976_v4 = vshrl.u32 %v2866_v59, 16  ;;  %v2979_v17 = vshll.u32 %v2866_v59, 16  ;;  %vm642_vm3 = vc.u32 %v634_v18, %v638_v32  ;;  %v644_v62 = vadd.s32 %v638_v32, %v634_v18 }
 0x248   : > { %v15395_v23 = vrot.slane %v13528_v63, 1  ;;  %v623_v7 = vshrl.u32 %v622_v52, 4  ;;  %v643_v20 = vsel %vm642_vm3, 1, %v15439_v10  ;;  %v641_v27 = vshrl.u32 %v636_v46, 16  ;;  %v2732_v52 = vpop.f32.mrf.mxu0 }
 0x249   : > { %v2978_v13 = vrot.slane %v2976_v4, 6  ;;  %v2981_v39 = vrot.slane %v2979_v17, 7  ;;  %v645_v21 = vadd.s32 %v643_v20, %v637_v51  ;;  %vm646_vm1 = vc.u32 %v644_v62, %v640_v29 }
 0x24a   : > { %v15503_v22 = vrot.slane %v13414_v2, 1  ;;  %vm15504_vm10 = vcmask 1046528   ;;  %v624_v45 = vmul.u32 18, %v623_v7  ;;  %v647_v59 = vsel %vm646_vm1, 1, %v15439_v10 }
 0x24b   : > { %v13540_v18 = vor.u32 %v2981_v39, %v2978_v13  ;;  %v3967_v55 = vshrl.u32 %v13528_v63, 16  ;;  %v649_v32 = vadd.s32 %v647_v59, %v645_v21  ;;  %v3970_v4 = vshll.u32 %v13528_v63, 16  ;;  %v13552_v13 = vpop.f32.mrf.mxu1 }
 0x24c   : > { %v3757_v40 = vsel %vm15504_vm10, %v15503_v22, %v15395_v23  ;;  %v15394_v20 = vrot.slane %v13528_v63, 2  ;;  %v15393_v62 = vrot.slane %v13532_v26, 2  ;;  %v625_v51 = vsub.s32 %v13458_v1, %v624_v45 }
 0x24d   : > { %3854 = vmatmul.bf16.gmra.mxu0 %v3757_v40  ;;  %v2983_v46 = vsel %vm13165_vm8, %v2974_v50, %v13540_v18  ;;  %v2795_v29 = vmax.f32 %v13524_v3, 0.0  ;;  %v3969_v17 = vrot.slane %v3967_v55, 1  ;;  %v650_v21 = vadd.s32 %v649_v32, %v639_v42 }
 0x24e   : > { %3086 = vst [vmem:[#allocation2 + $0x30] sm:$0xf] %v2983_v46  ;;  %v3972_v39 = vrot.slane %v3970_v4, 2  ;;  %v15505_v7 = vrot.slane %v13414_v2, 2  ;;  %vm15506_vm14 = vcmask 1045504   ;;  %v15507_v50 = vrot.slane %v13432_v57, 2 }
 0x24f   : > { %vm15508_vm4 = vmmov %vm15506_vm14  ;;  %vm813_vm3 = vcmp.ne.s32.totalorder %v625_v51, 0  ;;  %vm831_vm1 = vcmp.lt.s32.totalorder %v625_v51, 0  ;;  %v867_v3 = vadd.s32 18, %v625_v51  ;;  %v3480_v40 = vadd.f32 %v3479_v44, %v3368_v31 }
 0x250   : > { %v4163_v22 = vsel %vm15506_vm14, %v15505_v7, %v15394_v20  ;;  %v4394_v1 = vsel %vm15508_vm4, %v15507_v50, %v15393_v62  ;;  %vm849_vm10 = vmand %vm831_vm1, %vm813_vm3  ;;  %v651_v42 = vadd.s32 %v650_v21, %v641_v27  ;;  %v13565_v45 = vadd.f32 %v13521_v48, %v2757_v28 }
 0x251   : > { %4260 = vmatmul.bf16.gmra.mxu2 %v4163_v22  ;;  %4491 = vmatmul.bf16.gmra.mxu3 %v4394_v1  ;;  %v13567_v2 = vor.u32 %v3972_v39, %v3969_v17  ;;  %v13570_v59 = vadd.s32 104, %v12738_v5  ;;  %v885_v55 = vsel %vm849_vm10, %v867_v3, %v625_v51  ;;  %v13572_v57 = vadd.f32 %v3629_v30, %v3480_v40  ;;  %v13589_v51 = vpop.f32.mrf.mxu2  ;;  %v13591_v17 = vpop.f32.mrf.mxu3 }
 0x252   : > { %v13575_v32 = vadd.s32 112, %v12738_v5  ;;  %vm13577_vm14 = vcmp.lt.s32.totalorder %v885_v55, 16  ;;  %v15509_v4 = vmov 0  ;;  %v652_v44 = vshrl.u32 %v651_v42, 4 }
 0x253   : > { %v15510_v4 = vsel %vm13577_vm14, 4294967295, %v15509_v4  ;;  %vm15512_vm4 = vsmask.f32 6400  ;;  %v660_v28 = vand.u32 65535, %v13570_v59  ;;  %v2849_v27 = vsel %vm13577_vm14, %v2795_v29, 0.0  ;;  %v13606_v62 = vpop.f32.mrf.mxu1 }
 0x254   : > { %15511 = vst [vmem:[#allocation31_spill] sm:$0xff] %v15510_v4  ;;  %v3974_v31 = vsel %vm15512_vm4, %v13466_v38, %v13567_v2  ;;  %v661_v30 = vshrl.u32 %v13570_v59, 16  ;;  %v2758_v46 = vadd.f32 %v2732_v52, %v12817_v35  ;;  %v2867_v21 = vpack.c.bf16 %v2849_v27, %v2849_v27  ;;  %v2735_v27 = vpop.f32.mrf.mxu0 }
 0x255   : > { %4092 = vmatmul.bf16.gmra.mxu1 %v3974_v31  ;;  %v653_v39 = vmul.u32 18, %v652_v44  ;;  %v2796_v7 = vmax.f32 %v13565_v45, 0.0  ;;  %v664_v22 = vmul.u32 58254, %v660_v28  ;;  %v2984_v38 = vrot.slane %v13540_v18, 4  ;;  %v11457_v45 = vld [vmem:[#allocation3 + $0x50] sm:$0xff]  ;;  %v11425_v18 = vld [vmem:[%s15351_s1 + $0x1d0] sm:$0xff] }
 0x256   : > { %v663_v50 = vmul.u32 14564, %v660_v28  ;;  %v13595_v1 = vmul.u32 14564, %v661_v30  ;;  %v689_v29 = vand.u32 65535, %v13575_v32  ;;  %v2986_v3 = vshrl.u32 %v2867_v21, 16  ;;  %v11449_v28 = vld [vmem:[#allocation3 + $0x10] sm:$0xff]  ;;  %5505 = vmatpush.bf16.msra.mxu2 %v11457_v45  ;;  %4701 = vmatpush.bf16.msra.mxu0 %v11425_v18 }
 0x257   : > { %v2989_v40 = vshll.u32 %v2867_v21, 16  ;;  %v654_v35 = vsub.s32 %v13499_v47, %v653_v39  ;;  %v667_v52 = vshll.u32 %v664_v22, 16  ;;  %v666_v42 = vmul.u32 58254, %v661_v30  ;;  %5616 = vmatpush.bf16.msra.mxu3 %v11449_v28  ;;  %v13631_v47 = vld [vmem:[%s12069_s16 + $0x88] sm:$0xff] }
 0x258   : > { %v668_v55 = vshrl.u32 %v664_v22, 16  ;;  %v669_v31 = vshll.u32 %v13595_v1, 16  ;;  %v13601_v44 = vadd.f32 %v13521_v48, %v2758_v46  ;;  %v2988_v21 = vrot.slane %v2986_v3, 6 }
 0x259   : > { %v2991_v20 = vrot.slane %v2989_v40, 7  ;;  %vm814_vm3 = vcmp.ne.s32.totalorder %v654_v35, 0  ;;  %vm832_vm1 = vcmp.lt.s32.totalorder %v654_v35, 0  ;;  %v868_v30 = vadd.s32 18, %v654_v35  ;;  %v3634_v45 = vpop.f32.mrf.mxu3 }
 0x25a   : > { %vm13608_vm10 = vmand %vm832_vm1, %vm814_vm3  ;;  %vm671_vm4 = vc.u32 %v663_v50, %v667_v52  ;;  %v673_v46 = vadd.s32 %v667_v52, %v663_v50  ;;  %v690_v39 = vshrl.u32 %v13575_v32, 16  ;;  %v692_v4 = vmul.u32 14564, %v689_v29 }
 0x25b   : > { %v2992_v22 = vor.u32 %v2991_v20, %v2988_v21  ;;  %v672_v23 = vsel %vm671_vm4, 1, %v15439_v10  ;;  %v693_v3 = vmul.u32 58254, %v689_v29  ;;  %v886_v40 = vsel %vm13608_vm10, %v868_v30, %v654_v35 }
 0x25c   : > { %v674_v49 = vadd.s32 %v672_v23, %v666_v42  ;;  %vm675_vm3 = vc.u32 %v673_v46, %v669_v31  ;;  %v694_v58 = vmul.u32 14564, %v690_v39  ;;  %vm13618_vm1 = vcmp.lt.s32.totalorder %v886_v40, 16  ;;  %v3484_v31 = vpop.f32.mrf.mxu2 }
 0x25d   : > { %v2993_v11 = vsel %vm13165_vm8, %v2984_v38, %v2992_v22  ;;  %v15515_v50 = vmov 0  ;;  %v670_v20 = vshrl.u32 %v13595_v1, 16  ;;  %v676_v52 = vsel %vm675_vm3, 1, %v15439_v10  ;;  %v11433_v38 = vld [vmem:[%s15351_s1 + $0x210] sm:$0xff] }
 0x25e   : > { %v15516_v50 = vsel %vm13618_vm1, 4294967295, %v15515_v50  ;;  %3087 = vst [vmem:[#allocation2 + $0x34] sm:$0xf] %v2993_v11  ;;  %v2850_v29 = vsel %vm13618_vm1, %v2796_v7, 0.0  ;;  %v678_v35 = vadd.s32 %v676_v52, %v674_v49  ;;  %v695_v23 = vmul.u32 58254, %v690_v39  ;;  %4869 = vmatpush.bf16.msra.mxu1 %v11433_v38  ;;  %v13636_v52 = vld [vmem:[%s12069_s16 + $0x90] sm:$0xff] }
 0x25f   : > { %15517 = vst [vmem:[#allocation32_spill] sm:$0xff] %v15516_v50  ;;  %v696_v42 = vshll.u32 %v693_v3, 16  ;;  %v2994_v18 = vrot.slane %v2992_v22, 4  ;;  %v2868_v28 = vpack.c.bf16 %v2850_v29, %v2850_v29  ;;  %v698_v21 = vshll.u32 %v694_v58, 16 }
 0x260   : > { %v2759_v1 = vadd.f32 %v2735_v27, %v12877_v12  ;;  %v679_v11 = vadd.s32 %v678_v35, %v668_v55  ;;  %v697_v30 = vshrl.u32 %v693_v3, 16  ;;  %v15404_v40 = vrot.slane %v13631_v47, 1  ;;  %v2737_v12 = vpop.f32.mrf.mxu0  ;;  %v13638_v27 = vpop.f32.mrf.mxu1 }
 0x261   : > { %vm700_vm10 = vc.u32 %v692_v4, %v696_v42  ;;  %v702_v49 = vadd.s32 %v696_v42, %v692_v4  ;;  %v2996_v7 = vshrl.u32 %v2868_v28, 16  ;;  %v2999_v46 = vshll.u32 %v2868_v28, 16 }
 0x262   : > { %v701_v39 = vsel %vm700_vm10, 1, %v15439_v10  ;;  %v680_v22 = vadd.s32 %v679_v11, %v670_v20  ;;  %v699_v29 = vshrl.u32 %v694_v58, 16  ;;  %v15518_v35 = vrot.slane %v13528_v63, 1 }
 0x263   : > { %v703_v50 = vadd.s32 %v701_v39, %v695_v23  ;;  %vm704_vm4 = vc.u32 %v702_v49, %v698_v21  ;;  %v2998_v55 = vrot.slane %v2996_v7, 6  ;;  %v3001_v3 = vrot.slane %v2999_v46, 7 }
 0x264   : > { %v705_v4 = vsel %vm704_vm4, 1, %v15439_v10  ;;  %vm15519_vm3 = vcmask 1046528   ;;  %v681_v38 = vshrl.u32 %v680_v22, 4  ;;  %v3976_v58 = vshrl.u32 %v13631_v47, 16 }
 0x265   : > { %v3759_v42 = vsel %vm15519_vm3, %v15518_v35, %v15404_v40  ;;  %v707_v28 = vadd.s32 %v705_v4, %v703_v50  ;;  %v3979_v20 = vshll.u32 %v13631_v47, 16  ;;  %v13648_v23 = vor.u32 %v3001_v3, %v2998_v55  ;;  %v13674_v35 = vpop.f32.mrf.mxu3 }
 0x266   : > { %3859 = vmatmul.bf16.gmra.mxu0 %v3759_v42  ;;  %v15403_v21 = vrot.slane %v13631_v47, 2  ;;  %v15401_v11 = vrot.slane %v13636_v52, 2  ;;  %v3485_v49 = vadd.f32 %v3484_v31, %v13606_v62  ;;  %v682_v7 = vmul.u32 18, %v681_v38 }
 0x267   : > { %v708_v46 = vadd.s32 %v707_v28, %v697_v30  ;;  %v3978_v39 = vrot.slane %v3976_v58, 1  ;;  %v3981_v34 = vrot.slane %v3979_v20, 2  ;;  %v3003_v50 = vsel %vm13165_vm8, %v2994_v18, %v13648_v23 }
 0x268   : > { %v13657_v22 = vadd.f32 %v13521_v48, %v2759_v1  ;;  %v15520_v55 = vrot.slane %v13528_v63, 2  ;;  %vm15521_vm10 = vcmask 1045504   ;;  %v15522_v62 = vrot.slane %v13532_v26, 2  ;;  %3088 = vst [vmem:[#allocation2 + $0x38] sm:$0xf] %v3003_v50  ;;  %v13672_v1 = vpop.f32.mrf.mxu2 }
 0x269   : > { %vm15523_vm4 = vmmov %vm15521_vm10  ;;  %v683_v30 = vsub.s32 %v13570_v59, %v682_v7  ;;  %v709_v4 = vadd.s32 %v708_v46, %v699_v29  ;;  %v13670_v18 = vor.u32 %v3981_v34, %v3978_v39  ;;  %v2797_v63 = vmax.f32 %v13601_v44, 0.0  ;;  %v13695_v7 = vpop.f32.mrf.mxu1 }
 0x26a   : > { %v4165_v3 = vsel %vm15521_vm10, %v15520_v55, %v15403_v21  ;;  %v4396_v31 = vsel %vm15523_vm4, %v15522_v62, %v15401_v11  ;;  %v13677_v42 = vadd.f32 %v3634_v45, %v3485_v49  ;;  %v13680_v26 = vadd.s32 120, %v12738_v5  ;;  %v13693_v49 = vpop.f32.mrf.mxu0 }
 0x26b   : > { %4265 = vmatmul.bf16.gmra.mxu2 %v4165_v3  ;;  %4496 = vmatmul.bf16.gmra.mxu3 %v4396_v31  ;;  %v2760_v38 = vadd.f32 %v2737_v12, %v12918_v14  ;;  %vm815_vm3 = vcmp.ne.s32.totalorder %v683_v30, 0  ;;  %vm833_vm10 = vcmp.lt.s32.totalorder %v683_v30, 0  ;;  %v869_v59 = vadd.s32 18, %v683_v30 }
 0x26c   : > { %v710_v34 = vshrl.u32 %v709_v4, 4  ;;  %vm851_vm4 = vmand %vm833_vm10, %vm815_vm3  ;;  %vm15524_vm1 = vsmask.f32 6400  ;;  %v718_v28 = vand.u32 65535, %v13680_v26  ;;  %v719_v44 = vshrl.u32 %v13680_v26, 16 }
 0x26d   : > { %v3983_v29 = vsel %vm15524_vm1, %v13567_v2, %v13670_v18  ;;  %v13689_v45 = vadd.f32 %v13521_v48, %v2760_v38  ;;  %v3004_v58 = vrot.slane %v13648_v23, 4  ;;  %v887_v20 = vsel %vm851_vm4, %v869_v59, %v683_v30 }
 0x26e   : > { %v711_v14 = vmul.u32 18, %v710_v34  ;;  %v2798_v12 = vmax.f32 %v13657_v22, 0.0  ;;  %4097 = vmatmul.bf16.gmra.mxu1 %v3983_v29  ;;  %vm13697_vm3 = vcmp.lt.s32.totalorder %v887_v20, 16  ;;  %v15525_v2 = vmov 0  ;;  %v11456_v34 = vld [vmem:[#allocation3 + $0x48] sm:$0xff] }
 0x26f   : > { %v15526_v2 = vsel %vm13697_vm3, 4294967295, %v15525_v2  ;;  %v721_v46 = vmul.u32 14564, %v718_v28  ;;  %v722_v39 = vmul.u32 58254, %v718_v28  ;;  %v723_v50 = vmul.u32 14564, %v719_v44  ;;  %5506 = vmatpush.bf16.msra.mxu2 %v11456_v34 }
 0x270   : > { %15527 = vst [vmem:[#allocation33_spill] sm:$0xff] %v15526_v2  ;;  %v2851_v55 = vsel %vm13697_vm3, %v2797_v63, 0.0  ;;  %v712_v23 = vsub.s32 %v13575_v32, %v711_v14  ;;  %v724_v3 = vmul.u32 58254, %v719_v44  ;;  %v13705_v22 = vadd.s32 128, %v12738_v5 }
 0x271   : > { %v2869_v62 = vpack.c.bf16 %v2851_v55, %v2851_v55  ;;  %v725_v31 = vshll.u32 %v722_v39, 16  ;;  %v726_v30 = vshrl.u32 %v722_v39, 16  ;;  %v727_v59 = vshll.u32 %v723_v50, 16  ;;  %v13711_v39 = vpop.f32.mrf.mxu2  ;;  %v13713_v55 = vpop.f32.mrf.mxu3 }
 0x272   : > { %vm816_vm1 = vcmp.ne.s32.totalorder %v712_v23, 0  ;;  %vm834_vm10 = vcmp.lt.s32.totalorder %v712_v23, 0  ;;  %v870_v38 = vadd.s32 18, %v712_v23  ;;  %v747_v20 = vand.u32 65535, %v13705_v22  ;;  %v2742_v60 = vpop.f32.mrf.mxu0  ;;  %v13724_v33 = vpop.f32.mrf.mxu1 }
 0x273   : > { %v3006_v29 = vshrl.u32 %v2869_v62, 16  ;;  %v3009_v28 = vshll.u32 %v2869_v62, 16  ;;  %vm852_vm4 = vmand %vm834_vm10, %vm816_vm1  ;;  %vm729_vm3 = vc.u32 %v721_v46, %v725_v31  ;;  %v731_v63 = vadd.s32 %v725_v31, %v721_v46 }
 0x274   : > { %v888_v32 = vsel %vm852_vm4, %v870_v38, %v712_v23  ;;  %v730_v44 = vsel %vm729_vm3, 1, %v15439_v10  ;;  %v748_v14 = vshrl.u32 %v13705_v22, 16  ;;  %v15528_v21 = vmov 0 }
 0x275   : > { %v3008_v4 = vrot.slane %v3006_v29, 6  ;;  %v3011_v11 = vrot.slane %v3009_v28, 7  ;;  %vm13715_vm14 = vcmp.lt.s32.totalorder %v888_v32, 16  ;;  %v732_v62 = vadd.s32 %v730_v44, %v724_v3  ;;  %v13729_v44 = vld [vmem:[%s12069_s16 + $0x90] sm:$0xff] }
 0x276   : > { %v15529_v21 = vsel %vm13715_vm14, 4294967295, %v15528_v21  ;;  %v2852_v46 = vsel %vm13715_vm14, %v2798_v12, 0.0  ;;  %vm733_vm3 = vc.u32 %v731_v63, %v727_v59  ;;  %v750_v23 = vmul.u32 14564, %v747_v20 }
 0x277   : > { %15530 = vst [vmem:[#allocation34_spill] sm:$0xff] %v15529_v21  ;;  %v751_v31 = vmul.u32 58254, %v747_v20  ;;  %v3012_v38 = vor.u32 %v3011_v11, %v3008_v4  ;;  %v2870_v34 = vpack.c.bf16 %v2852_v46, %v2852_v46  ;;  %v734_v40 = vsel %vm733_vm3, 1, %v15439_v10 }
 0x278   : > { %v13722_v2 = vmul.u32 14564, %v748_v14  ;;  %v728_v29 = vshrl.u32 %v723_v50, 16  ;;  %v736_v28 = vadd.s32 %v734_v40, %v732_v62  ;;  %v753_v32 = vmul.u32 58254, %v748_v14  ;;  %v11424_v40 = vld [vmem:[%s15351_s1 + $0x1c8] sm:$0xff]  ;;  %v11448_v50 = vld [vmem:[#allocation3 + $0x8] sm:$0xff] }
 0x279   : > { %v754_v25 = vshll.u32 %v751_v31, 16  ;;  %v3013_v12 = vsel %vm13165_vm8, %v3004_v58, %v3012_v38  ;;  %v3016_v3 = vshrl.u32 %v2870_v34, 16  ;;  %v3019_v59 = vshll.u32 %v2870_v34, 16  ;;  %4702 = vmatpush.bf16.msra.mxu0 %v11424_v40  ;;  %5617 = vmatpush.bf16.msra.mxu3 %v11448_v50 }
 0x27a   : > { %v755_v63 = vshrl.u32 %v751_v31, 16  ;;  %v3014_v11 = vrot.slane %v3012_v38, 4  ;;  %3089 = vst [vmem:[#allocation2 + $0x3c] sm:$0xf] %v3013_v12  ;;  %v737_v4 = vadd.s32 %v736_v28, %v726_v30  ;;  %v756_v20 = vshll.u32 %v13722_v2, 16  ;;  %v11432_v31 = vld [vmem:[%s15351_s1 + $0x208] sm:$0xff] }
 0x27b   : > { %vm758_vm1 = vc.u32 %v750_v23, %v754_v25  ;;  %v3018_v14 = vrot.slane %v3016_v3, 6  ;;  %v3021_v62 = vrot.slane %v3019_v59, 7  ;;  %v760_v46 = vadd.s32 %v754_v25, %v750_v23  ;;  %v13747_v23 = vld [vmem:[%s12069_s16 + $0x98] sm:$0xff]  ;;  %4870 = vmatpush.bf16.msra.mxu1 %v11432_v31 }
 0x27c   : > { %v759_v58 = vsel %vm758_vm1, 1, %v15439_v10  ;;  %v738_v38 = vadd.s32 %v737_v4, %v728_v29  ;;  %v2761_v34 = vadd.f32 %v13693_v49, %v12984_v16  ;;  %v15407_v28 = vrot.slane %v13729_v44, 1  ;;  %v3491_v4 = vpop.f32.mrf.mxu2 }
 0x27d   : > { %v761_v30 = vadd.s32 %v759_v58, %v753_v32  ;;  %v13742_v12 = vor.u32 %v3021_v62, %v3018_v14  ;;  %vm762_vm10 = vc.u32 %v760_v46, %v756_v20  ;;  %v3985_v3 = vshrl.u32 %v13729_v44, 16  ;;  %v3641_v20 = vpop.f32.mrf.mxu3 }
 0x27e   : > { %v3988_v25 = vshll.u32 %v13729_v44, 16  ;;  %v739_v59 = vshrl.u32 %v738_v38, 4  ;;  %v757_v29 = vshrl.u32 %v13722_v2, 16  ;;  %v763_v32 = vsel %vm762_vm10, 1, %v15439_v10  ;;  %v3830_v38 = vpop.f32.mrf.mxu0 }
 0x27f   : > { %v15531_v16 = vrot.slane %v13631_v47, 1  ;;  %vm15532_vm4 = vcmask 1046528   ;;  %v3023_v40 = vsel %vm13165_vm8, %v3014_v11, %v13742_v12  ;;  %v765_v50 = vadd.s32 %v763_v32, %v761_v30 }
 0x280   : > { %v13760_v14 = vadd.f32 %v13521_v48, %v2761_v34  ;;  %v3987_v2 = vrot.slane %v3985_v3, 1  ;;  %3090 = vst [vmem:[#allocation2 + $0x40] sm:$0xf] %v3023_v40  ;;  %v740_v58 = vmul.u32 18, %v739_v59  ;;  %v3990_v46 = vrot.slane %v3988_v25, 2 }
 0x281   : > { %v3761_v49 = vsel %vm15532_vm4, %v15531_v16, %v15407_v28  ;;  %v15412_v31 = vrot.slane %v13729_v44, 2  ;;  %v4068_v16 = vpop.f32.mrf.mxu1  ;;  %v766_v28 = vadd.s32 %v765_v50, %v755_v63  ;;  %v15411_v21 = vrot.slane %v13747_v23, 2 }
 0x282   : > { %3864 = vmatmul.bf16.gmra.mxu0 %v3761_v49  ;;  %v3490_v11 = vadd.f32 %v13711_v39, %v13695_v7  ;;  %v13768_v30 = vadd.s32 136, %v12738_v5  ;;  %v741_v34 = vsub.s32 %v13680_v26, %v740_v58  ;;  %v13771_v3 = vor.u32 %v3990_v46, %v3987_v2 }
 0x283   : > { %v15533_v25 = vrot.slane %v13631_v47, 2  ;;  %vm15534_vm3 = vcmask 1045504   ;;  %v2762_v63 = vadd.f32 %v2742_v60, %v13039_v36  ;;  %v767_v32 = vadd.s32 %v766_v28, %v757_v29 }
 0x284   : > { %v15535_v7 = vrot.slane %v13636_v52, 2  ;;  %vm15536_vm1 = vmmov %vm15534_vm3  ;;  %v13785_v26 = vadd.f32 %v13713_v55, %v3490_v11  ;;  %v776_v39 = vand.u32 65535, %v13768_v30  ;;  %vm817_vm10 = vcmp.ne.s32.totalorder %v741_v34, 0  ;;  %v4236_v2 = vpop.f32.mrf.mxu2 }
 0x285   : > { %v4167_v59 = vsel %vm15534_vm3, %v15533_v25, %v15412_v31  ;;  %vm835_vm4 = vcmp.lt.s32.totalorder %v741_v34, 0  ;;  %v871_v47 = vadd.s32 18, %v741_v34  ;;  %vm15537_vm3 = vsmask.f32 6400  ;;  %v13797_v58 = vpop.f32.mrf.mxu3  ;;  %v11494_v31 = vld [vmem:[#allocation3 + $0x138] sm:$0xff] }
 0x286   : > { %4270 = vmatmul.bf16.gmra.mxu2 %v4167_v59  ;;  %v4398_v5 = vsel %vm15536_vm1, %v15535_v7, %v15411_v21  ;;  %v3992_v36 = vsel %vm15537_vm3, %v13670_v18, %v13771_v3  ;;  %vm853_vm14 = vmand %vm835_vm4, %vm817_vm10  ;;  %v768_v60 = vshrl.u32 %v767_v32, 4  ;;  %v777_v52 = vshrl.u32 %v13768_v30, 16  ;;  %v13814_v59 = vpop.f32.mrf.mxu0 }
 0x287   : > { %4501 = vmatmul.bf16.gmra.mxu3 %v4398_v5  ;;  %4102 = vmatmul.bf16.gmra.mxu1 %v3992_v36  ;;  %v13793_v29 = vmul.u32 58254, %v776_v39  ;;  %v889_v55 = vsel %vm853_vm14, %v871_v47, %v741_v34  ;;  %v779_v49 = vmul.u32 14564, %v776_v39  ;;  %v3492_v40 = vadd.f32 %v3491_v4, %v13724_v33  ;;  %v3680_v5 = vld [vmem:[%s12069_s16 + $0x98] sm:$0x1] }
 0x288   : > { %v3875_v50 = vadd.f32 %v3830_v38, %v13085_v61  ;;  %vm13799_vm1 = vcmp.lt.s32.totalorder %v889_v55, 16  ;;  %v15538_v18 = vmov 0  ;;  %v769_v46 = vmul.u32 18, %v768_v60  ;;  %v3893_v60 = vld [vmem:[%s12069_s16 + $0x98] sm:$0x3] }
 0x289   : > { %v15539_v18 = vsel %vm13799_vm1, 4294967295, %v15538_v18  ;;  %v13803_v11 = vmul.u32 14564, %v777_v52  ;;  %v13806_v25 = vadd.f32 %v13521_v48, %v2762_v63  ;;  %v15541_v34 = vmax.f32 %v13689_v45, 0.0  ;;  %v13816_v32 = vpop.f32.mrf.mxu1 }
 0x28a   : > { %15540 = vst [vmem:[#allocation35_spill] sm:$0xff] %v15539_v18  ;;  %v782_v33 = vmul.u32 58254, %v777_v52  ;;  %v783_v4 = vshll.u32 %v13793_v29, 16  ;;  %v784_v38 = vshrl.u32 %v13793_v29, 16  ;;  %v770_v48 = vsub.s32 %v13705_v22, %v769_v46  ;;  %v4317_v52 = vld [vmem:[%s12069_s16 + $0xa0] sm:$0x3] }
 0x28b   : > { %v2853_v61 = vsel %vm13799_vm1, %v15541_v34, 0.0  ;;  %v785_v63 = vshll.u32 %v13803_v11, 16  ;;  %v13822_v47 = vadd.f32 %v3641_v20, %v3492_v40  ;;  %v4113_v36 = vadd.f32 %v4068_v16, %v3875_v50  ;;  %v11455_v34 = vld [vmem:[#allocation3 + $0x40] sm:$0xff]  ;;  %v11423_v22 = vld [vmem:[%s15351_s1 + $0x1c0] sm:$0xff] }
 0x28c   : > { %v2871_v7 = vpack.c.bf16 %v2853_v61, %v2853_v61  ;;  %vm787_vm14 = vc.u32 %v779_v49, %v783_v4  ;;  %v789_v39 = vadd.s32 %v783_v4, %v779_v49  ;;  %vm818_vm10 = vcmp.ne.s32.totalorder %v770_v48, 0  ;;  %v11447_v49 = vld [vmem:[#allocation3] sm:$0xff]  ;;  %v11431_v40 = vld [vmem:[%s15351_s1 + $0x200] sm:$0xff]  ;;  %5507 = vmatpush.bf16.msra.mxu2 %v11455_v34  ;;  %4703 = vmatpush.bf16.msra.mxu0 %v11423_v22 }
 0x28d   : > { %vm836_vm4 = vcmp.lt.s32.totalorder %v770_v48, 0  ;;  %v872_v61 = vadd.s32 18, %v770_v48  ;;  %v788_v20 = vsel %vm787_vm14, 1, %v15439_v10  ;;  %v3734_v16 = vunpack.c.l.b16 %v3680_v5  ;;  %5618 = vmatpush.bf16.msra.mxu3 %v11447_v49  ;;  %4871 = vmatpush.bf16.msra.mxu1 %v11431_v40  ;;  %v13840_v5 = vpop.f32.mrf.mxu2  ;;  %v14015_v18 = vld [vmem:[%s12069_s16 + $0x80] sm:$0xff] }
 0x28e   : > { %v3026_v29 = vshrl.u32 %v2871_v7, 16  ;;  %v3029_v55 = vshll.u32 %v2871_v7, 16  ;;  %vm13829_vm3 = vmand %vm836_vm4, %vm818_vm10  ;;  %vm791_vm1 = vc.u32 %v789_v39, %v785_v63  ;;  %v790_v7 = vadd.s32 %v788_v20, %v782_v33  ;;  %v13842_v39 = vpop.f32.mrf.mxu3  ;;  %v11486_v33 = vld [vmem:[#allocation3 + $0xf8] sm:$0xff] }
 0x28f   : > { %v792_v21 = vsel %vm791_vm1, 1, %v15439_v10  ;;  %v890_v45 = vsel %vm13829_vm3, %v872_v61, %v770_v48  ;;  %v3744_v62 = vpack.c.b16 %v3734_v16, %v3734_v16  ;;  %v3911_v28 = vunpack.c.l.b16 %v3893_v60  ;;  %v3835_v16 = vpop.f32.mrf.mxu0 }
 0x290   : > { %v3028_v50 = vrot.slane %v3026_v29, 6  ;;  %v3031_v4 = vrot.slane %v3029_v55, 7  ;;  %v4371_v63 = vunpack.c.l.b16 %v4317_v52  ;;  %v11470_v29 = vld [vmem:[#allocation3 + $0xb8] sm:$0xff]  ;;  %vm13844_vm1 = vcmp.lt.s32.totalorder %v890_v45, 16  ;;  %6233 = vmatpush.bf16.msrb.mxu2 %v11494_v31 }
 0x291   : > { %v11502_v55 = vld [vmem:[#allocation3 + $0x178] sm:$0xff]  ;;  %v15544_v10 = vmov 0  ;;  %v794_v34 = vadd.s32 %v792_v21, %v790_v7  ;;  %v4281_v22 = vadd.f32 %v4236_v2, %v4113_v36  ;;  %v15547_v48 = vmax.f32 %v13760_v14, 0.0  ;;  %v4073_v49 = vpop.f32.mrf.mxu1  ;;  %5762 = vmatpush.bf16.msrb.mxu0 %v11470_v29  ;;  %5994 = vmatpush.bf16.msrb.mxu1 %v11486_v33 }
 0x292   : > { %v3032_v20 = vor.u32 %v3031_v4, %v3028_v50  ;;  %v15545_v10 = vsel %vm13844_vm1, 4294967295, %v15544_v10  ;;  %v3762_v52 = vrot.slane %v3744_v62, 1  ;;  %v3912_v46 = vpack.c.b16 %v3911_v28, %v3911_v28  ;;  %6402 = vmatpush.bf16.msrb.mxu3 %v11502_v55 }
 0x293   : > { %15546 = vst [vmem:[#allocation36_spill] sm:$0xff] %v15545_v10  ;;  %v2854_v60 = vsel %vm13844_vm1, %v15547_v48, 0.0  ;;  %v4381_v61 = vpack.c.b16 %v4371_v63, %v4371_v63  ;;  %v15548_v45 = vrot.slane %v13742_v12, 4  ;;  %v795_v31 = vadd.s32 %v794_v34, %v784_v38 }
 0x294   : > { %v3034_v21 = vrot.slane %v3032_v20, 4  ;;  %v2872_v2 = vpack.c.bf16 %v2854_v60, %v2854_v60  ;;  %v15549_v14 = vrot.slane %v13729_v44, 1  ;;  %vm15550_vm14 = vcmask 1046528  }
 0x295   : > { %v3033_v40 = vsel %vm13165_vm8, %v15548_v45, %v3032_v20  ;;  %v3994_v28 = vshrl.u32 %v3912_v46, 16  ;;  %v3997_v36 = vshll.u32 %v3912_v46, 16  ;;  %v4168_v50 = vrot.slane %v3912_v46, 2 }
 0x296   : > { %3091 = vst [vmem:[#allocation2 + $0x44] sm:$0xf] %v3033_v40  ;;  %v3763_v62 = vsel %vm15550_vm14, %v15549_v14, %v3762_v52  ;;  %v3036_v4 = vshrl.u32 %v2872_v2, 16  ;;  %v3039_v7 = vshll.u32 %v2872_v2, 16  ;;  %v15551_v63 = vshrl.u32 %v13803_v11, 16  ;;  %v4472_v40 = vpop.f32.mrf.mxu3 }
 0x297   : > { %3869 = vmatmul.bf16.gmra.mxu0 %v3763_v62  ;;  %v4399_v29 = vrot.slane %v4381_v61, 2  ;;  %v3996_v55 = vrot.slane %v3994_v28, 1  ;;  %v3999_v20 = vrot.slane %v3997_v36, 2  ;;  %v15552_v38 = vrot.slane %v13729_v44, 2  ;;  %v13878_v62 = vld [vmem:[%s12069_s16 + $0x60] sm:$0xff] }
 0x298   : > { %v796_v12 = vadd.s32 %v795_v31, %v15551_v63  ;;  %vm15553_vm10 = vcmask 1045504   ;;  %v13865_v34 = vadd.f32 %v13797_v58, %v4281_v22  ;;  %v3038_v48 = vrot.slane %v3036_v4, 6  ;;  %v4241_v22 = vpop.f32.mrf.mxu2  ;;  %v4768_v36 = vld [vmem:[%s12069_s16 + $0x58] sm:$0x8]  ;;  %v13887_v4 = vpop.f32.mrf.mxu0 }
 0x299   : > { %v4169_v33 = vsel %vm15553_vm10, %v15552_v38, %v4168_v50  ;;  %v3041_v60 = vrot.slane %v3039_v7, 7  ;;  %v15554_v11 = vrot.slane %v13747_v23, 2  ;;  %vm15555_vm4 = vmmov %vm15553_vm10  ;;  %v4000_v61 = vor.u32 %v3999_v20, %v3996_v55  ;;  %v13889_v7 = vpop.f32.mrf.mxu1  ;;  %v11501_v55 = vld [vmem:[#allocation3 + $0x170] sm:$0xff] }
 0x29a   : > { %v797_v52 = vshrl.u32 %v796_v12, 4  ;;  %4275 = vmatmul.bf16.gmra.mxu2 %v4169_v33  ;;  %v3876_v44 = vadd.f32 %v13814_v59, %v13148_v43  ;;  %v3877_v45 = vadd.f32 %v3835_v16, %v13191_v24  ;;  %v4551_v58 = vshrl.u32 %v12978_v6, 16  ;;  %v13885_v16 = vld [vmem:[#allocation2 + $0x8] sm:$0xff]  ;;  %v11673_v33 = vld [vmem:[#allocation2] sm:$0xff]   ;;  %6403 = vmatpush.bf16.msrb.mxu3 %v11501_v55 }
 0x29b   : > { %v4400_v46 = vsel %vm15555_vm4, %v15554_v11, %v4399_v29  ;;  %v13874_v2 = vor.u32 %v3041_v60, %v3038_v48  ;;  %v4554_v14 = vshll.u32 %v12978_v6, 16  ;;  %v4559_v28 = vshrl.u32 %v13878_v62, 16  ;;  %v11493_v29 = vld [vmem:[#allocation3 + $0x130] sm:$0xff] }
 0x29c   : > { %4506 = vmatmul.bf16.gmra.mxu3 %v4400_v46  ;;  %v798_v31 = vmul.u32 18, %v797_v52  ;;  %vm15556_vm3 = vsmask.f32 6400  ;;  %v4114_v43 = vadd.f32 %v13816_v32, %v3876_v44  ;;  %v4115_v24 = vadd.f32 %v4073_v49, %v3877_v45  ;;  %v11485_v48 = vld [vmem:[#allocation3 + $0xf0] sm:$0xff]  ;;  %6234 = vmatpush.bf16.msrb.mxu2 %v11493_v29 }
 0x29d   : > { %v4001_v50 = vsel %vm15556_vm3, %v13771_v3, %v4000_v61  ;;  %v4553_v59 = vrot.slane %v4551_v58, 2  ;;  %v3043_v6 = vsel %vm13165_vm8, %v3034_v21, %v13874_v2  ;;  %v4556_v12 = vrot.slane %v4554_v14, 3  ;;  %v11469_v3 = vld [vmem:[#allocation3 + $0xb0] sm:$0xff]  ;;  %5995 = vmatpush.bf16.msrb.mxu1 %v11485_v48  ;;  %v13920_v48 = vld [vmem:[%s12069_s16 + $0x68] sm:$0xff] }
 0x29e   : > { %v799_v63 = vsub.s32 %v13768_v30, %v798_v31  ;;  %4107 = vmatmul.bf16.gmra.mxu1 %v4001_v50  ;;  %3092 = vst [vmem:[#allocation2 + $0x48] sm:$0xf] %v3043_v6  ;;  %v4282_v32 = vadd.f32 %v13840_v5, %v4114_v43  ;;  %v4561_v49 = vrot.slane %v4559_v28, 2  ;;  %v4562_v20 = vshll.u32 %v13878_v62, 16  ;;  %5763 = vmatpush.bf16.msrb.mxu0 %v11469_v3  ;;  %v15560_v58 = vld [vmem:[#allocation11_spill] sm:$0xff] }
 0x29f   : > { %v4786_v38 = vunpack.c.l.b16 %v4768_v36  ;;  %v2801_v21 = vmax.f32 %v13806_v25, 0.0  ;;  %v4557_v52 = vor.u32 %v4556_v12, %v4553_v59  ;;  %v5368_v46 = vshrl.u32 %v11673_v33, 16  ;;  %v13910_v36 = vpop.f32.mrf.mxu3 }
 0x2a0   : > { %vm819_vm14 = vcmp.ne.s32.totalorder %v799_v63, 0  ;;  %vm837_vm10 = vcmp.lt.s32.totalorder %v799_v63, 0  ;;  %v873_v60 = vadd.s32 18, %v799_v63  ;;  %v13899_v30 = vadd.f32 %v13842_v39, %v4282_v32  ;;  %v13908_v39 = vpop.f32.mrf.mxu2  ;;  %v3840_v29 = vpop.f32.mrf.mxu0 }
 0x2a1   : > { %vm855_vm4 = vmand %vm837_vm10, %vm819_vm14  ;;  %v4564_v11 = vrot.slane %v4562_v20, 3  ;;  %v5370_v61 = vshll.u32 %v11673_v33, 16  ;;  %v5375_v44 = vshll.u32 %v13885_v16, 16  ;;  %v15557_v45 = vmov 0  ;;  %v4078_v3 = vpop.f32.mrf.mxu1 }
 0x2a2   : > { %v891_v5 = vsel %vm855_vm4, %v873_v60, %v799_v63  ;;  %v15561_v31 = vunpack.c.l.b16 %v15560_v58  ;;  %v4283_v28 = vadd.f32 %v4241_v22, %v4115_v24  ;;  %vm15562_vm14 = vsmask.f32 5376 }
 0x2a3   : > { %vm13902_vm3 = vcmp.lt.s32.totalorder %v891_v5, 16  ;;  %v4565_v25 = vor.u32 %v4564_v11, %v4561_v49  ;;  %v5372_v43 = vrot.slane %v5370_v61, 1  ;;  %v5377_v63 = vrot.slane %v5375_v44, 1  ;;  %v3094_v44 = vld [vmem:[#allocation2 + $0x50] sm:$0x3] }
 0x2a4   : > { %v15558_v45 = vsel %vm13902_vm3, 4294967295, %v15557_v45  ;;  %v4787_v14 = vpack.c.b16 %v15561_v31, %v4786_v38  ;;  %v2855_v50 = vsel %vm13902_vm3, %v2801_v21, 0.0  ;;  %v13915_v12 = vadd.f32 %v4472_v40, %v4283_v28 }
 0x2a5   : > { %15559 = vst [vmem:[#allocation37_spill] sm:$0xff] %v15558_v45  ;;  %v2873_v59 = vpack.c.bf16 %v2855_v50, %v2855_v50  ;;  %v4566_v6 = vsel %vm15562_vm14, %v4557_v52, %v4565_v25  ;;  %v5373_v55 = vor.u32 %v5372_v43, %v5368_v46  ;;  %v3879_v22 = vadd.f32 %v3840_v29, %v13248_v37  ;;  %v13929_v43 = vld [vmem:[#allocation2 + $0x10] sm:$0xff]  ;;  %v11498_v45 = vld [vmem:[#allocation3 + $0x158] sm:$0xff] }
 0x2a6   : > { %v4788_v49 = vrot.slane %v4787_v14, 3  ;;  %v4789_v20 = vrot.slane %v13878_v62, 3  ;;  %v4568_v60 = vshrl.u32 %v13920_v48, 16  ;;  %vm15563_vm10 = vsmask.f32 7424  ;;  %v11468_v29 = vld [vmem:[#allocation3 + $0xa8] sm:$0xff] }
 0x2a7   : > { %v3046_v24 = vshrl.u32 %v2873_v59, 16  ;;  %v3049_v32 = vshll.u32 %v2873_v59, 16  ;;  %4704 = vmatmul.bf16.vlgmr.msra.gmra.mxu0 %v4566_v6  ;;  %v4117_v38 = vadd.f32 %v4078_v3, %v3879_v22  ;;  %v5378_v40 = vsel %vm15563_vm10, %v5373_v55, %v5377_v63  ;;  %v4477_v61 = vpop.f32.mrf.mxu3  ;;  %v11500_v3 = vld [vmem:[#allocation3 + $0x168] sm:$0xff] }
 0x2a8   : > { %v4571_v11 = vshll.u32 %v13920_v48, 16  ;;  %v3044_v37 = vrot.slane %v13874_v2, 4  ;;  %vm15564_vm4 = vcmask 1044480   ;;  %v4246_v62 = vpop.f32.mrf.mxu2  ;;  %v4570_v28 = vrot.slane %v4568_v60, 2  ;;  %v13931_v59 = vpop.f32.mrf.mxu0  ;;  %5764 = vmatpush.bf16.msrb.mxu0 %v11468_v29  ;;  %6404 = vmatpush.bf16.msrb.mxu3 %v11500_v3  ;;  %v13958_v3 = vld [vmem:[#allocation2 + $0x18] sm:$0xff] }
 0x2a9   : > { %v3048_v21 = vrot.slane %v3046_v24, 6  ;;  %v3051_v52 = vrot.slane %v3049_v32, 7  ;;  %v4790_v46 = vsel %vm15564_vm4, %v4788_v49, %v4789_v20  ;;  %v4285_v58 = vadd.f32 %v4246_v62, %v4117_v38  ;;  %v13933_v6 = vpop.f32.mrf.mxu1  ;;  %v11484_v24 = vld [vmem:[#allocation3 + $0xe8] sm:$0xff] }
 0x2aa   : > { %5508 = vmatmul.bf16.vlgmr.msra.gmra.mxu2 %v5378_v40  ;;  %v4573_v50 = vrot.slane %v4571_v11, 3  ;;  %v5383_v49 = vshll.u32 %v13929_v43, 16  ;;  %5996 = vmatpush.bf16.msrb.mxu1 %v11484_v24 }
 0x2ab   : > { %v3052_v5 = vor.u32 %v3051_v52, %v3048_v21  ;;  %v13935_v2 = vadd.f32 %v4477_v61, %v4285_v58  ;;  %v5379_v52 = vshrl.u32 %v13885_v16, 16  ;;  %v13950_v58 = vld [vmem:[%s12069_s16 + $0x70] sm:$0xff] }
 0x2ac   : > { %5619 = vmatmul.bf16.vlgmr.msra.gmra.mxu3 %v11673_v33  ;;  %v11492_v33 = vld [vmem:[#allocation3 + $0x128] sm:$0xff]  ;;  %v4574_v32 = vor.u32 %v4573_v50, %v4570_v28  ;;  %v5385_v40 = vrot.slane %v5383_v49, 1 }
 0x2ad   : > { %v3053_v31 = vsel %vm13165_vm8, %v3044_v37, %v3052_v5  ;;  %v3054_v14 = vrot.slane %v3052_v5, 4  ;;  %6235 = vmatpush.bf16.msrb.mxu2 %v11492_v33  ;;  %v5381_v62 = vor.u32 %v5379_v52, %v5377_v63  ;;  %v5689_v63 = vrot.slane %v13929_v43, 1  ;;  %v11467_v52 = vld [vmem:[#allocation3 + $0xa0] sm:$0xff] }
 0x2ae   : > { %3093 = vst [vmem:[#allocation2 + $0x4c] sm:$0xf] %v3053_v31  ;;  %4872 = vmatmul.bf16.vlgmr.msra.gmra.mxu1 %v4790_v46  ;;  %v4575_v21 = vsel %vm15562_vm14, %v4565_v25, %v4574_v32  ;;  %v4791_v46 = vrot.slane %v13920_v48, 3  ;;  %v4577_v31 = vshrl.u32 %v13950_v58, 16  ;;  %v4580_v25 = vshll.u32 %v13950_v58, 16  ;;  %5765 = vmatpush.bf16.msrb.mxu0 %v11467_v52 }
 0x2af   : > { %v3095_v22 = vsel %vm12820_vm12, %v3054_v14, %v3094_v44  ;;  %v13942_v60 = vpop.f32.mrf.mxu3  ;;  %v5386_v44 = vsel %vm15563_vm10, %v5381_v62, %v5385_v40  ;;  %v15413_v48 = vrot.slane %v13885_v16, 1  ;;  %vm15566_vm14 = vcmask 1046528  }
 0x2b0   : > { %3096 = vst [vmem:[#allocation2 + $0x50] sm:$0x3] %v3095_v22  ;;  %v13940_v38 = vpop.f32.mrf.mxu2  ;;  %v3845_v11 = vpop.f32.mrf.mxu0  ;;  %v4792_v14 = vsel %vm15564_vm4, %v4789_v20, %v4791_v46  ;;  %v4579_v33 = vrot.slane %v4577_v31, 2  ;;  %v4582_v29 = vrot.slane %v4580_v25, 3  ;;  %v5391_v62 = vshll.u32 %v13958_v3, 16  ;;  %vm15567_vm10 = vmmov %vm15566_vm14 }
 0x2b1   : > { %v4083_v37 = vpop.f32.mrf.mxu1  ;;  %v3881_v5 = vadd.f32 %v3845_v11, %v13323_v56  ;;  %v13967_v20 = vsel %vm15566_vm14, %v15413_v48, %v5689_v63  ;;  %v11499_v11 = vld [vmem:[#allocation3 + $0x160] sm:$0xff]  ;;  %vm15568_vm4 = vsmask.f32 5376  ;;  %vm15569_vm14 = vsmask.f32 7424  ;;  %v13986_v48 = vld [vmem:[%s12069_s16 + $0x78] sm:$0xff] }
 0x2b2   : > { %6405 = vmatpush.bf16.msrb.mxu3 %v11499_v11 }
 0x2b3   : > { %v4119_v61 = vadd.f32 %v4083_v37, %v3881_v5  ;;  %v11483_v37 = vld [vmem:[#allocation3 + $0xe0] sm:$0xff]  ;;  %v4583_v5 = vor.u32 %v4582_v29, %v4579_v33 }
 0x2b4   : > { %5997 = vmatpush.bf16.msrb.mxu1 %v11483_v37 }
 0x2b6   : > { %6406 = vmatpush.bf16.msrb.mxu3 %v11498_v45 }
 0x2b7   : > { %4709 = vmatmul.bf16.gmra.mxu0 %v4575_v21  ;;  %v4482_v56 = vpop.f32.mrf.mxu3  ;;  %v11491_v21 = vld [vmem:[#allocation3 + $0x120] sm:$0xff] }
 0x2b8   : > { %v4251_v28 = vpop.f32.mrf.mxu2  ;;  %v13960_v22 = vpop.f32.mrf.mxu0  ;;  %6236 = vmatpush.bf16.msrb.mxu2 %v11491_v21  ;;  %v4793_v21 = vrot.slane %v13950_v58, 3 }
 0x2b9   : > { %v4287_v50 = vadd.f32 %v4251_v28, %v4119_v61  ;;  %v13962_v24 = vpop.f32.mrf.mxu1  ;;  %v5691_v61 = vrot.slane %v13958_v3, 1  ;;  %v5387_v28 = vshrl.u32 %v13929_v43, 16 }
 0x2ba   : > { %5513 = vmatmul.bf16.gmra.mxu2 %v5386_v44 }
 0x2bb   : > { %v13969_v49 = vadd.f32 %v4482_v56, %v4287_v50  ;;  %v13978_v25 = vsel %vm15567_vm10, %v5689_v63, %v5691_v61  ;;  %v5393_v56 = vrot.slane %v5391_v62, 1  ;;  %v5389_v52 = vor.u32 %v5387_v28, %v5385_v40 }
 0x2bc   : > { %5624 = vmatmul.bf16.gmra.mxu3 %v13885_v16  ;;  %v4586_v63 = vshrl.u32 %v13986_v48, 16  ;;  %vm15570_vm10 = vcmask 1044480  }
 0x2bd   : > { %v5394_v37 = vsel %vm15569_vm14, %v5389_v52, %v5393_v56  ;;  %v4794_v62 = vsel %vm15570_vm10, %v4791_v46, %v4793_v21  ;;  %v11490_v52 = vld [vmem:[#allocation3 + $0x118] sm:$0xff]  ;;  %vm15575_vm14 = vsmask.f32 5376  ;;  %vm15576_vm10 = vsmask.f32 7424 }
 0x2be   : > { %4877 = vmatmul.bf16.gmra.mxu1 %v4792_v14  ;;  %v4584_v14 = vsel %vm15568_vm4, %v4574_v32, %v4583_v5  ;;  %v4589_v32 = vshll.u32 %v13986_v48, 16  ;;  %v4588_v58 = vrot.slane %v4586_v63, 2  ;;  %v11482_v46 = vld [vmem:[#allocation3 + $0xd8] sm:$0xff]  ;;  %6237 = vmatpush.bf16.msrb.mxu2 %v11490_v52  ;;  %vm15571_vm4 = vcmask 1046528  }
 0x2bf   : > { %v13975_v31 = vpop.f32.mrf.mxu3  ;;  %5998 = vmatpush.bf16.msrb.mxu1 %v11482_v46 }
 0x2c0   : > { %v13973_v44 = vpop.f32.mrf.mxu2  ;;  %v3850_v50 = vpop.f32.mrf.mxu0 }
 0x2c1   : > { %v4088_v33 = vpop.f32.mrf.mxu1  ;;  %v3883_v29 = vadd.f32 %v3850_v50, %v13387_v9  ;;  %v13992_v50 = vld [vmem:[#allocation2 + $0x20] sm:$0xff] }
 0x2c3   : > { %v4121_v11 = vadd.f32 %v4088_v33, %v3883_v29 }
 0x2c7   : > { %4714 = vmatmul.bf16.gmra.mxu0 %v4584_v14  ;;  %v4487_v9 = vpop.f32.mrf.mxu3  ;;  %v4591_v14 = vrot.slane %v4589_v32, 3 }
 0x2c8   : > { %v4256_v55 = vpop.f32.mrf.mxu2  ;;  %v13994_v28 = vpop.f32.mrf.mxu0 }
 0x2c9   : > { %v4289_v40 = vadd.f32 %v4256_v55, %v4121_v11  ;;  %v13998_v29 = vpop.f32.mrf.mxu1  ;;  %v4592_v10 = vor.u32 %v4591_v14, %v4588_v58  ;;  %v5399_v55 = vshll.u32 %v13992_v50, 16  ;;  %v4795_v14 = vrot.slane %v13986_v48, 3 }
 0x2ca   : > { %5518 = vmatmul.bf16.gmra.mxu2 %v5394_v37  ;;  %v11466_v37 = vld [vmem:[#allocation3 + $0x98] sm:$0xff] }
 0x2cb   : > { %v13996_v33 = vadd.f32 %v4487_v9, %v4289_v40  ;;  %5766 = vmatpush.bf16.msrb.mxu0 %v11466_v37  ;;  %v5395_v9 = vshrl.u32 %v13958_v3, 16  ;;  %v5401_v40 = vrot.slane %v5399_v55, 1 }
 0x2cc   : > { %5629 = vmatmul.bf16.gmra.mxu3 %v13929_v43  ;;  %v5693_v43 = vrot.slane %v13992_v50, 1 }
 0x2cd   : > { %v5397_v45 = vor.u32 %v5395_v9, %v5393_v56 }
 0x2ce   : > { %4882 = vmatmul.bf16.gmra.mxu1 %v4794_v62  ;;  %v14003_v11 = vsel %vm15571_vm4, %v5691_v61, %v5693_v43  ;;  %v4593_v62 = vsel %vm15575_vm14, %v4583_v5, %v4592_v10  ;;  %v4598_v5 = vshll.u32 %v14015_v18, 16  ;;  %vm15577_vm4 = vcmask 1044480  }
 0x2cf   : > { %15572 = vst [vmem:[#allocation11_spill] sm:$0xff] %v14003_v11  ;;  %v14007_v32 = vpop.f32.mrf.mxu3  ;;  %v5402_v61 = vsel %vm15576_vm10, %v5397_v45, %v5401_v40  ;;  %v4796_v55 = vsel %vm15577_vm4, %v4793_v21, %v4795_v14  ;;  %v11497_v11 = vld [vmem:[#allocation3 + $0x150] sm:$0xff]  ;;  %vm15580_vm14 = vcmask 1046528   ;;  %vm15582_vm10 = vsmask.f32 5376 }
 0x2d0   : > { %v14005_v63 = vpop.f32.mrf.mxu2  ;;  %15574 = vst [vmem:[#allocation39_spill] sm:$0xff] %v14007_v32  ;;  %v3855_v52 = vpop.f32.mrf.mxu0  ;;  %v4595_v32 = vshrl.u32 %v14015_v18, 16  ;;  %6407 = vmatpush.bf16.msrb.mxu3 %v11497_v11  ;;  %v11481_v11 = vld [vmem:[#allocation3 + $0xd0] sm:$0xff]  ;;  %vm15586_vm4 = vsmask.f32 7424 }
 0x2d1   : > { %15573 = vst [vmem:[#allocation38_spill] sm:$0xff] %v14005_v63  ;;  %v3885_v58 = vadd.f32 %v3855_v52, %v13468_v8  ;;  %v14021_v52 = vld [vmem:[#allocation2 + $0x28] sm:$0xff]  ;;  %v11465_v63 = vld [vmem:[#allocation3 + $0x90] sm:$0xff]  ;;  %5999 = vmatpush.bf16.msrb.mxu1 %v11481_v11 }
 0x2d2   : > { %v4093_v37 = vpop.f32.mrf.mxu1  ;;  %v4597_v56 = vrot.slane %v4595_v32, 2  ;;  %5767 = vmatpush.bf16.msrb.mxu0 %v11465_v63  ;;  %v5695_v21 = vrot.slane %v14021_v52, 1 }
 0x2d3   : > { %v4123_v46 = vadd.f32 %v4093_v37, %v3885_v58  ;;  %v11489_v37 = vld [vmem:[#allocation3 + $0x110] sm:$0xff] }
 0x2d4   : > { %6238 = vmatpush.bf16.msrb.mxu2 %v11489_v37  ;;  %v14030_v32 = vsel %vm15580_vm14, %v5693_v43, %v5695_v21  ;;  %vm15587_vm14 = vcmask 1044480  }
 0x2d5   : > { %15581 = vst [vmem:[#allocation42_spill] sm:$0xff] %v14030_v32 }
 0x2d7   : > { %4719 = vmatmul.bf16.gmra.mxu0 %v4593_v62  ;;  %v4600_v62 = vrot.slane %v4598_v5, 3  ;;  %v4492_v9 = vpop.f32.mrf.mxu3  ;;  %v5403_v5 = vshrl.u32 %v13992_v50, 16 }
 0x2d8   : > { %v4261_v8 = vpop.f32.mrf.mxu2  ;;  %v14025_v45 = vpop.f32.mrf.mxu0 }
 0x2d9   : > { %v4291_v48 = vadd.f32 %v4261_v8, %v4123_v46  ;;  %15579 = vst [vmem:[#allocation41_spill] sm:$0xff] %v14025_v45  ;;  %v5405_v63 = vor.u32 %v5403_v5, %v5401_v40  ;;  %v14050_v40 = vld [vmem:[#allocation2 + $0x30] sm:$0xff] }
 0x2da   : > { %5523 = vmatmul.bf16.gmra.mxu2 %v5402_v61  ;;  %v5407_v61 = vshll.u32 %v14021_v52, 16  ;;  %v14034_v8 = vpop.f32.mrf.mxu1 }
 0x2db   : > { %v14023_v58 = vadd.f32 %v4492_v9, %v4291_v48  ;;  %15583 = vst [vmem:[#allocation43_spill] sm:$0xff] %v14034_v8  ;;  %v4797_v48 = vrot.slane %v14015_v18, 3 }
 0x2dc   : > { %5634 = vmatmul.bf16.gmra.mxu3 %v13958_v3  ;;  %v4601_v3 = vor.u32 %v4600_v62, %v4597_v56 }
 0x2dd   : > { %15578 = vst [vmem:[#allocation40_spill] sm:$0xff] %v14023_v58  ;;  %v4798_v18 = vsel %vm15587_vm14, %v4795_v14, %v4797_v48  ;;  %vm15591_vm14 = vsmask.f32 7424 }
 0x2de   : > { %4887 = vmatmul.bf16.gmra.mxu1 %v4796_v55  ;;  %v4602_v46 = vsel %vm15582_vm10, %v4592_v10, %v4601_v3  ;;  %v5409_v55 = vrot.slane %v5407_v61, 1  ;;  %v14044_v10 = vld [vmem:[%s12069_s16 + $0x88] sm:$0xff]  ;;  %vm15588_vm10 = vcmask 1046528  }
 0x2df   : > { %v14039_v56 = vpop.f32.mrf.mxu3  ;;  %v4604_v61 = vshrl.u32 %v14044_v10, 16  ;;  %v4607_v32 = vshll.u32 %v14044_v10, 16 }
 0x2e0   : > { %v14037_v9 = vpop.f32.mrf.mxu2  ;;  %15585 = vst [vmem:[#allocation45_spill] sm:$0xff] %v14039_v56  ;;  %v5410_v43 = vsel %vm15586_vm4, %v5405_v63, %v5409_v55  ;;  %v5697_v63 = vrot.slane %v14050_v40, 1  ;;  %vm15590_vm4 = vsmask.f32 5376 }
 0x2e1   : > { %15584 = vst [vmem:[#allocation44_spill] sm:$0xff] %v14037_v9  ;;  %v4609_v5 = vrot.slane %v4607_v32, 3 }
 0x2e3   : > { %v3860_v62 = vpop.f32.mrf.mxu0 }
 0x2e4   : > { %v3887_v37 = vadd.f32 %v3860_v62, %v13572_v57  ;;  %v3482_v57 = vadd.f32 %v13589_v51, %v13552_v13 }
 0x2e6   : > { %v3657_v32 = vadd.f32 %v13591_v17, %v3482_v57  ;;  %v14067_v17 = vld [vmem:[%s12069_s16 + $0x90] sm:$0xff] }
 0x2e7   : > { %4724 = vmatmul.bf16.gmra.mxu0 %v4602_v46  ;;  %v4606_v46 = vrot.slane %v4604_v61, 2 }
 0x2e9   : > { %v4610_v9 = vor.u32 %v4609_v5, %v4606_v46  ;;  %v11488_v46 = vld [vmem:[#allocation3 + $0x108] sm:$0xff]  ;;  %v4799_v5 = vrot.slane %v14044_v10, 3 }
 0x2ea   : > { %5528 = vmatmul.bf16.gmra.mxu2 %v5410_v43  ;;  %v5415_v43 = vshll.u32 %v14050_v40, 16 }
 0x2eb   : > { %v4098_v62 = vpop.f32.mrf.mxu1  ;;  %v3862_v11 = vpop.f32.mrf.mxu0  ;;  %v4611_v13 = vsel %vm15590_vm4, %v4601_v3, %v4610_v9  ;;  %6239 = vmatpush.bf16.msrb.mxu2 %v11488_v46  ;;  %v4616_v3 = vshll.u32 %v14067_v17, 16  ;;  %vm15593_vm4 = vcmask 1046528  }
 0x2ec   : > { %5639 = vmatmul.bf16.gmra.mxu3 %v13992_v50  ;;  %v4125_v56 = vadd.f32 %v4098_v62, %v3887_v37  ;;  %v14057_v50 = vsel %vm15588_vm10, %v5695_v21, %v5697_v63  ;;  %v5417_v51 = vrot.slane %v5415_v43, 1  ;;  %v3888_v37 = vadd.f32 %v3862_v11, %v3657_v32  ;;  %v14073_v43 = vld [vmem:[#allocation2 + $0x38] sm:$0xff] }
 0x2ed   : > { %15589 = vst [vmem:[#allocation46_spill] sm:$0xff] %v14057_v50  ;;  %vm15592_vm10 = vcmask 1044480   ;;  %v11464_v11 = vld [vmem:[#allocation3 + $0x88] sm:$0xff] }
 0x2ee   : > { %4892 = vmatmul.bf16.gmra.mxu1 %v4798_v18  ;;  %v4266_v58 = vpop.f32.mrf.mxu2  ;;  %v4497_v14 = vpop.f32.mrf.mxu3  ;;  %v5411_v18 = vshrl.u32 %v14021_v52, 16  ;;  %v4800_v57 = vsel %vm15592_vm10, %v4797_v48, %v4799_v5  ;;  %5768 = vmatpush.bf16.msrb.mxu0 %v11464_v11  ;;  %vm15595_vm10 = vsmask.f32 7424 }
 0x2ef   : > { %v4293_v61 = vadd.f32 %v4266_v58, %v4125_v56  ;;  %v4613_v58 = vshrl.u32 %v14067_v17, 16 }
 0x2f0   : > { %v5413_v62 = vor.u32 %v5411_v18, %v5409_v55  ;;  %v11480_v18 = vld [vmem:[#allocation3 + $0xc8] sm:$0xff] }
 0x2f1   : > { %v14062_v8 = vadd.f32 %v4497_v14, %v4293_v61  ;;  %v11496_v14 = vld [vmem:[#allocation3 + $0x148] sm:$0xff]  ;;  %v4618_v61 = vrot.slane %v4616_v3, 3  ;;  %6000 = vmatpush.bf16.msrb.mxu1 %v11480_v18  ;;  %v3487_v3 = vadd.f32 %v13672_v1, %v13638_v27  ;;  %v14094_v1 = vld [vmem:[#allocation2 + $0x40] sm:$0xff] }
 0x2f2   : > { %v5418_v21 = vsel %vm15591_vm14, %v5413_v62, %v5417_v51  ;;  %6408 = vmatpush.bf16.msrb.mxu3 %v11496_v14  ;;  %vm15594_vm14 = vsmask.f32 5376  ;;  %v4625_v14 = vshll.u32 %v13747_v23, 16 }
 0x2f3   : > { %v4100_v45 = vpop.f32.mrf.mxu1 }
 0x2f4   : > { %v4126_v50 = vadd.f32 %v4100_v45, %v3888_v37  ;;  %v4615_v45 = vrot.slane %v4613_v58, 2 }
 0x2f6   : > { %v4268_v56 = vpop.f32.mrf.mxu2  ;;  %v4499_v55 = vpop.f32.mrf.mxu3  ;;  %v4619_v37 = vor.u32 %v4618_v61, %v4615_v45 }
 0x2f7   : > { %4729 = vmatmul.bf16.gmra.mxu0 %v4611_v13  ;;  %v4294_v10 = vadd.f32 %v4268_v56, %v4126_v50  ;;  %v5699_v13 = vrot.slane %v14073_v43, 1 }
 0x2f8   : > { %v4620_v62 = vsel %vm15594_vm14, %v4610_v9, %v4619_v37  ;;  %v3659_v9 = vadd.f32 %v13674_v35, %v3487_v3  ;;  %v5701_v35 = vrot.slane %v14094_v1, 1  ;;  %vm15597_vm14 = vcmask 1046528  }
 0x2f9   : > { %v14075_v32 = vadd.f32 %v4499_v55, %v4294_v10  ;;  %v14081_v46 = vsel %vm15593_vm4, %v5697_v63, %v5699_v13  ;;  %v4622_v63 = vshrl.u32 %v13747_v23, 16  ;;  %vm15596_vm4 = vcmask 1044480  }
 0x2fa   : > { %5533 = vmatmul.bf16.gmra.mxu2 %v5418_v21  ;;  %v5419_v21 = vshrl.u32 %v14050_v40, 16 }
 0x2fb   : > { %v4624_v18 = vrot.slane %v4622_v63, 2 }
 0x2fc   : > { %5644 = vmatmul.bf16.gmra.mxu3 %v14021_v52  ;;  %v5423_v52 = vshll.u32 %v14073_v43, 16  ;;  %v5421_v10 = vor.u32 %v5419_v21, %v5417_v51 }
 0x2fe   : > { %4897 = vmatmul.bf16.gmra.mxu1 %v4800_v57  ;;  %v5425_v58 = vrot.slane %v5423_v52, 1  ;;  %v4801_v57 = vrot.slane %v14067_v17, 3 }
 0x2ff   : > { %v3865_v48 = vpop.f32.mrf.mxu0 }
 0x300   : > { %v3889_v50 = vadd.f32 %v3865_v48, %v13677_v42  ;;  %v5426_v11 = vsel %vm15595_vm10, %v5421_v10, %v5425_v58  ;;  %v4802_v45 = vsel %vm15596_vm4, %v4799_v5, %v4801_v57  ;;  %v4627_v48 = vrot.slane %v4625_v14, 3 }
 0x301   : > { %v5431_v5 = vshll.u32 %v14094_v1, 16  ;;  %vm15598_vm10 = vsmask.f32 5376  ;;  %v5427_v14 = vshrl.u32 %v14073_v43, 16  ;;  %vm15599_vm4 = vsmask.f32 7424 }
 0x302   : > { %v4628_v3 = vor.u32 %v4627_v48, %v4624_v18 }
 0x304   : > { %v4103_v56 = vpop.f32.mrf.mxu1  ;;  %v4629_v63 = vsel %vm15598_vm10, %v4619_v37, %v4628_v3  ;;  %vm15601_vm10 = vcmask 1046528  }
 0x305   : > { %v4127_v55 = vadd.f32 %v4103_v56, %v3889_v50  ;;  %v5301_v50 = vld [vmem:[#allocation2 + $0x48] sm:$0x1]  ;;  %v14101_v56 = vsel %vm15597_vm14, %v5699_v13, %v5701_v35  ;;  %vm15600_vm14 = vcmask 1044480  }
 0x307   : > { %4734 = vmatmul.bf16.gmra.mxu0 %v4620_v62  ;;  %v3867_v42 = vpop.f32.mrf.mxu0 }
 0x308   : > { %v3890_v61 = vadd.f32 %v3867_v42, %v3659_v9  ;;  %v5433_v9 = vrot.slane %v5431_v5, 1  ;;  %v4530_v5 = vld [vmem:[%s12069_s16 + $0xa0] sm:$0x7] }
 0x309   : > { %v4271_v27 = vpop.f32.mrf.mxu2 }
 0x30a   : > { %5538 = vmatmul.bf16.gmra.mxu2 %v5426_v11  ;;  %v4295_v51 = vadd.f32 %v4271_v27, %v4127_v55  ;;  %v4502_v17 = vpop.f32.mrf.mxu3 }
 0x30c   : > { %5649 = vmatmul.bf16.gmra.mxu3 %v14050_v40  ;;  %v14096_v52 = vadd.f32 %v4502_v17, %v4295_v51  ;;  %v4105_v62 = vpop.f32.mrf.mxu1  ;;  %v5356_v40 = vunpack.c.l.b16 %v5301_v50  ;;  %v4803_v17 = vrot.slane %v13747_v23, 3 }
 0x30d   : > { %v4128_v21 = vadd.f32 %v4105_v62, %v3890_v61  ;;  %v5429_v61 = vor.u32 %v5427_v14, %v5425_v58  ;;  %v4548_v58 = vunpack.c.l.b16 %v4530_v5  ;;  %v5835_v5 = vld [vmem:[#allocation2 + $0xc] sm:$0xf] }
 0x30e   : > { %4902 = vmatmul.bf16.gmra.mxu1 %v4802_v45  ;;  %v5366_v45 = vpack.c.b16 %v5356_v40, %v5356_v40  ;;  %v4804_v37 = vsel %vm15600_vm14, %v4801_v57, %v4803_v17  ;;  %vm15604_vm14 = vsmask.f32 7424 }
 0x30f   : > { %v5434_v13 = vsel %vm15599_vm4, %v5429_v61, %v5433_v9  ;;  %v4549_v57 = vpack.c.b16 %v4548_v58, %v4548_v58  ;;  %v5834_v58 = vld [vmem:[#allocation2 + $0x8] sm:$0xe]  ;;  %vm15603_vm4 = vsmask.f32 5376 }
 0x310   : > { %v5703_v18 = vrot.slane %v5366_v45, 1 }
 0x311   : > { %v4273_v10 = vpop.f32.mrf.mxu2  ;;  %v4634_v14 = vshll.u32 %v4549_v57, 16 }
 0x312   : > { %v4296_v55 = vadd.f32 %v4273_v10, %v4128_v21  ;;  %v4504_v11 = vpop.f32.mrf.mxu3  ;;  %v14113_v50 = vsel %vm15601_vm10, %v5701_v35, %v5703_v18  ;;  %v11487_v21 = vld [vmem:[#allocation3 + $0x100] sm:$0xff]  ;;  %v4631_v35 = vshrl.u32 %v4549_v57, 16  ;;  %vm15605_vm10 = vcmask 1044480  }
 0x313   : > { %15602 = vst [vmem:[#allocation47_spill] sm:$0xff] %v14113_v50  ;;  %v11495_v10 = vld [vmem:[#allocation3 + $0x140] sm:$0xff]  ;;  %6240 = vmatpush.bf16.msrb.mxu2 %v11487_v21  ;;  %v4636_v18 = vrot.slane %v4634_v14, 3 }
 0x314   : > { %v3870_v42 = vpop.f32.mrf.mxu0  ;;  %v14105_v27 = vadd.f32 %v4504_v11, %v4296_v55  ;;  %v11479_v55 = vld [vmem:[#allocation3 + $0xc0] sm:$0xff]  ;;  %6409 = vmatpush.bf16.msrb.mxu3 %v11495_v10 }
 0x315   : > { %v3891_v51 = vadd.f32 %v3870_v42, %v13785_v26  ;;  %v11463_v26 = vld [vmem:[#allocation3 + $0x80] sm:$0xff]  ;;  %6001 = vmatpush.bf16.msrb.mxu1 %v11479_v55  ;;  %v4805_v55 = vrot.slane %v4549_v57, 3  ;;  %v11728_v57 = vld [vmem:[#allocation2] sm:$0xe] }
 0x316   : > { %5769 = vmatpush.bf16.msrb.mxu0 %v11463_v26  ;;  %v14125_v14 = vld [vmem:[#allocation2 + $0x10] sm:$0xff] }
 0x317   : > { %4739 = vmatmul.bf16.gmra.mxu0 %v4629_v63 }
 0x31a   : > { %5543 = vmatmul.bf16.gmra.mxu2 %v5434_v13  ;;  %v4633_v13 = vrot.slane %v4631_v35, 2 }
 0x31b   : > { %v4108_v48 = vpop.f32.mrf.mxu1 }
 0x31c   : > { %5654 = vmatmul.bf16.gmra.mxu3 %v14073_v43  ;;  %v4129_v62 = vadd.f32 %v4108_v48, %v3891_v51  ;;  %v3872_v23 = vpop.f32.mrf.mxu0  ;;  %v5439_v51 = vshll.u32 %v5366_v45, 16 }
 0x31d   : > { %v4276_v40 = vpop.f32.mrf.mxu2  ;;  %v3892_v63 = vadd.f32 %v3872_v23, %v13822_v47  ;;  %v5435_v47 = vshrl.u32 %v14094_v1, 16 }
 0x31e   : > { %4907 = vmatmul.bf16.gmra.mxu1 %v4804_v37  ;;  %v4297_v11 = vadd.f32 %v4276_v40, %v4129_v62  ;;  %v4637_v40 = vor.u32 %v4636_v18, %v4633_v13  ;;  %v5441_v21 = vrot.slane %v5439_v51, 1  ;;  %v4806_v13 = vsel %vm15605_vm10, %v4803_v17, %v4805_v55  ;;  %v14136_v17 = vld [vmem:[%s15352_s2] ss:$0 sm:$0xff] }
 0x31f   : > { %v4507_v42 = vpop.f32.mrf.mxu3 }
 0x320   : > { %v14117_v43 = vadd.f32 %v4507_v42, %v4297_v11  ;;  %v4638_v10 = vsel %vm15603_vm4, %v4628_v3, %v4637_v40  ;;  %v5437_v11 = vor.u32 %v5435_v47, %v5433_v9  ;;  %v5890_v42 = vunpack.c.l.b16 %v5835_v5  ;;  %v11727_v3 = vld [vmem:[#allocation2] sm:$0xf0] }
 0x321   : > { %v11518_v5 = vld [vmem:[#allocation3 + $0x1b8] sm:$0xff]  ;;  %v6096_v40 = vshrl.u32 %v14125_v14, 16  ;;  %v6099_v47 = vshll.u32 %v14125_v14, 16  ;;  %vm15609_vm4 = vsmask.f32 6400 }
 0x322   : > { %6634 = vmatpush.bf16.msra.mxu0 %v11518_v5 }
 0x323   : > { %v4110_v61 = vpop.f32.mrf.mxu1 }
 0x324   : > { %v4130_v48 = vadd.f32 %v4110_v61, %v3892_v63  ;;  %v4705_v62 = vpop.f32.mrf.mxu0  ;;  %v5442_v63 = vsel %vm15604_vm14, %v5437_v11, %v5441_v21  ;;  %v5889_v61 = vunpack.c.l.b16 %v5834_v58  ;;  %v11526_v21 = vld [vmem:[#allocation3 + $0x1f8] sm:$0xff]  ;;  %vm15610_vm14 = vcmask 1045504  }
 0x325   : > { %v4278_v37 = vpop.f32.mrf.mxu2  ;;  %v4750_v35 = vadd.f32 %v4705_v62, %v13865_v34  ;;  %v11558_v34 = vld [vmem:[#allocation3 + $0x78] sm:$0xff]  ;;  %6873 = vmatpush.bf16.msra.mxu1 %v11526_v21 }
 0x326   : > { %v4298_v23 = vadd.f32 %v4278_v37, %v4130_v48  ;;  %v14129_v9 = vpack.c.b16 %v5890_v42, %v5889_v61  ;;  %v11534_v48 = vld [vmem:[#allocation3 + $0x238] sm:$0xff]  ;;  %7545 = vmatpush.bf16.msra.mxu3 %v11558_v34  ;;  %v6098_v61 = vrot.slane %v6096_v40, 1 }
 0x327   : > { %v4509_v26 = vpop.f32.mrf.mxu3  ;;  %4744 = vmatmul.bf16.gmra.mxu0 %v4638_v10  ;;  %7042 = vmatpush.bf16.msra.mxu2 %v11534_v48  ;;  %v6305_v11 = vld [vmem:[#allocation2 + $0x8] sm:$0xc] }
 0x328   : > { %v14121_v45 = vadd.f32 %v4509_v26, %v4298_v23  ;;  %v11729_v26 = vor.u32 %v11728_v57, %v11727_v3  ;;  %v6088_v10 = vshrl.u32 %v14129_v9, 16  ;;  %v6091_v55 = vshll.u32 %v14129_v9, 16 }
 0x32a   : > { %5548 = vmatmul.bf16.gmra.mxu2 %v5442_v63  ;;  %v5686_v57 = vrot.slane %v11729_v26, 1  ;;  %v6093_v50 = vrot.slane %v6091_v55, 2  ;;  %v6327_v26 = vrot.slane %v14125_v14, 2 }
 0x32b   : > { %v4873_v51 = vpop.f32.mrf.mxu1 }
 0x32c   : > { %5659 = vmatmul.bf16.gmra.mxu3 %v14094_v1  ;;  %v4918_v18 = vadd.f32 %v4873_v51, %v4750_v35  ;;  %v4707_v62 = vpop.f32.mrf.mxu0  ;;  %v6101_v51 = vrot.slane %v6099_v47, 2 }
 0x32d   : > { %v5509_v37 = vpop.f32.mrf.mxu2  ;;  %v4751_v63 = vadd.f32 %v4707_v62, %v13899_v30 }
 0x32e   : > { %v4936_v1 = vadd.f32 %v14136_v17, %v4918_v18  ;;  %4912 = vmatmul.bf16.gmra.mxu1 %v4806_v13  ;;  %v3878_v13 = vadd.f32 %v13887_v4, %v13218_v53  ;;  %v6324_v18 = vunpack.c.l.b16 %v6305_v11  ;;  %v14148_v40 = vor.u32 %v6101_v51, %v6098_v61 }
 0x32f   : > { %v5620_v23 = vpop.f32.mrf.mxu3  ;;  %v15607_v4 = vrot.slane %v13885_v16, 1 }
 0x330   : > { %v14139_v58 = vadd.f32 %v5620_v23, %v5509_v37  ;;  %v4954_v35 = vmax.f32 %v4936_v1, 0.0  ;;  %v6090_v23 = vrot.slane %v6088_v10, 1  ;;  %v6325_v34 = vpack.c.b16 %v5890_v42, %v6324_v18 }
 0x331   : > { %v4116_v47 = vadd.f32 %v13889_v7, %v3878_v13  ;;  %v5919_v7 = vrot.slane %v14125_v14, 1  ;;  %v14162_v13 = vld [vmem:[#allocation2 + $0x18] sm:$0xff] }
 0x332   : > { %15606 = vst [vmem:[#allocation48_spill] sm:$0xff] %v14139_v58  ;;  %v4972_v3 = vsel %vm12998_vm7, %v4954_v35, 0.0  ;;  %vm15608_vm7 = vcmask 1046528   ;;  %v6094_v11 = vor.u32 %v6093_v50, %v6090_v23  ;;  %v6326_v61 = vrot.slane %v6325_v34, 2  ;;  %v11517_v34 = vld [vmem:[#allocation3 + $0x1b0] sm:$0xff] }
 0x333   : > { %v4990_v48 = vpack.c.bf16 %v4972_v3, %v4972_v3  ;;  %v4875_v37 = vpop.f32.mrf.mxu1  ;;  %v5688_v21 = vsel %vm15608_vm7, %v5686_v57, %v15607_v4  ;;  %v4284_v3 = vadd.f32 %v13908_v39, %v4116_v47  ;;  %v5206_v57 = vld [vmem:[#allocation2 + $0x50] sm:$0xe]  ;;  %v5918_v50 = vrot.slane %v14129_v9, 1  ;;  %vm15612_vm10 = vmmov %vm15608_vm7  ;;  %v11533_v39 = vld [vmem:[#allocation3 + $0x230] sm:$0xff]  ;;  %6635 = vmatpush.bf16.msra.mxu0 %v11517_v34 }
 0x334   : > { %v4919_v5 = vadd.f32 %v4875_v37, %v4751_v63  ;;  %v4710_v62 = vpop.f32.mrf.mxu0  ;;  %v6103_v16 = vsel %vm15609_vm4, %v6094_v11, %v14148_v40  ;;  %v11557_v9 = vld [vmem:[#allocation3 + $0x70] sm:$0xff]  ;;  %v3462_v4 = vadd.f32 %v13267_v15, %v13242_v41  ;;  %7043 = vmatpush.bf16.msra.mxu2 %v11533_v39  ;;  %v15613_v41 = vld [vmem:[#allocation16_spill] sm:$0xff] }
 0x335   : > { %v5009_v1 = vshrl.u32 %v4990_v48, 16  ;;  %v5012_v58 = vshll.u32 %v4990_v48, 16  ;;  %v5511_v30 = vpop.f32.mrf.mxu2  ;;  %v4752_v63 = vadd.f32 %v4710_v62, %v13915_v12  ;;  %v6328_v12 = vsel %vm15610_vm14, %v6326_v61, %v6327_v26  ;;  %7546 = vmatpush.bf16.msra.mxu3 %v11557_v9 }
 0x336   : > { %v4937_v53 = vadd.f32 %v14136_v17, %v4919_v5  ;;  %v5920_v54 = vsel %vm15612_vm10, %v5918_v50, %v5919_v7  ;;  %v3649_v15 = vadd.f32 %v15613_v41, %v3462_v4  ;;  %v11532_v41 = vld [vmem:[#allocation3 + $0x228] sm:$0xff] }
 0x337   : > { %v5622_v19 = vpop.f32.mrf.mxu3  ;;  %v5011_v10 = vrot.slane %v5009_v1, 6  ;;  %v5014_v55 = vrot.slane %v5012_v58, 7  ;;  %5770 = vmatmul.bf16.vlgmr.msrb.gmra.mxu0 %v5688_v21  ;;  %v4515_v21 = vadd.f32 %v13910_v36, %v4284_v3 }
 0x338   : > { %v14156_v42 = vadd.f32 %v5622_v19, %v5511_v30  ;;  %v4955_v35 = vmax.f32 %v4937_v53, 0.0  ;;  %v6105_v53 = vshrl.u32 %v14162_v13, 16  ;;  %v6108_v19 = vshll.u32 %v14162_v13, 16  ;;  %7044 = vmatpush.bf16.msra.mxu2 %v11532_v41 }
 0x339   : > { %v5015_v51 = vor.u32 %v5014_v55, %v5011_v10 }
 0x33a   : > { %v4973_v58 = vsel %vm13061_vm6, %v4955_v35, 0.0  ;;  %6241 = vmatmul.bf16.vlgmr.msrb.gmra.mxu2 %v6103_v16  ;;  %v6107_v50 = vrot.slane %v6105_v53, 1  ;;  %vm15617_vm6 = vmmov %vm15610_vm14 }
 0x33b   : > { %v5207_v48 = vsel %vm12832_vm15, %v5015_v51, %v5206_v57  ;;  %v4991_v37 = vpack.c.bf16 %v4973_v58, %v4973_v58  ;;  %v4878_v23 = vpop.f32.mrf.mxu1  ;;  %v5016_v57 = vrot.slane %v5015_v51, 4  ;;  %vm15615_vm15 = vmmov %vm15609_vm4 }
 0x33c   : > { %6410 = vmatmul.bf16.vlgmr.msrb.gmra.mxu3 %v6328_v12  ;;  %5208 = vst [vmem:[#allocation2 + $0x50] sm:$0xe] %v5207_v48  ;;  %v4920_v5 = vadd.f32 %v4878_v23, %v4752_v63  ;;  %v4712_v47 = vpop.f32.mrf.mxu0  ;;  %v6110_v12 = vrot.slane %v6108_v19, 2  ;;  %v3880_v23 = vadd.f32 %v13931_v59, %v3649_v15 }
 0x33d   : > { %v5018_v1 = vshrl.u32 %v4991_v37, 16  ;;  %v5021_v30 = vshll.u32 %v4991_v37, 16  ;;  %v5514_v62 = vpop.f32.mrf.mxu2  ;;  %v4753_v16 = vadd.f32 %v4712_v47, %v4515_v21  ;;  %v6329_v47 = vrot.slane %v14162_v13, 2 }
 0x33e   : > { %v4938_v10 = vadd.f32 %v14136_v17, %v4920_v5  ;;  %6002 = vmatmul.bf16.vlgmr.msrb.gmra.mxu1 %v5920_v54  ;;  %v11525_v54 = vld [vmem:[#allocation3 + $0x1f0] sm:$0xff]  ;;  %v4118_v59 = vadd.f32 %v13933_v6, %v3880_v23 }
 0x33f   : > { %v5625_v55 = vpop.f32.mrf.mxu3  ;;  %v5020_v11 = vrot.slane %v5018_v1, 6  ;;  %v5023_v35 = vrot.slane %v5021_v30, 7  ;;  %v14190_v1 = vor.u32 %v6110_v12, %v6107_v50  ;;  %6874 = vmatpush.bf16.msra.mxu1 %v11525_v54  ;;  %v15620_v23 = vld [vmem:[#allocation19_spill] sm:$0xff] }
 0x340   : > { %v14182_v63 = vadd.f32 %v5625_v55, %v5514_v62  ;;  %v4956_v61 = vmax.f32 %v4938_v10, 0.0  ;;  %v5921_v55 = vrot.slane %v14162_v13, 1 }
 0x341   : > { %v5024_v58 = vor.u32 %v5023_v35, %v5020_v11 }
 0x342   : > { %v4974_v3 = vsel %vm13093_vm13, %v4956_v61, 0.0  ;;  %v6112_v61 = vsel %vm15615_vm15, %v14148_v40, %v14190_v1  ;;  %vm15618_vm13 = vmmov %vm15608_vm7 }
 0x343   : > { %v5025_v18 = vsel %vm13165_vm8, %v5016_v57, %v5024_v58  ;;  %v4992_v48 = vpack.c.bf16 %v4974_v3, %v4974_v3  ;;  %v4880_v37 = vpop.f32.mrf.mxu1  ;;  %v5026_v11 = vrot.slane %v5024_v58, 4  ;;  %v4286_v57 = vadd.f32 %v13940_v38, %v4118_v59 }
 0x344   : > { %5209 = vst [vmem:[#allocation2 + $0x54] sm:$0xf] %v5025_v18  ;;  %v4921_v5 = vadd.f32 %v4880_v37, %v4753_v16  ;;  %v4715_v9 = vpop.f32.mrf.mxu0  ;;  %v14203_v16 = vld [vmem:[#allocation2 + $0x20] sm:$0xff]  ;;  %v5922_v38 = vsel %vm15618_vm13, %v5919_v7, %v5921_v55  ;;  %v15619_v37 = vld [vmem:[#allocation18_spill] sm:$0xff] }
 0x345   : > { %v5028_v39 = vshrl.u32 %v4992_v48, 16  ;;  %v5031_v51 = vshll.u32 %v4992_v48, 16  ;;  %v5516_v34 = vpop.f32.mrf.mxu2  ;;  %v4754_v10 = vadd.f32 %v4715_v9, %v13935_v2  ;;  %v6330_v2 = vsel %vm15617_vm6, %v6327_v26, %v6329_v47 }
 0x346   : > { %v4939_v30 = vadd.f32 %v14136_v17, %v4921_v5  ;;  %v6114_v26 = vshrl.u32 %v14203_v16, 16  ;;  %v6117_v48 = vshll.u32 %v14203_v16, 16  ;;  %v3467_v5 = vadd.f32 %v15620_v23, %v15619_v37 }
 0x347   : > { %v5627_v62 = vpop.f32.mrf.mxu3  ;;  %v5030_v53 = vrot.slane %v5028_v39, 6  ;;  %v5033_v19 = vrot.slane %v5031_v51, 7  ;;  %5775 = vmatmul.bf16.gmra.mxu0 %v13967_v20  ;;  %v4517_v54 = vadd.f32 %v13942_v60, %v4286_v57 }
 0x348   : > { %v14194_v4 = vadd.f32 %v5627_v62, %v5516_v34  ;;  %v4957_v21 = vmax.f32 %v4939_v30, 0.0  ;;  %v6119_v59 = vrot.slane %v6117_v48, 2 }
 0x349   : > { %v5034_v35 = vor.u32 %v5033_v19, %v5030_v53  ;;  %v6116_v19 = vrot.slane %v6114_v26, 1 }
 0x34a   : > { %v4975_v6 = vsel %vm13173_vm9, %v4957_v21, 0.0  ;;  %6246 = vmatmul.bf16.gmra.mxu2 %v6112_v61  ;;  %v15621_v21 = vld [vmem:[#allocation20_spill] sm:$0xff]  ;;  %vm15623_vm9 = vmmov %vm15609_vm4 }
 0x34b   : > { %v5035_v20 = vsel %vm13165_vm8, %v5026_v11, %v5034_v35  ;;  %v4993_v58 = vpack.c.bf16 %v4975_v6, %v4975_v6  ;;  %v4883_v12 = vpop.f32.mrf.mxu1  ;;  %v5036_v62 = vrot.slane %v5034_v35, 4  ;;  %v11524_v35 = vld [vmem:[#allocation3 + $0x1e8] sm:$0xff] }
 0x34c   : > { %6415 = vmatmul.bf16.gmra.mxu3 %v6330_v2  ;;  %5210 = vst [vmem:[#allocation2 + $0x58] sm:$0xf] %v5035_v20  ;;  %v4922_v40 = vadd.f32 %v4883_v12, %v4754_v10  ;;  %v4717_v18 = vpop.f32.mrf.mxu0  ;;  %v3651_v10 = vadd.f32 %v15621_v21, %v3467_v5  ;;  %v11516_v20 = vld [vmem:[#allocation3 + $0x1a8] sm:$0xff]  ;;  %6875 = vmatpush.bf16.msra.mxu1 %v11524_v35 }
 0x34d   : > { %v5038_v15 = vshrl.u32 %v4993_v58, 16  ;;  %v5041_v36 = vshll.u32 %v4993_v58, 16  ;;  %v5519_v3 = vpop.f32.mrf.mxu2  ;;  %v4755_v30 = vadd.f32 %v4717_v18, %v4517_v54  ;;  %v11556_v58 = vld [vmem:[#allocation3 + $0x68] sm:$0xff]  ;;  %v6331_v18 = vrot.slane %v14203_v16, 2  ;;  %6636 = vmatpush.bf16.msra.mxu0 %v11516_v20 }
 0x34e   : > { %v4940_v39 = vadd.f32 %v14136_v17, %v4922_v40  ;;  %6007 = vmatmul.bf16.gmra.mxu1 %v5922_v38  ;;  %v3882_v6 = vadd.f32 %v13960_v22, %v3651_v10  ;;  %7547 = vmatpush.bf16.msra.mxu3 %v11556_v58  ;;  %v5923_v54 = vrot.slane %v14203_v16, 1 }
 0x34f   : > { %v5630_v14 = vpop.f32.mrf.mxu3  ;;  %v5040_v7 = vrot.slane %v5038_v15, 6  ;;  %v5043_v51 = vrot.slane %v5041_v36, 7  ;;  %v14234_v15 = vor.u32 %v6119_v59, %v6116_v19 }
 0x350   : > { %v14226_v34 = vadd.f32 %v5630_v14, %v5519_v3  ;;  %v4958_v9 = vmax.f32 %v4940_v39, 0.0  ;;  %v4120_v37 = vadd.f32 %v13962_v24, %v3882_v6 }
 0x351   : > { %v5044_v53 = vor.u32 %v5043_v51, %v5040_v7  ;;  %v6121_v7 = vsel %vm15623_vm9, %v14190_v1, %v14234_v15  ;;  %v14247_v51 = vld [vmem:[#allocation2 + $0x28] sm:$0xff] }
 0x352   : > { %v4976_v60 = vsel %vm13220_vm11, %v4958_v9, 0.0  ;;  %v4288_v9 = vadd.f32 %v13973_v44, %v4120_v37  ;;  %vm15625_vm11 = vmmov %vm15617_vm6  ;;  %v6126_v11 = vshll.u32 %v14247_v51, 16 }
 0x353   : > { %v5045_v61 = vsel %vm13165_vm8, %v5036_v62, %v5044_v53  ;;  %v4994_v57 = vpack.c.bf16 %v4976_v60, %v4976_v60  ;;  %v4885_v50 = vpop.f32.mrf.mxu1  ;;  %v5046_v39 = vrot.slane %v5044_v53, 4  ;;  %v15627_v60 = vld [vmem:[#allocation22_spill] sm:$0xff] }
 0x354   : > { %5211 = vst [vmem:[#allocation2 + $0x5c] sm:$0xf] %v5045_v61  ;;  %v4923_v2 = vadd.f32 %v4885_v50, %v4755_v30  ;;  %v4720_v41 = vpop.f32.mrf.mxu0  ;;  %v15628_v61 = vld [vmem:[#allocation23_spill] sm:$0xff]  ;;  %v4519_v50 = vadd.f32 %v13975_v31, %v4288_v9  ;;  %v11515_v9 = vld [vmem:[#allocation3 + $0x1a0] sm:$0xff] }
 0x355   : > { %v5048_v12 = vshrl.u32 %v4994_v57, 16  ;;  %v5051_v40 = vshll.u32 %v4994_v57, 16  ;;  %v5521_v38 = vpop.f32.mrf.mxu2  ;;  %v4756_v5 = vadd.f32 %v4720_v41, %v13969_v49  ;;  %v6332_v49 = vsel %vm15625_vm11, %v6329_v47, %v6331_v18  ;;  %6637 = vmatpush.bf16.msra.mxu0 %v11515_v9 }
 0x356   : > { %v4941_v36 = vadd.f32 %v14136_v17, %v4923_v2  ;;  %v6123_v47 = vshrl.u32 %v14247_v51, 16  ;;  %v3472_v57 = vadd.f32 %v15628_v61, %v15627_v60  ;;  %v6128_v41 = vrot.slane %v6126_v11, 2  ;;  %v15631_v60 = vld [vmem:[#allocation11_spill] sm:$0xff] }
 0x357   : > { %v5632_v3 = vpop.f32.mrf.mxu3  ;;  %v5050_v26 = vrot.slane %v5048_v12, 6  ;;  %v5053_v22 = vrot.slane %v5051_v40, 7  ;;  %5780 = vmatmul.bf16.gmra.mxu0 %v13978_v25  ;;  %v5925_v61 = vrot.slane %v14247_v51, 1 }
 0x358   : > { %v14238_v48 = vadd.f32 %v5632_v3, %v5521_v38  ;;  %v4959_v23 = vmax.f32 %v4941_v36, 0.0  ;;  %v6125_v38 = vrot.slane %v6123_v47, 1  ;;  %v15629_v36 = vld [vmem:[#allocation24_spill] sm:$0xff] }
 0x359   : > { %v5054_v14 = vor.u32 %v5053_v22, %v5050_v26  ;;  %v3653_v3 = vadd.f32 %v15629_v36, %v3472_v57 }
 0x35a   : > { %v4977_v24 = vsel %vm13254_vm0, %v4959_v23, 0.0  ;;  %6251 = vmatmul.bf16.gmra.mxu2 %v6121_v7  ;;  %vm15626_vm0 = vmmov %vm15608_vm7  ;;  %v11531_v7 = vld [vmem:[#allocation3 + $0x220] sm:$0xff] }
 0x35b   : > { %v5055_v25 = vsel %vm13165_vm8, %v5046_v39, %v5054_v14  ;;  %v4995_v62 = vpack.c.bf16 %v4977_v24, %v4977_v24  ;;  %v4888_v53 = vpop.f32.mrf.mxu1  ;;  %v5924_v44 = vsel %vm15626_vm0, %v5921_v55, %v5923_v54  ;;  %v5056_v12 = vrot.slane %v5054_v14, 4  ;;  %v11555_v14 = vld [vmem:[#allocation3 + $0x60] sm:$0xff]  ;;  %7045 = vmatpush.bf16.msra.mxu2 %v11531_v7  ;;  %vm15637_vm14 = vmmov %vm15626_vm0 }
 0x35c   : > { %6420 = vmatmul.bf16.gmra.mxu3 %v6332_v49  ;;  %5212 = vst [vmem:[#allocation2 + $0x60] sm:$0xf] %v5055_v25  ;;  %v4924_v1 = vadd.f32 %v4888_v53, %v4756_v5  ;;  %v4722_v10 = vpop.f32.mrf.mxu0  ;;  %v3884_v5 = vadd.f32 %v13994_v28, %v3653_v3  ;;  %v11523_v53 = vld [vmem:[#allocation3 + $0x1e0] sm:$0xff]  ;;  %vm15653_vm9 = vmmov %vm15626_vm0 }
 0x35d   : > { %v5058_v19 = vshrl.u32 %v4995_v62, 16  ;;  %v5061_v59 = vshll.u32 %v4995_v62, 16  ;;  %v5524_v21 = vpop.f32.mrf.mxu2  ;;  %v4757_v35 = vadd.f32 %v4722_v10, %v4519_v50  ;;  %v14278_v62 = vor.u32 %v6128_v41, %v6125_v38  ;;  %7548 = vmatpush.bf16.msra.mxu3 %v11555_v14  ;;  %6876 = vmatpush.bf16.msra.mxu1 %v11523_v53 }
 0x35e   : > { %v4942_v6 = vadd.f32 %v14136_v17, %v4924_v1  ;;  %6012 = vmatmul.bf16.gmra.mxu1 %v5924_v44  ;;  %v4122_v10 = vadd.f32 %v13998_v29, %v3884_v5  ;;  %v5926_v38 = vsel %vm15637_vm14, %v5923_v54, %v5925_v61  ;;  %v15640_v5 = vld [vmem:[#allocation39_spill] sm:$0xff] }
 0x35f   : > { %v5635_v2 = vpop.f32.mrf.mxu3  ;;  %v5060_v13 = vrot.slane %v5058_v19, 6  ;;  %v5063_v20 = vrot.slane %v5061_v59, 7  ;;  %v6333_v19 = vrot.slane %v14247_v51, 2 }
 0x360   : > { %v14270_v55 = vadd.f32 %v5635_v2, %v5524_v21  ;;  %v4960_v58 = vmax.f32 %v4942_v6, 0.0  ;;  %v14291_v2 = vld [vmem:[#allocation2 + $0x30] sm:$0xff] }
 0x361   : > { %v5064_v40 = vor.u32 %v5063_v20, %v5060_v13  ;;  %v15633_v13 = vld [vmem:[#allocation38_spill] sm:$0xff] }
 0x362   : > { %v4978_v22 = vsel %vm13304_vm2, %v4960_v58, 0.0  ;;  %vm15632_vm2 = vmmov %vm15609_vm4  ;;  %v4290_v20 = vadd.f32 %v15633_v13, %v4122_v10  ;;  %v15634_v58 = vld [vmem:[#allocation21_spill] sm:$0xff] }
 0x363   : > { %v5065_v31 = vsel %vm13165_vm8, %v5056_v12, %v5064_v40  ;;  %v4996_v37 = vpack.c.bf16 %v4978_v22, %v4978_v22  ;;  %v4890_v23 = vpop.f32.mrf.mxu1  ;;  %v5066_v57 = vrot.slane %v5064_v40, 4  ;;  %v6130_v6 = vsel %vm15632_vm2, %v14234_v15, %v14278_v62  ;;  %vm15636_vm4 = vmmov %vm15617_vm6 }
 0x364   : > { %5213 = vst [vmem:[#allocation2 + $0x64] sm:$0xf] %v5065_v31  ;;  %v4925_v39 = vadd.f32 %v4890_v23, %v4757_v35  ;;  %v4725_v25 = vpop.f32.mrf.mxu0  ;;  %vm15635_vm7 = vnez %v15634_v58  ;;  %v6135_v22 = vshll.u32 %v14291_v2, 16  ;;  %v15638_v31 = vld [vmem:[#allocation26_spill] sm:$0xff]  ;;  %v11514_v58 = vld [vmem:[#allocation3 + $0x198] sm:$0xff]  ;;  %vm15648_vm15 = vmmov %vm15632_vm2 }
 0x365   : > { %v5068_v30 = vshrl.u32 %v4996_v37, 16  ;;  %v5071_v24 = vshll.u32 %v4996_v37, 16  ;;  %v5526_v49 = vpop.f32.mrf.mxu2  ;;  %v4758_v11 = vadd.f32 %v4725_v25, %v13996_v33  ;;  %v6334_v33 = vsel %vm15636_vm4, %v6331_v18, %v6333_v19  ;;  %v15639_v37 = vld [vmem:[#allocation28_spill] sm:$0xff]  ;;  %6638 = vmatpush.bf16.msra.mxu0 %v11514_v58  ;;  %vm15652_vm13 = vmmov %vm15636_vm4 }
 0x366   : > { %v4943_v1 = vadd.f32 %v14136_v17, %v4925_v39  ;;  %v6132_v18 = vshrl.u32 %v14291_v2, 16  ;;  %v3477_v23 = vadd.f32 %v15639_v37, %v15638_v31  ;;  %v4521_v39 = vadd.f32 %v15640_v5, %v4290_v20  ;;  %v11530_v20 = vld [vmem:[#allocation3 + $0x218] sm:$0xff]  ;;  %vm15660_vm0 = vmmov %vm15636_vm4 }
 0x367   : > { %v5637_v44 = vpop.f32.mrf.mxu3  ;;  %v5070_v28 = vrot.slane %v5068_v30, 6  ;;  %v5073_v59 = vrot.slane %v5071_v24, 7  ;;  %5785 = vmatmul.bf16.gmra.mxu0 %v15631_v60  ;;  %7046 = vmatpush.bf16.msra.mxu2 %v11530_v20 }
 0x368   : > { %v14282_v21 = vadd.f32 %v5637_v44, %v5526_v49  ;;  %v4961_v47 = vmax.f32 %v4943_v1, 0.0  ;;  %v6134_v53 = vrot.slane %v6132_v18, 1  ;;  %v6137_v1 = vrot.slane %v6135_v22, 2  ;;  %v15641_v44 = vld [vmem:[#allocation29_spill] sm:$0xff]  ;;  %v15645_v22 = vld [vmem:[#allocation43_spill] sm:$0xff] }
 0x369   : > { %v5074_v50 = vor.u32 %v5073_v59, %v5070_v28  ;;  %v3655_v28 = vadd.f32 %v15641_v44, %v3477_v23  ;;  %v15642_v59 = vld [vmem:[#allocation25_spill] sm:$0xff]  ;;  %v15646_v23 = vld [vmem:[#allocation40_spill] sm:$0xff] }
 0x36a   : > { %v4979_v29 = vsel %vm15635_vm7, %v4961_v47, 0.0  ;;  %6256 = vmatmul.bf16.gmra.mxu2 %v6130_v6  ;;  %vm15643_vm10 = vnez %v15642_v59 }
 0x36b   : > { %v5075_v35 = vsel %vm13165_vm8, %v5066_v57, %v5074_v50  ;;  %v4997_v12 = vpack.c.bf16 %v4979_v29, %v4979_v29  ;;  %v4893_v40 = vpop.f32.mrf.mxu1  ;;  %v5076_v49 = vrot.slane %v5074_v50, 4  ;;  %v15644_v57 = vld [vmem:[#allocation41_spill] sm:$0xff]  ;;  %v11554_v50 = vld [vmem:[#allocation3 + $0x58] sm:$0xff] }
 0x36c   : > { %6425 = vmatmul.bf16.gmra.mxu3 %v6334_v33  ;;  %5214 = vst [vmem:[#allocation2 + $0x68] sm:$0xf] %v5075_v35  ;;  %v4926_v15 = vadd.f32 %v4893_v40, %v4758_v11  ;;  %v4727_v26 = vpop.f32.mrf.mxu0  ;;  %v3886_v6 = vadd.f32 %v15644_v57, %v3655_v28  ;;  %v14322_v40 = vor.u32 %v6137_v1, %v6134_v53  ;;  %v15650_v53 = vld [vmem:[#allocation27_spill] sm:$0xff] }
 0x36d   : > { %v5078_v41 = vshrl.u32 %v4997_v12, 16  ;;  %v5081_v36 = vshll.u32 %v4997_v12, 16  ;;  %v5529_v3 = vpop.f32.mrf.mxu2  ;;  %v4759_v24 = vadd.f32 %v4727_v26, %v4521_v39  ;;  %7549 = vmatpush.bf16.msra.mxu3 %v11554_v50  ;;  %v15647_v39 = vld [vmem:[#allocation42_spill] sm:$0xff]  ;;  %vm15651_vm6 = vnez %v15650_v53 }
 0x36e   : > { %v4944_v7 = vadd.f32 %v14136_v17, %v4926_v15  ;;  %6017 = vmatmul.bf16.gmra.mxu1 %v5926_v38  ;;  %v11522_v15 = vld [vmem:[#allocation3 + $0x1d8] sm:$0xff]  ;;  %v4124_v31 = vadd.f32 %v15645_v22, %v3886_v6 }
 0x36f   : > { %v5640_v9 = vpop.f32.mrf.mxu3  ;;  %v5080_v16 = vrot.slane %v5078_v41, 6  ;;  %v5083_v14 = vrot.slane %v5081_v36, 7  ;;  %v6335_v36 = vrot.slane %v14291_v2, 2  ;;  %6877 = vmatpush.bf16.msra.mxu1 %v11522_v15 }
 0x370   : > { %v14314_v54 = vadd.f32 %v5640_v9, %v5529_v3  ;;  %v4962_v30 = vmax.f32 %v4944_v7, 0.0  ;;  %v5927_v7 = vrot.slane %v14291_v2, 1 }
 0x371   : > { %v5084_v25 = vor.u32 %v5083_v14, %v5080_v16  ;;  %v6139_v14 = vsel %vm15648_vm15, %v14278_v62, %v14322_v40  ;;  %v6336_v44 = vsel %vm15652_vm13, %v6333_v19, %v6335_v36 }
 0x372   : > { %v4980_v10 = vsel %vm15643_vm10, %v4962_v30, 0.0  ;;  %v14335_v30 = vld [vmem:[#allocation2 + $0x38] sm:$0xff]  ;;  %vm15667_vm10 = vmmov %vm15660_vm0 }
 0x373   : > { %v5085_v47 = vsel %vm13165_vm8, %v5076_v49, %v5084_v25  ;;  %v4998_v11 = vpack.c.bf16 %v4980_v10, %v4980_v10  ;;  %v4895_v60 = vpop.f32.mrf.mxu1  ;;  %v5086_v9 = vrot.slane %v5084_v25, 4  ;;  %v5928_v10 = vsel %vm15653_vm9, %v5925_v61, %v5927_v7 }
 0x374   : > { %5215 = vst [vmem:[#allocation2 + $0x6c] sm:$0xf] %v5085_v47  ;;  %v4927_v13 = vadd.f32 %v4895_v60, %v4759_v24  ;;  %v4730_v12 = vpop.f32.mrf.mxu0  ;;  %v15649_v24 = vld [vmem:[#allocation44_spill] sm:$0xff]  ;;  %v6141_v19 = vshrl.u32 %v14335_v30, 16  ;;  %v6144_v6 = vshll.u32 %v14335_v30, 16 }
 0x375   : > { %v5088_v29 = vshrl.u32 %v4998_v11, 16  ;;  %v5091_v33 = vshll.u32 %v4998_v11, 16  ;;  %v5531_v35 = vpop.f32.mrf.mxu2  ;;  %v4760_v5 = vadd.f32 %v4730_v12, %v15646_v23  ;;  %v4292_v49 = vadd.f32 %v15649_v24, %v4124_v31 }
 0x376   : > { %v4945_v38 = vadd.f32 %v14136_v17, %v4927_v13  ;;  %v15654_v13 = vld [vmem:[#allocation45_spill] sm:$0xff] }
 0x377   : > { %v5642_v41 = vpop.f32.mrf.mxu3  ;;  %v5090_v3 = vrot.slane %v5088_v29, 6  ;;  %v5093_v26 = vrot.slane %v5091_v33, 7  ;;  %5790 = vmatmul.bf16.gmra.mxu0 %v15647_v39  ;;  %v4523_v20 = vadd.f32 %v15654_v13, %v4292_v49  ;;  %v11513_v39 = vld [vmem:[#allocation3 + $0x190] sm:$0xff] }
 0x378   : > { %v14326_v18 = vadd.f32 %v5642_v41, %v5531_v35  ;;  %v4963_v37 = vmax.f32 %v4945_v38, 0.0  ;;  %v6143_v38 = vrot.slane %v6141_v19, 1  ;;  %v6146_v41 = vrot.slane %v6144_v6, 2  ;;  %6639 = vmatpush.bf16.msra.mxu0 %v11513_v39  ;;  %v14374_v13 = vld [vmem:[#allocation2 + $0x40] sm:$0xff] }
 0x379   : > { %v5094_v16 = vor.u32 %v5093_v26, %v5090_v3  ;;  %v6153_v3 = vshll.u32 %v14374_v13, 16 }
 0x37a   : > { %v4981_v1 = vsel %vm15651_vm6, %v4963_v37, 0.0  ;;  %6261 = vmatmul.bf16.gmra.mxu2 %v6139_v14  ;;  %v14362_v53 = vor.u32 %v6146_v41, %v6143_v38 }
 0x37b   : > { %v5095_v25 = vsel %vm13165_vm8, %v5086_v9, %v5094_v16  ;;  %v4999_v28 = vpack.c.bf16 %v4981_v1, %v4981_v1  ;;  %v4898_v59 = vpop.f32.mrf.mxu1  ;;  %v5096_v12 = vrot.slane %v5094_v16, 4  ;;  %v11553_v9 = vld [vmem:[#allocation3 + $0x50] sm:$0xff] }
 0x37c   : > { %6430 = vmatmul.bf16.gmra.mxu3 %v6336_v44  ;;  %5216 = vst [vmem:[#allocation2 + $0x70] sm:$0xf] %v5095_v25  ;;  %v4928_v62 = vadd.f32 %v4898_v59, %v4760_v5  ;;  %v4732_v57 = vpop.f32.mrf.mxu0  ;;  %v11529_v5 = vld [vmem:[#allocation3 + $0x210] sm:$0xff]  ;;  %v6337_v25 = vrot.slane %v14335_v30, 2 }
 0x37d   : > { %v5098_v47 = vshrl.u32 %v4999_v28, 16  ;;  %v5101_v11 = vshll.u32 %v4999_v28, 16  ;;  %v5534_v60 = vpop.f32.mrf.mxu2  ;;  %v4761_v61 = vadd.f32 %v4732_v57, %v4523_v20  ;;  %7047 = vmatpush.bf16.msra.mxu2 %v11529_v5  ;;  %7550 = vmatpush.bf16.msra.mxu3 %v11553_v9  ;;  %v15658_v20 = vld [vmem:[#allocation31_spill] sm:$0xff] }
 0x37e   : > { %v4946_v58 = vadd.f32 %v14136_v17, %v4928_v62  ;;  %6022 = vmatmul.bf16.gmra.mxu1 %v5928_v10  ;;  %vm15659_vm11 = vnez %v15658_v20  ;;  %v6339_v20 = vrot.slane %v14374_v13, 2 }
 0x37f   : > { %v5645_v50 = vpop.f32.mrf.mxu3  ;;  %v5100_v29 = vrot.slane %v5098_v47, 6  ;;  %v5103_v33 = vrot.slane %v5101_v11, 7  ;;  %v15656_v11 = vld [vmem:[#allocation46_spill] sm:$0xff] }
 0x380   : > { %v14356_v35 = vadd.f32 %v5645_v50, %v5534_v60  ;;  %v4964_v51 = vmax.f32 %v4946_v58, 0.0  ;;  %v5929_v60 = vrot.slane %v14335_v30, 1 }
 0x381   : > { %v5104_v15 = vor.u32 %v5103_v33, %v5100_v29 }
 0x382   : > { %v4982_v26 = vsel %vm13509_vm5, %v4964_v51, 0.0  ;;  %vm15657_vm5 = vmmov %vm15632_vm2 }
 0x383   : > { %v5105_v22 = vsel %vm13165_vm8, %v5096_v12, %v5104_v15  ;;  %v5000_v31 = vpack.c.bf16 %v4982_v26, %v4982_v26  ;;  %v4900_v37 = vpop.f32.mrf.mxu1  ;;  %v5106_v57 = vrot.slane %v5104_v15, 4  ;;  %v6148_v6 = vsel %vm15657_vm5, %v14322_v40, %v14362_v53  ;;  %vm15661_vm2 = vmmov %vm15653_vm9 }
 0x384   : > { %5217 = vst [vmem:[#allocation2 + $0x74] sm:$0xf] %v5105_v22  ;;  %v4929_v23 = vadd.f32 %v4900_v37, %v4761_v61  ;;  %v4735_v16 = vpop.f32.mrf.mxu0  ;;  %v5930_v51 = vsel %vm15661_vm2, %v5927_v7, %v5929_v60  ;;  %v11521_v61 = vld [vmem:[#allocation3 + $0x1d0] sm:$0xff]  ;;  %vm15664_vm4 = vmmov %vm15657_vm5 }
 0x385   : > { %v5108_v14 = vshrl.u32 %v5000_v31, 16  ;;  %v5111_v24 = vshll.u32 %v5000_v31, 16  ;;  %v5536_v49 = vpop.f32.mrf.mxu2  ;;  %v4762_v47 = vadd.f32 %v4735_v16, %v14062_v8  ;;  %v6338_v8 = vsel %vm15660_vm0, %v6335_v36, %v6337_v25  ;;  %6878 = vmatpush.bf16.msra.mxu1 %v11521_v61  ;;  %vm15668_vm15 = vmmov %vm15661_vm2 }
 0x386   : > { %v4947_v1 = vadd.f32 %v14136_v17, %v4929_v23  ;;  %v6150_v36 = vshrl.u32 %v14374_v13, 16  ;;  %vm15671_vm13 = vmmov %vm15664_vm4 }
 0x387   : > { %v5647_v44 = vpop.f32.mrf.mxu3  ;;  %v5110_v28 = vrot.slane %v5108_v14, 6  ;;  %v5113_v59 = vrot.slane %v5111_v24, 7  ;;  %5795 = vmatmul.bf16.gmra.mxu0 %v15656_v11  ;;  %v6155_v14 = vrot.slane %v6153_v3, 2  ;;  %v15662_v24 = vld [vmem:[#allocation32_spill] sm:$0xff]  ;;  %vm15674_vm5 = vmmov %vm15660_vm0 }
 0x388   : > { %v14366_v62 = vadd.f32 %v5647_v44, %v5536_v49  ;;  %v4965_v10 = vmax.f32 %v4947_v1, 0.0  ;;  %v6152_v9 = vrot.slane %v6150_v36, 1  ;;  %vm15663_vm7 = vnez %v15662_v24 }
 0x389   : > { %v5114_v19 = vor.u32 %v5113_v59, %v5110_v28  ;;  %v11528_v59 = vld [vmem:[#allocation3 + $0x208] sm:$0xff] }
 0x38a   : > { %v4983_v58 = vsel %vm15659_vm11, %v4965_v10, 0.0  ;;  %6266 = vmatmul.bf16.gmra.mxu2 %v6148_v6  ;;  %vm15675_vm11 = vmmov %vm15661_vm2 }
 0x38b   : > { %v5115_v50 = vsel %vm13165_vm8, %v5106_v57, %v5114_v19  ;;  %v5001_v29 = vpack.c.bf16 %v4983_v58, %v4983_v58  ;;  %v4903_v33 = vpop.f32.mrf.mxu1  ;;  %v5116_v5 = vrot.slane %v5114_v19, 4  ;;  %7048 = vmatpush.bf16.msra.mxu2 %v11528_v59 }
 0x38c   : > { %6435 = vmatmul.bf16.gmra.mxu3 %v6338_v8  ;;  %5218 = vst [vmem:[#allocation2 + $0x78] sm:$0xf] %v5115_v50  ;;  %v4930_v40 = vadd.f32 %v4903_v33, %v4762_v47  ;;  %v4737_v41 = vpop.f32.mrf.mxu0 }
 0x38d   : > { %v5118_v12 = vshrl.u32 %v5001_v29, 16  ;;  %v5121_v15 = vshll.u32 %v5001_v29, 16  ;;  %v5539_v38 = vpop.f32.mrf.mxu2  ;;  %v4763_v7 = vadd.f32 %v4737_v41, %v14075_v32  ;;  %v14400_v32 = vor.u32 %v6155_v14, %v6152_v9 }
 0x38e   : > { %v4948_v26 = vadd.f32 %v14136_v17, %v4930_v40  ;;  %6027 = vmatmul.bf16.gmra.mxu1 %v5930_v51  ;;  %v5931_v40 = vrot.slane %v14374_v13, 1  ;;  %v11550_v13 = vld [vmem:[#allocation3 + $0x38] sm:$0xff] }
 0x38f   : > { %v5650_v22 = vpop.f32.mrf.mxu3  ;;  %v5120_v31 = vrot.slane %v5118_v12, 6  ;;  %v5123_v37 = vrot.slane %v5121_v15, 7  ;;  %v6157_v12 = vsel %vm15664_vm4, %v14362_v53, %v14400_v32  ;;  %v14412_v15 = vld [vmem:[#allocation2 + $0x48] sm:$0xff] }
 0x390   : > { %v14393_v23 = vadd.f32 %v5650_v22, %v5539_v38  ;;  %v4966_v2 = vmax.f32 %v4948_v26, 0.0  ;;  %v15665_v38 = vld [vmem:[#allocation33_spill] sm:$0xff]  ;;  %v5932_v26 = vsel %vm15668_vm15, %v5929_v60, %v5931_v40  ;;  %v11512_v22 = vld [vmem:[#allocation3 + $0x188] sm:$0xff]  ;;  %v6162_v9 = vshll.u32 %v14412_v15, 16 }
 0x391   : > { %v5124_v39 = vor.u32 %v5123_v37, %v5120_v31  ;;  %vm15666_vm14 = vnez %v15665_v38  ;;  %v11552_v31 = vld [vmem:[#allocation3 + $0x48] sm:$0xff]  ;;  %6640 = vmatpush.bf16.msra.mxu0 %v11512_v22  ;;  %v6341_v38 = vrot.slane %v14412_v15, 2  ;;  %v11551_v22 = vld [vmem:[#allocation3 + $0x40] sm:$0xff] }
 0x392   : > { %v4984_v49 = vsel %vm15663_vm7, %v4966_v2, 0.0  ;;  %v11520_v37 = vld [vmem:[#allocation3 + $0x1c8] sm:$0xff]  ;;  %7551 = vmatpush.bf16.msra.mxu3 %v11552_v31  ;;  %v11519_v31 = vld [vmem:[#allocation3 + $0x1c0] sm:$0xff]  ;;  %vm15686_vm7 = vsmask.f32 5376 }
 0x393   : > { %v5125_v16 = vsel %vm13165_vm8, %v5116_v5, %v5124_v39  ;;  %v5002_v1 = vpack.c.bf16 %v4984_v49, %v4984_v49  ;;  %v4905_v44 = vpop.f32.mrf.mxu1  ;;  %v5126_v51 = vrot.slane %v5124_v39, 4  ;;  %v6159_v39 = vshrl.u32 %v14412_v15, 16  ;;  %6879 = vmatpush.bf16.msra.mxu1 %v11520_v37 }
 0x394   : > { %5219 = vst [vmem:[#allocation2 + $0x7c] sm:$0xf] %v5125_v16  ;;  %v4931_v28 = vadd.f32 %v4905_v44, %v4763_v7  ;;  %v4740_v57 = vpop.f32.mrf.mxu0 }
 0x395   : > { %v5128_v10 = vshrl.u32 %v5002_v1, 16  ;;  %v5131_v47 = vshll.u32 %v5002_v1, 16  ;;  %v5541_v11 = vpop.f32.mrf.mxu2  ;;  %v4764_v33 = vadd.f32 %v4740_v57, %v14096_v52  ;;  %v6161_v59 = vrot.slane %v6159_v39, 1 }
 0x396   : > { %v4949_v19 = vadd.f32 %v14136_v17, %v4931_v28  ;;  %7552 = vmatpush.bf16.msra.mxu3 %v11551_v22 }
 0x397   : > { %v5652_v6 = vpop.f32.mrf.mxu3  ;;  %v5130_v58 = vrot.slane %v5128_v10, 6  ;;  %v5133_v8 = vrot.slane %v5131_v47, 7  ;;  %5800 = vmatmul.bf16.gmra.mxu0 %v14081_v46  ;;  %v6340_v46 = vsel %vm15667_vm10, %v6337_v25, %v6339_v20  ;;  %v6164_v10 = vrot.slane %v6162_v9, 2  ;;  %v15669_v47 = vld [vmem:[#allocation34_spill] sm:$0xff]  ;;  %v15672_v9 = vld [vmem:[#allocation35_spill] sm:$0xff]  ;;  %6880 = vmatpush.bf16.msra.mxu1 %v11519_v31 }
 0x398   : > { %v14404_v50 = vadd.f32 %v5652_v6, %v5541_v11  ;;  %v4967_v29 = vmax.f32 %v4949_v19, 0.0  ;;  %vm15670_vm6 = vnez %v15669_v47  ;;  %vm15673_vm9 = vnez %v15672_v9  ;;  %v11809_v47 = vld [vmem:[%s15352_s2] ss:$0 sm:$0xff] }
 0x399   : > { %v5134_v61 = vor.u32 %v5133_v8, %v5130_v58 }
 0x39a   : > { %v4985_v41 = vsel %vm15666_vm14, %v4967_v29, 0.0  ;;  %6271 = vmatmul.bf16.gmra.mxu2 %v6157_v12  ;;  %v14438_v12 = vor.u32 %v6164_v10, %v6161_v59  ;;  %vm15689_vm14 = vmmov %vm15660_vm0 }
 0x39b   : > { %v5135_v52 = vsel %vm13165_vm8, %v5126_v51, %v5134_v61  ;;  %v5003_v36 = vpack.c.bf16 %v4985_v41, %v4985_v41  ;;  %v4908_v3 = vpop.f32.mrf.mxu1  ;;  %v5136_v44 = vrot.slane %v5134_v61, 4  ;;  %v11527_v41 = vld [vmem:[#allocation3 + $0x200] sm:$0xff] }
 0x39c   : > { %6440 = vmatmul.bf16.gmra.mxu3 %v6340_v46  ;;  %5220 = vst [vmem:[#allocation2 + $0x80] sm:$0xf] %v5135_v52  ;;  %v4932_v53 = vadd.f32 %v4908_v3, %v4764_v33  ;;  %v4742_v5 = vpop.f32.mrf.mxu0  ;;  %v6066_v46 = vld [vmem:[#allocation2 + $0x50] sm:$0x3]  ;;  %7049 = vmatpush.bf16.msra.mxu2 %v11527_v41 }
 0x39d   : > { %v5138_v2 = vshrl.u32 %v5003_v36, 16  ;;  %v5141_v7 = vshll.u32 %v5003_v36, 16  ;;  %v5544_v25 = vpop.f32.mrf.mxu2  ;;  %v4765_v1 = vadd.f32 %v4742_v5, %v14105_v27  ;;  %v11511_v52 = vld [vmem:[#allocation3 + $0x180] sm:$0xff]  ;;  %v6166_v5 = vsel %vm15671_vm13, %v14400_v32, %v14438_v12  ;;  %vm15693_vm13 = vmmov %vm15660_vm0 }
 0x39e   : > { %v4950_v14 = vadd.f32 %v14136_v17, %v4932_v53  ;;  %6032 = vmatmul.bf16.gmra.mxu1 %v5932_v26  ;;  %v6085_v26 = vunpack.c.l.b16 %v6066_v46  ;;  %6641 = vmatpush.bf16.msra.mxu0 %v11511_v52 }
 0x39f   : > { %v5655_v24 = vpop.f32.mrf.mxu3  ;;  %v5140_v49 = vrot.slane %v5138_v2, 6  ;;  %v5143_v30 = vrot.slane %v5141_v7, 7 }
 0x3a0   : > { %v14431_v16 = vadd.f32 %v5655_v24, %v5544_v25  ;;  %v4968_v60 = vmax.f32 %v4950_v14, 0.0  ;;  %v14450_v39 = vpack.c.b16 %v6085_v26, %v6085_v26 }
 0x3a1   : > { %v5144_v28 = vor.u32 %v5143_v30, %v5140_v49 }
 0x3a2   : > { %v4986_v11 = vsel %vm15670_vm6, %v4968_v60, 0.0  ;;  %v6168_v59 = vshrl.u32 %v14450_v39, 16  ;;  %v6171_v10 = vshll.u32 %v14450_v39, 16  ;;  %7656 = vmatpush.bf16.msrb.mxu0 %v11550_v13  ;;  %vm15692_vm6 = vmmov %vm15686_vm7 }
 0x3a3   : > { %v5145_v57 = vsel %vm13165_vm8, %v5136_v44, %v5144_v28  ;;  %v5004_v19 = vpack.c.bf16 %v4986_v11, %v4986_v11  ;;  %v4910_v6 = vpop.f32.mrf.mxu1  ;;  %v5146_v7 = vrot.slane %v5144_v28, 4 }
 0x3a4   : > { %5221 = vst [vmem:[#allocation2 + $0x84] sm:$0xf] %v5145_v57  ;;  %v4933_v58 = vadd.f32 %v4910_v6, %v4765_v1  ;;  %v4745_v51 = vpop.f32.mrf.mxu0  ;;  %v6170_v46 = vrot.slane %v6168_v59, 1  ;;  %v6173_v52 = vrot.slane %v6171_v10, 2 }
 0x3a5   : > { %v5148_v8 = vshrl.u32 %v5004_v19, 16  ;;  %v5151_v29 = vshll.u32 %v5004_v19, 16  ;;  %v5546_v33 = vpop.f32.mrf.mxu2  ;;  %v4766_v2 = vadd.f32 %v4745_v51, %v14117_v43  ;;  %v11582_v19 = vld [vmem:[#allocation3 + $0xf8] sm:$0xff] }
 0x3a6   : > { %v4951_v27 = vadd.f32 %v14136_v17, %v4933_v58  ;;  %v5933_v17 = vrot.slane %v14412_v15, 1  ;;  %8037 = vmatpush.bf16.msrb.mxu2 %v11582_v19  ;;  %v6174_v9 = vor.u32 %v6173_v52, %v6170_v46  ;;  %v14495_v46 = vld [vmem:[#allocation2 + $0x18] sm:$0xff]  ;;  %v11738_v52 = vld [vmem:[#allocation2 + $0x48] sm:$0xff]  }
 0x3a7   : > { %v5657_v61 = vpop.f32.mrf.mxu3  ;;  %v5150_v36 = vrot.slane %v5148_v8, 6  ;;  %v5153_v3 = vrot.slane %v5151_v29, 7  ;;  %5805 = vmatmul.bf16.gmra.mxu0 %v14101_v56  ;;  %v6342_v56 = vsel %vm15674_vm5, %v6339_v20, %v6341_v38  ;;  %v5852_v20 = vld [vmem:[#allocation2 + $0x50] sm:$0x1]  ;;  %v11590_v8 = vld [vmem:[#allocation3 + $0x138] sm:$0xff] }
 0x3a8   : > { %v14442_v53 = vadd.f32 %v5657_v61, %v5546_v33  ;;  %v4969_v37 = vmax.f32 %v4951_v27, 0.0  ;;  %v5934_v30 = vsel %vm15675_vm11, %v5931_v40, %v5933_v17  ;;  %v5907_v51 = vunpack.c.l.b16 %v5852_v20  ;;  %v11566_v27 = vld [vmem:[#allocation3 + $0xb8] sm:$0xff]  ;;  %8275 = vmatpush.bf16.msrb.mxu3 %v11590_v8 }
 0x3a9   : > { %v5154_v25 = vor.u32 %v5153_v3, %v5150_v36  ;;  %7806 = vmatpush.bf16.msrb.mxu1 %v11566_v27 }
 0x3aa   : > { %v4987_v14 = vsel %vm15673_vm9, %v4969_v37, 0.0  ;;  %6276 = vmatmul.bf16.gmra.mxu2 %v6166_v5  ;;  %vm15694_vm9 = vmmov %vm15660_vm0 }
 0x3ab   : > { %v5155_v43 = vsel %vm13165_vm8, %v5146_v7, %v5154_v25  ;;  %v5005_v24 = vpack.c.bf16 %v4987_v14, %v4987_v14  ;;  %v4913_v32 = vpop.f32.mrf.mxu1  ;;  %v5156_v61 = vrot.slane %v5154_v25, 4  ;;  %v5917_v25 = vpack.c.b16 %v5907_v51, %v5907_v51 }
 0x3ac   : > { %6445 = vmatmul.bf16.gmra.mxu3 %v6342_v56  ;;  %5222 = vst [vmem:[#allocation2 + $0x88] sm:$0xf] %v5155_v43  ;;  %v4934_v49 = vadd.f32 %v4913_v32, %v4766_v2  ;;  %v4747_v28 = vpop.f32.mrf.mxu0  ;;  %v15677_v43 = vld [vmem:[#allocation48_spill] sm:$0xff]  ;;  %v6343_v32 = vrot.slane %v14450_v39, 2 }
 0x3ad   : > { %v5158_v60 = vshrl.u32 %v5005_v24, 16  ;;  %v5161_v1 = vshll.u32 %v5005_v24, 16  ;;  %v5549_v44 = vpop.f32.mrf.mxu2  ;;  %v4767_v33 = vadd.f32 %v4747_v28, %v14121_v45  ;;  %v15678_v28 = vld [vmem:[#allocation47_spill] sm:$0xff]  ;;  %v5935_v10 = vrot.slane %v5917_v25, 1 }
 0x3ae   : > { %v4952_v11 = vadd.f32 %v11809_v47, %v4934_v49  ;;  %6037 = vmatmul.bf16.gmra.mxu1 %v5934_v30  ;;  %v6344_v39 = vsel %vm15660_vm0, %v6341_v38, %v6343_v32  ;;  %v6945_v38 = vld [vmem:[#allocation2 + $0x10] sm:$0x8]  ;;  %v11589_v25 = vld [vmem:[#allocation3 + $0x130] sm:$0xff] }
 0x3af   : > { %v5660_v57 = vpop.f32.mrf.mxu3  ;;  %v5160_v6 = vrot.slane %v5158_v60, 6  ;;  %v5163_v40 = vrot.slane %v5161_v1, 7  ;;  %v6475_v1 = vld [vmem:[#allocation2 + $0x14] sm:$0xf]  ;;  %8276 = vmatpush.bf16.msrb.mxu3 %v11589_v25 }
 0x3b0   : > { %v14471_v58 = vadd.f32 %v5660_v57, %v5549_v44  ;;  %v4970_v29 = vmax.f32 %v4952_v11, 0.0  ;;  %v6530_v13 = vunpack.c.l.b16 %v6475_v1 }
 0x3b1   : > { %v5164_v41 = vor.u32 %v5163_v40, %v5160_v6 }
 0x3b2   : > { %v4988_v3 = vsel %vm13844_vm1, %v4970_v29, 0.0  ;;  %vm15679_vm1 = vmmov %vm15664_vm4 }
 0x3b3   : > { %v5165_v26 = vsel %vm13165_vm8, %v5156_v61, %v5164_v41  ;;  %v5006_v22 = vpack.c.bf16 %v4988_v3, %v4988_v3  ;;  %v4915_v31 = vpop.f32.mrf.mxu1  ;;  %v5166_v20 = vrot.slane %v5164_v41, 4  ;;  %v6175_v11 = vsel %vm15679_vm1, %v14438_v12, %v6174_v9  ;;  %vm15687_vm4 = vmmov %vm15660_vm0 }
 0x3b4   : > { %5223 = vst [vmem:[#allocation2 + $0x8c] sm:$0xf] %v5165_v26  ;;  %v4935_v45 = vadd.f32 %v4915_v31, %v4767_v33  ;;  %v5771_v5 = vpop.f32.mrf.mxu0  ;;  %v14498_v31 = vld [vmem:[#allocation2 + $0x50] sm:$0xff]  ;;  %vm15698_vm1 = vmmov %vm15692_vm6 }
 0x3b5   : > { %v5168_v37 = vshrl.u32 %v5006_v22, 16  ;;  %v5171_v2 = vshll.u32 %v5006_v22, 16  ;;  %v5551_v7 = vpop.f32.mrf.mxu2  ;;  %v5816_v24 = vadd.f32 %v5771_v5, %v15677_v43  ;;  %v11549_v5 = vld [vmem:[#allocation3 + $0x30] sm:$0xff]  ;;  %v6739_v43 = vshll.u32 %v14495_v46, 16 }
 0x3b6   : > { %v4953_v14 = vadd.f32 %v11809_v47, %v4935_v45  ;;  %v6474_v47 = vld [vmem:[#allocation2 + $0x10] sm:$0xc]  ;;  %v11581_v45 = vld [vmem:[#allocation3 + $0xf0] sm:$0xff]  ;;  %7657 = vmatpush.bf16.msrb.mxu0 %v11549_v5 }
 0x3b7   : > { %v5662_v56 = vpop.f32.mrf.mxu3  ;;  %v5170_v49 = vrot.slane %v5168_v37, 6  ;;  %v5173_v30 = vrot.slane %v5171_v2, 7  ;;  %5810 = vmatmul.bf16.gmra.mxu0 %v15678_v28  ;;  %v6529_v33 = vunpack.c.l.b16 %v6474_v47  ;;  %8038 = vmatpush.bf16.msrb.mxu2 %v11581_v45  ;;  %v11565_v47 = vld [vmem:[#allocation3 + $0xb0] sm:$0xff] }
 0x3b8   : > { %v14480_v60 = vadd.f32 %v5662_v56, %v5551_v7  ;;  %v4971_v44 = vmax.f32 %v4953_v14, 0.0  ;;  %v7415_v7 = vshll.u32 %v11738_v52, 16  ;;  %v6736_v56 = vshrl.u32 %v14495_v46, 16  ;;  %7807 = vmatpush.bf16.msrb.mxu1 %v11565_v47 }
 0x3b9   : > { %v5174_v59 = vor.u32 %v5173_v30, %v5170_v49  ;;  %v6548_v22 = vpack.c.b16 %v6530_v13, %v6529_v33  ;;  %v7420_v49 = vshll.u32 %v14498_v31, 16 }
 0x3ba   : > { %v4989_v19 = vsel %vm13902_vm3, %v4971_v44, 0.0  ;;  %6281 = vmatmul.bf16.gmra.mxu2 %v6175_v11  ;;  %vm15681_vm3 = vmmov %vm15661_vm2  ;;  %v7417_v11 = vrot.slane %v7415_v7, 1  ;;  %vm15685_vm2 = vsmask.f32 7424 }
 0x3bb   : > { %v5175_v6 = vsel %vm13165_vm8, %v5166_v20, %v5174_v59  ;;  %v5007_v40 = vpack.c.bf16 %v4989_v19, %v4989_v19  ;;  %v6003_v8 = vpop.f32.mrf.mxu1  ;;  %v5936_v27 = vsel %vm15681_vm3, %v5933_v17, %v5935_v10  ;;  %v6964_v17 = vunpack.c.l.b16 %v6945_v38  ;;  %vm15691_vm15 = vmmov %vm15685_vm2 }
 0x3bc   : > { %6450 = vmatmul.bf16.gmra.mxu3 %v6344_v39  ;;  %5224 = vst [vmem:[#allocation2 + $0x90] sm:$0xf] %v5175_v6  ;;  %v6048_v29 = vadd.f32 %v6003_v8, %v5816_v24  ;;  %v5773_v41 = vpop.f32.mrf.mxu0  ;;  %v5176_v9 = vrot.slane %v5174_v59, 4  ;;  %v6559_v24 = vrot.slane %v14495_v46, 2  ;;  %v6728_v32 = vshrl.u32 %v6548_v22, 16  ;;  %vm15697_vm11 = vmmov %vm15685_vm2 }
 0x3bd   : > { %v5178_v12 = vshrl.u32 %v5007_v40, 16  ;;  %v5181_v51 = vshll.u32 %v5007_v40, 16  ;;  %v6242_v61 = vpop.f32.mrf.mxu2  ;;  %v5817_v26 = vadd.f32 %v5773_v41, %v14156_v42  ;;  %v5226_v42 = vld [vmem:[#allocation2 + $0x98] sm:$0x3]  ;;  %v6731_v28 = vshll.u32 %v6548_v22, 16  ;;  %vm15699_vm3 = vmmov %vm15660_vm0 }
 0x3be   : > { %6042 = vmatmul.bf16.gmra.mxu1 %v5936_v27  ;;  %v6287_v36 = vadd.f32 %v6242_v61, %v6048_v29  ;;  %v6965_v20 = vpack.c.b16 %v6530_v13, %v6964_v17  ;;  %v6558_v10 = vrot.slane %v6548_v22, 2  ;;  %v6738_v40 = vrot.slane %v6736_v56, 2  ;;  %v14528_v56 = vld [vmem:[#allocation2 + $0x20] sm:$0xff] }
 0x3bf   : > { %v6411_v3 = vpop.f32.mrf.mxu3  ;;  %v5180_v37 = vrot.slane %v5178_v12, 6  ;;  %v5183_v2 = vrot.slane %v5181_v51, 7  ;;  %v6741_v8 = vrot.slane %v6739_v43, 3  ;;  %v6967_v29 = vrot.slane %v14495_v46, 3  ;;  %v14570_v46 = vld [vmem:[#allocation2 + $0x60] sm:$0xff] }
 0x3c0   : > { %v14500_v15 = vadd.f32 %v6411_v3, %v6287_v36  ;;  %v7413_v13 = vshrl.u32 %v11738_v52, 16  ;;  %v14512_v51 = vrot.slane %v7420_v49, 1  ;;  %v6730_v61 = vrot.slane %v6728_v32, 2  ;;  %v14517_v36 = vld [vmem:[#allocation2 + $0x54] sm:$0xf]  ;;  %v14531_v49 = vld [vmem:[#allocation2 + $0x58] sm:$0xff] }
 0x3c1   : > { %v5184_v14 = vor.u32 %v5183_v2, %v5180_v37  ;;  %v6733_v41 = vrot.slane %v6731_v28, 3  ;;  %v6966_v38 = vrot.slane %v6965_v20, 3  ;;  %v6742_v22 = vor.u32 %v6741_v8, %v6738_v40  ;;  %v8347_v52 = vld [vmem:[#allocation2 + $0x50] sm:$0xc]  ;;  %v11580_v28 = vld [vmem:[#allocation3 + $0xe8] sm:$0xff] }
 0x3c2   : > { %v15417_v37 = vunpack.c.l.b16 %v14517_v36  ;;  %v8365_v5 = vunpack.c.l.b16 %v8347_v52  ;;  %v6745_v20 = vshrl.u32 %v14528_v56, 16  ;;  %8039 = vmatpush.bf16.msrb.mxu2 %v11580_v28  ;;  %v6561_v57 = vrot.slane %v14528_v56, 2  ;;  %v11564_v40 = vld [vmem:[#allocation3 + $0xa8] sm:$0xff] }
 0x3c3   : > { %v5185_v30 = vsel %vm13165_vm8, %v5176_v9, %v5184_v14  ;;  %v5186_v1 = vrot.slane %v5184_v14, 4  ;;  %v6005_v44 = vpop.f32.mrf.mxu1  ;;  %vm15683_vm8 = vmmov %vm15660_vm0  ;;  %v6734_v17 = vor.u32 %v6733_v41, %v6730_v61  ;;  %7808 = vmatpush.bf16.msrb.mxu1 %v11564_v40 }
 0x3c4   : > { %5225 = vst [vmem:[#allocation2 + $0x94] sm:$0xf] %v5185_v30  ;;  %v6049_v59 = vadd.f32 %v6005_v44, %v5817_v26  ;;  %v5776_v6 = vpop.f32.mrf.mxu0  ;;  %v6560_v27 = vsel %vm15683_vm8, %v6558_v10, %v6559_v24  ;;  %v7418_v26 = vor.u32 %v7417_v11, %v7413_v13  ;;  %v14533_v30 = vld [vmem:[#allocation2 + $0x58] sm:$0xff]  ;;  %v7428_v10 = vshll.u32 %v14531_v49, 16 }
 0x3c5   : > { %v5227_v19 = vsel %vm12820_vm12, %v5186_v1, %v5226_v42  ;;  %v6244_v39 = vpop.f32.mrf.mxu2  ;;  %v5818_v12 = vadd.f32 %v5776_v6, %v14182_v63  ;;  %vm15684_vm12 = vcmask 1044480   ;;  %v6743_v25 = vsel %vm15686_vm7, %v6734_v17, %v6742_v22  ;;  %v11588_v6 = vld [vmem:[#allocation3 + $0x128] sm:$0xff]  ;;  %vm15704_vm7 = vmmov %vm15660_vm0 }
 0x3c6   : > { %5228 = vst [vmem:[#allocation2 + $0x98] sm:$0x3] %v5227_v19  ;;  %v6288_v0 = vadd.f32 %v6244_v39, %v6049_v59  ;;  %v6968_v63 = vsel %vm15684_vm12, %v6966_v38, %v6967_v29  ;;  %v7423_v45 = vsel %vm15685_vm2, %v7418_v26, %v14512_v51  ;;  %v8366_v1 = vpack.c.b16 %v15417_v37, %v8365_v5  ;;  %v11548_v39 = vld [vmem:[#allocation3 + $0x28] sm:$0xff]  ;;  %vm15690_vm10 = vmmov %vm15684_vm12 }
 0x3c7   : > { %v6413_v33 = vpop.f32.mrf.mxu3  ;;  %6642 = vmatmul.bf16.vlgmr.msra.gmra.mxu0 %v6560_v27  ;;  %v6748_v59 = vshll.u32 %v14528_v56, 16  ;;  %v6969_v27 = vrot.slane %v14528_v56, 3  ;;  %v7424_v26 = vshrl.u32 %v14498_v31, 16  ;;  %8277 = vmatpush.bf16.msrb.mxu3 %v11588_v6  ;;  %v6562_v52 = vsel %vm15689_vm14, %v6559_v24, %v6561_v57  ;;  %vm15696_vm5 = vmmov %vm15690_vm10  ;;  %v14606_v56 = vld [vmem:[#allocation2 + $0x68] sm:$0xff]  ;;  %v6706_v37 = vld [vmem:[#allocation2 + $0x58] sm:$0x7] }
 0x3c8   : > { %v14519_v3 = vadd.f32 %v6413_v33, %v6288_v0  ;;  %v8367_v11 = vrot.slane %v8366_v1, 2  ;;  %7658 = vmatpush.bf16.msrb.mxu0 %v11548_v39  ;;  %v11587_v39 = vld [vmem:[#allocation3 + $0x120] sm:$0xff]  ;;  %vm15701_vm8 = vmmov %vm15696_vm5 }
 0x3c9   : > { %v6750_v13 = vrot.slane %v6748_v59, 3  ;;  %vm15702_vm12 = vmmov %vm15685_vm2 }
 0x3ca   : > { %7050 = vmatmul.bf16.vlgmr.msra.gmra.mxu2 %v6968_v63  ;;  %v7430_v63 = vrot.slane %v7428_v10, 1  ;;  %vm15703_vm2 = vmmov %vm15698_vm1 }
 0x3cb   : > { %v6008_v2 = vpop.f32.mrf.mxu1  ;;  %8278 = vmatpush.bf16.msrb.mxu3 %v11587_v39  ;;  %v11578_v39 = vld [vmem:[#allocation3 + $0xd8] sm:$0xff]  ;;  %vm15707_vm14 = vmmov %vm15696_vm5 }
 0x3cc   : > { %7553 = vmatmul.bf16.vlgmr.msra.gmra.mxu3 %v7423_v45  ;;  %v6050_v7 = vadd.f32 %v6008_v2, %v5818_v12  ;;  %v5778_v14 = vpop.f32.mrf.mxu0  ;;  %v6747_v12 = vrot.slane %v6745_v20, 2  ;;  %v7426_v2 = vor.u32 %v7424_v26, %v14512_v51  ;;  %v14576_v20 = vld [vmem:[#allocation2 + $0x60] sm:$0xff]  ;;  %v7432_v26 = vshrl.u32 %v14531_v49, 16 }
 0x3cd   : > { %v6247_v9 = vpop.f32.mrf.mxu2  ;;  %v5819_v32 = vadd.f32 %v5778_v14, %v14194_v4  ;;  %v8368_v4 = vrot.slane %v14533_v30, 2 }
 0x3ce   : > { %6881 = vmatmul.bf16.vlgmr.msra.gmra.mxu1 %v6743_v25  ;;  %v6289_v43 = vadd.f32 %v6247_v9, %v6050_v7  ;;  %v6751_v17 = vor.u32 %v6750_v13, %v6747_v12  ;;  %v7431_v7 = vsel %vm15691_vm15, %v7426_v2, %v7430_v63  ;;  %v11563_v12 = vld [vmem:[#allocation3 + $0xa0] sm:$0xff]  ;;  %v8370_v13 = vrot.slane %v14576_v20, 2  ;;  %vm15709_vm15 = vmmov %vm15698_vm1 }
 0x3cf   : > { %v6416_v42 = vpop.f32.mrf.mxu3  ;;  %v14547_v8 = vsel %vm15687_vm4, %v8367_v11, %v8368_v4  ;;  %7809 = vmatpush.bf16.msrb.mxu1 %v11563_v12  ;;  %vm15705_vm4 = vmmov %vm15660_vm0 }
 0x3d0   : > { %v14537_v44 = vadd.f32 %v6416_v42, %v6289_v43  ;;  %15688 = vst [vmem:[#allocation10_spill] sm:$0xff] %v14547_v8  ;;  %v6752_v24 = vsel %vm15692_vm6, %v6742_v22, %v6751_v17  ;;  %v14567_v43 = vld [vmem:[#allocation2 + $0x28] sm:$0xff]  ;;  %v7436_v22 = vshll.u32 %v14570_v46, 16  ;;  %vm15710_vm6 = vmmov %vm15660_vm0 }
 0x3d1   : > { %v6754_v1 = vshrl.u32 %v14567_v43, 16  ;;  %v6757_v28 = vshll.u32 %v14567_v43, 16  ;;  %v6563_v10 = vrot.slane %v14567_v43, 2 }
 0x3d3   : > { %v6010_v47 = vpop.f32.mrf.mxu1  ;;  %v6756_v40 = vrot.slane %v6754_v1, 2  ;;  %v6564_v2 = vsel %vm15693_vm13, %v6561_v57, %v6563_v10  ;;  %vm15711_vm13 = vmmov %vm15660_vm0 }
 0x3d4   : > { %v6051_v19 = vadd.f32 %v6010_v47, %v5819_v32  ;;  %v5781_v33 = vpop.f32.mrf.mxu0  ;;  %v11579_v47 = vld [vmem:[#allocation3 + $0xe0] sm:$0xff] }
 0x3d5   : > { %v6249_v0 = vpop.f32.mrf.mxu2  ;;  %v5820_v38 = vadd.f32 %v5781_v33, %v14226_v34  ;;  %v6970_v34 = vsel %vm15690_vm10, %v6967_v29, %v6969_v27  ;;  %v6971_v33 = vrot.slane %v14567_v43, 3  ;;  %8040 = vmatpush.bf16.msrb.mxu2 %v11579_v47  ;;  %vm15708_vm10 = vmmov %vm15697_vm11 }
 0x3d6   : > { %v6290_v61 = vadd.f32 %v6249_v0, %v6051_v19  ;;  %v11547_v19 = vld [vmem:[#allocation3 + $0x20] sm:$0xff]  ;;  %v6759_v0 = vrot.slane %v6757_v28, 3 }
 0x3d7   : > { %v6418_v41 = vpop.f32.mrf.mxu3  ;;  %6647 = vmatmul.bf16.gmra.mxu0 %v6562_v52  ;;  %v7438_v52 = vrot.slane %v7436_v22, 1 }
 0x3d8   : > { %v14557_v45 = vadd.f32 %v6418_v41, %v6290_v61  ;;  %7659 = vmatpush.bf16.msrb.mxu0 %v11547_v19 }
 0x3d9   : > { %8041 = vmatpush.bf16.msrb.mxu2 %v11578_v39 }
 0x3da   : > { %7055 = vmatmul.bf16.gmra.mxu2 %v6970_v34  ;;  %v14592_v34 = vsel %vm15694_vm9, %v8368_v4, %v8370_v13  ;;  %vm15713_vm9 = vmmov %vm15696_vm5 }
 0x3db   : > { %v6013_v5 = vpop.f32.mrf.mxu1  ;;  %15695 = vst [vmem:[#allocation16_spill] sm:$0xff] %v14592_v34  ;;  %v7878_v34 = vld [vmem:[#allocation2 + $0x50] sm:$0xe] }
 0x3dc   : > { %7558 = vmatmul.bf16.gmra.mxu3 %v7431_v7  ;;  %v6052_v25 = vadd.f32 %v6013_v5, %v5820_v38  ;;  %v5783_v14 = vpop.f32.mrf.mxu0  ;;  %v6760_v5 = vor.u32 %v6759_v0, %v6756_v40 }
 0x3dd   : > { %v6252_v9 = vpop.f32.mrf.mxu2  ;;  %v5821_v32 = vadd.f32 %v5783_v14, %v14238_v48 }
 0x3de   : > { %6886 = vmatmul.bf16.gmra.mxu1 %v6752_v24  ;;  %v6291_v51 = vadd.f32 %v6252_v9, %v6052_v25  ;;  %v6972_v25 = vsel %vm15696_vm5, %v6969_v27, %v6971_v33  ;;  %v6761_v4 = vsel %vm15698_vm1, %v6751_v17, %v6760_v5  ;;  %v7444_v17 = vshll.u32 %v14606_v56, 16  ;;  %vm15714_vm5 = vmmov %vm15708_vm10 }
 0x3df   : > { %v6421_v42 = vpop.f32.mrf.mxu3 }
 0x3e0   : > { %v14572_v29 = vadd.f32 %v6421_v42, %v6291_v51  ;;  %v14603_v42 = vld [vmem:[#allocation2 + $0x30] sm:$0xff] }
 0x3e1   : > { %v6763_v28 = vshrl.u32 %v14603_v42, 16  ;;  %v6766_v22 = vshll.u32 %v14603_v42, 16  ;;  %v6565_v47 = vrot.slane %v14603_v42, 2 }
 0x3e3   : > { %v6015_v59 = vpop.f32.mrf.mxu1  ;;  %v6765_v0 = vrot.slane %v6763_v28, 2  ;;  %v6768_v12 = vrot.slane %v6766_v22, 3 }
 0x3e4   : > { %v6053_v11 = vadd.f32 %v6015_v59, %v5821_v32  ;;  %v5786_v6 = vpop.f32.mrf.mxu0  ;;  %v14612_v59 = vld [vmem:[#allocation2 + $0x68] sm:$0xff] }
 0x3e5   : > { %v6254_v48 = vpop.f32.mrf.mxu2  ;;  %v5822_v38 = vadd.f32 %v5786_v6, %v14270_v55  ;;  %v7434_v55 = vor.u32 %v7432_v26, %v7430_v63  ;;  %v11586_v6 = vld [vmem:[#allocation3 + $0x118] sm:$0xff] }
 0x3e6   : > { %v6292_v61 = vadd.f32 %v6254_v48, %v6053_v11  ;;  %v11546_v48 = vld [vmem:[#allocation3 + $0x18] sm:$0xff]  ;;  %8279 = vmatpush.bf16.msrb.mxu3 %v11586_v6 }
 0x3e7   : > { %v6423_v41 = vpop.f32.mrf.mxu3  ;;  %6652 = vmatmul.bf16.gmra.mxu0 %v6564_v2  ;;  %v7439_v57 = vsel %vm15697_vm11, %v7434_v55, %v7438_v52  ;;  %v7440_v55 = vshrl.u32 %v14570_v46, 16  ;;  %vm15715_vm11 = vmmov %vm15698_vm1 }
 0x3e8   : > { %v14594_v7 = vadd.f32 %v6423_v41, %v6292_v61  ;;  %v6973_v61 = vrot.slane %v14603_v42, 3  ;;  %v8372_v41 = vrot.slane %v14612_v59, 2  ;;  %7660 = vmatpush.bf16.msrb.mxu0 %v11546_v48  ;;  %v14646_v48 = vld [vmem:[#allocation2 + $0x70] sm:$0xff]  ;;  %vm15716_vm1 = vmmov %vm15660_vm0 }
 0x3ea   : > { %7060 = vmatmul.bf16.gmra.mxu2 %v6972_v25  ;;  %v7446_v25 = vrot.slane %v7444_v17, 1 }
 0x3eb   : > { %v6018_v24 = vpop.f32.mrf.mxu1 }
 0x3ec   : > { %7563 = vmatmul.bf16.gmra.mxu3 %v7439_v57  ;;  %v6054_v9 = vadd.f32 %v6018_v24, %v5822_v38  ;;  %v5788_v51 = vpop.f32.mrf.mxu0  ;;  %v6566_v57 = vsel %vm15660_vm0, %v6563_v10, %v6565_v47  ;;  %v14626_v24 = vsel %vm15699_vm3, %v8370_v13, %v8372_v41  ;;  %vm15718_vm3 = vmmov %vm15701_vm8 }
 0x3ed   : > { %v6257_v14 = vpop.f32.mrf.mxu2  ;;  %v5823_v1 = vadd.f32 %v5788_v51, %v14282_v21  ;;  %15700 = vst [vmem:[#allocation12_spill] sm:$0xff] %v14626_v24  ;;  %v6974_v51 = vsel %vm15701_vm8, %v6971_v33, %v6973_v61  ;;  %vm15719_vm8 = vmmov %vm15714_vm5 }
 0x3ee   : > { %6891 = vmatmul.bf16.gmra.mxu1 %v6761_v4  ;;  %v6293_v63 = vadd.f32 %v6257_v14, %v6054_v9  ;;  %v7442_v4 = vor.u32 %v7440_v55, %v7438_v52  ;;  %v6769_v14 = vor.u32 %v6768_v12, %v6765_v0  ;;  %v14637_v52 = vld [vmem:[#allocation2 + $0x38] sm:$0xff]  ;;  %v8374_v55 = vrot.slane %v14646_v48, 2 }
 0x3ef   : > { %v6426_v32 = vpop.f32.mrf.mxu3  ;;  %v6775_v39 = vshll.u32 %v14637_v52, 16  ;;  %v11577_v0 = vld [vmem:[#allocation3 + $0xd0] sm:$0xff] }
 0x3f0   : > { %v14608_v27 = vadd.f32 %v6426_v32, %v6293_v63  ;;  %v7447_v63 = vsel %vm15702_vm12, %v7442_v4, %v7446_v25  ;;  %v6770_v32 = vsel %vm15703_vm2, %v6760_v5, %v6769_v14  ;;  %8042 = vmatpush.bf16.msrb.mxu2 %v11577_v0  ;;  %vm15720_vm12 = vmmov %vm15703_vm2 }
 0x3f1   : > { %vm15721_vm2 = vmmov %vm15660_vm0 }
 0x3f3   : > { %v6020_v11 = vpop.f32.mrf.mxu1 }
 0x3f4   : > { %v6055_v19 = vadd.f32 %v6020_v11, %v5823_v1  ;;  %v5791_v40 = vpop.f32.mrf.mxu0  ;;  %v14640_v11 = vld [vmem:[#allocation2 + $0x70] sm:$0xff] }
 0x3f5   : > { %v6259_v21 = vpop.f32.mrf.mxu2  ;;  %v5824_v2 = vadd.f32 %v5791_v40, %v14314_v54  ;;  %v11562_v54 = vld [vmem:[#allocation3 + $0x98] sm:$0xff]  ;;  %v7452_v5 = vshll.u32 %v14640_v11, 16 }
 0x3f6   : > { %v6294_v38 = vadd.f32 %v6259_v21, %v6055_v19  ;;  %7810 = vmatpush.bf16.msrb.mxu1 %v11562_v54  ;;  %v6772_v19 = vshrl.u32 %v14637_v52, 16  ;;  %v6567_v21 = vrot.slane %v14637_v52, 2 }
 0x3f7   : > { %v6428_v26 = vpop.f32.mrf.mxu3  ;;  %6657 = vmatmul.bf16.gmra.mxu0 %v6566_v57 }
 0x3f8   : > { %v14628_v9 = vadd.f32 %v6428_v26, %v6294_v38  ;;  %v6777_v26 = vrot.slane %v6775_v39, 3 }
 0x3fa   : > { %7065 = vmatmul.bf16.gmra.mxu2 %v6974_v51  ;;  %v7448_v51 = vshrl.u32 %v14606_v56, 16 }
 0x3fb   : > { %v6023_v10 = vpop.f32.mrf.mxu1 }
 0x3fc   : > { %7568 = vmatmul.bf16.gmra.mxu3 %v7447_v63  ;;  %v6056_v13 = vadd.f32 %v6023_v10, %v5824_v2  ;;  %v5793_v28 = vpop.f32.mrf.mxu0  ;;  %v6975_v2 = vrot.slane %v14637_v52, 3  ;;  %v7454_v63 = vrot.slane %v7452_v5, 1  ;;  %v6568_v10 = vsel %vm15704_vm7, %v6565_v47, %v6567_v21  ;;  %v11585_v52 = vld [vmem:[#allocation3 + $0x110] sm:$0xff]  ;;  %vm15722_vm7 = vmmov %vm15718_vm3 }
 0x3fd   : > { %v6262_v1 = vpop.f32.mrf.mxu2  ;;  %v5825_v43 = vadd.f32 %v5793_v28, %v14326_v18  ;;  %v6774_v18 = vrot.slane %v6772_v19, 2  ;;  %v11545_v28 = vld [vmem:[#allocation3 + $0x10] sm:$0xff]  ;;  %8280 = vmatpush.bf16.msrb.mxu3 %v11585_v52 }
 0x3fe   : > { %6896 = vmatmul.bf16.gmra.mxu1 %v6770_v32  ;;  %v6295_v22 = vadd.f32 %v6262_v1, %v6056_v13  ;;  %v14658_v13 = vsel %vm15705_vm4, %v8372_v41, %v8374_v55  ;;  %v7450_v1 = vor.u32 %v7448_v51, %v7446_v25  ;;  %7661 = vmatpush.bf16.msrb.mxu0 %v11545_v28  ;;  %v11561_v41 = vld [vmem:[#allocation3 + $0x90] sm:$0xff]  ;;  %vm15723_vm4 = vmmov %vm15714_vm5 }
 0x3ff   : > { %v6431_v17 = vpop.f32.mrf.mxu3  ;;  %15706 = vst [vmem:[#allocation13_spill] sm:$0xff] %v14658_v13  ;;  %v14667_v5 = vld [vmem:[#allocation2 + $0x40] sm:$0xff]  ;;  %7811 = vmatpush.bf16.msrb.mxu1 %v11561_v41 }
 0x400   : > { %v14642_v33 = vadd.f32 %v6431_v17, %v6295_v22  ;;  %v6778_v22 = vor.u32 %v6777_v26, %v6774_v18  ;;  %v7455_v17 = vsel %vm15708_vm10, %v7450_v1, %v7454_v63  ;;  %v14676_v18 = vld [vmem:[#allocation2 + $0x78] sm:$0xff]  ;;  %v6977_v1 = vrot.slane %v14667_v5, 3  ;;  %vm15727_vm10 = vmmov %vm15715_vm11  ;;  %v11614_v13 = vld [vmem:[#allocation3 + $0x1b8] sm:$0xff] }
 0x401   : > { %v8376_v28 = vrot.slane %v14676_v18, 2 }
 0x402   : > { %v6779_v19 = vsel %vm15709_vm15, %v6769_v14, %v6778_v22  ;;  %vm15729_vm15 = vmmov %vm15660_vm0 }
 0x403   : > { %v6025_v6 = vpop.f32.mrf.mxu1 }
 0x404   : > { %v6057_v40 = vadd.f32 %v6025_v6, %v5825_v43  ;;  %v5796_v38 = vpop.f32.mrf.mxu0 }
 0x405   : > { %v6264_v12 = vpop.f32.mrf.mxu2  ;;  %v5826_v54 = vadd.f32 %v5796_v38, %v14356_v35  ;;  %v6976_v35 = vsel %vm15707_vm14, %v6973_v61, %v6975_v2  ;;  %v6784_v38 = vshll.u32 %v14667_v5, 16  ;;  %vm15725_vm14 = vmmov %vm15660_vm0 }
 0x406   : > { %v6296_v57 = vadd.f32 %v6264_v12, %v6057_v40  ;;  %v14670_v40 = vld [vmem:[#allocation2 + $0x78] sm:$0xff]  ;;  %v6781_v12 = vshrl.u32 %v14667_v5, 16 }
 0x407   : > { %v6433_v4 = vpop.f32.mrf.mxu3  ;;  %6662 = vmatmul.bf16.gmra.mxu0 %v6568_v10  ;;  %v7460_v14 = vshll.u32 %v14670_v40, 16  ;;  %v6786_v10 = vrot.slane %v6784_v38, 3  ;;  %v11544_v38 = vld [vmem:[#allocation3 + $0x8] sm:$0xff] }
 0x408   : > { %v14660_v32 = vadd.f32 %v6433_v4, %v6296_v57  ;;  %v6569_v57 = vrot.slane %v14667_v5, 2  ;;  %7662 = vmatpush.bf16.msrb.mxu0 %v11544_v38 }
 0x40a   : > { %7070 = vmatmul.bf16.gmra.mxu2 %v6976_v35  ;;  %v6570_v41 = vsel %vm15710_vm6, %v6567_v21, %v6569_v57  ;;  %v11584_v21 = vld [vmem:[#allocation3 + $0x108] sm:$0xff]  ;;  %vm15731_vm6 = vmmov %vm15718_vm3 }
 0x40b   : > { %v6028_v43 = vpop.f32.mrf.mxu1  ;;  %8281 = vmatpush.bf16.msrb.mxu3 %v11584_v21 }
 0x40c   : > { %7573 = vmatmul.bf16.gmra.mxu3 %v7455_v17  ;;  %v6058_v47 = vadd.f32 %v6028_v43, %v5826_v54  ;;  %v5798_v25 = vpop.f32.mrf.mxu0  ;;  %v7456_v43 = vshrl.u32 %v14640_v11, 16 }
 0x40d   : > { %v6267_v39 = vpop.f32.mrf.mxu2  ;;  %v5827_v61 = vadd.f32 %v5798_v25, %v14366_v62  ;;  %v6783_v62 = vrot.slane %v6781_v12, 2 }
 0x40e   : > { %6901 = vmatmul.bf16.gmra.mxu1 %v6779_v19  ;;  %v6297_v6 = vadd.f32 %v6267_v39, %v6058_v47  ;;  %v7462_v47 = vrot.slane %v7460_v14, 1  ;;  %v14686_v19 = vsel %vm15711_vm13, %v8374_v55, %v8376_v28  ;;  %v7458_v25 = vor.u32 %v7456_v43, %v7454_v63  ;;  %vm15732_vm13 = vmmov %vm15723_vm4 }
 0x40f   : > { %v6436_v42 = vpop.f32.mrf.mxu3  ;;  %15712 = vst [vmem:[#allocation18_spill] sm:$0xff] %v14686_v19  ;;  %v6787_v5 = vor.u32 %v6786_v10, %v6783_v62  ;;  %v11560_v62 = vld [vmem:[#allocation3 + $0x88] sm:$0xff] }
 0x410   : > { %v14672_v0 = vadd.f32 %v6436_v42, %v6297_v6  ;;  %v11576_v6 = vld [vmem:[#allocation3 + $0xc8] sm:$0xff]  ;;  %v6978_v42 = vsel %vm15713_vm9, %v6975_v2, %v6977_v1  ;;  %7812 = vmatpush.bf16.msrb.mxu1 %v11560_v62  ;;  %vm15734_vm9 = vmmov %vm15660_vm0 }
 0x411   : > { %8043 = vmatpush.bf16.msrb.mxu2 %v11576_v6  ;;  %v6788_v55 = vsel %vm15715_vm11, %v6778_v22, %v6787_v5  ;;  %vm15737_vm11 = vmmov %vm15718_vm3 }
 0x413   : > { %v6030_v26 = vpop.f32.mrf.mxu1 }
 0x414   : > { %v6059_v4 = vadd.f32 %v6030_v26, %v5827_v61  ;;  %v5801_v51 = vpop.f32.mrf.mxu0  ;;  %v7463_v61 = vsel %vm15714_vm5, %v7458_v25, %v7462_v47  ;;  %vm15736_vm5 = vmmov %vm15727_vm10 }
 0x415   : > { %v6269_v54 = vpop.f32.mrf.mxu2  ;;  %v5828_v17 = vadd.f32 %v5801_v51, %v14393_v23  ;;  %v14696_v51 = vld [vmem:[#allocation2 + $0x80] sm:$0xff] }
 0x416   : > { %v6298_v52 = vadd.f32 %v6269_v54, %v6059_v4  ;;  %v14693_v4 = vld [vmem:[#allocation2 + $0x48] sm:$0xff] }
 0x417   : > { %v6438_v35 = vpop.f32.mrf.mxu3  ;;  %6667 = vmatmul.bf16.gmra.mxu0 %v6570_v41  ;;  %v6793_v22 = vshll.u32 %v14693_v4, 16  ;;  %v6571_v41 = vrot.slane %v14693_v4, 2 }
 0x418   : > { %v14688_v39 = vadd.f32 %v6438_v35, %v6298_v52  ;;  %v6790_v52 = vshrl.u32 %v14693_v4, 16  ;;  %v14702_v35 = vld [vmem:[#allocation2 + $0x80] sm:$0xff] }
 0x41a   : > { %7075 = vmatmul.bf16.gmra.mxu2 %v6978_v42  ;;  %v6792_v42 = vrot.slane %v6790_v52, 2 }
 0x41b   : > { %v6033_v23 = vpop.f32.mrf.mxu1 }
 0x41c   : > { %7578 = vmatmul.bf16.gmra.mxu3 %v7463_v61  ;;  %v6060_v12 = vadd.f32 %v6033_v23, %v5828_v17  ;;  %v5803_v26 = vpop.f32.mrf.mxu0  ;;  %v7468_v17 = vshll.u32 %v14696_v51, 16  ;;  %v6795_v61 = vrot.slane %v6793_v22, 3  ;;  %v6979_v23 = vrot.slane %v14693_v4, 3 }
 0x41d   : > { %v6272_v14 = vpop.f32.mrf.mxu2  ;;  %v5829_v2 = vadd.f32 %v5803_v26, %v14404_v50 }
 0x41e   : > { %6906 = vmatmul.bf16.gmra.mxu1 %v6788_v55  ;;  %v6299_v63 = vadd.f32 %v6272_v14, %v6060_v12  ;;  %v15418_v12 = vrot.slane %v14702_v35, 2  ;;  %v7464_v14 = vshrl.u32 %v14670_v40, 16  ;;  %v7470_v26 = vrot.slane %v7468_v17, 1 }
 0x41f   : > { %v6441_v54 = vpop.f32.mrf.mxu3  ;;  %v6796_v52 = vor.u32 %v6795_v61, %v6792_v42  ;;  %v6980_v22 = vsel %vm15718_vm3, %v6977_v1, %v6979_v23  ;;  %v11543_v1 = vld [vmem:[#allocation3] sm:$0xff] }
 0x420   : > { %v14698_v10 = vadd.f32 %v6441_v54, %v6299_v63  ;;  %v6572_v63 = vsel %vm15716_vm1, %v6569_v57, %v6571_v41  ;;  %v14714_v54 = vsel %vm15660_vm0, %v8376_v28, %v15418_v12  ;;  %v7466_v62 = vor.u32 %v7464_v14, %v7462_v47  ;;  %v11559_v14 = vld [vmem:[#allocation3 + $0x80] sm:$0xff]  ;;  %7663 = vmatpush.bf16.msrb.mxu0 %v11543_v1  ;;  %vm15738_vm1 = vmmov %vm15660_vm0 }
 0x421   : > { %15717 = vst [vmem:[#allocation19_spill] sm:$0xff] %v14714_v54  ;;  %7813 = vmatpush.bf16.msrb.mxu1 %v11559_v14  ;;  %vm15740_vm0 = vmmov %vm15718_vm3  ;;  %vm15741_vm3 = vcmask 1046528  }
 0x423   : > { %v6035_v43 = vpop.f32.mrf.mxu1 }
 0x424   : > { %v6061_v50 = vadd.f32 %v6035_v43, %v5829_v2  ;;  %v5806_v6 = vpop.f32.mrf.mxu0  ;;  %v11575_v43 = vld [vmem:[#allocation3 + $0xc0] sm:$0xff] }
 0x425   : > { %v6274_v25 = vpop.f32.mrf.mxu2  ;;  %v5830_v55 = vadd.f32 %v5806_v6, %v14431_v16  ;;  %v7471_v16 = vsel %vm15719_vm8, %v7466_v62, %v7470_v26  ;;  %v14723_v6 = vld [vmem:[#allocation2 + $0x50] sm:$0xff]  ;;  %8044 = vmatpush.bf16.msrb.mxu2 %v11575_v43  ;;  %8674 = vmatpush.bf16.msra.mxu1 %v11614_v13  ;;  %vm15742_vm8 = vsmask.f32 6400 }
 0x426   : > { %v6300_v38 = vadd.f32 %v6274_v25, %v6061_v50  ;;  %v6797_v50 = vsel %vm15720_vm12, %v6787_v5, %v6796_v52  ;;  %v6799_v5 = vshrl.u32 %v14723_v6, 16  ;;  %v15728_v24 = vrot.slane %v14723_v6, 2  ;;  %vm15743_vm12 = vmmov %vm15741_vm3 }
 0x427   : > { %v6443_v21 = vpop.f32.mrf.mxu3  ;;  %6672 = vmatmul.bf16.gmra.mxu0 %v6572_v63 }
 0x428   : > { %v14716_v2 = vadd.f32 %v6443_v21, %v6300_v38  ;;  %v14726_v38 = vld [vmem:[#allocation2 + $0x88] sm:$0xff] }
 0x429   : > { %v11583_v21 = vld [vmem:[#allocation3 + $0x100] sm:$0xff]  ;;  %v7476_v62 = vshll.u32 %v14726_v38, 16 }
 0x42a   : > { %7080 = vmatmul.bf16.gmra.mxu2 %v6980_v22  ;;  %8282 = vmatpush.bf16.msrb.mxu3 %v11583_v21  ;;  %v7472_v21 = vshrl.u32 %v14696_v51, 16 }
 0x42b   : > { %v6038_v17 = vpop.f32.mrf.mxu1  ;;  %v14739_v14 = vrot.slane %v7476_v62, 1  ;;  %v6725_v62 = vunpack.c.l.b16 %v6706_v37 }
 0x42c   : > { %7583 = vmatmul.bf16.gmra.mxu3 %v7471_v16  ;;  %v6062_v57 = vadd.f32 %v6038_v17, %v5830_v55  ;;  %v5808_v25 = vpop.f32.mrf.mxu0  ;;  %v6802_v55 = vshll.u32 %v14723_v6, 16  ;;  %v14734_v17 = vld [vmem:[#allocation2 + $0x88] sm:$0xff] }
 0x42d   : > { %v6277_v28 = vpop.f32.mrf.mxu2  ;;  %v5831_v61 = vadd.f32 %v5808_v25, %v14442_v53  ;;  %v15421_v53 = vrot.slane %v14723_v6, 2  ;;  %v15420_v25 = vrot.slane %v14723_v6, 3  ;;  %v15733_v13 = vrot.slane %v14734_v17, 2 }
 0x42e   : > { %6911 = vmatmul.bf16.gmra.mxu1 %v6797_v50  ;;  %v6301_v47 = vadd.f32 %v6277_v28, %v6062_v57  ;;  %v6801_v50 = vrot.slane %v6799_v5, 2  ;;  %v6804_v28 = vrot.slane %v6802_v55, 3  ;;  %v7474_v5 = vor.u32 %v7472_v21, %v7470_v26  ;;  %v6492_v55 = vld [vmem:[#allocation2 + $0x58] sm:$0x3] }
 0x42f   : > { %v6446_v42 = vpop.f32.mrf.mxu3  ;;  %v15724_v26 = vrot.slane %v14702_v35, 2  ;;  %v6726_v21 = vpack.c.b16 %v6725_v62, %v6725_v62 }
 0x430   : > { %v14728_v63 = vadd.f32 %v6446_v42, %v6301_v47 }
 0x433   : > { %v6040_v22 = vpop.f32.mrf.mxu1 }
 0x434   : > { %v6063_v16 = vadd.f32 %v6040_v22, %v5831_v61  ;;  %v5811_v43 = vpop.f32.mrf.mxu0  ;;  %v6574_v61 = vsel %vm15721_vm2, %v6571_v41, %v15421_v53  ;;  %v7347_v22 = vld [vmem:[#allocation2 + $0x90] sm:$0x1]  ;;  %v7479_v41 = vsel %vm15723_vm4, %v7474_v5, %v14739_v14  ;;  %vm15744_vm2 = vmmov %vm15740_vm0 }
 0x435   : > { %v6279_v57 = vpop.f32.mrf.mxu2  ;;  %v5832_v1 = vadd.f32 %v5811_v43, %v14471_v58  ;;  %v6982_v58 = vsel %vm15722_vm7, %v6979_v23, %v15420_v25  ;;  %v7401_v43 = vunpack.c.l.b16 %v7347_v22  ;;  %vm15745_vm7 = vmmov %vm15740_vm0 }
 0x436   : > { %v6302_v47 = vadd.f32 %v6279_v57, %v6063_v16  ;;  %v15419_v16 = vrot.slane %v14734_v17, 2  ;;  %v14747_v57 = vor.u32 %v6804_v28, %v6801_v50  ;;  %v6547_v28 = vunpack.c.l.b16 %v6492_v55  ;;  %vm15746_vm4 = vmmov %vm15741_vm3 }
 0x437   : > { %v6448_v42 = vpop.f32.mrf.mxu3  ;;  %6677 = vmatmul.bf16.gmra.mxu0 %v6574_v61 }
 0x438   : > { %v14744_v12 = vadd.f32 %v6448_v42, %v6302_v47  ;;  %v14761_v47 = vsel %vm15725_vm14, %v15724_v26, %v15419_v16  ;;  %v6806_v4 = vsel %vm15727_vm10, %v6796_v52, %v14747_v57  ;;  %v11622_v26 = vld [vmem:[#allocation3 + $0x1f8] sm:$0xff]  ;;  %v6557_v55 = vpack.c.b16 %v6547_v28, %v6547_v28  ;;  %vm15747_vm14 = vmmov %vm15742_vm8 }
 0x439   : > { %15726 = vst [vmem:[#allocation20_spill] sm:$0xff] %v14761_v47  ;;  %v11598_v16 = vld [vmem:[#allocation3 + $0x178] sm:$0xff]  ;;  %8912 = vmatpush.bf16.msra.mxu2 %v11622_v26  ;;  %v6808_v52 = vshrl.u32 %v6726_v21, 16  ;;  %v6983_v28 = vrot.slane %v6726_v21, 3  ;;  %vm15748_vm10 = vmmov %vm15741_vm3 }
 0x43a   : > { %7085 = vmatmul.bf16.gmra.mxu2 %v6982_v58  ;;  %v14766_v58 = vpack.c.b16 %v7401_v43, %v7401_v43  ;;  %8443 = vmatpush.bf16.msra.mxu0 %v11598_v16 }
 0x43b   : > { %v6043_v50 = vpop.f32.mrf.mxu1  ;;  %v6810_v47 = vrot.slane %v6808_v52, 2 }
 0x43c   : > { %7588 = vmatmul.bf16.gmra.mxu3 %v7479_v41  ;;  %v6064_v42 = vadd.f32 %v6043_v50, %v5832_v1  ;;  %v5813_v23 = vpop.f32.mrf.mxu0  ;;  %v11630_v41 = vld [vmem:[#allocation3 + $0x238] sm:$0xff]  ;;  %v6811_v50 = vshll.u32 %v6726_v21, 16  ;;  %v7484_v62 = vshll.u32 %v14766_v58, 16 }
 0x43d   : > { %v6282_v37 = vpop.f32.mrf.mxu2  ;;  %v5833_v5 = vadd.f32 %v5813_v23, %v14480_v60  ;;  %9080 = vmatpush.bf16.msra.mxu3 %v11630_v41  ;;  %v6575_v60 = vrot.slane %v6557_v55, 2  ;;  %v5230_v23 = vld [vmem:[%s12069_s16 + $0xc] sm:$0xf]  ;;  %v7480_v41 = vshrl.u32 %v14726_v38, 16  ;;  %v15730_v38 = vrot.slane %v14723_v6, 3 }
 0x43e   : > { %6916 = vmatmul.bf16.gmra.mxu1 %v6806_v4  ;;  %v6303_v61 = vadd.f32 %v6282_v37, %v6064_v42  ;;  %v8109_v42 = vld [vmem:[#allocation2 + $0x98] sm:$0x3]  ;;  %v5229_v37 = vld [vmem:[%s12069_s16 + $0x8] sm:$0xe]  ;;  %v6813_v54 = vrot.slane %v6811_v50, 3  ;;  %v7486_v19 = vrot.slane %v7484_v62, 1 }
 0x43f   : > { %v6451_v22 = vpop.f32.mrf.mxu3  ;;  %v5248_v55 = vunpack.c.l.bf16 %v5229_v37  ;;  %v7482_v52 = vor.u32 %v7480_v41, %v14739_v14  ;;  %v6984_v50 = vsel %vm15731_vm6, %v15730_v38, %v6983_v28  ;;  %v8138_v41 = vshrl.u32 %v14533_v30, 16  ;;  %vm15750_vm6 = vmmov %vm15740_vm0 }
 0x440   : > { %v14768_v1 = vadd.f32 %v6451_v22, %v6303_v61  ;;  %v14773_v61 = vld [vmem:[#allocation2 + $0x90] sm:$0xff]  ;;  %v8127_v22 = vunpack.c.l.b16 %v8109_v42 }
 0x441   : > { %v7487_v42 = vsel %vm15732_vm13, %v7482_v52, %v7486_v19  ;;  %v15735_v19 = vunpack.c.l.b16 %v14517_v36  ;;  %vm15751_vm13 = vmmov %vm15741_vm3 }
 0x442   : > { %v14786_v62 = vpack.c.b16 %v8127_v22, %v8127_v22 }
 0x443   : > { %v6045_v4 = vpop.f32.mrf.mxu1 }
 0x444   : > { %v6065_v43 = vadd.f32 %v6045_v4, %v5833_v5  ;;  %v6643_v53 = vpop.f32.mrf.mxu0  ;;  %v6576_v5 = vsel %vm15729_vm15, %v15728_v24, %v6575_v60  ;;  %v5249_v4 = vunpack.c.l.bf16 %v5230_v23  ;;  %v8382_v24 = vrot.slane %v14773_v61, 2  ;;  %vm15749_vm15 = vmmov %vm15740_vm0 }
 0x445   : > { %v6284_v25 = vpop.f32.mrf.mxu2  ;;  %v6688_v21 = vadd.f32 %v6643_v53, %v14500_v15  ;;  %v7932_v60 = vunpack.c.l.b16 %v7878_v34  ;;  %v7155_v53 = vrot.slane %v5248_v55, 3  ;;  %v8384_v22 = vrot.slane %v14786_v62, 2  ;;  %v11621_v55 = vld [vmem:[#allocation3 + $0x1f0] sm:$0xff] }
 0x446   : > { %v6304_v16 = vadd.f32 %v6284_v25, %v6065_v43  ;;  %v6814_v25 = vor.u32 %v6813_v54, %v6810_v47  ;;  %v7156_v14 = vrot.slane %v5249_v4, 3  ;;  %v14793_v54 = vsel %vm15734_vm9, %v15733_v13, %v8382_v24  ;;  %v14798_v47 = vld [vmem:[%s15354_s4] ss:$0 sm:$0xff]  ;;  %v14801_v43 = vld [vmem:[%s12069_s16 + $0x10] sm:$0xff]   ;;  %8913 = vmatpush.bf16.msra.mxu2 %v11621_v55  ;;  %vm15752_vm9 = vmmov %vm15742_vm8 }
 0x447   : > { %v6453_v26 = vpop.f32.mrf.mxu3  ;;  %6682 = vmatmul.bf16.gmra.mxu0 %v6576_v5  ;;  %v7951_v34 = vpack.c.b16 %v15735_v19, %v7932_v60  ;;  %v8141_v5 = vshll.u32 %v14533_v30, 16  ;;  %v11642_v4 = vunpack.c.l.bf16 %v14801_v43  ;;  %v11739_v19 = vld [vmem:[#allocation2 + $0x48] sm:$0xf0] }
 0x448   : > { %v14779_v8 = vadd.f32 %v6453_v26, %v6304_v16  ;;  %v6815_v37 = vsel %vm15736_vm5, %v14747_v57, %v6814_v25  ;;  %v7157_v36 = vsel %vm15737_vm11, %v7155_v53, %v7156_v14  ;;  %v14816_v57 = vsel %vm15738_vm1, %v8382_v24, %v8384_v22  ;;  %vm15753_vm5 = vmmov %vm15741_vm3 }
 0x449   : > { %15739 = vst [vmem:[#allocation14_spill] sm:$0xff] %v14816_v57  ;;  %v8130_v25 = vshrl.u32 %v7951_v34, 16  ;;  %v8133_v38 = vshll.u32 %v7951_v34, 16  ;;  %v8143_v60 = vrot.slane %v8141_v5, 2  ;;  %v7158_v13 = vrot.slane %v11642_v4, 3  ;;  %vm15754_vm11 = vmmov %vm15740_vm0 }
 0x44a   : > { %7090 = vmatmul.bf16.gmra.mxu2 %v6984_v50  ;;  %v7962_v57 = vrot.slane %v14533_v30, 1  ;;  %v11643_v4 = vunpack.c.h.bf16 %v14801_v43  ;;  %vm15755_vm1 = vmmov %vm15740_vm0 }
 0x44b   : > { %v6882_v15 = vpop.f32.mrf.mxu1  ;;  %v8135_v24 = vrot.slane %v8133_v38, 2  ;;  %v7159_v5 = vsel %vm15740_vm0, %v7156_v14, %v7158_v13  ;;  %vm15756_vm0 = vmmov %vm15741_vm3 }
 0x44c   : > { %7593 = vmatmul.bf16.gmra.mxu3 %v7487_v42  ;;  %v6927_v6 = vadd.f32 %v6882_v15, %v6688_v21  ;;  %v6645_v28 = vpop.f32.mrf.mxu0  ;;  %v8140_v42 = vrot.slane %v8138_v41, 1 }
 0x44d   : > { %v7051_v23 = vpop.f32.mrf.mxu2  ;;  %v6689_v52 = vadd.f32 %v6645_v28, %v14519_v3 }
 0x44e   : > { %6921 = vmatmul.bf16.gmra.mxu1 %v6815_v37  ;;  %v7096_v16 = vadd.f32 %v7051_v23, %v6927_v6  ;;  %v8132_v37 = vrot.slane %v8130_v25, 1  ;;  %v14828_v41 = vor.u32 %v8143_v60, %v8140_v42  ;;  %v11613_v25 = vld [vmem:[#allocation3 + $0x1b0] sm:$0xff]  ;;  %v7731_v42 = vrot.slane %v14498_v31, 1 }
 0x44f   : > { %v14809_v26 = vpop.f32.mrf.mxu3  ;;  %8675 = vmatpush.bf16.msra.mxu1 %v11613_v25 }
 0x450   : > { %v7117_v21 = vadd.f32 %v14798_v47, %v7096_v16  ;;  %v11740_v16 = vld [vmem:[#allocation2 + $0x48] sm:$0xe] }
 0x451   : > { %v11741_v55 = vor.u32 %v11740_v16, %v11739_v19 }
 0x452   : > { %v7210_v50 = vadd.f32 %v7157_v36, %v7117_v21  ;;  %v7961_v36 = vrot.slane %v7951_v34, 1  ;;  %v11597_v21 = vld [vmem:[#allocation3 + $0x170] sm:$0xff] }
 0x453   : > { %v6884_v15 = vpop.f32.mrf.mxu1  ;;  %8444 = vmatpush.bf16.msra.mxu0 %v11597_v21  ;;  %v7730_v60 = vrot.slane %v11741_v55, 1  ;;  %v8150_v55 = vshll.u32 %v14576_v20, 16 }
 0x454   : > { %v7228_v53 = vmax.f32 %v7210_v50, 0.0  ;;  %v6928_v6 = vadd.f32 %v6884_v15, %v6689_v52  ;;  %v6648_v22 = vpop.f32.mrf.mxu0  ;;  %v11629_v52 = vld [vmem:[#allocation3 + $0x230] sm:$0xff]  ;;  %v11810_v15 = vld [vmem:[#allocation2 + $0x48] sm:$0xff]   ;;  %v7963_v14 = vsel %vm15741_vm3, %v7961_v36, %v7962_v57  ;;  %v8147_v36 = vshrl.u32 %v14576_v20, 16  ;;  %vm15757_vm3 = vmmov %vm15742_vm8 }
 0x455   : > { %v7053_v23 = vpop.f32.mrf.mxu2  ;;  %v6690_v50 = vadd.f32 %v6648_v22, %v14537_v44  ;;  %9081 = vmatpush.bf16.msra.mxu3 %v11629_v52 }
 0x456   : > { %7246 = vst [vmem:[%s14823_s12] sm:$0xff] %v7228_v53  ;;  %v7097_v3 = vadd.f32 %v7053_v23, %v6928_v6  ;;  %v8136_v53 = vor.u32 %v8135_v24, %v8132_v37  ;;  %v7160_v6 = vrot.slane %v11643_v4, 3  ;;  %v11720_v24 = vld [vmem:[%s12069_s16 + $0x18] sm:$0xff]   ;;  %v7732_v23 = vsel %vm15743_vm12, %v7730_v60, %v7731_v42  ;;  %vm15759_vm12 = vmmov %vm15755_vm1 }
 0x457   : > { %v14826_v28 = vpop.f32.mrf.mxu3  ;;  %7664 = vmatmul.bf16.vlgmr.msrb.gmra.mxu0 %v11810_v15  ;;  %v11646_v21 = vunpack.c.l.bf16 %v11720_v24  ;;  %v8152_v15 = vrot.slane %v8150_v55, 2 }
 0x458   : > { %v7118_v38 = vadd.f32 %v14798_v47, %v7097_v3  ;;  %v8145_v34 = vsel %vm15742_vm8, %v8136_v53, %v14828_v41  ;;  %v7161_v4 = vsel %vm15744_vm2, %v7158_v13, %v7160_v6  ;;  %vm15758_vm8 = vmmov %vm15756_vm0 }
 0x459   : > { %vm15760_vm2 = vmmov %vm15755_vm1 }
 0x45a   : > { %v7211_v43 = vadd.f32 %v7159_v5, %v7118_v38  ;;  %8045 = vmatmul.bf16.vlgmr.msrb.gmra.mxu2 %v7963_v14  ;;  %v7162_v14 = vrot.slane %v11646_v21, 3  ;;  %v11811_v21 = vld [vmem:[#allocation2 + $0x50] sm:$0xff] }
 0x45b   : > { %v6887_v44 = vpop.f32.mrf.mxu1 }
 0x45c   : > { %8283 = vmatmul.bf16.vlgmr.msrb.gmra.mxu3 %v8145_v34  ;;  %v7229_v19 = vmax.f32 %v7211_v43, 0.0  ;;  %v6929_v37 = vadd.f32 %v6887_v44, %v6690_v50  ;;  %v6650_v3 = vpop.f32.mrf.mxu0  ;;  %v8149_v50 = vrot.slane %v8147_v36, 1  ;;  %v11628_v36 = vld [vmem:[#allocation3 + $0x228] sm:$0xff] }
 0x45d   : > { %v7056_v22 = vpop.f32.mrf.mxu2  ;;  %v6691_v25 = vadd.f32 %v6650_v3, %v14557_v45  ;;  %v11647_v45 = vunpack.c.h.bf16 %v11720_v24  ;;  %v11620_v3 = vld [vmem:[#allocation3 + $0x1e8] sm:$0xff]  ;;  %9082 = vmatpush.bf16.msra.mxu3 %v11628_v36 }
 0x45e   : > { %7247 = vst [vmem:[%s14823_s12 + $0x8] sm:$0xff] %v7229_v19  ;;  %7814 = vmatmul.bf16.vlgmr.msrb.gmra.mxu1 %v7732_v23  ;;  %v7098_v16 = vadd.f32 %v7056_v22, %v6929_v37  ;;  %v7964_v19 = vrot.slane %v14576_v20, 1  ;;  %v14856_v13 = vor.u32 %v8152_v15, %v8149_v50  ;;  %v7163_v22 = vsel %vm15745_vm7, %v7160_v6, %v7162_v14  ;;  %vm15761_vm7 = vmmov %vm15756_vm0 }
 0x45f   : > { %v14845_v5 = vpop.f32.mrf.mxu3  ;;  %8914 = vmatpush.bf16.msra.mxu2 %v11620_v3  ;;  %v7164_v50 = vrot.slane %v11647_v45, 3 }
 0x460   : > { %v7119_v52 = vadd.f32 %v14798_v47, %v7098_v16  ;;  %v11596_v16 = vld [vmem:[#allocation3 + $0x168] sm:$0xff]  ;;  %v7965_v6 = vsel %vm15746_vm4, %v7962_v57, %v7964_v19  ;;  %vm15762_vm4 = vmmov %vm15757_vm3 }
 0x461   : > { %8445 = vmatpush.bf16.msra.mxu0 %v11596_v16 }
 0x462   : > { %v7212_v38 = vadd.f32 %v7161_v4, %v7119_v52  ;;  %v11612_v52 = vld [vmem:[#allocation3 + $0x1a8] sm:$0xff] }
 0x463   : > { %v6889_v53 = vpop.f32.mrf.mxu1  ;;  %8676 = vmatpush.bf16.msra.mxu1 %v11612_v52 }
 0x464   : > { %v7230_v43 = vmax.f32 %v7212_v38, 0.0  ;;  %v6930_v34 = vadd.f32 %v6889_v53, %v6691_v25  ;;  %v6653_v60 = vpop.f32.mrf.mxu0  ;;  %v7733_v25 = vrot.slane %v14531_v49, 1 }
 0x465   : > { %v7058_v44 = vpop.f32.mrf.mxu2  ;;  %v6692_v4 = vadd.f32 %v6653_v60, %v14572_v29  ;;  %v8154_v29 = vsel %vm15747_vm14, %v14828_v41, %v14856_v13  ;;  %v8156_v60 = vshrl.u32 %v14612_v59, 16  ;;  %vm15763_vm14 = vmmov %vm15756_vm0 }
 0x466   : > { %10816 = vst [vmem:[%s14823_s12 + $0xe] sm:$0xfc] %v7230_v43  ;;  %v7099_v37 = vadd.f32 %v7058_v44, %v6930_v34  ;;  %v11721_v43 = vld [vmem:[%s12069_s16 + $0x20] sm:$0xff]   ;;  %v7734_v30 = vsel %vm15748_vm10, %v7731_v42, %v7733_v25  ;;  %vm15764_vm10 = vmmov %vm15755_vm1 }
 0x467   : > { %v14854_v23 = vpop.f32.mrf.mxu3  ;;  %7669 = vmatmul.bf16.gmra.mxu0 %v11811_v21  ;;  %v11650_v45 = vunpack.c.l.bf16 %v11721_v43  ;;  %v8158_v16 = vrot.slane %v8156_v60, 1 }
 0x468   : > { %v7120_v55 = vadd.f32 %v14798_v47, %v7099_v37  ;;  %v8159_v37 = vshll.u32 %v14612_v59, 16 }
 0x46a   : > { %v7213_v24 = vadd.f32 %v7163_v22, %v7120_v55  ;;  %8050 = vmatmul.bf16.gmra.mxu2 %v7965_v6  ;;  %v7165_v22 = vsel %vm15749_vm15, %v7162_v14, %v7164_v50  ;;  %v8161_v36 = vrot.slane %v8159_v37, 2  ;;  %vm15765_vm15 = vmmov %vm15755_vm1 }
 0x46b   : > { %v6892_v38 = vpop.f32.mrf.mxu1 }
 0x46c   : > { %8288 = vmatmul.bf16.gmra.mxu3 %v8154_v29  ;;  %v7231_v15 = vmax.f32 %v7213_v24, 0.0  ;;  %v6931_v53 = vadd.f32 %v6892_v38, %v6692_v4  ;;  %v6655_v34 = vpop.f32.mrf.mxu0  ;;  %v7166_v4 = vrot.slane %v11650_v45, 3  ;;  %v7966_v29 = vrot.slane %v14612_v59, 1 }
 0x46d   : > { %v7061_v57 = vpop.f32.mrf.mxu2  ;;  %v6693_v31 = vadd.f32 %v6655_v34, %v14594_v7  ;;  %v11595_v7 = vld [vmem:[#allocation3 + $0x160] sm:$0xff]  ;;  %v11651_v34 = vunpack.c.h.bf16 %v11721_v43  ;;  %v7735_v45 = vrot.slane %v14570_v46, 1 }
 0x46e   : > { %10817 = vst [vmem:[%s14823_s12 + $0x16] sm:$0xff] %v7231_v15  ;;  %7819 = vmatmul.bf16.gmra.mxu1 %v7734_v30  ;;  %v7100_v44 = vadd.f32 %v7061_v57, %v6931_v53  ;;  %v14888_v15 = vor.u32 %v8161_v36, %v8158_v16  ;;  %v11619_v53 = vld [vmem:[#allocation3 + $0x1e0] sm:$0xff]  ;;  %v7167_v57 = vsel %vm15750_vm6, %v7164_v50, %v7166_v4  ;;  %vm15766_vm6 = vmmov %vm15756_vm0 }
 0x46f   : > { %v14877_v41 = vpop.f32.mrf.mxu3  ;;  %v11627_v30 = vld [vmem:[#allocation3 + $0x220] sm:$0xff]  ;;  %8915 = vmatpush.bf16.msra.mxu2 %v11619_v53  ;;  %8446 = vmatpush.bf16.msra.mxu0 %v11595_v7  ;;  %v7736_v20 = vsel %vm15753_vm5, %v7733_v25, %v7735_v45  ;;  %vm15769_vm5 = vmmov %vm15755_vm1 }
 0x470   : > { %v7121_v3 = vadd.f32 %v14798_v47, %v7100_v44  ;;  %v11611_v44 = vld [vmem:[#allocation3 + $0x1a0] sm:$0xff]  ;;  %9083 = vmatpush.bf16.msra.mxu3 %v11627_v30 }
 0x471   : > { %8677 = vmatpush.bf16.msra.mxu1 %v11611_v44  ;;  %v11722_v36 = vld [vmem:[%s12069_s16 + $0x28] sm:$0xff]  }
 0x472   : > { %v7214_v42 = vadd.f32 %v7165_v22, %v7121_v3  ;;  %v11812_v22 = vld [vmem:[#allocation2 + $0x58] sm:$0xff]  ;;  %v7967_v3 = vsel %vm15751_vm13, %v7964_v19, %v7966_v29  ;;  %vm15767_vm13 = vmmov %vm15757_vm3 }
 0x473   : > { %v6894_v55 = vpop.f32.mrf.mxu1 }
 0x474   : > { %v7232_v21 = vmax.f32 %v7214_v42, 0.0  ;;  %v6932_v52 = vadd.f32 %v6894_v55, %v6693_v31  ;;  %v6658_v24 = vpop.f32.mrf.mxu0  ;;  %v7168_v31 = vrot.slane %v11651_v34, 3 }
 0x475   : > { %v7063_v6 = vpop.f32.mrf.mxu2  ;;  %v6694_v37 = vadd.f32 %v6658_v24, %v14608_v27  ;;  %v8163_v27 = vsel %vm15752_vm9, %v14856_v13, %v14888_v15  ;;  %v8165_v13 = vshrl.u32 %v14646_v48, 16  ;;  %vm15768_vm9 = vmmov %vm15756_vm0 }
 0x476   : > { %10818 = vst [vmem:[%s14823_s12 + $0x1e] sm:$0x3] %v7232_v21  ;;  %v7101_v38 = vadd.f32 %v7063_v6, %v6932_v52  ;;  %v8168_v6 = vshll.u32 %v14646_v48, 16  ;;  %v7169_v24 = vsel %vm15754_vm11, %v7166_v4, %v7168_v31  ;;  %vm15770_vm11 = vmmov %vm15755_vm1 }
 0x477   : > { %v14886_v14 = vpop.f32.mrf.mxu3  ;;  %10819 = vst [vmem:[%s14823_s12 + $0x1c] sm:$0xf0] %v7232_v21  ;;  %7674 = vmatmul.bf16.gmra.mxu0 %v11812_v22  ;;  %v8167_v7 = vrot.slane %v8165_v13, 1  ;;  %v7737_v13 = vrot.slane %v14606_v56, 1 }
 0x478   : > { %v7122_v60 = vadd.f32 %v14798_v47, %v7101_v38  ;;  %v11654_v38 = vunpack.c.l.bf16 %v11722_v36  ;;  %v8170_v30 = vrot.slane %v8168_v6, 2 }
 0x479   : > { %v7738_v59 = vsel %vm15758_vm8, %v7735_v45, %v7737_v13  ;;  %vm15774_vm8 = vmmov %vm15760_vm2 }
 0x47a   : > { %v7215_v50 = vadd.f32 %v7167_v57, %v7122_v60  ;;  %8055 = vmatmul.bf16.gmra.mxu2 %v7967_v3  ;;  %v7170_v34 = vrot.slane %v11654_v38, 3  ;;  %v7968_v3 = vrot.slane %v14646_v48, 1 }
 0x47b   : > { %v6897_v43 = vpop.f32.mrf.mxu1 }
 0x47c   : > { %8293 = vmatmul.bf16.gmra.mxu3 %v8163_v27  ;;  %v7233_v42 = vmax.f32 %v7215_v50, 0.0  ;;  %v6933_v16 = vadd.f32 %v6897_v43, %v6694_v37  ;;  %v6660_v55 = vpop.f32.mrf.mxu0  ;;  %v14921_v27 = vor.u32 %v8170_v30, %v8167_v7  ;;  %v11618_v43 = vld [vmem:[#allocation3 + $0x1d8] sm:$0xff]  ;;  %v7969_v6 = vsel %vm15756_vm0, %v7966_v29, %v7968_v3 }
 0x47d   : > { %v7066_v19 = vpop.f32.mrf.mxu2  ;;  %v6695_v49 = vadd.f32 %v6660_v55, %v14628_v9  ;;  %v11594_v9 = vld [vmem:[#allocation3 + $0x158] sm:$0xff]  ;;  %8916 = vmatpush.bf16.msra.mxu2 %v11618_v43  ;;  %v8174_v30 = vshrl.u32 %v14676_v18, 16 }
 0x47e   : > { %10820 = vst [vmem:[%s14823_s12 + $0x24] sm:$0xff] %v7233_v42  ;;  %7824 = vmatmul.bf16.gmra.mxu1 %v7736_v20  ;;  %v7102_v21 = vadd.f32 %v7066_v19, %v6933_v16  ;;  %v11626_v42 = vld [vmem:[#allocation3 + $0x218] sm:$0xff]  ;;  %v7171_v16 = vsel %vm15755_vm1, %v7168_v31, %v7170_v34  ;;  %v11655_v20 = vunpack.c.h.bf16 %v11722_v36  ;;  %8447 = vmatpush.bf16.msra.mxu0 %v11594_v9  ;;  %vm15771_vm1 = vmmov %vm15756_vm0 }
 0x47f   : > { %v14910_v52 = vpop.f32.mrf.mxu3  ;;  %9084 = vmatpush.bf16.msra.mxu3 %v11626_v42  ;;  %vm15772_vm0 = vmmov %vm15757_vm3 }
 0x480   : > { %v7123_v53 = vadd.f32 %v14798_v47, %v7102_v21  ;;  %v11813_v21 = vld [vmem:[#allocation2 + $0x60] sm:$0xff] }
 0x482   : > { %v7216_v25 = vadd.f32 %v7169_v24, %v7123_v53  ;;  %v7172_v24 = vrot.slane %v11655_v20, 3  ;;  %v11723_v53 = vld [vmem:[%s12069_s16 + $0x30] sm:$0xff]  }
 0x483   : > { %v6899_v57 = vpop.f32.mrf.mxu1 }
 0x484   : > { %v7234_v44 = vmax.f32 %v7216_v25, 0.0  ;;  %v6934_v60 = vadd.f32 %v6899_v57, %v6695_v49  ;;  %v6663_v22 = vpop.f32.mrf.mxu0  ;;  %v11610_v57 = vld [vmem:[#allocation3 + $0x198] sm:$0xff] }
 0x485   : > { %v7068_v37 = vpop.f32.mrf.mxu2  ;;  %v6696_v55 = vadd.f32 %v6663_v22, %v14642_v33  ;;  %v8172_v33 = vsel %vm15757_vm3, %v14888_v15, %v14921_v27  ;;  %v8177_v15 = vshll.u32 %v14676_v18, 16  ;;  %8678 = vmatpush.bf16.msra.mxu1 %v11610_v57  ;;  %v8176_v22 = vrot.slane %v8174_v30, 1  ;;  %vm15773_vm3 = vmmov %vm15771_vm1 }
 0x486   : > { %10821 = vst [vmem:[%s14823_s12 + $0x2c] sm:$0xf] %v7234_v44  ;;  %v7103_v50 = vadd.f32 %v7068_v37, %v6934_v60  ;;  %v11658_v60 = vunpack.c.l.bf16 %v11723_v53 }
 0x487   : > { %v14919_v4 = vpop.f32.mrf.mxu3  ;;  %10822 = vst [vmem:[%s14823_s12 + $0x2a] sm:$0xc0] %v7234_v44  ;;  %7679 = vmatmul.bf16.gmra.mxu0 %v11813_v21  ;;  %v7173_v44 = vsel %vm15759_vm12, %v7170_v34, %v7172_v24  ;;  %vm15775_vm12 = vmmov %vm15760_vm2 }
 0x488   : > { %v7124_v19 = vadd.f32 %v14798_v47, %v7103_v50  ;;  %v8179_v50 = vrot.slane %v8177_v15, 2  ;;  %v7174_v9 = vrot.slane %v11658_v60, 3  ;;  %v11724_v15 = vld [vmem:[%s12069_s16 + $0x38] sm:$0xff]   ;;  %v8183_v60 = vshrl.u32 %v14702_v35, 16 }
 0x48a   : > { %v7217_v31 = vadd.f32 %v7171_v16, %v7124_v19  ;;  %8060 = vmatmul.bf16.gmra.mxu2 %v7969_v6  ;;  %v14952_v6 = vor.u32 %v8179_v50, %v8176_v22  ;;  %v11625_v22 = vld [vmem:[#allocation3 + $0x210] sm:$0xff] }
 0x48b   : > { %v6902_v36 = vpop.f32.mrf.mxu1  ;;  %v11609_v50 = vld [vmem:[#allocation3 + $0x190] sm:$0xff]  ;;  %9085 = vmatpush.bf16.msra.mxu3 %v11625_v22 }
 0x48c   : > { %8298 = vmatmul.bf16.gmra.mxu3 %v8172_v33  ;;  %v7235_v38 = vmax.f32 %v7217_v31, 0.0  ;;  %v6935_v56 = vadd.f32 %v6902_v36, %v6696_v55  ;;  %v6665_v29 = vpop.f32.mrf.mxu0  ;;  %v7970_v55 = vrot.slane %v14676_v18, 1  ;;  %v11617_v31 = vld [vmem:[#allocation3 + $0x1d0] sm:$0xff]  ;;  %v11659_v33 = vunpack.c.h.bf16 %v11723_v53  ;;  %8679 = vmatpush.bf16.msra.mxu1 %v11609_v50 }
 0x48d   : > { %v7071_v49 = vpop.f32.mrf.mxu2  ;;  %v6697_v45 = vadd.f32 %v6665_v29, %v14660_v32  ;;  %v7175_v32 = vsel %vm15760_vm2, %v7172_v24, %v7174_v9  ;;  %8917 = vmatpush.bf16.msra.mxu2 %v11617_v31  ;;  %v8181_v24 = vsel %vm15762_vm4, %v14921_v27, %v14952_v6  ;;  %vm15776_vm2 = vmmov %vm15771_vm1 }
 0x48e   : > { %10823 = vst [vmem:[%s14823_s12 + $0x32] sm:$0xff] %v7235_v38  ;;  %7829 = vmatmul.bf16.gmra.mxu1 %v7738_v59  ;;  %v7104_v25 = vadd.f32 %v7071_v49, %v6935_v56  ;;  %v11814_v56 = vld [vmem:[#allocation2 + $0x68] sm:$0xff]  ;;  %v7739_v59 = vrot.slane %v14640_v11, 1  ;;  %v7971_v49 = vsel %vm15761_vm7, %v7968_v3, %v7970_v55  ;;  %vm15777_vm7 = vmmov %vm15772_vm0 }
 0x48f   : > { %v14941_v7 = vpop.f32.mrf.mxu3  ;;  %vm15778_vm4 = vmmov %vm15771_vm1 }
 0x490   : > { %v7125_v46 = vadd.f32 %v14798_v47, %v7104_v25  ;;  %v7740_v11 = vsel %vm15763_vm14, %v7737_v13, %v7739_v59  ;;  %vm15779_vm14 = vmmov %vm15769_vm5 }
 0x492   : > { %v7218_v37 = vadd.f32 %v7173_v44, %v7125_v46  ;;  %v8186_v46 = vshll.u32 %v14702_v35, 16 }
 0x493   : > { %v6904_v43 = vpop.f32.mrf.mxu1 }
 0x494   : > { %v7236_v42 = vmax.f32 %v7218_v37, 0.0  ;;  %v6936_v16 = vadd.f32 %v6904_v43, %v6697_v45  ;;  %v6668_v19 = vpop.f32.mrf.mxu0  ;;  %v11662_v45 = vunpack.c.l.bf16 %v11724_v15  ;;  %v11593_v37 = vld [vmem:[#allocation3 + $0x150] sm:$0xff] }
 0x495   : > { %v7073_v20 = vpop.f32.mrf.mxu2  ;;  %v6698_v38 = vadd.f32 %v6668_v19, %v14672_v0  ;;  %v7176_v0 = vrot.slane %v11659_v33, 3  ;;  %8448 = vmatpush.bf16.msra.mxu0 %v11593_v37  ;;  %v8192_v37 = vshrl.u32 %v14734_v17, 16 }
 0x496   : > { %10824 = vst [vmem:[%s14823_s12 + $0x3a] sm:$0x3f] %v7236_v42  ;;  %v7105_v21 = vadd.f32 %v7073_v20, %v6936_v16  ;;  %v8185_v16 = vrot.slane %v8183_v60, 1  ;;  %v8188_v20 = vrot.slane %v8186_v46, 2  ;;  %v11725_v60 = vld [vmem:[%s12069_s16 + $0x40] sm:$0xff]  }
 0x497   : > { %v14950_v34 = vpop.f32.mrf.mxu3  ;;  %7684 = vmatmul.bf16.gmra.mxu0 %v11814_v56  ;;  %v7177_v27 = vsel %vm15764_vm10, %v7174_v9, %v7176_v0  ;;  %v11666_v50 = vunpack.c.l.bf16 %v11725_v60  ;;  %vm15780_vm10 = vmmov %vm15769_vm5 }
 0x498   : > { %v7126_v36 = vadd.f32 %v14798_v47, %v7105_v21  ;;  %v7178_v21 = vrot.slane %v11662_v45, 3 }
 0x49a   : > { %v7219_v29 = vadd.f32 %v7175_v32, %v7126_v36  ;;  %8065 = vmatmul.bf16.gmra.mxu2 %v7971_v49  ;;  %v7972_v36 = vrot.slane %v14702_v35, 1  ;;  %v14980_v49 = vor.u32 %v8188_v20, %v8185_v16  ;;  %v11608_v20 = vld [vmem:[#allocation3 + $0x188] sm:$0xff] }
 0x49b   : > { %v6907_v53 = vpop.f32.mrf.mxu1  ;;  %8680 = vmatpush.bf16.msra.mxu1 %v11608_v20  ;;  %v11607_v20 = vld [vmem:[#allocation3 + $0x180] sm:$0xff] }
 0x49c   : > { %8303 = vmatmul.bf16.gmra.mxu3 %v8181_v24  ;;  %v7237_v25 = vmax.f32 %v7219_v29, 0.0  ;;  %v6937_v30 = vadd.f32 %v6907_v53, %v6698_v38  ;;  %v6670_v44 = vpop.f32.mrf.mxu0  ;;  %v11663_v29 = vunpack.c.h.bf16 %v11724_v15 }
 0x49d   : > { %v7076_v57 = vpop.f32.mrf.mxu2  ;;  %v6699_v43 = vadd.f32 %v6670_v44, %v14688_v39  ;;  %v7179_v39 = vsel %vm15765_vm15, %v7176_v0, %v7178_v21  ;;  %v8190_v0 = vsel %vm15767_vm13, %v14952_v6, %v14980_v49  ;;  %v8195_v6 = vshll.u32 %v14734_v17, 16  ;;  %vm15781_vm15 = vmmov %vm15771_vm1 }
 0x49e   : > { %10825 = vst [vmem:[%s14823_s12 + $0x40] sm:$0xff] %v7237_v25  ;;  %7834 = vmatmul.bf16.gmra.mxu1 %v7740_v11  ;;  %v7106_v48 = vadd.f32 %v7076_v57, %v6937_v30  ;;  %v11815_v25 = vld [vmem:[#allocation2 + $0x70] sm:$0xff]  ;;  %v7741_v30 = vrot.slane %v14670_v40, 1  ;;  %v7973_v11 = vsel %vm15766_vm6, %v7970_v55, %v7972_v36  ;;  %vm15782_vm6 = vmmov %vm15772_vm0 }
 0x49f   : > { %v14969_v3 = vpop.f32.mrf.mxu3  ;;  %8681 = vmatpush.bf16.msra.mxu1 %v11607_v20  ;;  %vm15783_vm13 = vmmov %vm15771_vm1 }
 0x4a0   : > { %v7127_v13 = vadd.f32 %v14798_v47, %v7106_v48  ;;  %v7742_v46 = vsel %vm15768_vm9, %v7739_v59, %v7741_v30  ;;  %vm15785_vm9 = vsmask.f32 5376 }
 0x4a2   : > { %v7220_v42 = vadd.f32 %v7177_v27, %v7127_v13  ;;  %v11616_v13 = vld [vmem:[#allocation3 + $0x1c8] sm:$0xff] }
 0x4a3   : > { %v6909_v19 = vpop.f32.mrf.mxu1  ;;  %8918 = vmatpush.bf16.msra.mxu2 %v11616_v13  ;;  %v8204_v13 = vshll.u32 %v14773_v61, 16 }
 0x4a4   : > { %v7238_v31 = vmax.f32 %v7220_v42, 0.0  ;;  %v6938_v32 = vadd.f32 %v6909_v19, %v6699_v43  ;;  %v6673_v33 = vpop.f32.mrf.mxu0  ;;  %v11592_v43 = vld [vmem:[#allocation3 + $0x148] sm:$0xff] }
 0x4a5   : > { %v7078_v9 = vpop.f32.mrf.mxu2  ;;  %v6700_v53 = vadd.f32 %v6673_v33, %v14698_v10  ;;  %v7180_v10 = vrot.slane %v11663_v29, 3  ;;  %v11624_v42 = vld [vmem:[#allocation3 + $0x208] sm:$0xff]  ;;  %8449 = vmatpush.bf16.msra.mxu0 %v11592_v43  ;;  %v7182_v33 = vrot.slane %v11666_v50, 3  ;;  %v11615_v43 = vld [vmem:[#allocation3 + $0x1c0] sm:$0xff] }
 0x4a6   : > { %10826 = vst [vmem:[%s14823_s12 + $0x48] sm:$0xff] %v7238_v31  ;;  %v7107_v38 = vadd.f32 %v7078_v9, %v6938_v32  ;;  %v8194_v31 = vrot.slane %v8192_v37, 1  ;;  %v8197_v32 = vrot.slane %v8195_v6, 2  ;;  %9086 = vmatpush.bf16.msra.mxu3 %v11624_v42  ;;  %v11726_v37 = vld [vmem:[%s12069_s16 + $0x48] sm:$0xff]  }
 0x4a7   : > { %v14978_v56 = vpop.f32.mrf.mxu3  ;;  %7689 = vmatmul.bf16.gmra.mxu0 %v11815_v25  ;;  %v7181_v22 = vsel %vm15769_vm5, %v7178_v21, %v7180_v10  ;;  %v11591_v42 = vld [vmem:[#allocation3 + $0x140] sm:$0xff]  ;;  %v11670_v40 = vunpack.c.l.bf16 %v11726_v37  ;;  %8919 = vmatpush.bf16.msra.mxu2 %v11615_v43 }
 0x4a8   : > { %v7128_v24 = vadd.f32 %v14798_v47, %v7107_v38  ;;  %v15010_v25 = vor.u32 %v8197_v32, %v8194_v31 }
 0x4a9   : > { %8450 = vmatpush.bf16.msra.mxu0 %v11591_v42 }
 0x4aa   : > { %v7221_v57 = vadd.f32 %v7179_v39, %v7128_v24  ;;  %8070 = vmatmul.bf16.gmra.mxu2 %v7973_v11  ;;  %v7974_v24 = vrot.slane %v14734_v17, 1  ;;  %v7183_v11 = vsel %vm15770_vm11, %v7180_v10, %v7182_v33  ;;  %v8199_v10 = vsel %vm15772_vm0, %v14980_v49, %v15010_v25  ;;  %vm15789_vm0 = vmmov %vm15769_vm5 }
 0x4ab   : > { %v6912_v15 = vpop.f32.mrf.mxu1  ;;  %vm15786_vm11 = vcmask 1045504  }
 0x4ac   : > { %8308 = vmatmul.bf16.gmra.mxu3 %v8190_v0  ;;  %v7239_v44 = vmax.f32 %v7221_v57, 0.0  ;;  %v6939_v48 = vadd.f32 %v6912_v15, %v6700_v53  ;;  %v6675_v18 = vpop.f32.mrf.mxu0  ;;  %v11667_v57 = vunpack.c.h.bf16 %v11725_v60 }
 0x4ad   : > { %v7081_v27 = vpop.f32.mrf.mxu2  ;;  %v6701_v59 = vadd.f32 %v6675_v18, %v14716_v2 }
 0x4ae   : > { %10827 = vst [vmem:[%s14823_s12 + $0x4e] sm:$0xfc] %v7239_v44  ;;  %7839 = vmatmul.bf16.gmra.mxu1 %v7742_v46  ;;  %v7108_v55 = vadd.f32 %v7081_v27, %v6939_v48  ;;  %v11816_v44 = vld [vmem:[#allocation2 + $0x78] sm:$0xff]  ;;  %v7743_v48 = vrot.slane %v14696_v51, 1  ;;  %v7975_v46 = vsel %vm15771_vm1, %v7972_v36, %v7974_v24  ;;  %vm15788_vm1 = vmmov %vm15785_vm9 }
 0x4af   : > { %v14999_v45 = vpop.f32.mrf.mxu3 }
 0x4b0   : > { %v7129_v16 = vadd.f32 %v14798_v47, %v7108_v55  ;;  %v7744_v35 = vsel %vm15773_vm3, %v7741_v30, %v7743_v48  ;;  %vm15790_vm3 = vmmov %vm15786_vm11 }
 0x4b2   : > { %v7222_v19 = vadd.f32 %v7181_v22, %v7129_v16  ;;  %v8201_v22 = vshrl.u32 %v14773_v61, 16  ;;  %v11623_v16 = vld [vmem:[#allocation3 + $0x200] sm:$0xff] }
 0x4b3   : > { %v6914_v9 = vpop.f32.mrf.mxu1  ;;  %9087 = vmatpush.bf16.msra.mxu3 %v11623_v16 }
 0x4b4   : > { %v7240_v21 = vmax.f32 %v7222_v19, 0.0  ;;  %v6940_v38 = vadd.f32 %v6914_v9, %v6701_v59  ;;  %v6678_v29 = vpop.f32.mrf.mxu0  ;;  %v8203_v32 = vrot.slane %v8201_v22, 1  ;;  %v8206_v9 = vrot.slane %v8204_v13, 2 }
 0x4b5   : > { %v7083_v39 = vpop.f32.mrf.mxu2  ;;  %v6702_v15 = vadd.f32 %v6678_v29, %v14728_v63  ;;  %v7184_v63 = vrot.slane %v11667_v57, 3 }
 0x4b6   : > { %10828 = vst [vmem:[%s14823_s12 + $0x56] sm:$0xff] %v7240_v21  ;;  %v7109_v53 = vadd.f32 %v7083_v39, %v6940_v38  ;;  %v7186_v38 = vrot.slane %v11670_v40, 3 }
 0x4b7   : > { %v15008_v2 = vpop.f32.mrf.mxu3  ;;  %7694 = vmatmul.bf16.gmra.mxu0 %v11816_v44  ;;  %v7185_v59 = vsel %vm15774_vm8, %v7182_v33, %v7184_v63  ;;  %v11671_v44 = vunpack.c.h.bf16 %v11726_v37  ;;  %vm15792_vm8 = vmmov %vm15788_vm1 }
 0x4b8   : > { %v7130_v0 = vadd.f32 %v14798_v47, %v7109_v53 }
 0x4ba   : > { %v7223_v27 = vadd.f32 %v7183_v11, %v7130_v0  ;;  %8075 = vmatmul.bf16.gmra.mxu2 %v7975_v46  ;;  %v7976_v11 = vrot.slane %v14773_v61, 1 }
 0x4bb   : > { %v6917_v60 = vpop.f32.mrf.mxu1 }
 0x4bc   : > { %8313 = vmatmul.bf16.gmra.mxu3 %v8199_v10  ;;  %v7241_v18 = vmax.f32 %v7223_v27, 0.0  ;;  %v6941_v55 = vadd.f32 %v6917_v60, %v6702_v15  ;;  %v6680_v6 = vpop.f32.mrf.mxu0  ;;  %v7187_v15 = vsel %vm15775_vm12, %v7184_v63, %v7186_v38  ;;  %v11817_v10 = vld [vmem:[#allocation2 + $0x80] sm:$0xff]  ;;  %v15048_v60 = vld [vmem:[#allocation2 + $0x88] sm:$0xff]  ;;  %vm15793_vm12 = vmmov %vm15789_vm0 }
 0x4bd   : > { %v7086_v36 = vpop.f32.mrf.mxu2  ;;  %v6703_v19 = vadd.f32 %v6680_v6, %v14744_v12  ;;  %v15043_v12 = vor.u32 %v8206_v9, %v8203_v32 }
 0x4be   : > { %10829 = vst [vmem:[%s14823_s12 + $0x5e] sm:$0x3] %v7241_v18  ;;  %7844 = vmatmul.bf16.gmra.mxu1 %v7744_v35  ;;  %v7110_v49 = vadd.f32 %v7086_v36, %v6941_v55  ;;  %v7977_v55 = vsel %vm15776_vm2, %v7974_v24, %v7976_v11  ;;  %v7188_v36 = vrot.slane %v11671_v44, 3  ;;  %vm15794_vm2 = vmmov %vm15790_vm3 }
 0x4bf   : > { %v15032_v50 = vpop.f32.mrf.mxu3  ;;  %10830 = vst [vmem:[%s14823_s12 + $0x5c] sm:$0xf0] %v7241_v18  ;;  %v7745_v18 = vrot.slane %v15048_v60, 1  ;;  %v8208_v37 = vsel %vm15777_vm7, %v15010_v25, %v15043_v12  ;;  %v8210_v25 = vshrl.u32 %v14786_v62, 16  ;;  %vm15796_vm7 = vmmov %vm15788_vm1 }
 0x4c0   : > { %v7131_v30 = vadd.f32 %v14798_v47, %v7110_v49  ;;  %v5247_v49 = vld [vmem:[%s12069_s16 + $0x50] sm:$0x3]  ;;  %v7189_v40 = vsel %vm15779_vm14, %v7186_v38, %v7188_v36  ;;  %vm15798_vm14 = vmmov %vm15794_vm2 }
 0x4c1   : > { %v7746_v17 = vsel %vm15778_vm4, %v7743_v48, %v7745_v18  ;;  %v5266_v20 = vunpack.c.l.bf16 %v5247_v49  ;;  %vm15797_vm4 = vmmov %vm15789_vm0 }
 0x4c2   : > { %v7224_v31 = vadd.f32 %v7185_v59, %v7131_v30  ;;  %v8213_v59 = vshll.u32 %v14786_v62, 16 }
 0x4c3   : > { %v6919_v21 = vpop.f32.mrf.mxu1 }
 0x4c4   : > { %v7242_v39 = vmax.f32 %v7224_v31, 0.0  ;;  %v6942_v29 = vadd.f32 %v6919_v21, %v6703_v19  ;;  %v6683_v33 = vpop.f32.mrf.mxu0  ;;  %v8212_v31 = vrot.slane %v8210_v25, 1  ;;  %v8215_v32 = vrot.slane %v8213_v59, 2 }
 0x4c5   : > { %v7088_v53 = vpop.f32.mrf.mxu2  ;;  %v6704_v27 = vadd.f32 %v6683_v33, %v14768_v1  ;;  %v7896_v1 = vld [vmem:[#allocation2 + $0x98] sm:$0x1]  ;;  %v7190_v21 = vrot.slane %v5266_v20, 3 }
 0x4c6   : > { %10831 = vst [vmem:[%s14823_s12 + $0x64] sm:$0xff] %v7242_v39  ;;  %v7111_v57 = vadd.f32 %v7088_v53, %v6942_v29  ;;  %v7950_v43 = vunpack.c.l.b16 %v7896_v1  ;;  %v8516_v53 = vld [vmem:[#allocation2 + $0x5c] sm:$0xf]  ;;  %v8216_v44 = vor.u32 %v8215_v32, %v8212_v31  ;;  %v15083_v1 = vld [vmem:[#allocation2 + $0x60] sm:$0xff] }
 0x4c7   : > { %v15041_v0 = vpop.f32.mrf.mxu3  ;;  %7699 = vmatmul.bf16.gmra.mxu0 %v11817_v10 }
 0x4c8   : > { %v7132_v46 = vadd.f32 %v14798_v47, %v7111_v57  ;;  %v7960_v30 = vpack.c.b16 %v7950_v43, %v7950_v43 }
 0x4ca   : > { %v7225_v63 = vadd.f32 %v7187_v15, %v7132_v46  ;;  %8080 = vmatmul.bf16.gmra.mxu2 %v7977_v55  ;;  %v7978_v57 = vrot.slane %v7960_v30, 1  ;;  %v8515_v46 = vld [vmem:[#allocation2 + $0x58] sm:$0xc] }
 0x4cb   : > { %v6922_v35 = vpop.f32.mrf.mxu1 }
 0x4cc   : > { %8318 = vmatmul.bf16.gmra.mxu3 %v8208_v37  ;;  %v7243_v6 = vmax.f32 %v7225_v63, 0.0  ;;  %v6943_v22 = vadd.f32 %v6922_v35, %v6704_v27  ;;  %v6685_v24 = vpop.f32.mrf.mxu0  ;;  %v8570_v27 = vunpack.c.l.b16 %v8516_v53  ;;  %v7747_v63 = vrot.slane %v14766_v58, 1 }
 0x4cd   : > { %v7091_v13 = vpop.f32.mrf.mxu2  ;;  %v6705_v48 = vadd.f32 %v6685_v24, %v14779_v8  ;;  %v7191_v8 = vsel %vm15780_vm10, %v7188_v36, %v7190_v21  ;;  %v7979_v37 = vsel %vm15781_vm15, %v7976_v11, %v7978_v57  ;;  %v8569_v35 = vunpack.c.l.b16 %v8515_v46  ;;  %v15784_v57 = vld [vmem:[#allocation10_spill] sm:$0xff]  ;;  %vm15800_vm10 = vmmov %vm15788_vm1 }
 0x4ce   : > { %10832 = vst [vmem:[%s14823_s12 + $0x6c] sm:$0xf] %v7243_v6  ;;  %7849 = vmatmul.bf16.gmra.mxu1 %v7746_v17  ;;  %v7112_v42 = vadd.f32 %v7091_v13, %v6943_v22  ;;  %v8217_v36 = vsel %vm15782_vm6, %v15043_v12, %v8216_v44  ;;  %v7748_v58 = vsel %vm15783_vm13, %v7745_v18, %v7747_v63  ;;  %v8775_v11 = vshrl.u32 %v15083_v1, 16  ;;  %v8984_v12 = vld [vmem:[#allocation2 + $0x58] sm:$0x8]  ;;  %vm15801_vm15 = vmmov %vm15789_vm0 }
 0x4cf   : > { %v15064_v16 = vpop.f32.mrf.mxu3  ;;  %10833 = vst [vmem:[%s14823_s12 + $0x6a] sm:$0xc0] %v7243_v6  ;;  %v8778_v17 = vshll.u32 %v15083_v1, 16  ;;  %v9002_v18 = vunpack.c.l.b16 %v8984_v12  ;;  %v9005_v53 = vrot.slane %v15083_v1, 3  ;;  %v8599_v44 = vrot.slane %v15083_v1, 2  ;;  %vm15802_vm6 = vmmov %vm15794_vm2 }
 0x4d0   : > { %v7133_v51 = vadd.f32 %v14798_v47, %v7112_v42  ;;  %vm15804_vm13 = vmmov %vm15788_vm1 }
 0x4d1   : > { %v8780_v20 = vrot.slane %v8778_v17, 3  ;;  %v9003_v31 = vpack.c.b16 %v8570_v27, %v9002_v18  ;;  %v15117_v18 = vld [vmem:[#allocation2 + $0x70] sm:$0xff] }
 0x4d2   : > { %v7226_v19 = vadd.f32 %v7189_v40, %v7133_v51  ;;  %v8777_v40 = vrot.slane %v8775_v11, 2 }
 0x4d3   : > { %v6924_v9 = vpop.f32.mrf.mxu1 }
 0x4d4   : > { %v7244_v39 = vmax.f32 %v7226_v19, 0.0  ;;  %v6944_v29 = vadd.f32 %v6924_v9, %v6705_v48  ;;  %v7665_v62 = vpop.f32.mrf.mxu0  ;;  %v8781_v21 = vor.u32 %v8780_v20, %v8777_v40  ;;  %v15787_v40 = vld [vmem:[#allocation16_spill] sm:$0xff] }
 0x4d5   : > { %v7093_v33 = vpop.f32.mrf.mxu2  ;;  %v7666_v55 = vadd.f32 %v7665_v62, %v14809_v26  ;;  %v8588_v26 = vpack.c.b16 %v8570_v27, %v8569_v35 }
 0x4d6   : > { %10834 = vst [vmem:[%s14823_s12 + $0x72] sm:$0xff] %v7244_v39  ;;  %v7113_v38 = vadd.f32 %v7093_v33, %v6944_v29 }
 0x4d7   : > { %v15073_v15 = vpop.f32.mrf.mxu3  ;;  %7704 = vmatmul.bf16.gmra.mxu0 %v15048_v60  ;;  %v8767_v43 = vshrl.u32 %v8588_v26, 16  ;;  %v8770_v42 = vshll.u32 %v8588_v26, 16 }
 0x4d8   : > { %v7134_v10 = vadd.f32 %v14798_v47, %v7113_v38  ;;  %v9004_v38 = vrot.slane %v9003_v31, 3 }
 0x4d9   : > { %v8769_v48 = vrot.slane %v8767_v43, 2  ;;  %v8772_v30 = vrot.slane %v8770_v42, 3 }
 0x4da   : > { %v7227_v6 = vadd.f32 %v7191_v8, %v7134_v10  ;;  %8085 = vmatmul.bf16.gmra.mxu2 %v7979_v37  ;;  %v15101_v8 = vld [vmem:[#allocation2 + $0x68] sm:$0xff]  ;;  %v9006_v27 = vsel %vm15769_vm5, %v9004_v38, %v9005_v53  ;;  %vm15806_vm5 = vmmov %vm15794_vm2 }
 0x4db   : > { %v7815_v47 = vpop.f32.mrf.mxu1  ;;  %v8773_v33 = vor.u32 %v8772_v30, %v8769_v48  ;;  %v9007_v42 = vrot.slane %v15101_v8, 3  ;;  %v8601_v20 = vrot.slane %v15101_v8, 2 }
 0x4dc   : > { %8323 = vmatmul.bf16.gmra.mxu3 %v8217_v36  ;;  %v7245_v22 = vmax.f32 %v7227_v6, 0.0  ;;  %v7860_v60 = vadd.f32 %v7815_v47, %v7666_v55  ;;  %v7667_v61 = vpop.f32.mrf.mxu0  ;;  %v8598_v55 = vrot.slane %v8588_v26, 2  ;;  %v8784_v6 = vshrl.u32 %v15101_v8, 16 }
 0x4dd   : > { %v8046_v49 = vpop.f32.mrf.mxu2  ;;  %v7668_v59 = vadd.f32 %v7667_v61, %v14826_v28  ;;  %v8782_v46 = vsel %vm15785_vm9, %v8773_v33, %v8781_v21  ;;  %v8787_v36 = vshll.u32 %v15101_v8, 16  ;;  %vm15805_vm9 = vmmov %vm15789_vm0 }
 0x4de   : > { %10835 = vst [vmem:[%s14823_s12 + $0x7a] sm:$0x3f] %v7245_v22  ;;  %7854 = vmatmul.bf16.gmra.mxu1 %v7748_v58  ;;  %v8091_v13 = vadd.f32 %v8046_v49, %v7860_v60  ;;  %v8600_v37 = vsel %vm15786_vm11, %v8598_v55, %v8599_v44  ;;  %v8786_v58 = vrot.slane %v8784_v6, 2  ;;  %v9009_v55 = vrot.slane %v15117_v18, 3  ;;  %v15133_v6 = vld [vmem:[#allocation2 + $0x78] sm:$0xff]  ;;  %vm15808_vm11 = vmmov %vm15788_vm1 }
 0x4df   : > { %v8284_v24 = vpop.f32.mrf.mxu3  ;;  %v8789_v49 = vrot.slane %v8787_v36, 3 }
 0x4e0   : > { %v15091_v25 = vadd.f32 %v8284_v24, %v8091_v13  ;;  %v9010_v36 = vsel %vm15793_vm12, %v9007_v42, %v9009_v55 }
 0x4e1   : > { %v8790_v13 = vor.u32 %v8789_v49, %v8786_v58 }
 0x4e3   : > { %v7817_v51 = vpop.f32.mrf.mxu1 }
 0x4e4   : > { %v7861_v19 = vadd.f32 %v7817_v51, %v7668_v59  ;;  %v7670_v9 = vpop.f32.mrf.mxu0  ;;  %v9008_v51 = vsel %vm15789_vm0, %v9005_v53, %v9007_v42 }
 0x4e5   : > { %v8048_v32 = vpop.f32.mrf.mxu2  ;;  %v7671_v28 = vadd.f32 %v7670_v9, %v14845_v5  ;;  %v8796_v9 = vshll.u32 %v15117_v18, 16 }
 0x4e6   : > { %v8092_v39 = vadd.f32 %v8048_v32, %v7861_v19  ;;  %v8602_v19 = vsel %vm15790_vm3, %v8599_v44, %v8601_v20  ;;  %vm15811_vm3 = vmmov %vm15796_vm7 }
 0x4e7   : > { %v8286_v29 = vpop.f32.mrf.mxu3  ;;  %8451 = vmatmul.bf16.vlgmr.msra.gmra.mxu0 %v15784_v57  ;;  %v8798_v53 = vrot.slane %v8796_v9, 3 }
 0x4e8   : > { %v15095_v62 = vadd.f32 %v8286_v29, %v8092_v39 }
 0x4ea   : > { %8920 = vmatmul.bf16.vlgmr.msra.gmra.mxu2 %v8782_v46 }
 0x4eb   : > { %v7820_v10 = vpop.f32.mrf.mxu1 }
 0x4ec   : > { %9088 = vmatmul.bf16.vlgmr.msra.gmra.mxu3 %v9006_v27  ;;  %v7862_v63 = vadd.f32 %v7820_v10, %v7671_v28  ;;  %v7672_v5 = vpop.f32.mrf.mxu0 }
 0x4ed   : > { %v8051_v35 = vpop.f32.mrf.mxu2  ;;  %v7673_v60 = vadd.f32 %v7672_v5, %v14854_v23  ;;  %v8791_v23 = vsel %vm15788_vm1, %v8781_v21, %v8790_v13  ;;  %v8603_v5 = vrot.slane %v15117_v18, 2  ;;  %vm15809_vm1 = vmmov %vm15789_vm0 }
 0x4ee   : > { %8682 = vmatmul.bf16.vlgmr.msra.gmra.mxu1 %v8600_v37  ;;  %v8093_v1 = vadd.f32 %v8051_v35, %v7862_v63  ;;  %v15791_v35 = vld [vmem:[#allocation12_spill] sm:$0xff]  ;;  %vm15810_vm0 = vmmov %vm15794_vm2 }
 0x4ef   : > { %v8289_v47 = vpop.f32.mrf.mxu3  ;;  %vm15813_vm12 = vmmov %vm15810_vm0 }
 0x4f0   : > { %v15107_v22 = vadd.f32 %v8289_v47, %v8093_v1 }
 0x4f3   : > { %v7822_v26 = vpop.f32.mrf.mxu1 }
 0x4f4   : > { %v7863_v61 = vadd.f32 %v7822_v26, %v7673_v60  ;;  %v7675_v17 = vpop.f32.mrf.mxu0  ;;  %v8604_v60 = vsel %vm15794_vm2, %v8601_v20, %v8603_v5  ;;  %v8805_v26 = vshll.u32 %v15133_v6, 16  ;;  %vm15815_vm2 = vmmov %vm15811_vm3 }
 0x4f5   : > { %v8053_v11 = vpop.f32.mrf.mxu2  ;;  %v7676_v59 = vadd.f32 %v7675_v17, %v14877_v41  ;;  %v8793_v41 = vshrl.u32 %v15117_v18, 16 }
 0x4f6   : > { %v8094_v24 = vadd.f32 %v8053_v11, %v7863_v61 }
 0x4f7   : > { %v8291_v43 = vpop.f32.mrf.mxu3  ;;  %8456 = vmatmul.bf16.gmra.mxu0 %v15787_v40  ;;  %v8795_v28 = vrot.slane %v8793_v41, 2  ;;  %v15149_v41 = vld [vmem:[#allocation2 + $0x80] sm:$0xff] }
 0x4f8   : > { %v15111_v12 = vadd.f32 %v8291_v43, %v8094_v24  ;;  %v8807_v43 = vrot.slane %v8805_v26, 3 }
 0x4f9   : > { %v8799_v44 = vor.u32 %v8798_v53, %v8795_v28 }
 0x4fa   : > { %8925 = vmatmul.bf16.gmra.mxu2 %v8791_v23 }
 0x4fb   : > { %v7825_v48 = vpop.f32.mrf.mxu1 }
 0x4fc   : > { %9093 = vmatmul.bf16.gmra.mxu3 %v9008_v51  ;;  %v7864_v30 = vadd.f32 %v7825_v48, %v7676_v59  ;;  %v7677_v32 = vpop.f32.mrf.mxu0  ;;  %v9011_v48 = vrot.slane %v15133_v6, 3 }
 0x4fd   : > { %v8056_v31 = vpop.f32.mrf.mxu2  ;;  %v7678_v33 = vadd.f32 %v7677_v32, %v14886_v14  ;;  %v8800_v14 = vsel %vm15792_vm8, %v8790_v13, %v8799_v44  ;;  %v8605_v32 = vrot.slane %v15133_v6, 2  ;;  %vm15812_vm8 = vmmov %vm15809_vm1 }
 0x4fe   : > { %8687 = vmatmul.bf16.gmra.mxu1 %v8602_v19  ;;  %v8095_v39 = vadd.f32 %v8056_v31, %v7864_v30  ;;  %v15795_v31 = vld [vmem:[#allocation13_spill] sm:$0xff]  ;;  %v9012_v9 = vsel %vm15797_vm4, %v9009_v55, %v9011_v48  ;;  %vm15817_vm4 = vmmov %vm15810_vm0 }
 0x4ff   : > { %v8294_v29 = vpop.f32.mrf.mxu3 }
 0x500   : > { %v15123_v21 = vadd.f32 %v8294_v29, %v8095_v39 }
 0x503   : > { %v7827_v57 = vpop.f32.mrf.mxu1 }
 0x504   : > { %v7865_v38 = vadd.f32 %v7827_v57, %v7678_v33  ;;  %v7680_v8 = vpop.f32.mrf.mxu0  ;;  %v8606_v33 = vsel %vm15798_vm14, %v8603_v5, %v8605_v32  ;;  %v8814_v57 = vshll.u32 %v15149_v41, 16  ;;  %vm15818_vm14 = vmmov %vm15809_vm1 }
 0x505   : > { %v8058_v46 = vpop.f32.mrf.mxu2  ;;  %v7681_v37 = vadd.f32 %v7680_v8, %v14910_v52  ;;  %v8802_v52 = vshrl.u32 %v15133_v6, 16 }
 0x506   : > { %v8096_v27 = vadd.f32 %v8058_v46, %v7865_v38 }
 0x507   : > { %v8296_v10 = vpop.f32.mrf.mxu3  ;;  %8461 = vmatmul.bf16.gmra.mxu0 %v15791_v35  ;;  %v8804_v24 = vrot.slane %v8802_v52, 2  ;;  %v15165_v52 = vld [vmem:[#allocation2 + $0x88] sm:$0xff] }
 0x508   : > { %v15127_v63 = vadd.f32 %v8296_v10, %v8096_v27  ;;  %v8816_v10 = vrot.slane %v8814_v57, 3 }
 0x509   : > { %v8808_v20 = vor.u32 %v8807_v43, %v8804_v24 }
 0x50a   : > { %8930 = vmatmul.bf16.gmra.mxu2 %v8800_v14 }
 0x50b   : > { %v7830_v1 = vpop.f32.mrf.mxu1 }
 0x50c   : > { %9098 = vmatmul.bf16.gmra.mxu3 %v9010_v36  ;;  %v7866_v47 = vadd.f32 %v7830_v1, %v7681_v37  ;;  %v7682_v49 = vpop.f32.mrf.mxu0  ;;  %v9013_v1 = vrot.slane %v15149_v41, 3 }
 0x50d   : > { %v8061_v58 = vpop.f32.mrf.mxu2  ;;  %v7683_v13 = vadd.f32 %v7682_v49, %v14919_v4  ;;  %v8809_v4 = vsel %vm15796_vm7, %v8799_v44, %v8808_v20  ;;  %v8607_v49 = vrot.slane %v15149_v41, 2  ;;  %vm15816_vm7 = vmmov %vm15809_vm1 }
 0x50e   : > { %8692 = vmatmul.bf16.gmra.mxu1 %v8604_v60  ;;  %v8097_v61 = vadd.f32 %v8061_v58, %v7866_v47  ;;  %v15799_v58 = vld [vmem:[#allocation18_spill] sm:$0xff]  ;;  %v9014_v26 = vsel %vm15801_vm15, %v9011_v48, %v9013_v1  ;;  %vm15820_vm15 = vmmov %vm15809_vm1 }
 0x50f   : > { %v8299_v11 = vpop.f32.mrf.mxu3 }
 0x510   : > { %v15139_v17 = vadd.f32 %v8299_v11, %v8097_v61 }
 0x513   : > { %v7832_v42 = vpop.f32.mrf.mxu1 }
 0x514   : > { %v7867_v59 = vadd.f32 %v7832_v42, %v7683_v13  ;;  %v7685_v23 = vpop.f32.mrf.mxu0  ;;  %v8608_v13 = vsel %vm15802_vm6, %v8605_v32, %v8607_v49  ;;  %v8823_v42 = vshll.u32 %v15165_v52, 16  ;;  %vm15821_vm6 = vmmov %vm15809_vm1 }
 0x515   : > { %v8063_v40 = vpop.f32.mrf.mxu2  ;;  %v7686_v19 = vadd.f32 %v7685_v23, %v14941_v7  ;;  %v8811_v7 = vshrl.u32 %v15149_v41, 16 }
 0x516   : > { %v8098_v18 = vadd.f32 %v8063_v40, %v7867_v59 }
 0x517   : > { %v8301_v51 = vpop.f32.mrf.mxu3  ;;  %8466 = vmatmul.bf16.gmra.mxu0 %v15795_v31  ;;  %v8813_v27 = vrot.slane %v8811_v7, 2  ;;  %v15181_v7 = vld [vmem:[#allocation2 + $0x90] sm:$0xff] }
 0x518   : > { %v15143_v30 = vadd.f32 %v8301_v51, %v8098_v18  ;;  %v8825_v51 = vrot.slane %v8823_v42, 3 }
 0x519   : > { %v8817_v5 = vor.u32 %v8816_v10, %v8813_v27 }
 0x51a   : > { %8935 = vmatmul.bf16.gmra.mxu2 %v8809_v4 }
 0x51b   : > { %v7835_v39 = vpop.f32.mrf.mxu1 }
 0x51c   : > { %9103 = vmatmul.bf16.gmra.mxu3 %v9012_v9  ;;  %v7868_v29 = vadd.f32 %v7835_v39, %v7686_v19  ;;  %v7687_v53 = vpop.f32.mrf.mxu0  ;;  %v9015_v39 = vrot.slane %v15165_v52, 3 }
 0x51d   : > { %v8066_v28 = vpop.f32.mrf.mxu2  ;;  %v7688_v44 = vadd.f32 %v7687_v53, %v14950_v34  ;;  %v8818_v34 = vsel %vm15800_vm10, %v8808_v20, %v8817_v5  ;;  %v8609_v53 = vrot.slane %v15165_v52, 2  ;;  %vm15819_vm10 = vmmov %vm15809_vm1 }
 0x51e   : > { %8697 = vmatmul.bf16.gmra.mxu1 %v8606_v33  ;;  %v8099_v38 = vadd.f32 %v8066_v28, %v7868_v29  ;;  %v15803_v28 = vld [vmem:[#allocation19_spill] sm:$0xff]  ;;  %v9016_v57 = vsel %vm15805_vm9, %v9013_v1, %v9015_v39  ;;  %vm15823_vm9 = vmmov %vm15809_vm1 }
 0x51f   : > { %v8304_v46 = vpop.f32.mrf.mxu3 }
 0x520   : > { %v15155_v8 = vadd.f32 %v8304_v46, %v8099_v38 }
 0x523   : > { %v7837_v55 = vpop.f32.mrf.mxu1 }
 0x524   : > { %v7869_v37 = vadd.f32 %v7837_v55, %v7688_v44  ;;  %v7690_v14 = vpop.f32.mrf.mxu0  ;;  %v8610_v44 = vsel %vm15806_vm5, %v8607_v49, %v8609_v53  ;;  %v8832_v55 = vshll.u32 %v15181_v7, 16  ;;  %vm15824_vm5 = vmmov %vm15809_vm1 }
 0x525   : > { %v8068_v35 = vpop.f32.mrf.mxu2  ;;  %v7691_v60 = vadd.f32 %v7690_v14, %v14969_v3  ;;  %v8820_v3 = vshrl.u32 %v15165_v52, 16 }
 0x526   : > { %v8100_v6 = vadd.f32 %v8068_v35, %v7869_v37 }
 0x527   : > { %v8306_v36 = vpop.f32.mrf.mxu3  ;;  %8471 = vmatmul.bf16.gmra.mxu0 %v15799_v58  ;;  %v8822_v18 = vrot.slane %v8820_v3, 2  ;;  %v15197_v3 = vld [vmem:[#allocation2 + $0x98] sm:$0xff] }
 0x528   : > { %v15159_v47 = vadd.f32 %v8306_v36, %v8100_v6  ;;  %v8834_v36 = vrot.slane %v8832_v55, 3 }
 0x529   : > { %v8826_v32 = vor.u32 %v8825_v51, %v8822_v18 }
 0x52a   : > { %8940 = vmatmul.bf16.gmra.mxu2 %v8818_v34 }
 0x52b   : > { %v7840_v61 = vpop.f32.mrf.mxu1 }
 0x52c   : > { %9108 = vmatmul.bf16.gmra.mxu3 %v9014_v26  ;;  %v7870_v11 = vadd.f32 %v7840_v61, %v7691_v60  ;;  %v7692_v43 = vpop.f32.mrf.mxu0  ;;  %v9017_v61 = vrot.slane %v15181_v7, 3 }
 0x52d   : > { %v8071_v24 = vpop.f32.mrf.mxu2  ;;  %v7693_v20 = vadd.f32 %v7692_v43, %v14978_v56  ;;  %v8827_v56 = vsel %vm15804_vm13, %v8817_v5, %v8826_v32  ;;  %v8611_v43 = vrot.slane %v15181_v7, 2  ;;  %vm15822_vm13 = vmmov %vm15809_vm1 }
 0x52e   : > { %8702 = vmatmul.bf16.gmra.mxu1 %v8608_v13  ;;  %v8101_v59 = vadd.f32 %v8071_v24, %v7870_v11  ;;  %v15807_v24 = vld [vmem:[#allocation20_spill] sm:$0xff]  ;;  %v9018_v42 = vsel %vm15809_vm1, %v9015_v39, %v9017_v61  ;;  %v8746_v39 = vld [vmem:[#allocation2 + $0xa0] sm:$0x7] }
 0x52f   : > { %v8309_v40 = vpop.f32.mrf.mxu3 }
 0x530   : > { %v15171_v23 = vadd.f32 %v8309_v40, %v8101_v59 }
 0x533   : > { %v7842_v48 = vpop.f32.mrf.mxu1 }
 0x534   : > { %v7871_v19 = vadd.f32 %v7842_v48, %v7693_v20  ;;  %v7695_v4 = vpop.f32.mrf.mxu0  ;;  %v8612_v20 = vsel %vm15810_vm0, %v8609_v53, %v8611_v43  ;;  %v8841_v48 = vshll.u32 %v15197_v3, 16  ;;  %vm15826_vm0 = vmmov %vm15809_vm1 }
 0x535   : > { %v8073_v31 = vpop.f32.mrf.mxu2  ;;  %v7696_v33 = vadd.f32 %v7695_v4, %v14999_v45  ;;  %v8829_v45 = vshrl.u32 %v15181_v7, 16 }
 0x536   : > { %v8102_v41 = vadd.f32 %v8073_v31, %v7871_v19 }
 0x537   : > { %v8311_v9 = vpop.f32.mrf.mxu3  ;;  %8476 = vmatmul.bf16.gmra.mxu0 %v15803_v28  ;;  %v8831_v6 = vrot.slane %v8829_v45, 2 }
 0x538   : > { %v15175_v29 = vadd.f32 %v8311_v9, %v8102_v41  ;;  %v8843_v9 = vrot.slane %v8841_v48, 3 }
 0x539   : > { %v8835_v49 = vor.u32 %v8834_v36, %v8831_v6 }
 0x53a   : > { %8945 = vmatmul.bf16.gmra.mxu2 %v8827_v56 }
 0x53b   : > { %v7845_v38 = vpop.f32.mrf.mxu1 }
 0x53c   : > { %9113 = vmatmul.bf16.gmra.mxu3 %v9016_v57  ;;  %v7872_v46 = vadd.f32 %v7845_v38, %v7696_v33  ;;  %v7697_v10 = vpop.f32.mrf.mxu0  ;;  %v8764_v57 = vunpack.c.l.b16 %v8746_v39 }
 0x53d   : > { %v8076_v27 = vpop.f32.mrf.mxu2  ;;  %v7698_v5 = vadd.f32 %v7697_v10, %v15008_v2  ;;  %v8836_v2 = vsel %vm15808_vm11, %v8826_v32, %v8835_v49  ;;  %vm15825_vm11 = vmmov %vm15809_vm1 }
 0x53e   : > { %8707 = vmatmul.bf16.gmra.mxu1 %v8610_v44  ;;  %v8103_v37 = vadd.f32 %v8076_v27, %v7872_v46  ;;  %v9019_v44 = vrot.slane %v15197_v3, 3  ;;  %v8765_v55 = vpack.c.b16 %v8764_v57, %v8764_v57 }
 0x53f   : > { %v8314_v35 = vpop.f32.mrf.mxu3 }
 0x540   : > { %v15187_v14 = vadd.f32 %v8314_v35, %v8103_v37  ;;  %v9020_v37 = vsel %vm15812_vm8, %v9017_v61, %v9019_v44  ;;  %vm15828_vm8 = vmmov %vm15826_vm0 }
 0x543   : > { %v7847_v1 = vpop.f32.mrf.mxu1 }
 0x544   : > { %v7873_v60 = vadd.f32 %v7847_v1, %v7698_v5  ;;  %v7700_v34 = vpop.f32.mrf.mxu0 }
 0x545   : > { %v8078_v58 = vpop.f32.mrf.mxu2  ;;  %v7701_v13 = vadd.f32 %v7700_v34, %v15032_v50  ;;  %v8838_v50 = vshrl.u32 %v15197_v3, 16  ;;  %v8533_v34 = vld [vmem:[#allocation2 + $0xa0] sm:$0x3] }
 0x546   : > { %v8104_v52 = vadd.f32 %v8078_v58, %v7873_v60  ;;  %v8847_v60 = vshrl.u32 %v8765_v55, 16  ;;  %v8850_v58 = vshll.u32 %v8765_v55, 16 }
 0x547   : > { %v8316_v26 = vpop.f32.mrf.mxu3  ;;  %8481 = vmatmul.bf16.gmra.mxu0 %v15807_v24  ;;  %v8840_v41 = vrot.slane %v8838_v50, 2  ;;  %v7276_v50 = vld [vmem:[%s12069_s16 + $0x54] sm:$0xf] }
 0x548   : > { %v15191_v11 = vadd.f32 %v8316_v26, %v8104_v52  ;;  %v8587_v26 = vunpack.c.l.b16 %v8533_v34  ;;  %v8849_v61 = vrot.slane %v8847_v60, 2 }
 0x549   : > { %v8844_v7 = vor.u32 %v8843_v9, %v8840_v41  ;;  %v7295_v9 = vunpack.c.l.bf16 %v7276_v50 }
 0x54a   : > { %8950 = vmatmul.bf16.gmra.mxu2 %v8836_v2 }
 0x54b   : > { %v7850_v59 = vpop.f32.mrf.mxu1  ;;  %v8845_v45 = vsel %vm15811_vm3, %v8835_v49, %v8844_v7  ;;  %vm15827_vm3 = vmmov %vm15826_vm0 }
 0x54c   : > { %9118 = vmatmul.bf16.gmra.mxu3 %v9018_v42  ;;  %v7874_v40 = vadd.f32 %v7850_v59, %v7701_v13  ;;  %v7702_v51 = vpop.f32.mrf.mxu0  ;;  %v8852_v13 = vrot.slane %v8850_v58, 3  ;;  %v8597_v42 = vpack.c.b16 %v8587_v26, %v8587_v26 }
 0x54d   : > { %v8081_v18 = vpop.f32.mrf.mxu2  ;;  %v7703_v32 = vadd.f32 %v7702_v51, %v15041_v0  ;;  %v8613_v0 = vrot.slane %v15197_v3, 2  ;;  %v7275_v51 = vld [vmem:[%s12069_s16 + $0x50] sm:$0xe] }
 0x54e   : > { %8712 = vmatmul.bf16.gmra.mxu1 %v8612_v20  ;;  %v8105_v19 = vadd.f32 %v8081_v18, %v7874_v40  ;;  %v8853_v59 = vor.u32 %v8852_v13, %v8849_v61  ;;  %v9021_v18 = vrot.slane %v8765_v55, 3  ;;  %v7294_v41 = vunpack.c.l.bf16 %v7275_v51  ;;  %v11731_v51 = vld [vmem:[%s12069_s16 + $0x60] sm:$0xff]  }
 0x54f   : > { %v8319_v31 = vpop.f32.mrf.mxu3  ;;  %v8614_v6 = vsel %vm15813_vm12, %v8611_v43, %v8613_v0  ;;  %vm15829_vm12 = vmmov %vm15826_vm0 }
 0x550   : > { %v15203_v4 = vadd.f32 %v8319_v31, %v8105_v19  ;;  %v15814_v31 = vld [vmem:[#allocation14_spill] sm:$0xff]  ;;  %v9022_v39 = vsel %vm15816_vm7, %v9019_v44, %v9021_v18  ;;  %v9189_v57 = vrot.slane %v7294_v41, 3  ;;  %vm15831_vm7 = vmmov %vm15826_vm0 }
 0x553   : > { %v7852_v33 = vpop.f32.mrf.mxu1 }
 0x554   : > { %v7875_v28 = vadd.f32 %v7852_v33, %v7703_v32  ;;  %v7705_v53 = vpop.f32.mrf.mxu0  ;;  %v8854_v32 = vsel %vm15815_vm2, %v8844_v7, %v8853_v59  ;;  %vm15830_vm2 = vmmov %vm15826_vm0 }
 0x555   : > { %v8083_v56 = vpop.f32.mrf.mxu2  ;;  %v7706_v10 = vadd.f32 %v7705_v53, %v15064_v16 }
 0x556   : > { %v8106_v38 = vadd.f32 %v8083_v56, %v7875_v28 }
 0x557   : > { %v8321_v46 = vpop.f32.mrf.mxu3  ;;  %8486 = vmatmul.bf16.gmra.mxu0 %v14793_v54 }
 0x558   : > { %v15207_v27 = vadd.f32 %v8321_v46, %v8106_v38  ;;  %v9190_v38 = vrot.slane %v7295_v9, 3 }
 0x55a   : > { %8955 = vmatmul.bf16.gmra.mxu2 %v8845_v45  ;;  %v11730_v45 = vld [vmem:[%s12069_s16 + $0x58] sm:$0xff]  }
 0x55b   : > { %v7855_v35 = vpop.f32.mrf.mxu1  ;;  %v11678_v44 = vunpack.c.l.bf16 %v11730_v45  ;;  %v11679_v61 = vunpack.c.h.bf16 %v11730_v45 }
 0x55c   : > { %9123 = vmatmul.bf16.gmra.mxu3 %v9020_v37  ;;  %v7876_v5 = vadd.f32 %v7855_v35, %v7706_v10  ;;  %v7707_v1 = vpop.f32.mrf.mxu0  ;;  %v9191_v37 = vsel %vm15818_vm14, %v9189_v57, %v9190_v38  ;;  %v15233_v35 = vld [vmem:[%s15354_s4] ss:$0 sm:$0xff]  ;;  %vm15833_vm14 = vmmov %vm15826_vm0 }
 0x55d   : > { %v8086_v36 = vpop.f32.mrf.mxu2  ;;  %v7708_v52 = vadd.f32 %v7707_v1, %v15073_v15  ;;  %v8615_v15 = vrot.slane %v8597_v42, 2  ;;  %v9192_v60 = vrot.slane %v11678_v44, 3  ;;  %v9194_v42 = vrot.slane %v11679_v61, 3 }
 0x55e   : > { %8717 = vmatmul.bf16.gmra.mxu1 %v8614_v6  ;;  %v8107_v16 = vadd.f32 %v8086_v36, %v7876_v5 }
 0x55f   : > { %v8324_v54 = vpop.f32.mrf.mxu3  ;;  %v8616_v56 = vsel %vm15817_vm4, %v8613_v0, %v8615_v15  ;;  %v9193_v26 = vsel %vm15819_vm10, %v9190_v38, %v9192_v60  ;;  %vm15832_vm4 = vmmov %vm15826_vm0 }
 0x560   : > { %v15215_v49 = vadd.f32 %v8324_v54, %v8107_v16  ;;  %vm15834_vm10 = vmmov %vm15826_vm0 }
 0x563   : > { %v7857_v24 = vpop.f32.mrf.mxu1 }
 0x564   : > { %v7877_v2 = vadd.f32 %v7857_v24, %v7708_v52  ;;  %v8452_v3 = vpop.f32.mrf.mxu0 }
 0x565   : > { %v8088_v43 = vpop.f32.mrf.mxu2  ;;  %v8497_v19 = vadd.f32 %v8452_v3, %v15091_v25 }
 0x566   : > { %v8108_v40 = vadd.f32 %v8088_v43, %v7877_v2 }
 0x567   : > { %v8326_v20 = vpop.f32.mrf.mxu3  ;;  %8491 = vmatmul.bf16.gmra.mxu0 %v15814_v31  ;;  %v11682_v31 = vunpack.c.l.bf16 %v11731_v51 }
 0x568   : > { %v15220_v48 = vadd.f32 %v8326_v20, %v8108_v40 }
 0x56a   : > { %8960 = vmatmul.bf16.gmra.mxu2 %v8854_v32 }
 0x56b   : > { %v8683_v33 = vpop.f32.mrf.mxu1 }
 0x56c   : > { %9128 = vmatmul.bf16.gmra.mxu3 %v9022_v39  ;;  %v8728_v28 = vadd.f32 %v8683_v33, %v8497_v19  ;;  %v8454_v25 = vpop.f32.mrf.mxu0  ;;  %v9195_v19 = vsel %vm15820_vm15, %v9192_v60, %v9194_v42  ;;  %v9196_v33 = vrot.slane %v11682_v31, 3 }
 0x56d   : > { %v8921_v53 = vpop.f32.mrf.mxu2  ;;  %v8498_v55 = vadd.f32 %v8454_v25, %v15095_v62 }
 0x56e   : > { %8722 = vmatmul.bf16.gmra.mxu1 %v8616_v56  ;;  %v8966_v46 = vadd.f32 %v8921_v53, %v8728_v28  ;;  %v9197_v25 = vsel %vm15821_vm6, %v9194_v42, %v9196_v33 }
 0x56f   : > { %v9089_v10 = vpop.f32.mrf.mxu3 }
 0x570   : > { %v9134_v7 = vadd.f32 %v9089_v10, %v8966_v46  ;;  %v11683_v46 = vunpack.c.h.bf16 %v11731_v51 }
 0x572   : > { %v9152_v0 = vadd.f32 %v15233_v35, %v9134_v7  ;;  %v9198_v44 = vrot.slane %v11683_v46, 3 }
 0x573   : > { %v8685_v5 = vpop.f32.mrf.mxu1 }
 0x574   : > { %v9244_v6 = vadd.f32 %v9191_v37, %v9152_v0  ;;  %v8729_v36 = vadd.f32 %v8685_v5, %v8498_v55  ;;  %v8457_v58 = vpop.f32.mrf.mxu0 }
 0x575   : > { %v8923_v1 = vpop.f32.mrf.mxu2  ;;  %v8499_v52 = vadd.f32 %v8457_v58, %v15107_v22  ;;  %v9199_v58 = vsel %vm15822_vm13, %v9196_v33, %v9198_v44 }
 0x576   : > { %v9262_v16 = vmax.f32 %v9244_v6, 0.0  ;;  %v8967_v54 = vadd.f32 %v8923_v1, %v8729_v36  ;;  %v11732_v1 = vld [vmem:[%s12069_s16 + $0x68] sm:$0xff]  }
 0x577   : > { %v9091_v34 = vpop.f32.mrf.mxu3 }
 0x578   : > { %11220 = vst [vmem:[%s14823_s12 + $0x80] sm:$0xff] %v9262_v16  ;;  %v9135_v62 = vadd.f32 %v9091_v34, %v8967_v54  ;;  %v11686_v16 = vunpack.c.l.bf16 %v11732_v1 }
 0x57a   : > { %v9153_v13 = vadd.f32 %v15233_v35, %v9135_v62  ;;  %v9200_v61 = vrot.slane %v11686_v16, 3 }
 0x57b   : > { %v8688_v24 = vpop.f32.mrf.mxu1 }
 0x57c   : > { %v9245_v2 = vadd.f32 %v9193_v26, %v9153_v13  ;;  %v8730_v43 = vadd.f32 %v8688_v24, %v8499_v52  ;;  %v8459_v59 = vpop.f32.mrf.mxu0  ;;  %v9201_v42 = vsel %vm15823_vm9, %v9198_v44, %v9200_v61 }
 0x57d   : > { %v8926_v3 = vpop.f32.mrf.mxu2  ;;  %v8500_v22 = vadd.f32 %v8459_v59, %v15111_v12  ;;  %v11687_v59 = vunpack.c.h.bf16 %v11732_v1 }
 0x57e   : > { %v9263_v40 = vmax.f32 %v9245_v2, 0.0  ;;  %v8968_v20 = vadd.f32 %v8926_v3, %v8730_v43 }
 0x57f   : > { %v9094_v18 = vpop.f32.mrf.mxu3 }
 0x580   : > { %11221 = vst [vmem:[%s14823_s12 + $0x88] sm:$0xff] %v9263_v40  ;;  %v9136_v50 = vadd.f32 %v9094_v18, %v8968_v20 }
 0x582   : > { %v9154_v15 = vadd.f32 %v15233_v35, %v9136_v50 }
 0x583   : > { %v8690_v32 = vpop.f32.mrf.mxu1 }
 0x584   : > { %v9246_v41 = vadd.f32 %v9195_v19, %v9154_v15  ;;  %v8731_v9 = vadd.f32 %v8690_v32, %v8500_v22  ;;  %v8462_v28 = vpop.f32.mrf.mxu0  ;;  %v9202_v22 = vrot.slane %v11687_v59, 3 }
 0x585   : > { %v8928_v39 = vpop.f32.mrf.mxu2  ;;  %v8501_v12 = vadd.f32 %v8462_v28, %v15123_v21 }
 0x586   : > { %v9264_v56 = vmax.f32 %v9246_v41, 0.0  ;;  %v8969_v53 = vadd.f32 %v8928_v39, %v8731_v9  ;;  %v11733_v41 = vld [vmem:[%s12069_s16 + $0x70] sm:$0xff]   ;;  %v9203_v39 = vsel %vm15824_vm5, %v9200_v61, %v9202_v22 }
 0x587   : > { %v9096_v57 = vpop.f32.mrf.mxu3  ;;  %v11690_v33 = vunpack.c.l.bf16 %v11733_v41 }
 0x588   : > { %11222 = vst [vmem:[%s14823_s12 + $0x8e] sm:$0xfc] %v9264_v56  ;;  %v9137_v38 = vadd.f32 %v9096_v57, %v8969_v53 }
 0x58a   : > { %v9155_v10 = vadd.f32 %v15233_v35, %v9137_v38 }
 0x58b   : > { %v8693_v45 = vpop.f32.mrf.mxu1 }
 0x58c   : > { %v9247_v7 = vadd.f32 %v9197_v25, %v9155_v10  ;;  %v8732_v55 = vadd.f32 %v8693_v45, %v8501_v12  ;;  %v8464_v0 = vpop.f32.mrf.mxu0  ;;  %v9204_v12 = vrot.slane %v11690_v33, 3 }
 0x58d   : > { %v8931_v37 = vpop.f32.mrf.mxu2  ;;  %v8502_v21 = vadd.f32 %v8464_v0, %v15127_v63 }
 0x58e   : > { %v9265_v5 = vmax.f32 %v9247_v7, 0.0  ;;  %v8970_v6 = vadd.f32 %v8931_v37, %v8732_v55  ;;  %v9205_v55 = vsel %vm15825_vm11, %v9202_v22, %v9204_v12  ;;  %v11691_v37 = vunpack.c.h.bf16 %v11733_v41 }
 0x58f   : > { %v9099_v36 = vpop.f32.mrf.mxu3 }
 0x590   : > { %11223 = vst [vmem:[%s14823_s12 + $0x96] sm:$0xff] %v9265_v5  ;;  %v9138_v60 = vadd.f32 %v9099_v36, %v8970_v6  ;;  %v9206_v1 = vrot.slane %v11691_v37, 3 }
 0x592   : > { %v9156_v54 = vadd.f32 %v15233_v35, %v9138_v60 }
 0x593   : > { %v8695_v34 = vpop.f32.mrf.mxu1 }
 0x594   : > { %v9248_v62 = vadd.f32 %v9199_v58, %v9156_v54  ;;  %v8733_v52 = vadd.f32 %v8695_v34, %v8502_v21  ;;  %v8467_v13 = vpop.f32.mrf.mxu0  ;;  %v11734_v54 = vld [vmem:[%s12069_s16 + $0x78] sm:$0xff]  }
 0x595   : > { %v8933_v26 = vpop.f32.mrf.mxu2  ;;  %v8503_v63 = vadd.f32 %v8467_v13, %v15139_v17 }
 0x596   : > { %v9266_v24 = vmax.f32 %v9248_v62, 0.0  ;;  %v8971_v2 = vadd.f32 %v8933_v26, %v8733_v52  ;;  %v9207_v62 = vsel %vm15809_vm1, %v9204_v12, %v9206_v1  ;;  %v11694_v52 = vunpack.c.l.bf16 %v11734_v54 }
 0x597   : > { %v9101_v43 = vpop.f32.mrf.mxu3 }
 0x598   : > { %11224 = vst [vmem:[%s14823_s12 + $0x9e] sm:$0x3] %v9266_v24  ;;  %v9139_v3 = vadd.f32 %v9101_v43, %v8971_v2  ;;  %v9208_v43 = vrot.slane %v11694_v52, 3 }
 0x599   : > { %11225 = vst [vmem:[%s14823_s12 + $0x9c] sm:$0xf0] %v9266_v24 }
 0x59a   : > { %v9157_v40 = vadd.f32 %v15233_v35, %v9139_v3 }
 0x59b   : > { %v8698_v20 = vpop.f32.mrf.mxu1 }
 0x59c   : > { %v9249_v18 = vadd.f32 %v9201_v42, %v9157_v40  ;;  %v8734_v51 = vadd.f32 %v8698_v20, %v8503_v63  ;;  %v8469_v19 = vpop.f32.mrf.mxu0  ;;  %v9209_v20 = vsel %vm15826_vm0, %v9206_v1, %v9208_v43 }
 0x59d   : > { %v8936_v50 = vpop.f32.mrf.mxu2  ;;  %v8504_v17 = vadd.f32 %v8469_v19, %v15143_v30 }
 0x59e   : > { %v9267_v31 = vmax.f32 %v9249_v18, 0.0  ;;  %v8972_v15 = vadd.f32 %v8936_v50, %v8734_v51  ;;  %v11695_v18 = vunpack.c.h.bf16 %v11734_v54 }
 0x59f   : > { %v9104_v32 = vpop.f32.mrf.mxu3 }
 0x5a0   : > { %11226 = vst [vmem:[%s14823_s12 + $0xa4] sm:$0xff] %v9267_v31  ;;  %v9140_v9 = vadd.f32 %v9104_v32, %v8972_v15  ;;  %v9210_v15 = vrot.slane %v11695_v18, 3 }
 0x5a2   : > { %v9158_v28 = vadd.f32 %v15233_v35, %v9140_v9 }
 0x5a3   : > { %v8700_v56 = vpop.f32.mrf.mxu1 }
 0x5a4   : > { %v9250_v53 = vadd.f32 %v9203_v39, %v9158_v28  ;;  %v8735_v57 = vadd.f32 %v8700_v56, %v8504_v17  ;;  %v8472_v25 = vpop.f32.mrf.mxu0  ;;  %v11735_v39 = vld [vmem:[%s12069_s16 + $0x80] sm:$0xff]   ;;  %v9211_v28 = vsel %vm15827_vm3, %v9208_v43, %v9210_v15 }
 0x5a5   : > { %v8938_v38 = vpop.f32.mrf.mxu2  ;;  %v8505_v30 = vadd.f32 %v8472_v25, %v15155_v8  ;;  %v11698_v56 = vunpack.c.l.bf16 %v11735_v39 }
 0x5a6   : > { %v9268_v46 = vmax.f32 %v9250_v53, 0.0  ;;  %v8973_v10 = vadd.f32 %v8938_v38, %v8735_v57 }
 0x5a7   : > { %v9106_v45 = vpop.f32.mrf.mxu3 }
 0x5a8   : > { %11227 = vst [vmem:[%s14823_s12 + $0xac] sm:$0xf] %v9268_v46  ;;  %v9141_v7 = vadd.f32 %v9106_v45, %v8973_v10 }
 0x5a9   : > { %11228 = vst [vmem:[%s14823_s12 + $0xaa] sm:$0xc0] %v9268_v46  ;;  %v9212_v46 = vrot.slane %v11698_v56, 3 }
 0x5aa   : > { %v9159_v44 = vadd.f32 %v15233_v35, %v9141_v7 }
 0x5ab   : > { %v8703_v0 = vpop.f32.mrf.mxu1  ;;  %v9213_v37 = vsel %vm15828_vm8, %v9210_v15, %v9212_v46 }
 0x5ac   : > { %v9251_v5 = vadd.f32 %v9205_v55, %v9159_v44  ;;  %v8736_v6 = vadd.f32 %v8703_v0, %v8505_v30  ;;  %v8474_v60 = vpop.f32.mrf.mxu0  ;;  %v11699_v44 = vunpack.c.h.bf16 %v11735_v39 }
 0x5ad   : > { %v8941_v36 = vpop.f32.mrf.mxu2  ;;  %v8506_v8 = vadd.f32 %v8474_v60, %v15159_v47 }
 0x5ae   : > { %v9269_v21 = vmax.f32 %v9251_v5, 0.0  ;;  %v8974_v58 = vadd.f32 %v8941_v36, %v8736_v6  ;;  %v9214_v60 = vrot.slane %v11699_v44, 3 }
 0x5af   : > { %v9109_v16 = vpop.f32.mrf.mxu3 }
 0x5b0   : > { %11229 = vst [vmem:[%s14823_s12 + $0xb2] sm:$0xff] %v9269_v21  ;;  %v9142_v34 = vadd.f32 %v9109_v16, %v8974_v58 }
 0x5b2   : > { %v9160_v26 = vadd.f32 %v15233_v35, %v9142_v34  ;;  %v11736_v34 = vld [vmem:[%s12069_s16 + $0x88] sm:$0xff]  }
 0x5b3   : > { %v8705_v61 = vpop.f32.mrf.mxu1  ;;  %v11702_v52 = vunpack.c.l.bf16 %v11736_v34 }
 0x5b4   : > { %v9252_v13 = vadd.f32 %v9207_v62, %v9160_v26  ;;  %v8737_v24 = vadd.f32 %v8705_v61, %v8506_v8  ;;  %v8477_v3 = vpop.f32.mrf.mxu0  ;;  %v9215_v62 = vsel %vm15829_vm12, %v9212_v46, %v9214_v60 }
 0x5b5   : > { %v8943_v2 = vpop.f32.mrf.mxu2  ;;  %v8507_v47 = vadd.f32 %v8477_v3, %v15171_v23  ;;  %v9216_v43 = vrot.slane %v11702_v52, 3 }
 0x5b6   : > { %v9270_v63 = vmax.f32 %v9252_v13, 0.0  ;;  %v8975_v42 = vadd.f32 %v8943_v2, %v8737_v24 }
 0x5b7   : > { %v9111_v59 = vpop.f32.mrf.mxu3 }
 0x5b8   : > { %11230 = vst [vmem:[%s14823_s12 + $0xba] sm:$0x3f] %v9270_v63  ;;  %v9143_v40 = vadd.f32 %v9111_v59, %v8975_v42 }
 0x5ba   : > { %v9161_v51 = vadd.f32 %v15233_v35, %v9143_v40 }
 0x5bb   : > { %v8708_v50 = vpop.f32.mrf.mxu1 }
 0x5bc   : > { %v9253_v22 = vadd.f32 %v9209_v20, %v9161_v51  ;;  %v8738_v19 = vadd.f32 %v8708_v50, %v8507_v47  ;;  %v8479_v32 = vpop.f32.mrf.mxu0  ;;  %v9217_v47 = vsel %vm15830_vm2, %v9214_v60, %v9216_v43  ;;  %v11703_v20 = vunpack.c.h.bf16 %v11736_v34 }
 0x5bd   : > { %v8946_v31 = vpop.f32.mrf.mxu2  ;;  %v8508_v23 = vadd.f32 %v8479_v32, %v15175_v29 }
 0x5be   : > { %v9271_v41 = vmax.f32 %v9253_v22, 0.0  ;;  %v8976_v9 = vadd.f32 %v8946_v31, %v8738_v19  ;;  %v9218_v31 = vrot.slane %v11703_v20, 3 }
 0x5bf   : > { %v9114_v17 = vpop.f32.mrf.mxu3 }
 0x5c0   : > { %11231 = vst [vmem:[%s14823_s12 + $0xc0] sm:$0xff] %v9271_v41  ;;  %v9144_v33 = vadd.f32 %v9114_v17, %v8976_v9  ;;  %v11737_v17 = vld [vmem:[%s12069_s16 + $0x90] sm:$0xff]  }
 0x5c2   : > { %v9162_v53 = vadd.f32 %v15233_v35, %v9144_v33  ;;  %v9219_v33 = vsel %vm15831_vm7, %v9216_v43, %v9218_v31 }
 0x5c3   : > { %v8710_v57 = vpop.f32.mrf.mxu1 }
 0x5c4   : > { %v9254_v38 = vadd.f32 %v9211_v28, %v9162_v53  ;;  %v8739_v12 = vadd.f32 %v8710_v57, %v8508_v23  ;;  %v8482_v10 = vpop.f32.mrf.mxu0  ;;  %v11706_v23 = vunpack.c.l.bf16 %v11737_v17 }
 0x5c5   : > { %v8948_v25 = vpop.f32.mrf.mxu2  ;;  %v8509_v29 = vadd.f32 %v8482_v10, %v15187_v14 }
 0x5c6   : > { %v9272_v45 = vmax.f32 %v9254_v38, 0.0  ;;  %v8977_v7 = vadd.f32 %v8948_v25, %v8739_v12  ;;  %v9220_v12 = vrot.slane %v11706_v23, 3 }
 0x5c7   : > { %v9116_v30 = vpop.f32.mrf.mxu3 }
 0x5c8   : > { %11232 = vst [vmem:[%s14823_s12 + $0xc8] sm:$0xff] %v9272_v45  ;;  %v9145_v55 = vadd.f32 %v9116_v30, %v8977_v7  ;;  %v9221_v30 = vsel %vm15832_vm4, %v9218_v31, %v9220_v12 }
 0x5ca   : > { %v9163_v0 = vadd.f32 %v15233_v35, %v9145_v55  ;;  %v11707_v55 = vunpack.c.h.bf16 %v11737_v17 }
 0x5cb   : > { %v8713_v5 = vpop.f32.mrf.mxu1 }
 0x5cc   : > { %v9255_v6 = vadd.f32 %v9213_v37, %v9163_v0  ;;  %v8740_v36 = vadd.f32 %v8713_v5, %v8509_v29  ;;  %v8484_v21 = vpop.f32.mrf.mxu0 }
 0x5cd   : > { %v8951_v1 = vpop.f32.mrf.mxu2  ;;  %v8510_v14 = vadd.f32 %v8484_v21, %v15191_v11 }
 0x5ce   : > { %v9273_v58 = vmax.f32 %v9255_v6, 0.0  ;;  %v8978_v16 = vadd.f32 %v8951_v1, %v8740_v36  ;;  %v9222_v6 = vrot.slane %v11707_v55, 3 }
 0x5cf   : > { %v9119_v54 = vpop.f32.mrf.mxu3 }
 0x5d0   : > { %11233 = vst [vmem:[%s14823_s12 + $0xce] sm:$0xfc] %v9273_v58  ;;  %v9146_v8 = vadd.f32 %v9119_v54, %v8978_v16  ;;  %v7293_v58 = vld [vmem:[%s12069_s16 + $0x98] sm:$0x3]  ;;  %v9223_v54 = vsel %vm15833_vm14, %v9220_v12, %v9222_v6 }
 0x5d1   : > { %v7312_v34 = vunpack.c.l.bf16 %v7293_v58 }
 0x5d2   : > { %v9164_v26 = vadd.f32 %v15233_v35, %v9146_v8 }
 0x5d3   : > { %v8715_v61 = vpop.f32.mrf.mxu1 }
 0x5d4   : > { %v9256_v13 = vadd.f32 %v9215_v62, %v9164_v26  ;;  %v8741_v24 = vadd.f32 %v8715_v61, %v8510_v14  ;;  %v8487_v3 = vpop.f32.mrf.mxu0  ;;  %v9224_v61 = vrot.slane %v7312_v34, 3 }
 0x5d5   : > { %v8953_v2 = vpop.f32.mrf.mxu2  ;;  %v8511_v11 = vadd.f32 %v8487_v3, %v15203_v4 }
 0x5d6   : > { %v9274_v63 = vmax.f32 %v9256_v13, 0.0  ;;  %v8979_v42 = vadd.f32 %v8953_v2, %v8741_v24  ;;  %v9225_v43 = vsel %vm15834_vm10, %v9222_v6, %v9224_v61 }
 0x5d7   : > { %v9121_v59 = vpop.f32.mrf.mxu3 }
 0x5d8   : > { %11234 = vst [vmem:[%s14823_s12 + $0xd6] sm:$0xff] %v9274_v63  ;;  %v9147_v40 = vadd.f32 %v9121_v59, %v8979_v42 }
 0x5da   : > { %v9165_v18 = vadd.f32 %v15233_v35, %v9147_v40 }
 0x5db   : > { %v8718_v51 = vpop.f32.mrf.mxu1 }
 0x5dc   : > { %v9257_v50 = vadd.f32 %v9217_v47, %v9165_v18  ;;  %v8742_v22 = vadd.f32 %v8718_v51, %v8511_v11  ;;  %v8489_v15 = vpop.f32.mrf.mxu0 }
 0x5dd   : > { %v8956_v19 = vpop.f32.mrf.mxu2  ;;  %v8512_v4 = vadd.f32 %v8489_v15, %v15207_v27 }
 0x5de   : > { %v9275_v32 = vmax.f32 %v9257_v50, 0.0  ;;  %v8980_v41 = vadd.f32 %v8956_v19, %v8742_v22 }
 0x5df   : > { %v9124_v9 = vpop.f32.mrf.mxu3 }
 0x5e0   : > { %11235 = vst [vmem:[%s14823_s12 + $0xde] sm:$0x3] %v9275_v32  ;;  %v9148_v39 = vadd.f32 %v9124_v9, %v8980_v41 }
 0x5e1   : > { %11236 = vst [vmem:[%s14823_s12 + $0xdc] sm:$0xf0] %v9275_v32 }
 0x5e2   : > { %v9166_v28 = vadd.f32 %v15233_v35, %v9148_v39 }
 0x5e3   : > { %v8720_v56 = vpop.f32.mrf.mxu1 }
 0x5e4   : > { %v9258_v53 = vadd.f32 %v9219_v33, %v9166_v28  ;;  %v8743_v57 = vadd.f32 %v8720_v56, %v8512_v4  ;;  %v8492_v25 = vpop.f32.mrf.mxu0 }
 0x5e5   : > { %v8958_v38 = vpop.f32.mrf.mxu2  ;;  %v8513_v27 = vadd.f32 %v8492_v25, %v15215_v49 }
 0x5e6   : > { %v9276_v46 = vmax.f32 %v9258_v53, 0.0  ;;  %v8981_v10 = vadd.f32 %v8958_v38, %v8743_v57 }
 0x5e7   : > { %v9126_v45 = vpop.f32.mrf.mxu3 }
 0x5e8   : > { %11237 = vst [vmem:[%s14823_s12 + $0xe4] sm:$0xff] %v9276_v46  ;;  %v9149_v7 = vadd.f32 %v9126_v45, %v8981_v10 }
 0x5ea   : > { %v9167_v29 = vadd.f32 %v15233_v35, %v9149_v7 }
 0x5eb   : > { %v8723_v37 = vpop.f32.mrf.mxu1 }
 0x5ec   : > { %v9259_v44 = vadd.f32 %v9221_v30, %v9167_v29  ;;  %v8744_v0 = vadd.f32 %v8723_v37, %v8513_v27  ;;  %v8494_v36 = vpop.f32.mrf.mxu0 }
 0x5ed   : > { %v8961_v5 = vpop.f32.mrf.mxu2  ;;  %v8514_v49 = vadd.f32 %v8494_v36, %v15220_v48 }
 0x5ee   : > { %v9277_v1 = vmax.f32 %v9259_v44, 0.0  ;;  %v8982_v60 = vadd.f32 %v8961_v5, %v8744_v0 }
 0x5ef   : > { %v9129_v21 = vpop.f32.mrf.mxu3 }
 0x5f0   : > { %11238 = vst [vmem:[%s14823_s12 + $0xec] sm:$0xf] %v9277_v1  ;;  %v9150_v16 = vadd.f32 %v9129_v21, %v8982_v60 }
 0x5f1   : > { %11239 = vst [vmem:[%s14823_s12 + $0xea] sm:$0xc0] %v9277_v1 }
 0x5f2   : > { %v9168_v8 = vadd.f32 %v15233_v35, %v9150_v16 }
 0x5f3   : > { %v8725_v14 = vpop.f32.mrf.mxu1 }
 0x5f4   : > { %v9260_v62 = vadd.f32 %v9223_v54, %v9168_v8  ;;  %v8745_v52 = vadd.f32 %v8725_v14, %v8514_v49 }
 0x5f5   : > { %v8963_v26 = vpop.f32.mrf.mxu2 }
 0x5f6   : > { %v9278_v13 = vmax.f32 %v9260_v62, 0.0  ;;  %v8983_v24 = vadd.f32 %v8963_v26, %v8745_v52 }
 0x5f7   : > { %v9131_v2 = vpop.f32.mrf.mxu3 }
 0x5f8   : > { %11240 = vst [vmem:[%s14823_s12 + $0xf2] sm:$0xff] %v9278_v13  ;;  %v9151_v48 = vadd.f32 %v9131_v2, %v8983_v24 }
 0x5fa   : > { %v9169_v3 = vadd.f32 %v15233_v35, %v9151_v48 }
 0x5fc   : > { %v9261_v63 = vadd.f32 %v9225_v43, %v9169_v3 }
 0x5fe   : > { %v9279_v42 = vmax.f32 %v9261_v63, 0.0 }
 0x600   : > { %11241 = vst [vmem:[%s14823_s12 + $0xfa] sm:$0x3f] %v9279_v42 }
 0x601   : > { %11877 = shalt.err (!%p11874_p8)
}
 0x602   : > { %s11922_s13 = smov 128   ;;  %s11923_s12 = smov 8  }
 0x603   : > { %11747 = dma.vmem_to_hbm [thread:$0]  (%p11992_p5), %s9324_s6, 4096, %s9326_s22, %s9311_s7, %s11922_s13, %s11922_s13, %s11923_s12  }
 0x604 PF: > { %p11759_p9 = scmp.ge.s32.totalorder %s11916_s21, 2  ;;  %s9340_s17 = sand.u32 1, %s11904_s18  }
 0x605   : > { %s9341_s23 = scalar_lea.sflag [#allocation5], %s9340_s17 }
 0x606   : > { %p11754_p10 = pnand %p11759_p9, %p11996_p6 }
 0x608   : > { %p11755_p11 = pneg %p11754_p10 }
 0x60a   : > { %11899 = dma.done.wait (%p11755_p11), %s9341_s23, 4096  }
 0x60b   : > { %11901 = vsyncadd (%p11755_p11), %s9341_s23, 4294963200  ;;  %p16_p12 = scmp.ge.s32.totalorder %s11979_s24, 4   ;;  %s15835_s18 = smov %s11908_s19 }
 0x60c   : > { %s15836_s19 = smov %s11912_s20  ;;  %s15837_s20 = smov %s11990_s27 }
 0x60d   : > { %s15838_s21 = smov %s11979_s24  ;;  %18 = sbr.rel (!%p16_p12) target bundleno = 4 (0x4), region = 111 }
 0x612   :  { %9347 = vsyncpa [#allocation4], 1 }
 0x613   :  { %9349 = vsyncpa [#allocation4 + $0x1], 1 }
 0x614   :  { %9350 = vsyncpa [#allocation5], 1 }
 0x615   :  { %9352 = vsyncpa [#allocation5 + $0x1], 1 }

</bundles_post_ra>
